<compile_context>
chip_gen: v7x
topology: tpu7x:2x2x1
jax: 0.10.0
libtpu: 0.0.40
codegen_flags: <defaults>
</compile_context>

<pallas_src>
import numpy as np
import jax
import jax.numpy as jnp
from jax import lax
from jax.experimental import pallas as pl
from jax.experimental.pallas import tpu as pltpu

_EPS = 1e-5  # torch BatchNorm2d default


def _elu(x):
    # ELU(alpha=1); the min() keeps the discarded exp branch finite.
    return jnp.where(x > 0, x, jnp.exp(jnp.minimum(x, 0.0)) - 1.0)


def _conv_same(x, w_ref, b_ref, masks_ref, *, K, W):
    """'same' convolution on a lane-flattened batch tile.

    x:         (Cin, L) f32 with L = Bt*H*W (images concatenated along lanes)
    w_ref:     (K*K, Cout, Cin) ref, w[ky*K+kx] == torch_weight[:, :, ky, kx]
    b_ref:     (Cout, 1) ref
    masks_ref: (K*K, L) f32 ref of border-validity masks (None when K == 1)
    returns    (Cout, L) f32 pre-activation
    """
    cin, L = x.shape
    cout = b_ref.shape[0]
    p = K // 2
    acc = jnp.zeros((cout, L), jnp.float32)
    for ky in range(K):
        for kx in range(K):
            dy, dx = ky - p, kx - p
            k_idx = ky * K + kx
            s = dy * W + dx
            shifted = x if s == 0 else pltpu.roll(x, shift=(-s) % L, axis=1)
            if not (dy == 0 and dx == 0):
                # zero 'same' padding; also kills any cross-image wraparound
                shifted = shifted * masks_ref[k_idx:k_idx + 1, :]
            w_k = w_ref[k_idx]                                    # (Cout, Cin)
            if cin == 1:
                acc = acc + w_k * shifted                         # VPU broadcast (no degenerate MXU dim)
            else:
                acc = acc + jnp.dot(w_k, shifted, preferred_element_type=jnp.float32)
    return acc + b_ref[...]


def _make_fused_kernel(num_layer, K, W, eps, use_ste):
    """Whole batch resident in VMEM: conv stack + 1x1 conv + BN (+sign) in one pass."""
    n_wb = 2 * (num_layer + 1)

    def kernel(*refs):
        u_ref, masks_ref = refs[0], refs[1]
        wb = refs[2:2 + n_wb]
        o_ref = refs[2 + n_wb]

        x = 2.0 * u_ref[...].astype(jnp.float32) - 1.0            # (Ck, L)
        for l in range(num_layer):
            x = _elu(_conv_same(x, wb[2 * l], wb[2 * l + 1], masks_ref, K=K, W=W))
        x = _elu(_conv_same(x, wb[2 * num_layer], wb[2 * num_layer + 1], None, K=1, W=W))

        # Training-mode BatchNorm2d(affine=False): per-channel biased batch stats.
        mean = jnp.mean(x, axis=1, keepdims=True)                  # (Cn, 1)
        xc = x - mean
        var = jnp.mean(xc * xc, axis=1, keepdims=True)
        y = xc * lax.rsqrt(var + eps)
        if use_ste:
            # MyQuantize.forward == torch.sign (STE affects only the backward pass)
            y = jnp.where(y > 0, 1.0, jnp.where(y < 0, -1.0, 0.0))
        o_ref[...] = y.astype(o_ref.dtype)

    return kernel


def _make_encoder_kernel(num_layer, K, W, total_count, eps):
    """Tiled fallback, stage 1: conv stack + 1x1 conv, single-pass BN statistics."""
    n_wb = 2 * (num_layer + 1)

    def kernel(*refs):
        u_ref, masks_ref = refs[0], refs[1]
        wb = refs[2:2 + n_wb]
        xsys_ref, sum_ref, sq_ref = refs[2 + n_wb:]

        i = pl.program_id(0)
        last = pl.num_programs(0) - 1

        x = 2.0 * u_ref[...].astype(jnp.float32) - 1.0            # (Ck, L)
        for l in range(num_layer):
            x = _elu(_conv_same(x, wb[2 * l], wb[2 * l + 1], masks_ref, K=K, W=W))
        x = _elu(_conv_same(x, wb[2 * num_layer], wb[2 * num_layer + 1], None, K=1, W=W))

        xsys_ref[...] = x                                          # (Cn, L), lane-dense store

        @pl.when(i == 0)
        def _init():
            sum_ref[...] = jnp.zeros_like(sum_ref)
            sq_ref[...] = jnp.zeros_like(sq_ref)

        sum_ref[...] += jnp.sum(x, axis=1, keepdims=True)
        sq_ref[...] += jnp.sum(x * x, axis=1, keepdims=True)

        @pl.when(i == last)
        def _finalize():
            cnt = jnp.float32(total_count)
            mean = sum_ref[...] / cnt
            var = jnp.maximum(sq_ref[...] / cnt - mean * mean, 0.0)  # clamp cancellation
            sum_ref[...] = mean
            sq_ref[...] = lax.rsqrt(var + eps)

    return kernel


def _make_bn_kernel(use_ste):
    """Tiled fallback, stage 2: streaming normalize (+ optional sign)."""
    def kernel(x_ref, mean_ref, rstd_ref, o_ref):
        y = (x_ref[...] - mean_ref[...]) * rstd_ref[...]           # (Cn, L)
        if use_ste:
            y = jnp.where(y > 0, 1.0, jnp.where(y < 0, -1.0, 0.0))
        o_ref[...] = y.astype(o_ref.dtype)
    return kernel


def cce_cnn_encoder2d(u_message, real_cpu, conv_weights, conv_biases,
                      lin_weight, lin_bias, *, use_cce_ste=True,
                      vmem_budget_bytes=6 << 20, _force_batch_tile=None):
    """JAX/Pallas equivalent of CCE_CNN_Encoder2D.forward (training-mode BN).

    u_message:    (N, code_rate_k, H, W)
    conv_weights: list of (Cu, Cin, K, K) arrays (torch OIHW), len == cce_num_layer
    conv_biases:  list of (Cu,) arrays
    lin_weight:   (code_rate_n, Cu, 1, 1);   lin_bias: (code_rate_n,)
    """
    del real_cpu  # not used by the forward pass
    N, Ck, H, W = u_message.shape
    HW = H * W
    num_layer = len(conv_weights)
    K = int(conv_weights[0].shape[-1])
    Cu = int(conv_weights[0].shape[0])
    Cn = int(lin_weight.shape[0])
    assert K % 2 == 1, "same-shape conv requires an odd kernel size"

    # Lane-dense layout: NCHW -> (Ck, N*HW), batch images concatenated on lanes.
    u2 = jnp.transpose(u_message.reshape(N, Ck, HW), (1, 0, 2)).reshape(Ck, N * HW)
    u2 = u2.astype(jnp.float32)

    # Repack weights so w[ky*K+kx] == torch_weight[:, :, ky, kx] with shape (Cout, Cin).
    def pack_w(w):
        co, ci, kh, kw = w.shape
        return jnp.transpose(w, (2, 3, 0, 1)).reshape(kh * kw, co, ci).astype(jnp.float32)

    def pack_b(b):
        return b.reshape(-1, 1).astype(jnp.float32)

    wb = []
    for w, b in zip(conv_weights, conv_biases):
        wb += [pack_w(w), pack_b(b)]
    wb += [pack_w(lin_weight), pack_b(lin_bias)]

    # Precompute the K*K 'same'-padding border masks on host (static, per image).
    p = K // 2
    rows = np.arange(H).reshape(H, 1)
    cols = np.arange(W).reshape(1, W)
    mlist = []
    for ky in range(K):
        for kx in range(K):
            dy, dx = ky - p, kx - p
            valid = ((rows + dy >= 0) & (rows + dy < H) &
                     (cols + dx >= 0) & (cols + dx < W))
            mlist.append(valid.reshape(HW))
    mask_img = np.stack(mlist).astype(np.float32)                   # (K*K, HW)

    # Batch-tile: largest divisor of N whose activation footprint fits the budget.
    per_image = 4 * HW * (2 * Ck + K * K + 4 * max(Cu, Cn, Ck) + 2 * Cn)
    if _force_batch_tile is not None:
        bt = int(_force_batch_tile)
    else:
        bt = max(1, min(N, vmem_budget_bytes // max(per_image, 1)))
    bt = max(1, min(bt, N))
    while N % bt:
        bt -= 1
    L = bt * HW
    masks = jnp.asarray(np.tile(mask_img, (1, bt)))                 # (K*K, L)

    wb_specs = [pl.BlockSpec(a.shape, lambda i, nd=a.ndim: (0,) * nd) for a in wb]

    if bt == N:
        # ---- fully fused single kernel: convs + BN + sign, one HBM read/write ----
        out_flat = pl.pallas_call(
            _make_fused_kernel(num_layer, K, W, _EPS, use_cce_ste),
            out_shape=jax.ShapeDtypeStruct((Cn, L), jnp.float32),
            grid=(1,),
            in_specs=[pl.BlockSpec((Ck, L), lambda i: (0, 0)),
                      pl.BlockSpec(masks.shape, lambda i: (0, 0))] + wb_specs,
            out_specs=pl.BlockSpec((Cn, L), lambda i: (0, 0)),
            compiler_params=pltpu.CompilerParams(
                dimension_semantics=("arbitrary",)),
        )(u2, masks, *wb)
    else:
        nt = N // bt
        # ---- Stage 1: conv stack + 1x1 conv + BN statistics (batch-tile grid) ----
        x_sys, mean, rstd = pl.pallas_call(
            _make_encoder_kernel(num_layer, K, W, N * HW, _EPS),
            out_shape=(jax.ShapeDtypeStruct((Cn, N * HW), jnp.float32),
                       jax.ShapeDtypeStruct((Cn, 1), jnp.float32),
                       jax.ShapeDtypeStruct((Cn, 1), jnp.float32)),
            grid=(nt,),
            in_specs=[pl.BlockSpec((Ck, L), lambda i: (0, i)),
                      pl.BlockSpec(masks.shape, lambda i: (0, 0))] + wb_specs,
            out_specs=(pl.BlockSpec((Cn, L), lambda i: (0, i)),
                       pl.BlockSpec((Cn, 1), lambda i: (0, 0)),
                       pl.BlockSpec((Cn, 1), lambda i: (0, 0))),
            compiler_params=pltpu.CompilerParams(
                dimension_semantics=("arbitrary",)),   # stats accumulate across tiles
        )(u2, masks, *wb)

        # ---- Stage 2: streaming BN normalize (+ optional sign) ----
        out_flat = pl.pallas_call(
            _make_bn_kernel(use_cce_ste),
            out_shape=jax.ShapeDtypeStruct((Cn, N * HW), jnp.float32),
            grid=(nt,),
            in_specs=[pl.BlockSpec((Cn, L), lambda i: (0, i)),
                      pl.BlockSpec((Cn, 1), lambda i: (0, 0)),
                      pl.BlockSpec((Cn, 1), lambda i: (0, 0))],
            out_specs=pl.BlockSpec((Cn, L), lambda i: (0, i)),
            compiler_params=pltpu.CompilerParams(
                dimension_semantics=("parallel",)),
        )(x_sys, mean, rstd)

    # (Cn, N*HW) -> (N, Cn, H, W)
    return jnp.transpose(out_flat.reshape(Cn, N, H, W), (1, 0, 2, 3))


def _reference(u, conv_ws, conv_bs, lin_w, lin_b, use_ste):
    # Pure-JAX reference mirroring torch: Conv2d('same')+ELU stack, 1x1 Conv2d+ELU,
    # training-mode BatchNorm2d (affine=False, biased var, eps=1e-5), optional sign.
    dn = ('NCHW', 'OIHW', 'NCHW')
    x = 2.0 * u - 1.0
    for w, b in zip(conv_ws, conv_bs):
        x = lax.conv_general_dilated(x, w, (1, 1), 'SAME', dimension_numbers=dn,
                                     precision=lax.Precision.HIGHEST)
        x = _elu(x + b[None, :, None, None])
    x = lax.conv_general_dilated(x, lin_w, (1, 1), 'SAME', dimension_numbers=dn,
                                 precision=lax.Precision.HIGHEST)
    x = _elu(x + lin_b[None, :, None, None])
    mean = jnp.mean(x, axis=(0, 2, 3), keepdims=True)
    var = jnp.mean((x - mean) ** 2, axis=(0, 2, 3), keepdims=True)
    y = (x - mean) / jnp.sqrt(var + _EPS)
    return jnp.sign(y) if use_ste else y


if __name__ == "__main__":
    # args: code_rate_k=1, code_rate_n=3, cce_num_unit=32, cce_num_layer=2,
    #       enc_kernel_size=5, use_cce_ste=True
    N, Ck, H, W = 2, 1, 16, 16
    Cu, Cn, L, K = 32, 3, 2, 5

    key = jax.random.PRNGKey(0)
    keys = jax.random.split(key, 2 * (L + 1) + 2)
    u_message = jax.random.uniform(keys[0], (N, Ck, H, W), dtype=jnp.float32)
    real_cpu = jax.random.normal(keys[1], (N, Cn, H, W), dtype=jnp.float32)  # unused

    conv_ws, conv_bs = [], []
    cin, ki = Ck, 2
    for _ in range(L):
        fan_in = cin * K * K
        conv_ws.append(jax.random.normal(keys[ki], (Cu, cin, K, K), jnp.float32) / np.sqrt(fan_in))
        conv_bs.append(0.1 * jax.random.normal(keys[ki + 1], (Cu,), jnp.float32))
        ki += 2
        cin = Cu
    lin_w = jax.random.normal(keys[ki], (Cn, Cu, 1, 1), jnp.float32) / np.sqrt(Cu)
    lin_b = 0.1 * jax.random.normal(keys[ki + 1], (Cn,), jnp.float32)

    # Fused single-kernel path (batch fits VMEM).
    out_ste = cce_cnn_encoder2d(u_message, real_cpu, conv_ws, conv_bs, lin_w, lin_b,
                                use_cce_ste=True)
    out_ste = jax.block_until_ready(out_ste)
    out_lin = cce_cnn_encoder2d(u_message, real_cpu, conv_ws, conv_bs, lin_w, lin_b,
                                use_cce_ste=False)
    out_lin = jax.block_until_ready(out_lin)

    # Tiled fallback path (forced batch tile of 1 image) for coverage.
    out_lin_t = cce_cnn_encoder2d(u_message, real_cpu, conv_ws, conv_bs, lin_w, lin_b,
                                  use_cce_ste=False, _force_batch_tile=1)
    out_lin_t = jax.block_until_ready(out_lin_t)

    ref_lin = _reference(u_message, conv_ws, conv_bs, lin_w, lin_b, use_ste=False)
    ref_ste = jnp.sign(ref_lin)

    assert out_lin.shape == (N, Cn, H, W), out_lin.shape
    assert jnp.allclose(out_lin, ref_lin, atol=5e-3, rtol=5e-3), \
        float(jnp.max(jnp.abs(out_lin - ref_lin)))
    assert jnp.allclose(out_lin_t, ref_lin, atol=5e-3, rtol=5e-3), \
        float(jnp.max(jnp.abs(out_lin_t - ref_lin)))
    # Compare the STE-quantized output only where the pre-sign value is clearly nonzero.
    safe = jnp.abs(ref_lin) > 5e-2
    assert bool(jnp.all(jnp.where(safe, out_ste == ref_ste, True)))
    print("KERNEL_OK")
</pallas_src>

<mosaic_0001>
module attributes {stable_mosaic.version = 11 : i64} {
  func.func @kernel(%arg0: i32, %arg1: memref<1x512xf32, #tpu.memory_space<vmem>>, %arg2: memref<25x512xf32, #tpu.memory_space<vmem>>, %arg3: memref<25x32x1xf32, #tpu.memory_space<vmem>>, %arg4: memref<32x1xf32, #tpu.memory_space<vmem>>, %arg5: memref<25x32x32xf32, #tpu.memory_space<vmem>>, %arg6: memref<32x1xf32, #tpu.memory_space<vmem>>, %arg7: memref<1x3x32xf32, #tpu.memory_space<vmem>>, %arg8: memref<3x1xf32, #tpu.memory_space<vmem>>, %arg9: memref<3x512xf32, #tpu.memory_space<vmem>>) attributes {dimension_semantics = [#tpu.dimension_semantics<arbitrary>], iteration_bounds = array<i64: 1>, scalar_prefetch = 0 : i64, scratch_operands = 0 : i64, tpu.core_type = #tpu.core_type<tc>, window_params = [{pipeline_mode = #tpu.pipeline_mode<synchronous>, transform_indices = @transform_0, window_bounds = array<i64: 1, 512>}, {pipeline_mode = #tpu.pipeline_mode<synchronous>, transform_indices = @transform_1, window_bounds = array<i64: 25, 512>}, {pipeline_mode = #tpu.pipeline_mode<synchronous>, transform_indices = @transform_2, window_bounds = array<i64: 25, 32, 1>}, {pipeline_mode = #tpu.pipeline_mode<synchronous>, transform_indices = @transform_3, window_bounds = array<i64: 32, 1>}, {pipeline_mode = #tpu.pipeline_mode<synchronous>, transform_indices = @transform_4, window_bounds = array<i64: 25, 32, 32>}, {pipeline_mode = #tpu.pipeline_mode<synchronous>, transform_indices = @transform_5, window_bounds = array<i64: 32, 1>}, {pipeline_mode = #tpu.pipeline_mode<synchronous>, transform_indices = @transform_6, window_bounds = array<i64: 1, 3, 32>}, {pipeline_mode = #tpu.pipeline_mode<synchronous>, transform_indices = @transform_7, window_bounds = array<i64: 3, 1>}, {pipeline_mode = #tpu.pipeline_mode<synchronous>, transform_indices = @transform_8, window_bounds = array<i64: 3, 512>}]} {
    %c0 = arith.constant 0 : index
    %c0_0 = arith.constant 0 : index
    %0 = vector.load %arg1[%c0, %c0_0] : memref<1x512xf32, #tpu.memory_space<vmem>>, vector<1x512xf32>
    %cst = arith.constant 2.000000e+00 : f32
    %1 = vector.broadcast %cst : f32 to vector<1x512xf32>
    %2 = arith.mulf %1, %0 : vector<1x512xf32>
    %cst_1 = arith.constant 1.000000e+00 : f32
    %3 = vector.broadcast %cst_1 : f32 to vector<1x512xf32>
    %4 = arith.subf %2, %3 : vector<1x512xf32>
    %cst_2 = arith.constant 0.000000e+00 : f32
    %5 = vector.broadcast %cst_2 : f32 to vector<32x512xf32>
    %c34_i32 = arith.constant 34 : i32
    %6 = tpu.dynamic_rotate %4 by %c34_i32 dim 1 : vector<1x512xf32>, i32 -> vector<1x512xf32>
    %c0_3 = arith.constant 0 : index
    %c0_4 = arith.constant 0 : index
    %7 = vector.load %arg2[%c0_3, %c0_4] : memref<25x512xf32, #tpu.memory_space<vmem>>, vector<1x512xf32>
    %8 = arith.mulf %6, %7 : vector<1x512xf32>
    %c0_5 = arith.constant 0 : index
    %c0_6 = arith.constant 0 : index
    %c0_7 = arith.constant 0 : index
    %9 = vector.load %arg3[%c0_5, %c0_6, %c0_7] : memref<25x32x1xf32, #tpu.memory_space<vmem>>, vector<1x32x1xf32>
    %10 = vector.shape_cast %9 : vector<1x32x1xf32> to vector<32x1xf32>
    %11 = vector.broadcast %10 : vector<32x1xf32> to vector<32x512xf32>
    %12 = vector.broadcast %8 : vector<1x512xf32> to vector<32x512xf32>
    %13 = arith.mulf %11, %12 : vector<32x512xf32>
    %14 = arith.addf %5, %13 : vector<32x512xf32>
    %c33_i32 = arith.constant 33 : i32
    %15 = tpu.dynamic_rotate %4 by %c33_i32 dim 1 : vector<1x512xf32>, i32 -> vector<1x512xf32>
    %c1 = arith.constant 1 : index
    %c0_8 = arith.constant 0 : index
    %16 = vector.load %arg2[%c1, %c0_8] : memref<25x512xf32, #tpu.memory_space<vmem>>, vector<1x512xf32>
    %17 = arith.mulf %15, %16 : vector<1x512xf32>
    %c1_9 = arith.constant 1 : index
    %c0_10 = arith.constant 0 : index
    %c0_11 = arith.constant 0 : index
    %18 = vector.load %arg3[%c1_9, %c0_10, %c0_11] : memref<25x32x1xf32, #tpu.memory_space<vmem>>, vector<1x32x1xf32>
    %19 = vector.shape_cast %18 : vector<1x32x1xf32> to vector<32x1xf32>
    %20 = vector.broadcast %19 : vector<32x1xf32> to vector<32x512xf32>
    %21 = vector.broadcast %17 : vector<1x512xf32> to vector<32x512xf32>
    %22 = arith.mulf %20, %21 : vector<32x512xf32>
    %23 = arith.addf %14, %22 : vector<32x512xf32>
    %c32_i32 = arith.constant 32 : i32
    %24 = tpu.dynamic_rotate %4 by %c32_i32 dim 1 : vector<1x512xf32>, i32 -> vector<1x512xf32>
    %c2 = arith.constant 2 : index
    %c0_12 = arith.constant 0 : index
    %25 = vector.load %arg2[%c2, %c0_12] : memref<25x512xf32, #tpu.memory_space<vmem>>, vector<1x512xf32>
    %26 = arith.mulf %24, %25 : vector<1x512xf32>
    %c2_13 = arith.constant 2 : index
    %c0_14 = arith.constant 0 : index
    %c0_15 = arith.constant 0 : index
    %27 = vector.load %arg3[%c2_13, %c0_14, %c0_15] : memref<25x32x1xf32, #tpu.memory_space<vmem>>, vector<1x32x1xf32>
    %28 = vector.shape_cast %27 : vector<1x32x1xf32> to vector<32x1xf32>
    %29 = vector.broadcast %28 : vector<32x1xf32> to vector<32x512xf32>
    %30 = vector.broadcast %26 : vector<1x512xf32> to vector<32x512xf32>
    %31 = arith.mulf %29, %30 : vector<32x512xf32>
    %32 = arith.addf %23, %31 : vector<32x512xf32>
    %c31_i32 = arith.constant 31 : i32
    %33 = tpu.dynamic_rotate %4 by %c31_i32 dim 1 : vector<1x512xf32>, i32 -> vector<1x512xf32>
    %c3 = arith.constant 3 : index
    %c0_16 = arith.constant 0 : index
    %34 = vector.load %arg2[%c3, %c0_16] : memref<25x512xf32, #tpu.memory_space<vmem>>, vector<1x512xf32>
    %35 = arith.mulf %33, %34 : vector<1x512xf32>
    %c3_17 = arith.constant 3 : index
    %c0_18 = arith.constant 0 : index
    %c0_19 = arith.constant 0 : index
    %36 = vector.load %arg3[%c3_17, %c0_18, %c0_19] : memref<25x32x1xf32, #tpu.memory_space<vmem>>, vector<1x32x1xf32>
    %37 = vector.shape_cast %36 : vector<1x32x1xf32> to vector<32x1xf32>
    %38 = vector.broadcast %37 : vector<32x1xf32> to vector<32x512xf32>
    %39 = vector.broadcast %35 : vector<1x512xf32> to vector<32x512xf32>
    %40 = arith.mulf %38, %39 : vector<32x512xf32>
    %41 = arith.addf %32, %40 : vector<32x512xf32>
    %c30_i32 = arith.constant 30 : i32
    %42 = tpu.dynamic_rotate %4 by %c30_i32 dim 1 : vector<1x512xf32>, i32 -> vector<1x512xf32>
    %c4 = arith.constant 4 : index
    %c0_20 = arith.constant 0 : index
    %43 = vector.load %arg2[%c4, %c0_20] : memref<25x512xf32, #tpu.memory_space<vmem>>, vector<1x512xf32>
    %44 = arith.mulf %42, %43 : vector<1x512xf32>
    %c4_21 = arith.constant 4 : index
    %c0_22 = arith.constant 0 : index
    %c0_23 = arith.constant 0 : index
    %45 = vector.load %arg3[%c4_21, %c0_22, %c0_23] : memref<25x32x1xf32, #tpu.memory_space<vmem>>, vector<1x32x1xf32>
    %46 = vector.shape_cast %45 : vector<1x32x1xf32> to vector<32x1xf32>
    %47 = vector.broadcast %46 : vector<32x1xf32> to vector<32x512xf32>
    %48 = vector.broadcast %44 : vector<1x512xf32> to vector<32x512xf32>
    %49 = arith.mulf %47, %48 : vector<32x512xf32>
    %50 = arith.addf %41, %49 : vector<32x512xf32>
    %c18_i32 = arith.constant 18 : i32
    %51 = tpu.dynamic_rotate %4 by %c18_i32 dim 1 : vector<1x512xf32>, i32 -> vector<1x512xf32>
    %c5 = arith.constant 5 : index
    %c0_24 = arith.constant 0 : index
    %52 = vector.load %arg2[%c5, %c0_24] : memref<25x512xf32, #tpu.memory_space<vmem>>, vector<1x512xf32>
    %53 = arith.mulf %51, %52 : vector<1x512xf32>
    %c5_25 = arith.constant 5 : index
    %c0_26 = arith.constant 0 : index
    %c0_27 = arith.constant 0 : index
    %54 = vector.load %arg3[%c5_25, %c0_26, %c0_27] : memref<25x32x1xf32, #tpu.memory_space<vmem>>, vector<1x32x1xf32>
    %55 = vector.shape_cast %54 : vector<1x32x1xf32> to vector<32x1xf32>
    %56 = vector.broadcast %55 : vector<32x1xf32> to vector<32x512xf32>
    %57 = vector.broadcast %53 : vector<1x512xf32> to vector<32x512xf32>
    %58 = arith.mulf %56, %57 : vector<32x512xf32>
    %59 = arith.addf %50, %58 : vector<32x512xf32>
    %c17_i32 = arith.constant 17 : i32
    %60 = tpu.dynamic_rotate %4 by %c17_i32 dim 1 : vector<1x512xf32>, i32 -> vector<1x512xf32>
    %c6 = arith.constant 6 : index
    %c0_28 = arith.constant 0 : index
    %61 = vector.load %arg2[%c6, %c0_28] : memref<25x512xf32, #tpu.memory_space<vmem>>, vector<1x512xf32>
    %62 = arith.mulf %60, %61 : vector<1x512xf32>
    %c6_29 = arith.constant 6 : index
    %c0_30 = arith.constant 0 : index
    %c0_31 = arith.constant 0 : index
    %63 = vector.load %arg3[%c6_29, %c0_30, %c0_31] : memref<25x32x1xf32, #tpu.memory_space<vmem>>, vector<1x32x1xf32>
    %64 = vector.shape_cast %63 : vector<1x32x1xf32> to vector<32x1xf32>
    %65 = vector.broadcast %64 : vector<32x1xf32> to vector<32x512xf32>
    %66 = vector.broadcast %62 : vector<1x512xf32> to vector<32x512xf32>
    %67 = arith.mulf %65, %66 : vector<32x512xf32>
    %68 = arith.addf %59, %67 : vector<32x512xf32>
    %c16_i32 = arith.constant 16 : i32
    %69 = tpu.dynamic_rotate %4 by %c16_i32 dim 1 : vector<1x512xf32>, i32 -> vector<1x512xf32>
    %c7 = arith.constant 7 : index
    %c0_32 = arith.constant 0 : index
    %70 = vector.load %arg2[%c7, %c0_32] : memref<25x512xf32, #tpu.memory_space<vmem>>, vector<1x512xf32>
    %71 = arith.mulf %69, %70 : vector<1x512xf32>
    %c7_33 = arith.constant 7 : index
    %c0_34 = arith.constant 0 : index
    %c0_35 = arith.constant 0 : index
    %72 = vector.load %arg3[%c7_33, %c0_34, %c0_35] : memref<25x32x1xf32, #tpu.memory_space<vmem>>, vector<1x32x1xf32>
    %73 = vector.shape_cast %72 : vector<1x32x1xf32> to vector<32x1xf32>
    %74 = vector.broadcast %73 : vector<32x1xf32> to vector<32x512xf32>
    %75 = vector.broadcast %71 : vector<1x512xf32> to vector<32x512xf32>
    %76 = arith.mulf %74, %75 : vector<32x512xf32>
    %77 = arith.addf %68, %76 : vector<32x512xf32>
    %c15_i32 = arith.constant 15 : i32
    %78 = tpu.dynamic_rotate %4 by %c15_i32 dim 1 : vector<1x512xf32>, i32 -> vector<1x512xf32>
    %c8 = arith.constant 8 : index
    %c0_36 = arith.constant 0 : index
    %79 = vector.load %arg2[%c8, %c0_36] : memref<25x512xf32, #tpu.memory_space<vmem>>, vector<1x512xf32>
    %80 = arith.mulf %78, %79 : vector<1x512xf32>
    %c8_37 = arith.constant 8 : index
    %c0_38 = arith.constant 0 : index
    %c0_39 = arith.constant 0 : index
    %81 = vector.load %arg3[%c8_37, %c0_38, %c0_39] : memref<25x32x1xf32, #tpu.memory_space<vmem>>, vector<1x32x1xf32>
    %82 = vector.shape_cast %81 : vector<1x32x1xf32> to vector<32x1xf32>
    %83 = vector.broadcast %82 : vector<32x1xf32> to vector<32x512xf32>
    %84 = vector.broadcast %80 : vector<1x512xf32> to vector<32x512xf32>
    %85 = arith.mulf %83, %84 : vector<32x512xf32>
    %86 = arith.addf %77, %85 : vector<32x512xf32>
    %c14_i32 = arith.constant 14 : i32
    %87 = tpu.dynamic_rotate %4 by %c14_i32 dim 1 : vector<1x512xf32>, i32 -> vector<1x512xf32>
    %c9 = arith.constant 9 : index
    %c0_40 = arith.constant 0 : index
    %88 = vector.load %arg2[%c9, %c0_40] : memref<25x512xf32, #tpu.memory_space<vmem>>, vector<1x512xf32>
    %89 = arith.mulf %87, %88 : vector<1x512xf32>
    %c9_41 = arith.constant 9 : index
    %c0_42 = arith.constant 0 : index
    %c0_43 = arith.constant 0 : index
    %90 = vector.load %arg3[%c9_41, %c0_42, %c0_43] : memref<25x32x1xf32, #tpu.memory_space<vmem>>, vector<1x32x1xf32>
    %91 = vector.shape_cast %90 : vector<1x32x1xf32> to vector<32x1xf32>
    %92 = vector.broadcast %91 : vector<32x1xf32> to vector<32x512xf32>
    %93 = vector.broadcast %89 : vector<1x512xf32> to vector<32x512xf32>
    %94 = arith.mulf %92, %93 : vector<32x512xf32>
    %95 = arith.addf %86, %94 : vector<32x512xf32>
    %c2_i32 = arith.constant 2 : i32
    %96 = tpu.dynamic_rotate %4 by %c2_i32 dim 1 : vector<1x512xf32>, i32 -> vector<1x512xf32>
    %c10 = arith.constant 10 : index
    %c0_44 = arith.constant 0 : index
    %97 = vector.load %arg2[%c10, %c0_44] : memref<25x512xf32, #tpu.memory_space<vmem>>, vector<1x512xf32>
    %98 = arith.mulf %96, %97 : vector<1x512xf32>
    %c10_45 = arith.constant 10 : index
    %c0_46 = arith.constant 0 : index
    %c0_47 = arith.constant 0 : index
    %99 = vector.load %arg3[%c10_45, %c0_46, %c0_47] : memref<25x32x1xf32, #tpu.memory_space<vmem>>, vector<1x32x1xf32>
    %100 = vector.shape_cast %99 : vector<1x32x1xf32> to vector<32x1xf32>
    %101 = vector.broadcast %100 : vector<32x1xf32> to vector<32x512xf32>
    %102 = vector.broadcast %98 : vector<1x512xf32> to vector<32x512xf32>
    %103 = arith.mulf %101, %102 : vector<32x512xf32>
    %104 = arith.addf %95, %103 : vector<32x512xf32>
    %c1_i32 = arith.constant 1 : i32
    %105 = tpu.dynamic_rotate %4 by %c1_i32 dim 1 : vector<1x512xf32>, i32 -> vector<1x512xf32>
    %c11 = arith.constant 11 : index
    %c0_48 = arith.constant 0 : index
    %106 = vector.load %arg2[%c11, %c0_48] : memref<25x512xf32, #tpu.memory_space<vmem>>, vector<1x512xf32>
    %107 = arith.mulf %105, %106 : vector<1x512xf32>
    %c11_49 = arith.constant 11 : index
    %c0_50 = arith.constant 0 : index
    %c0_51 = arith.constant 0 : index
    %108 = vector.load %arg3[%c11_49, %c0_50, %c0_51] : memref<25x32x1xf32, #tpu.memory_space<vmem>>, vector<1x32x1xf32>
    %109 = vector.shape_cast %108 : vector<1x32x1xf32> to vector<32x1xf32>
    %110 = vector.broadcast %109 : vector<32x1xf32> to vector<32x512xf32>
    %111 = vector.broadcast %107 : vector<1x512xf32> to vector<32x512xf32>
    %112 = arith.mulf %110, %111 : vector<32x512xf32>
    %113 = arith.addf %104, %112 : vector<32x512xf32>
    %c12 = arith.constant 12 : index
    %c0_52 = arith.constant 0 : index
    %c0_53 = arith.constant 0 : index
    %114 = vector.load %arg3[%c12, %c0_52, %c0_53] : memref<25x32x1xf32, #tpu.memory_space<vmem>>, vector<1x32x1xf32>
    %115 = vector.shape_cast %114 : vector<1x32x1xf32> to vector<32x1xf32>
    %116 = vector.broadcast %115 : vector<32x1xf32> to vector<32x512xf32>
    %117 = vector.broadcast %4 : vector<1x512xf32> to vector<32x512xf32>
    %118 = arith.mulf %116, %117 : vector<32x512xf32>
    %119 = arith.addf %113, %118 : vector<32x512xf32>
    %c511_i32 = arith.constant 511 : i32
    %120 = tpu.dynamic_rotate %4 by %c511_i32 dim 1 : vector<1x512xf32>, i32 -> vector<1x512xf32>
    %c13 = arith.constant 13 : index
    %c0_54 = arith.constant 0 : index
    %121 = vector.load %arg2[%c13, %c0_54] : memref<25x512xf32, #tpu.memory_space<vmem>>, vector<1x512xf32>
    %122 = arith.mulf %120, %121 : vector<1x512xf32>
    %c13_55 = arith.constant 13 : index
    %c0_56 = arith.constant 0 : index
    %c0_57 = arith.constant 0 : index
    %123 = vector.load %arg3[%c13_55, %c0_56, %c0_57] : memref<25x32x1xf32, #tpu.memory_space<vmem>>, vector<1x32x1xf32>
    %124 = vector.shape_cast %123 : vector<1x32x1xf32> to vector<32x1xf32>
    %125 = vector.broadcast %124 : vector<32x1xf32> to vector<32x512xf32>
    %126 = vector.broadcast %122 : vector<1x512xf32> to vector<32x512xf32>
    %127 = arith.mulf %125, %126 : vector<32x512xf32>
    %128 = arith.addf %119, %127 : vector<32x512xf32>
    %c510_i32 = arith.constant 510 : i32
    %129 = tpu.dynamic_rotate %4 by %c510_i32 dim 1 : vector<1x512xf32>, i32 -> vector<1x512xf32>
    %c14 = arith.constant 14 : index
    %c0_58 = arith.constant 0 : index
    %130 = vector.load %arg2[%c14, %c0_58] : memref<25x512xf32, #tpu.memory_space<vmem>>, vector<1x512xf32>
    %131 = arith.mulf %129, %130 : vector<1x512xf32>
    %c14_59 = arith.constant 14 : index
    %c0_60 = arith.constant 0 : index
    %c0_61 = arith.constant 0 : index
    %132 = vector.load %arg3[%c14_59, %c0_60, %c0_61] : memref<25x32x1xf32, #tpu.memory_space<vmem>>, vector<1x32x1xf32>
    %133 = vector.shape_cast %132 : vector<1x32x1xf32> to vector<32x1xf32>
    %134 = vector.broadcast %133 : vector<32x1xf32> to vector<32x512xf32>
    %135 = vector.broadcast %131 : vector<1x512xf32> to vector<32x512xf32>
    %136 = arith.mulf %134, %135 : vector<32x512xf32>
    %137 = arith.addf %128, %136 : vector<32x512xf32>
    %c498_i32 = arith.constant 498 : i32
    %138 = tpu.dynamic_rotate %4 by %c498_i32 dim 1 : vector<1x512xf32>, i32 -> vector<1x512xf32>
    %c15 = arith.constant 15 : index
    %c0_62 = arith.constant 0 : index
    %139 = vector.load %arg2[%c15, %c0_62] : memref<25x512xf32, #tpu.memory_space<vmem>>, vector<1x512xf32>
    %140 = arith.mulf %138, %139 : vector<1x512xf32>
    %c15_63 = arith.constant 15 : index
    %c0_64 = arith.constant 0 : index
    %c0_65 = arith.constant 0 : index
    %141 = vector.load %arg3[%c15_63, %c0_64, %c0_65] : memref<25x32x1xf32, #tpu.memory_space<vmem>>, vector<1x32x1xf32>
    %142 = vector.shape_cast %141 : vector<1x32x1xf32> to vector<32x1xf32>
    %143 = vector.broadcast %142 : vector<32x1xf32> to vector<32x512xf32>
    %144 = vector.broadcast %140 : vector<1x512xf32> to vector<32x512xf32>
    %145 = arith.mulf %143, %144 : vector<32x512xf32>
    %146 = arith.addf %137, %145 : vector<32x512xf32>
    %c497_i32 = arith.constant 497 : i32
    %147 = tpu.dynamic_rotate %4 by %c497_i32 dim 1 : vector<1x512xf32>, i32 -> vector<1x512xf32>
    %c16 = arith.constant 16 : index
    %c0_66 = arith.constant 0 : index
    %148 = vector.load %arg2[%c16, %c0_66] : memref<25x512xf32, #tpu.memory_space<vmem>>, vector<1x512xf32>
    %149 = arith.mulf %147, %148 : vector<1x512xf32>
    %c16_67 = arith.constant 16 : index
    %c0_68 = arith.constant 0 : index
    %c0_69 = arith.constant 0 : index
    %150 = vector.load %arg3[%c16_67, %c0_68, %c0_69] : memref<25x32x1xf32, #tpu.memory_space<vmem>>, vector<1x32x1xf32>
    %151 = vector.shape_cast %150 : vector<1x32x1xf32> to vector<32x1xf32>
    %152 = vector.broadcast %151 : vector<32x1xf32> to vector<32x512xf32>
    %153 = vector.broadcast %149 : vector<1x512xf32> to vector<32x512xf32>
    %154 = arith.mulf %152, %153 : vector<32x512xf32>
    %155 = arith.addf %146, %154 : vector<32x512xf32>
    %c496_i32 = arith.constant 496 : i32
    %156 = tpu.dynamic_rotate %4 by %c496_i32 dim 1 : vector<1x512xf32>, i32 -> vector<1x512xf32>
    %c17 = arith.constant 17 : index
    %c0_70 = arith.constant 0 : index
    %157 = vector.load %arg2[%c17, %c0_70] : memref<25x512xf32, #tpu.memory_space<vmem>>, vector<1x512xf32>
    %158 = arith.mulf %156, %157 : vector<1x512xf32>
    %c17_71 = arith.constant 17 : index
    %c0_72 = arith.constant 0 : index
    %c0_73 = arith.constant 0 : index
    %159 = vector.load %arg3[%c17_71, %c0_72, %c0_73] : memref<25x32x1xf32, #tpu.memory_space<vmem>>, vector<1x32x1xf32>
    %160 = vector.shape_cast %159 : vector<1x32x1xf32> to vector<32x1xf32>
    %161 = vector.broadcast %160 : vector<32x1xf32> to vector<32x512xf32>
    %162 = vector.broadcast %158 : vector<1x512xf32> to vector<32x512xf32>
    %163 = arith.mulf %161, %162 : vector<32x512xf32>
    %164 = arith.addf %155, %163 : vector<32x512xf32>
    %c495_i32 = arith.constant 495 : i32
    %165 = tpu.dynamic_rotate %4 by %c495_i32 dim 1 : vector<1x512xf32>, i32 -> vector<1x512xf32>
    %c18 = arith.constant 18 : index
    %c0_74 = arith.constant 0 : index
    %166 = vector.load %arg2[%c18, %c0_74] : memref<25x512xf32, #tpu.memory_space<vmem>>, vector<1x512xf32>
    %167 = arith.mulf %165, %166 : vector<1x512xf32>
    %c18_75 = arith.constant 18 : index
    %c0_76 = arith.constant 0 : index
    %c0_77 = arith.constant 0 : index
    %168 = vector.load %arg3[%c18_75, %c0_76, %c0_77] : memref<25x32x1xf32, #tpu.memory_space<vmem>>, vector<1x32x1xf32>
    %169 = vector.shape_cast %168 : vector<1x32x1xf32> to vector<32x1xf32>
    %170 = vector.broadcast %169 : vector<32x1xf32> to vector<32x512xf32>
    %171 = vector.broadcast %167 : vector<1x512xf32> to vector<32x512xf32>
    %172 = arith.mulf %170, %171 : vector<32x512xf32>
    %173 = arith.addf %164, %172 : vector<32x512xf32>
    %c494_i32 = arith.constant 494 : i32
    %174 = tpu.dynamic_rotate %4 by %c494_i32 dim 1 : vector<1x512xf32>, i32 -> vector<1x512xf32>
    %c19 = arith.constant 19 : index
    %c0_78 = arith.constant 0 : index
    %175 = vector.load %arg2[%c19, %c0_78] : memref<25x512xf32, #tpu.memory_space<vmem>>, vector<1x512xf32>
    %176 = arith.mulf %174, %175 : vector<1x512xf32>
    %c19_79 = arith.constant 19 : index
    %c0_80 = arith.constant 0 : index
    %c0_81 = arith.constant 0 : index
    %177 = vector.load %arg3[%c19_79, %c0_80, %c0_81] : memref<25x32x1xf32, #tpu.memory_space<vmem>>, vector<1x32x1xf32>
    %178 = vector.shape_cast %177 : vector<1x32x1xf32> to vector<32x1xf32>
    %179 = vector.broadcast %178 : vector<32x1xf32> to vector<32x512xf32>
    %180 = vector.broadcast %176 : vector<1x512xf32> to vector<32x512xf32>
    %181 = arith.mulf %179, %180 : vector<32x512xf32>
    %182 = arith.addf %173, %181 : vector<32x512xf32>
    %c482_i32 = arith.constant 482 : i32
    %183 = tpu.dynamic_rotate %4 by %c482_i32 dim 1 : vector<1x512xf32>, i32 -> vector<1x512xf32>
    %c20 = arith.constant 20 : index
    %c0_82 = arith.constant 0 : index
    %184 = vector.load %arg2[%c20, %c0_82] : memref<25x512xf32, #tpu.memory_space<vmem>>, vector<1x512xf32>
    %185 = arith.mulf %183, %184 : vector<1x512xf32>
    %c20_83 = arith.constant 20 : index
    %c0_84 = arith.constant 0 : index
    %c0_85 = arith.constant 0 : index
    %186 = vector.load %arg3[%c20_83, %c0_84, %c0_85] : memref<25x32x1xf32, #tpu.memory_space<vmem>>, vector<1x32x1xf32>
    %187 = vector.shape_cast %186 : vector<1x32x1xf32> to vector<32x1xf32>
    %188 = vector.broadcast %187 : vector<32x1xf32> to vector<32x512xf32>
    %189 = vector.broadcast %185 : vector<1x512xf32> to vector<32x512xf32>
    %190 = arith.mulf %188, %189 : vector<32x512xf32>
    %191 = arith.addf %182, %190 : vector<32x512xf32>
    %c481_i32 = arith.constant 481 : i32
    %192 = tpu.dynamic_rotate %4 by %c481_i32 dim 1 : vector<1x512xf32>, i32 -> vector<1x512xf32>
    %c21 = arith.constant 21 : index
    %c0_86 = arith.constant 0 : index
    %193 = vector.load %arg2[%c21, %c0_86] : memref<25x512xf32, #tpu.memory_space<vmem>>, vector<1x512xf32>
    %194 = arith.mulf %192, %193 : vector<1x512xf32>
    %c21_87 = arith.constant 21 : index
    %c0_88 = arith.constant 0 : index
    %c0_89 = arith.constant 0 : index
    %195 = vector.load %arg3[%c21_87, %c0_88, %c0_89] : memref<25x32x1xf32, #tpu.memory_space<vmem>>, vector<1x32x1xf32>
    %196 = vector.shape_cast %195 : vector<1x32x1xf32> to vector<32x1xf32>
    %197 = vector.broadcast %196 : vector<32x1xf32> to vector<32x512xf32>
    %198 = vector.broadcast %194 : vector<1x512xf32> to vector<32x512xf32>
    %199 = arith.mulf %197, %198 : vector<32x512xf32>
    %200 = arith.addf %191, %199 : vector<32x512xf32>
    %c480_i32 = arith.constant 480 : i32
    %201 = tpu.dynamic_rotate %4 by %c480_i32 dim 1 : vector<1x512xf32>, i32 -> vector<1x512xf32>
    %c22 = arith.constant 22 : index
    %c0_90 = arith.constant 0 : index
    %202 = vector.load %arg2[%c22, %c0_90] : memref<25x512xf32, #tpu.memory_space<vmem>>, vector<1x512xf32>
    %203 = arith.mulf %201, %202 : vector<1x512xf32>
    %c22_91 = arith.constant 22 : index
    %c0_92 = arith.constant 0 : index
    %c0_93 = arith.constant 0 : index
    %204 = vector.load %arg3[%c22_91, %c0_92, %c0_93] : memref<25x32x1xf32, #tpu.memory_space<vmem>>, vector<1x32x1xf32>
    %205 = vector.shape_cast %204 : vector<1x32x1xf32> to vector<32x1xf32>
    %206 = vector.broadcast %205 : vector<32x1xf32> to vector<32x512xf32>
    %207 = vector.broadcast %203 : vector<1x512xf32> to vector<32x512xf32>
    %208 = arith.mulf %206, %207 : vector<32x512xf32>
    %209 = arith.addf %200, %208 : vector<32x512xf32>
    %c479_i32 = arith.constant 479 : i32
    %210 = tpu.dynamic_rotate %4 by %c479_i32 dim 1 : vector<1x512xf32>, i32 -> vector<1x512xf32>
    %c23 = arith.constant 23 : index
    %c0_94 = arith.constant 0 : index
    %211 = vector.load %arg2[%c23, %c0_94] : memref<25x512xf32, #tpu.memory_space<vmem>>, vector<1x512xf32>
    %212 = arith.mulf %210, %211 : vector<1x512xf32>
    %c23_95 = arith.constant 23 : index
    %c0_96 = arith.constant 0 : index
    %c0_97 = arith.constant 0 : index
    %213 = vector.load %arg3[%c23_95, %c0_96, %c0_97] : memref<25x32x1xf32, #tpu.memory_space<vmem>>, vector<1x32x1xf32>
    %214 = vector.shape_cast %213 : vector<1x32x1xf32> to vector<32x1xf32>
    %215 = vector.broadcast %214 : vector<32x1xf32> to vector<32x512xf32>
    %216 = vector.broadcast %212 : vector<1x512xf32> to vector<32x512xf32>
    %217 = arith.mulf %215, %216 : vector<32x512xf32>
    %218 = arith.addf %209, %217 : vector<32x512xf32>
    %c478_i32 = arith.constant 478 : i32
    %219 = tpu.dynamic_rotate %4 by %c478_i32 dim 1 : vector<1x512xf32>, i32 -> vector<1x512xf32>
    %c24 = arith.constant 24 : index
    %c0_98 = arith.constant 0 : index
    %220 = vector.load %arg2[%c24, %c0_98] : memref<25x512xf32, #tpu.memory_space<vmem>>, vector<1x512xf32>
    %221 = arith.mulf %219, %220 : vector<1x512xf32>
    %c24_99 = arith.constant 24 : index
    %c0_100 = arith.constant 0 : index
    %c0_101 = arith.constant 0 : index
    %222 = vector.load %arg3[%c24_99, %c0_100, %c0_101] : memref<25x32x1xf32, #tpu.memory_space<vmem>>, vector<1x32x1xf32>
    %223 = vector.shape_cast %222 : vector<1x32x1xf32> to vector<32x1xf32>
    %224 = vector.broadcast %223 : vector<32x1xf32> to vector<32x512xf32>
    %225 = vector.broadcast %221 : vector<1x512xf32> to vector<32x512xf32>
    %226 = arith.mulf %224, %225 : vector<32x512xf32>
    %227 = arith.addf %218, %226 : vector<32x512xf32>
    %c0_102 = arith.constant 0 : index
    %c0_103 = arith.constant 0 : index
    %228 = vector.load %arg4[%c0_102, %c0_103] : memref<32x1xf32, #tpu.memory_space<vmem>>, vector<32x1xf32>
    %229 = vector.broadcast %228 : vector<32x1xf32> to vector<32x512xf32>
    %230 = arith.addf %227, %229 : vector<32x512xf32>
    %cst_104 = arith.constant 0.000000e+00 : f32
    %231 = vector.broadcast %cst_104 : f32 to vector<32x512xf32>
    %232 = arith.cmpf ogt, %230, %231 : vector<32x512xf32>
    %cst_105 = arith.constant 0.000000e+00 : f32
    %233 = vector.broadcast %cst_105 : f32 to vector<32x512xf32>
    %234 = arith.minimumf %230, %233 : vector<32x512xf32>
    %235 = math.exp %234 : vector<32x512xf32>
    %cst_106 = arith.constant 1.000000e+00 : f32
    %236 = vector.broadcast %cst_106 : f32 to vector<32x512xf32>
    %237 = arith.subf %235, %236 : vector<32x512xf32>
    %238 = arith.select %232, %230, %237 : vector<32x512xi1>, vector<32x512xf32>
    %cst_107 = arith.constant 0.000000e+00 : f32
    %239 = vector.broadcast %cst_107 : f32 to vector<32x512xf32>
    %c34_i32_108 = arith.constant 34 : i32
    %240 = tpu.dynamic_rotate %238 by %c34_i32_108 dim 1 : vector<32x512xf32>, i32 -> vector<32x512xf32>
    %c0_109 = arith.constant 0 : index
    %c0_110 = arith.constant 0 : index
    %241 = vector.load %arg2[%c0_109, %c0_110] : memref<25x512xf32, #tpu.memory_space<vmem>>, vector<1x512xf32>
    %242 = vector.broadcast %241 : vector<1x512xf32> to vector<32x512xf32>
    %243 = arith.mulf %240, %242 : vector<32x512xf32>
    %c0_111 = arith.constant 0 : index
    %c0_112 = arith.constant 0 : index
    %c0_113 = arith.constant 0 : index
    %244 = vector.load %arg5[%c0_111, %c0_112, %c0_113] : memref<25x32x32xf32, #tpu.memory_space<vmem>>, vector<1x32x32xf32>
    %245 = vector.shape_cast %244 : vector<1x32x32xf32> to vector<32x32xf32>
    %cst_114 = arith.constant dense<0.000000e+00> : vector<32x512xf32>
    %246 = tpu.matmul %245, %243, %cst_114 {dimension_numbers = #tpu.dot_dimension_numbers<[1], [0], [0], [1], [0, 0, 1, 1], [], []>} : vector<32x32xf32>, vector<32x512xf32>, vector<32x512xf32> -> vector<32x512xf32>
    %247 = arith.addf %239, %246 : vector<32x512xf32>
    %c33_i32_115 = arith.constant 33 : i32
    %248 = tpu.dynamic_rotate %238 by %c33_i32_115 dim 1 : vector<32x512xf32>, i32 -> vector<32x512xf32>
    %c1_116 = arith.constant 1 : index
    %c0_117 = arith.constant 0 : index
    %249 = vector.load %arg2[%c1_116, %c0_117] : memref<25x512xf32, #tpu.memory_space<vmem>>, vector<1x512xf32>
    %250 = vector.broadcast %249 : vector<1x512xf32> to vector<32x512xf32>
    %251 = arith.mulf %248, %250 : vector<32x512xf32>
    %c1_118 = arith.constant 1 : index
    %c0_119 = arith.constant 0 : index
    %c0_120 = arith.constant 0 : index
    %252 = vector.load %arg5[%c1_118, %c0_119, %c0_120] : memref<25x32x32xf32, #tpu.memory_space<vmem>>, vector<1x32x32xf32>
    %253 = vector.shape_cast %252 : vector<1x32x32xf32> to vector<32x32xf32>
    %cst_121 = arith.constant dense<0.000000e+00> : vector<32x512xf32>
    %254 = tpu.matmul %253, %251, %cst_121 {dimension_numbers = #tpu.dot_dimension_numbers<[1], [0], [0], [1], [0, 0, 1, 1], [], []>} : vector<32x32xf32>, vector<32x512xf32>, vector<32x512xf32> -> vector<32x512xf32>
    %255 = arith.addf %247, %254 : vector<32x512xf32>
    %c32_i32_122 = arith.constant 32 : i32
    %256 = tpu.dynamic_rotate %238 by %c32_i32_122 dim 1 : vector<32x512xf32>, i32 -> vector<32x512xf32>
    %c2_123 = arith.constant 2 : index
    %c0_124 = arith.constant 0 : index
    %257 = vector.load %arg2[%c2_123, %c0_124] : memref<25x512xf32, #tpu.memory_space<vmem>>, vector<1x512xf32>
    %258 = vector.broadcast %257 : vector<1x512xf32> to vector<32x512xf32>
    %259 = arith.mulf %256, %258 : vector<32x512xf32>
    %c2_125 = arith.constant 2 : index
    %c0_126 = arith.constant 0 : index
    %c0_127 = arith.constant 0 : index
    %260 = vector.load %arg5[%c2_125, %c0_126, %c0_127] : memref<25x32x32xf32, #tpu.memory_space<vmem>>, vector<1x32x32xf32>
    %261 = vector.shape_cast %260 : vector<1x32x32xf32> to vector<32x32xf32>
    %cst_128 = arith.constant dense<0.000000e+00> : vector<32x512xf32>
    %262 = tpu.matmul %261, %259, %cst_128 {dimension_numbers = #tpu.dot_dimension_numbers<[1], [0], [0], [1], [0, 0, 1, 1], [], []>} : vector<32x32xf32>, vector<32x512xf32>, vector<32x512xf32> -> vector<32x512xf32>
    %263 = arith.addf %255, %262 : vector<32x512xf32>
    %c31_i32_129 = arith.constant 31 : i32
    %264 = tpu.dynamic_rotate %238 by %c31_i32_129 dim 1 : vector<32x512xf32>, i32 -> vector<32x512xf32>
    %c3_130 = arith.constant 3 : index
    %c0_131 = arith.constant 0 : index
    %265 = vector.load %arg2[%c3_130, %c0_131] : memref<25x512xf32, #tpu.memory_space<vmem>>, vector<1x512xf32>
    %266 = vector.broadcast %265 : vector<1x512xf32> to vector<32x512xf32>
    %267 = arith.mulf %264, %266 : vector<32x512xf32>
    %c3_132 = arith.constant 3 : index
    %c0_133 = arith.constant 0 : index
    %c0_134 = arith.constant 0 : index
    %268 = vector.load %arg5[%c3_132, %c0_133, %c0_134] : memref<25x32x32xf32, #tpu.memory_space<vmem>>, vector<1x32x32xf32>
    %269 = vector.shape_cast %268 : vector<1x32x32xf32> to vector<32x32xf32>
    %cst_135 = arith.constant dense<0.000000e+00> : vector<32x512xf32>
    %270 = tpu.matmul %269, %267, %cst_135 {dimension_numbers = #tpu.dot_dimension_numbers<[1], [0], [0], [1], [0, 0, 1, 1], [], []>} : vector<32x32xf32>, vector<32x512xf32>, vector<32x512xf32> -> vector<32x512xf32>
    %271 = arith.addf %263, %270 : vector<32x512xf32>
    %c30_i32_136 = arith.constant 30 : i32
    %272 = tpu.dynamic_rotate %238 by %c30_i32_136 dim 1 : vector<32x512xf32>, i32 -> vector<32x512xf32>
    %c4_137 = arith.constant 4 : index
    %c0_138 = arith.constant 0 : index
    %273 = vector.load %arg2[%c4_137, %c0_138] : memref<25x512xf32, #tpu.memory_space<vmem>>, vector<1x512xf32>
    %274 = vector.broadcast %273 : vector<1x512xf32> to vector<32x512xf32>
    %275 = arith.mulf %272, %274 : vector<32x512xf32>
    %c4_139 = arith.constant 4 : index
    %c0_140 = arith.constant 0 : index
    %c0_141 = arith.constant 0 : index
    %276 = vector.load %arg5[%c4_139, %c0_140, %c0_141] : memref<25x32x32xf32, #tpu.memory_space<vmem>>, vector<1x32x32xf32>
    %277 = vector.shape_cast %276 : vector<1x32x32xf32> to vector<32x32xf32>
    %cst_142 = arith.constant dense<0.000000e+00> : vector<32x512xf32>
    %278 = tpu.matmul %277, %275, %cst_142 {dimension_numbers = #tpu.dot_dimension_numbers<[1], [0], [0], [1], [0, 0, 1, 1], [], []>} : vector<32x32xf32>, vector<32x512xf32>, vector<32x512xf32> -> vector<32x512xf32>
    %279 = arith.addf %271, %278 : vector<32x512xf32>
    %c18_i32_143 = arith.constant 18 : i32
    %280 = tpu.dynamic_rotate %238 by %c18_i32_143 dim 1 : vector<32x512xf32>, i32 -> vector<32x512xf32>
    %c5_144 = arith.constant 5 : index
    %c0_145 = arith.constant 0 : index
    %281 = vector.load %arg2[%c5_144, %c0_145] : memref<25x512xf32, #tpu.memory_space<vmem>>, vector<1x512xf32>
    %282 = vector.broadcast %281 : vector<1x512xf32> to vector<32x512xf32>
    %283 = arith.mulf %280, %282 : vector<32x512xf32>
    %c5_146 = arith.constant 5 : index
    %c0_147 = arith.constant 0 : index
    %c0_148 = arith.constant 0 : index
    %284 = vector.load %arg5[%c5_146, %c0_147, %c0_148] : memref<25x32x32xf32, #tpu.memory_space<vmem>>, vector<1x32x32xf32>
    %285 = vector.shape_cast %284 : vector<1x32x32xf32> to vector<32x32xf32>
    %cst_149 = arith.constant dense<0.000000e+00> : vector<32x512xf32>
    %286 = tpu.matmul %285, %283, %cst_149 {dimension_numbers = #tpu.dot_dimension_numbers<[1], [0], [0], [1], [0, 0, 1, 1], [], []>} : vector<32x32xf32>, vector<32x512xf32>, vector<32x512xf32> -> vector<32x512xf32>
    %287 = arith.addf %279, %286 : vector<32x512xf32>
    %c17_i32_150 = arith.constant 17 : i32
    %288 = tpu.dynamic_rotate %238 by %c17_i32_150 dim 1 : vector<32x512xf32>, i32 -> vector<32x512xf32>
    %c6_151 = arith.constant 6 : index
    %c0_152 = arith.constant 0 : index
    %289 = vector.load %arg2[%c6_151, %c0_152] : memref<25x512xf32, #tpu.memory_space<vmem>>, vector<1x512xf32>
    %290 = vector.broadcast %289 : vector<1x512xf32> to vector<32x512xf32>
    %291 = arith.mulf %288, %290 : vector<32x512xf32>
    %c6_153 = arith.constant 6 : index
    %c0_154 = arith.constant 0 : index
    %c0_155 = arith.constant 0 : index
    %292 = vector.load %arg5[%c6_153, %c0_154, %c0_155] : memref<25x32x32xf32, #tpu.memory_space<vmem>>, vector<1x32x32xf32>
    %293 = vector.shape_cast %292 : vector<1x32x32xf32> to vector<32x32xf32>
    %cst_156 = arith.constant dense<0.000000e+00> : vector<32x512xf32>
    %294 = tpu.matmul %293, %291, %cst_156 {dimension_numbers = #tpu.dot_dimension_numbers<[1], [0], [0], [1], [0, 0, 1, 1], [], []>} : vector<32x32xf32>, vector<32x512xf32>, vector<32x512xf32> -> vector<32x512xf32>
    %295 = arith.addf %287, %294 : vector<32x512xf32>
    %c16_i32_157 = arith.constant 16 : i32
    %296 = tpu.dynamic_rotate %238 by %c16_i32_157 dim 1 : vector<32x512xf32>, i32 -> vector<32x512xf32>
    %c7_158 = arith.constant 7 : index
    %c0_159 = arith.constant 0 : index
    %297 = vector.load %arg2[%c7_158, %c0_159] : memref<25x512xf32, #tpu.memory_space<vmem>>, vector<1x512xf32>
    %298 = vector.broadcast %297 : vector<1x512xf32> to vector<32x512xf32>
    %299 = arith.mulf %296, %298 : vector<32x512xf32>
    %c7_160 = arith.constant 7 : index
    %c0_161 = arith.constant 0 : index
    %c0_162 = arith.constant 0 : index
    %300 = vector.load %arg5[%c7_160, %c0_161, %c0_162] : memref<25x32x32xf32, #tpu.memory_space<vmem>>, vector<1x32x32xf32>
    %301 = vector.shape_cast %300 : vector<1x32x32xf32> to vector<32x32xf32>
    %cst_163 = arith.constant dense<0.000000e+00> : vector<32x512xf32>
    %302 = tpu.matmul %301, %299, %cst_163 {dimension_numbers = #tpu.dot_dimension_numbers<[1], [0], [0], [1], [0, 0, 1, 1], [], []>} : vector<32x32xf32>, vector<32x512xf32>, vector<32x512xf32> -> vector<32x512xf32>
    %303 = arith.addf %295, %302 : vector<32x512xf32>
    %c15_i32_164 = arith.constant 15 : i32
    %304 = tpu.dynamic_rotate %238 by %c15_i32_164 dim 1 : vector<32x512xf32>, i32 -> vector<32x512xf32>
    %c8_165 = arith.constant 8 : index
    %c0_166 = arith.constant 0 : index
    %305 = vector.load %arg2[%c8_165, %c0_166] : memref<25x512xf32, #tpu.memory_space<vmem>>, vector<1x512xf32>
    %306 = vector.broadcast %305 : vector<1x512xf32> to vector<32x512xf32>
    %307 = arith.mulf %304, %306 : vector<32x512xf32>
    %c8_167 = arith.constant 8 : index
    %c0_168 = arith.constant 0 : index
    %c0_169 = arith.constant 0 : index
    %308 = vector.load %arg5[%c8_167, %c0_168, %c0_169] : memref<25x32x32xf32, #tpu.memory_space<vmem>>, vector<1x32x32xf32>
    %309 = vector.shape_cast %308 : vector<1x32x32xf32> to vector<32x32xf32>
    %cst_170 = arith.constant dense<0.000000e+00> : vector<32x512xf32>
    %310 = tpu.matmul %309, %307, %cst_170 {dimension_numbers = #tpu.dot_dimension_numbers<[1], [0], [0], [1], [0, 0, 1, 1], [], []>} : vector<32x32xf32>, vector<32x512xf32>, vector<32x512xf32> -> vector<32x512xf32>
    %311 = arith.addf %303, %310 : vector<32x512xf32>
    %c14_i32_171 = arith.constant 14 : i32
    %312 = tpu.dynamic_rotate %238 by %c14_i32_171 dim 1 : vector<32x512xf32>, i32 -> vector<32x512xf32>
    %c9_172 = arith.constant 9 : index
    %c0_173 = arith.constant 0 : index
    %313 = vector.load %arg2[%c9_172, %c0_173] : memref<25x512xf32, #tpu.memory_space<vmem>>, vector<1x512xf32>
    %314 = vector.broadcast %313 : vector<1x512xf32> to vector<32x512xf32>
    %315 = arith.mulf %312, %314 : vector<32x512xf32>
    %c9_174 = arith.constant 9 : index
    %c0_175 = arith.constant 0 : index
    %c0_176 = arith.constant 0 : index
    %316 = vector.load %arg5[%c9_174, %c0_175, %c0_176] : memref<25x32x32xf32, #tpu.memory_space<vmem>>, vector<1x32x32xf32>
    %317 = vector.shape_cast %316 : vector<1x32x32xf32> to vector<32x32xf32>
    %cst_177 = arith.constant dense<0.000000e+00> : vector<32x512xf32>
    %318 = tpu.matmul %317, %315, %cst_177 {dimension_numbers = #tpu.dot_dimension_numbers<[1], [0], [0], [1], [0, 0, 1, 1], [], []>} : vector<32x32xf32>, vector<32x512xf32>, vector<32x512xf32> -> vector<32x512xf32>
    %319 = arith.addf %311, %318 : vector<32x512xf32>
    %c2_i32_178 = arith.constant 2 : i32
    %320 = tpu.dynamic_rotate %238 by %c2_i32_178 dim 1 : vector<32x512xf32>, i32 -> vector<32x512xf32>
    %c10_179 = arith.constant 10 : index
    %c0_180 = arith.constant 0 : index
    %321 = vector.load %arg2[%c10_179, %c0_180] : memref<25x512xf32, #tpu.memory_space<vmem>>, vector<1x512xf32>
    %322 = vector.broadcast %321 : vector<1x512xf32> to vector<32x512xf32>
    %323 = arith.mulf %320, %322 : vector<32x512xf32>
    %c10_181 = arith.constant 10 : index
    %c0_182 = arith.constant 0 : index
    %c0_183 = arith.constant 0 : index
    %324 = vector.load %arg5[%c10_181, %c0_182, %c0_183] : memref<25x32x32xf32, #tpu.memory_space<vmem>>, vector<1x32x32xf32>
    %325 = vector.shape_cast %324 : vector<1x32x32xf32> to vector<32x32xf32>
    %cst_184 = arith.constant dense<0.000000e+00> : vector<32x512xf32>
    %326 = tpu.matmul %325, %323, %cst_184 {dimension_numbers = #tpu.dot_dimension_numbers<[1], [0], [0], [1], [0, 0, 1, 1], [], []>} : vector<32x32xf32>, vector<32x512xf32>, vector<32x512xf32> -> vector<32x512xf32>
    %327 = arith.addf %319, %326 : vector<32x512xf32>
    %c1_i32_185 = arith.constant 1 : i32
    %328 = tpu.dynamic_rotate %238 by %c1_i32_185 dim 1 : vector<32x512xf32>, i32 -> vector<32x512xf32>
    %c11_186 = arith.constant 11 : index
    %c0_187 = arith.constant 0 : index
    %329 = vector.load %arg2[%c11_186, %c0_187] : memref<25x512xf32, #tpu.memory_space<vmem>>, vector<1x512xf32>
    %330 = vector.broadcast %329 : vector<1x512xf32> to vector<32x512xf32>
    %331 = arith.mulf %328, %330 : vector<32x512xf32>
    %c11_188 = arith.constant 11 : index
    %c0_189 = arith.constant 0 : index
    %c0_190 = arith.constant 0 : index
    %332 = vector.load %arg5[%c11_188, %c0_189, %c0_190] : memref<25x32x32xf32, #tpu.memory_space<vmem>>, vector<1x32x32xf32>
    %333 = vector.shape_cast %332 : vector<1x32x32xf32> to vector<32x32xf32>
    %cst_191 = arith.constant dense<0.000000e+00> : vector<32x512xf32>
    %334 = tpu.matmul %333, %331, %cst_191 {dimension_numbers = #tpu.dot_dimension_numbers<[1], [0], [0], [1], [0, 0, 1, 1], [], []>} : vector<32x32xf32>, vector<32x512xf32>, vector<32x512xf32> -> vector<32x512xf32>
    %335 = arith.addf %327, %334 : vector<32x512xf32>
    %c12_192 = arith.constant 12 : index
    %c0_193 = arith.constant 0 : index
    %c0_194 = arith.constant 0 : index
    %336 = vector.load %arg5[%c12_192, %c0_193, %c0_194] : memref<25x32x32xf32, #tpu.memory_space<vmem>>, vector<1x32x32xf32>
    %337 = vector.shape_cast %336 : vector<1x32x32xf32> to vector<32x32xf32>
    %cst_195 = arith.constant dense<0.000000e+00> : vector<32x512xf32>
    %338 = tpu.matmul %337, %238, %cst_195 {dimension_numbers = #tpu.dot_dimension_numbers<[1], [0], [0], [1], [0, 0, 1, 1], [], []>} : vector<32x32xf32>, vector<32x512xf32>, vector<32x512xf32> -> vector<32x512xf32>
    %339 = arith.addf %335, %338 : vector<32x512xf32>
    %c511_i32_196 = arith.constant 511 : i32
    %340 = tpu.dynamic_rotate %238 by %c511_i32_196 dim 1 : vector<32x512xf32>, i32 -> vector<32x512xf32>
    %c13_197 = arith.constant 13 : index
    %c0_198 = arith.constant 0 : index
    %341 = vector.load %arg2[%c13_197, %c0_198] : memref<25x512xf32, #tpu.memory_space<vmem>>, vector<1x512xf32>
    %342 = vector.broadcast %341 : vector<1x512xf32> to vector<32x512xf32>
    %343 = arith.mulf %340, %342 : vector<32x512xf32>
    %c13_199 = arith.constant 13 : index
    %c0_200 = arith.constant 0 : index
    %c0_201 = arith.constant 0 : index
    %344 = vector.load %arg5[%c13_199, %c0_200, %c0_201] : memref<25x32x32xf32, #tpu.memory_space<vmem>>, vector<1x32x32xf32>
    %345 = vector.shape_cast %344 : vector<1x32x32xf32> to vector<32x32xf32>
    %cst_202 = arith.constant dense<0.000000e+00> : vector<32x512xf32>
    %346 = tpu.matmul %345, %343, %cst_202 {dimension_numbers = #tpu.dot_dimension_numbers<[1], [0], [0], [1], [0, 0, 1, 1], [], []>} : vector<32x32xf32>, vector<32x512xf32>, vector<32x512xf32> -> vector<32x512xf32>
    %347 = arith.addf %339, %346 : vector<32x512xf32>
    %c510_i32_203 = arith.constant 510 : i32
    %348 = tpu.dynamic_rotate %238 by %c510_i32_203 dim 1 : vector<32x512xf32>, i32 -> vector<32x512xf32>
    %c14_204 = arith.constant 14 : index
    %c0_205 = arith.constant 0 : index
    %349 = vector.load %arg2[%c14_204, %c0_205] : memref<25x512xf32, #tpu.memory_space<vmem>>, vector<1x512xf32>
    %350 = vector.broadcast %349 : vector<1x512xf32> to vector<32x512xf32>
    %351 = arith.mulf %348, %350 : vector<32x512xf32>
    %c14_206 = arith.constant 14 : index
    %c0_207 = arith.constant 0 : index
    %c0_208 = arith.constant 0 : index
    %352 = vector.load %arg5[%c14_206, %c0_207, %c0_208] : memref<25x32x32xf32, #tpu.memory_space<vmem>>, vector<1x32x32xf32>
    %353 = vector.shape_cast %352 : vector<1x32x32xf32> to vector<32x32xf32>
    %cst_209 = arith.constant dense<0.000000e+00> : vector<32x512xf32>
    %354 = tpu.matmul %353, %351, %cst_209 {dimension_numbers = #tpu.dot_dimension_numbers<[1], [0], [0], [1], [0, 0, 1, 1], [], []>} : vector<32x32xf32>, vector<32x512xf32>, vector<32x512xf32> -> vector<32x512xf32>
    %355 = arith.addf %347, %354 : vector<32x512xf32>
    %c498_i32_210 = arith.constant 498 : i32
    %356 = tpu.dynamic_rotate %238 by %c498_i32_210 dim 1 : vector<32x512xf32>, i32 -> vector<32x512xf32>
    %c15_211 = arith.constant 15 : index
    %c0_212 = arith.constant 0 : index
    %357 = vector.load %arg2[%c15_211, %c0_212] : memref<25x512xf32, #tpu.memory_space<vmem>>, vector<1x512xf32>
    %358 = vector.broadcast %357 : vector<1x512xf32> to vector<32x512xf32>
    %359 = arith.mulf %356, %358 : vector<32x512xf32>
    %c15_213 = arith.constant 15 : index
    %c0_214 = arith.constant 0 : index
    %c0_215 = arith.constant 0 : index
    %360 = vector.load %arg5[%c15_213, %c0_214, %c0_215] : memref<25x32x32xf32, #tpu.memory_space<vmem>>, vector<1x32x32xf32>
    %361 = vector.shape_cast %360 : vector<1x32x32xf32> to vector<32x32xf32>
    %cst_216 = arith.constant dense<0.000000e+00> : vector<32x512xf32>
    %362 = tpu.matmul %361, %359, %cst_216 {dimension_numbers = #tpu.dot_dimension_numbers<[1], [0], [0], [1], [0, 0, 1, 1], [], []>} : vector<32x32xf32>, vector<32x512xf32>, vector<32x512xf32> -> vector<32x512xf32>
    %363 = arith.addf %355, %362 : vector<32x512xf32>
    %c497_i32_217 = arith.constant 497 : i32
    %364 = tpu.dynamic_rotate %238 by %c497_i32_217 dim 1 : vector<32x512xf32>, i32 -> vector<32x512xf32>
    %c16_218 = arith.constant 16 : index
    %c0_219 = arith.constant 0 : index
    %365 = vector.load %arg2[%c16_218, %c0_219] : memref<25x512xf32, #tpu.memory_space<vmem>>, vector<1x512xf32>
    %366 = vector.broadcast %365 : vector<1x512xf32> to vector<32x512xf32>
    %367 = arith.mulf %364, %366 : vector<32x512xf32>
    %c16_220 = arith.constant 16 : index
    %c0_221 = arith.constant 0 : index
    %c0_222 = arith.constant 0 : index
    %368 = vector.load %arg5[%c16_220, %c0_221, %c0_222] : memref<25x32x32xf32, #tpu.memory_space<vmem>>, vector<1x32x32xf32>
    %369 = vector.shape_cast %368 : vector<1x32x32xf32> to vector<32x32xf32>
    %cst_223 = arith.constant dense<0.000000e+00> : vector<32x512xf32>
    %370 = tpu.matmul %369, %367, %cst_223 {dimension_numbers = #tpu.dot_dimension_numbers<[1], [0], [0], [1], [0, 0, 1, 1], [], []>} : vector<32x32xf32>, vector<32x512xf32>, vector<32x512xf32> -> vector<32x512xf32>
    %371 = arith.addf %363, %370 : vector<32x512xf32>
    %c496_i32_224 = arith.constant 496 : i32
    %372 = tpu.dynamic_rotate %238 by %c496_i32_224 dim 1 : vector<32x512xf32>, i32 -> vector<32x512xf32>
    %c17_225 = arith.constant 17 : index
    %c0_226 = arith.constant 0 : index
    %373 = vector.load %arg2[%c17_225, %c0_226] : memref<25x512xf32, #tpu.memory_space<vmem>>, vector<1x512xf32>
    %374 = vector.broadcast %373 : vector<1x512xf32> to vector<32x512xf32>
    %375 = arith.mulf %372, %374 : vector<32x512xf32>
    %c17_227 = arith.constant 17 : index
    %c0_228 = arith.constant 0 : index
    %c0_229 = arith.constant 0 : index
    %376 = vector.load %arg5[%c17_227, %c0_228, %c0_229] : memref<25x32x32xf32, #tpu.memory_space<vmem>>, vector<1x32x32xf32>
    %377 = vector.shape_cast %376 : vector<1x32x32xf32> to vector<32x32xf32>
    %cst_230 = arith.constant dense<0.000000e+00> : vector<32x512xf32>
    %378 = tpu.matmul %377, %375, %cst_230 {dimension_numbers = #tpu.dot_dimension_numbers<[1], [0], [0], [1], [0, 0, 1, 1], [], []>} : vector<32x32xf32>, vector<32x512xf32>, vector<32x512xf32> -> vector<32x512xf32>
    %379 = arith.addf %371, %378 : vector<32x512xf32>
    %c495_i32_231 = arith.constant 495 : i32
    %380 = tpu.dynamic_rotate %238 by %c495_i32_231 dim 1 : vector<32x512xf32>, i32 -> vector<32x512xf32>
    %c18_232 = arith.constant 18 : index
    %c0_233 = arith.constant 0 : index
    %381 = vector.load %arg2[%c18_232, %c0_233] : memref<25x512xf32, #tpu.memory_space<vmem>>, vector<1x512xf32>
    %382 = vector.broadcast %381 : vector<1x512xf32> to vector<32x512xf32>
    %383 = arith.mulf %380, %382 : vector<32x512xf32>
    %c18_234 = arith.constant 18 : index
    %c0_235 = arith.constant 0 : index
    %c0_236 = arith.constant 0 : index
    %384 = vector.load %arg5[%c18_234, %c0_235, %c0_236] : memref<25x32x32xf32, #tpu.memory_space<vmem>>, vector<1x32x32xf32>
    %385 = vector.shape_cast %384 : vector<1x32x32xf32> to vector<32x32xf32>
    %cst_237 = arith.constant dense<0.000000e+00> : vector<32x512xf32>
    %386 = tpu.matmul %385, %383, %cst_237 {dimension_numbers = #tpu.dot_dimension_numbers<[1], [0], [0], [1], [0, 0, 1, 1], [], []>} : vector<32x32xf32>, vector<32x512xf32>, vector<32x512xf32> -> vector<32x512xf32>
    %387 = arith.addf %379, %386 : vector<32x512xf32>
    %c494_i32_238 = arith.constant 494 : i32
    %388 = tpu.dynamic_rotate %238 by %c494_i32_238 dim 1 : vector<32x512xf32>, i32 -> vector<32x512xf32>
    %c19_239 = arith.constant 19 : index
    %c0_240 = arith.constant 0 : index
    %389 = vector.load %arg2[%c19_239, %c0_240] : memref<25x512xf32, #tpu.memory_space<vmem>>, vector<1x512xf32>
    %390 = vector.broadcast %389 : vector<1x512xf32> to vector<32x512xf32>
    %391 = arith.mulf %388, %390 : vector<32x512xf32>
    %c19_241 = arith.constant 19 : index
    %c0_242 = arith.constant 0 : index
    %c0_243 = arith.constant 0 : index
    %392 = vector.load %arg5[%c19_241, %c0_242, %c0_243] : memref<25x32x32xf32, #tpu.memory_space<vmem>>, vector<1x32x32xf32>
    %393 = vector.shape_cast %392 : vector<1x32x32xf32> to vector<32x32xf32>
    %cst_244 = arith.constant dense<0.000000e+00> : vector<32x512xf32>
    %394 = tpu.matmul %393, %391, %cst_244 {dimension_numbers = #tpu.dot_dimension_numbers<[1], [0], [0], [1], [0, 0, 1, 1], [], []>} : vector<32x32xf32>, vector<32x512xf32>, vector<32x512xf32> -> vector<32x512xf32>
    %395 = arith.addf %387, %394 : vector<32x512xf32>
    %c482_i32_245 = arith.constant 482 : i32
    %396 = tpu.dynamic_rotate %238 by %c482_i32_245 dim 1 : vector<32x512xf32>, i32 -> vector<32x512xf32>
    %c20_246 = arith.constant 20 : index
    %c0_247 = arith.constant 0 : index
    %397 = vector.load %arg2[%c20_246, %c0_247] : memref<25x512xf32, #tpu.memory_space<vmem>>, vector<1x512xf32>
    %398 = vector.broadcast %397 : vector<1x512xf32> to vector<32x512xf32>
    %399 = arith.mulf %396, %398 : vector<32x512xf32>
    %c20_248 = arith.constant 20 : index
    %c0_249 = arith.constant 0 : index
    %c0_250 = arith.constant 0 : index
    %400 = vector.load %arg5[%c20_248, %c0_249, %c0_250] : memref<25x32x32xf32, #tpu.memory_space<vmem>>, vector<1x32x32xf32>
    %401 = vector.shape_cast %400 : vector<1x32x32xf32> to vector<32x32xf32>
    %cst_251 = arith.constant dense<0.000000e+00> : vector<32x512xf32>
    %402 = tpu.matmul %401, %399, %cst_251 {dimension_numbers = #tpu.dot_dimension_numbers<[1], [0], [0], [1], [0, 0, 1, 1], [], []>} : vector<32x32xf32>, vector<32x512xf32>, vector<32x512xf32> -> vector<32x512xf32>
    %403 = arith.addf %395, %402 : vector<32x512xf32>
    %c481_i32_252 = arith.constant 481 : i32
    %404 = tpu.dynamic_rotate %238 by %c481_i32_252 dim 1 : vector<32x512xf32>, i32 -> vector<32x512xf32>
    %c21_253 = arith.constant 21 : index
    %c0_254 = arith.constant 0 : index
    %405 = vector.load %arg2[%c21_253, %c0_254] : memref<25x512xf32, #tpu.memory_space<vmem>>, vector<1x512xf32>
    %406 = vector.broadcast %405 : vector<1x512xf32> to vector<32x512xf32>
    %407 = arith.mulf %404, %406 : vector<32x512xf32>
    %c21_255 = arith.constant 21 : index
    %c0_256 = arith.constant 0 : index
    %c0_257 = arith.constant 0 : index
    %408 = vector.load %arg5[%c21_255, %c0_256, %c0_257] : memref<25x32x32xf32, #tpu.memory_space<vmem>>, vector<1x32x32xf32>
    %409 = vector.shape_cast %408 : vector<1x32x32xf32> to vector<32x32xf32>
    %cst_258 = arith.constant dense<0.000000e+00> : vector<32x512xf32>
    %410 = tpu.matmul %409, %407, %cst_258 {dimension_numbers = #tpu.dot_dimension_numbers<[1], [0], [0], [1], [0, 0, 1, 1], [], []>} : vector<32x32xf32>, vector<32x512xf32>, vector<32x512xf32> -> vector<32x512xf32>
    %411 = arith.addf %403, %410 : vector<32x512xf32>
    %c480_i32_259 = arith.constant 480 : i32
    %412 = tpu.dynamic_rotate %238 by %c480_i32_259 dim 1 : vector<32x512xf32>, i32 -> vector<32x512xf32>
    %c22_260 = arith.constant 22 : index
    %c0_261 = arith.constant 0 : index
    %413 = vector.load %arg2[%c22_260, %c0_261] : memref<25x512xf32, #tpu.memory_space<vmem>>, vector<1x512xf32>
    %414 = vector.broadcast %413 : vector<1x512xf32> to vector<32x512xf32>
    %415 = arith.mulf %412, %414 : vector<32x512xf32>
    %c22_262 = arith.constant 22 : index
    %c0_263 = arith.constant 0 : index
    %c0_264 = arith.constant 0 : index
    %416 = vector.load %arg5[%c22_262, %c0_263, %c0_264] : memref<25x32x32xf32, #tpu.memory_space<vmem>>, vector<1x32x32xf32>
    %417 = vector.shape_cast %416 : vector<1x32x32xf32> to vector<32x32xf32>
    %cst_265 = arith.constant dense<0.000000e+00> : vector<32x512xf32>
    %418 = tpu.matmul %417, %415, %cst_265 {dimension_numbers = #tpu.dot_dimension_numbers<[1], [0], [0], [1], [0, 0, 1, 1], [], []>} : vector<32x32xf32>, vector<32x512xf32>, vector<32x512xf32> -> vector<32x512xf32>
    %419 = arith.addf %411, %418 : vector<32x512xf32>
    %c479_i32_266 = arith.constant 479 : i32
    %420 = tpu.dynamic_rotate %238 by %c479_i32_266 dim 1 : vector<32x512xf32>, i32 -> vector<32x512xf32>
    %c23_267 = arith.constant 23 : index
    %c0_268 = arith.constant 0 : index
    %421 = vector.load %arg2[%c23_267, %c0_268] : memref<25x512xf32, #tpu.memory_space<vmem>>, vector<1x512xf32>
    %422 = vector.broadcast %421 : vector<1x512xf32> to vector<32x512xf32>
    %423 = arith.mulf %420, %422 : vector<32x512xf32>
    %c23_269 = arith.constant 23 : index
    %c0_270 = arith.constant 0 : index
    %c0_271 = arith.constant 0 : index
    %424 = vector.load %arg5[%c23_269, %c0_270, %c0_271] : memref<25x32x32xf32, #tpu.memory_space<vmem>>, vector<1x32x32xf32>
    %425 = vector.shape_cast %424 : vector<1x32x32xf32> to vector<32x32xf32>
    %cst_272 = arith.constant dense<0.000000e+00> : vector<32x512xf32>
    %426 = tpu.matmul %425, %423, %cst_272 {dimension_numbers = #tpu.dot_dimension_numbers<[1], [0], [0], [1], [0, 0, 1, 1], [], []>} : vector<32x32xf32>, vector<32x512xf32>, vector<32x512xf32> -> vector<32x512xf32>
    %427 = arith.addf %419, %426 : vector<32x512xf32>
    %c478_i32_273 = arith.constant 478 : i32
    %428 = tpu.dynamic_rotate %238 by %c478_i32_273 dim 1 : vector<32x512xf32>, i32 -> vector<32x512xf32>
    %c24_274 = arith.constant 24 : index
    %c0_275 = arith.constant 0 : index
    %429 = vector.load %arg2[%c24_274, %c0_275] : memref<25x512xf32, #tpu.memory_space<vmem>>, vector<1x512xf32>
    %430 = vector.broadcast %429 : vector<1x512xf32> to vector<32x512xf32>
    %431 = arith.mulf %428, %430 : vector<32x512xf32>
    %c24_276 = arith.constant 24 : index
    %c0_277 = arith.constant 0 : index
    %c0_278 = arith.constant 0 : index
    %432 = vector.load %arg5[%c24_276, %c0_277, %c0_278] : memref<25x32x32xf32, #tpu.memory_space<vmem>>, vector<1x32x32xf32>
    %433 = vector.shape_cast %432 : vector<1x32x32xf32> to vector<32x32xf32>
    %cst_279 = arith.constant dense<0.000000e+00> : vector<32x512xf32>
    %434 = tpu.matmul %433, %431, %cst_279 {dimension_numbers = #tpu.dot_dimension_numbers<[1], [0], [0], [1], [0, 0, 1, 1], [], []>} : vector<32x32xf32>, vector<32x512xf32>, vector<32x512xf32> -> vector<32x512xf32>
    %435 = arith.addf %427, %434 : vector<32x512xf32>
    %c0_280 = arith.constant 0 : index
    %c0_281 = arith.constant 0 : index
    %436 = vector.load %arg6[%c0_280, %c0_281] : memref<32x1xf32, #tpu.memory_space<vmem>>, vector<32x1xf32>
    %437 = vector.broadcast %436 : vector<32x1xf32> to vector<32x512xf32>
    %438 = arith.addf %435, %437 : vector<32x512xf32>
    %cst_282 = arith.constant 0.000000e+00 : f32
    %439 = vector.broadcast %cst_282 : f32 to vector<32x512xf32>
    %440 = arith.cmpf ogt, %438, %439 : vector<32x512xf32>
    %cst_283 = arith.constant 0.000000e+00 : f32
    %441 = vector.broadcast %cst_283 : f32 to vector<32x512xf32>
    %442 = arith.minimumf %438, %441 : vector<32x512xf32>
    %443 = math.exp %442 : vector<32x512xf32>
    %cst_284 = arith.constant 1.000000e+00 : f32
    %444 = vector.broadcast %cst_284 : f32 to vector<32x512xf32>
    %445 = arith.subf %443, %444 : vector<32x512xf32>
    %446 = arith.select %440, %438, %445 : vector<32x512xi1>, vector<32x512xf32>
    %cst_285 = arith.constant 0.000000e+00 : f32
    %447 = vector.broadcast %cst_285 : f32 to vector<3x512xf32>
    %c0_286 = arith.constant 0 : index
    %c0_287 = arith.constant 0 : index
    %c0_288 = arith.constant 0 : index
    %448 = vector.load %arg7[%c0_286, %c0_287, %c0_288] : memref<1x3x32xf32, #tpu.memory_space<vmem>>, vector<1x3x32xf32>
    %449 = vector.shape_cast %448 : vector<1x3x32xf32> to vector<3x32xf32>
    %cst_289 = arith.constant dense<0.000000e+00> : vector<3x512xf32>
    %450 = tpu.matmul %449, %446, %cst_289 {dimension_numbers = #tpu.dot_dimension_numbers<[1], [0], [0], [1], [0, 0, 1, 1], [], []>} : vector<3x32xf32>, vector<32x512xf32>, vector<3x512xf32> -> vector<3x512xf32>
    %451 = arith.addf %447, %450 : vector<3x512xf32>
    %c0_290 = arith.constant 0 : index
    %c0_291 = arith.constant 0 : index
    %452 = vector.load %arg8[%c0_290, %c0_291] : memref<3x1xf32, #tpu.memory_space<vmem>>, vector<3x1xf32>
    %453 = vector.broadcast %452 : vector<3x1xf32> to vector<3x512xf32>
    %454 = arith.addf %451, %453 : vector<3x512xf32>
    %cst_292 = arith.constant 0.000000e+00 : f32
    %455 = vector.broadcast %cst_292 : f32 to vector<3x512xf32>
    %456 = arith.cmpf ogt, %454, %455 : vector<3x512xf32>
    %cst_293 = arith.constant 0.000000e+00 : f32
    %457 = vector.broadcast %cst_293 : f32 to vector<3x512xf32>
    %458 = arith.minimumf %454, %457 : vector<3x512xf32>
    %459 = math.exp %458 : vector<3x512xf32>
    %cst_294 = arith.constant 1.000000e+00 : f32
    %460 = vector.broadcast %cst_294 : f32 to vector<3x512xf32>
    %461 = arith.subf %459, %460 : vector<3x512xf32>
    %462 = arith.select %456, %454, %461 : vector<3x512xi1>, vector<3x512xf32>
    %cst_295 = arith.constant dense<0.000000e+00> : vector<3xf32>
    %463 = vector.multi_reduction <add>, %462, %cst_295 [1] : vector<3x512xf32> to vector<3xf32>
    %464 = vector.shape_cast %463 : vector<3xf32> to vector<3x1xf32>
    %cst_296 = arith.constant 5.120000e+02 : f32
    %465 = vector.broadcast %cst_296 : f32 to vector<3x1xf32>
    %466 = arith.divf %464, %465 : vector<3x1xf32>
    %467 = vector.broadcast %466 : vector<3x1xf32> to vector<3x512xf32>
    %468 = arith.subf %462, %467 : vector<3x512xf32>
    %469 = arith.mulf %468, %468 : vector<3x512xf32>
    %cst_297 = arith.constant dense<0.000000e+00> : vector<3xf32>
    %470 = vector.multi_reduction <add>, %469, %cst_297 [1] : vector<3x512xf32> to vector<3xf32>
    %471 = vector.shape_cast %470 : vector<3xf32> to vector<3x1xf32>
    %cst_298 = arith.constant 5.120000e+02 : f32
    %472 = vector.broadcast %cst_298 : f32 to vector<3x1xf32>
    %473 = arith.divf %471, %472 : vector<3x1xf32>
    %cst_299 = arith.constant 9.99999974E-6 : f32
    %474 = vector.broadcast %cst_299 : f32 to vector<3x1xf32>
    %475 = arith.addf %473, %474 : vector<3x1xf32>
    %476 = math.rsqrt %475 : vector<3x1xf32>
    %477 = vector.broadcast %476 : vector<3x1xf32> to vector<3x512xf32>
    %478 = arith.mulf %468, %477 : vector<3x512xf32>
    %cst_300 = arith.constant 0.000000e+00 : f32
    %479 = vector.broadcast %cst_300 : f32 to vector<3x512xf32>
    %480 = arith.cmpf ogt, %478, %479 : vector<3x512xf32>
    %cst_301 = arith.constant 0.000000e+00 : f32
    %481 = vector.broadcast %cst_301 : f32 to vector<3x512xf32>
    %482 = arith.cmpf olt, %478, %481 : vector<3x512xf32>
    %cst_302 = arith.constant -1.000000e+00 : f32
    %cst_303 = arith.constant 0.000000e+00 : f32
    %483 = vector.broadcast %cst_302 : f32 to vector<3x512xf32>
    %484 = vector.broadcast %cst_303 : f32 to vector<3x512xf32>
    %485 = arith.select %482, %483, %484 : vector<3x512xi1>, vector<3x512xf32>
    %cst_304 = arith.constant 1.000000e+00 : f32
    %486 = vector.broadcast %cst_304 : f32 to vector<3x512xf32>
    %487 = arith.select %480, %486, %485 : vector<3x512xi1>, vector<3x512xf32>
    %c0_305 = arith.constant 0 : index
    %c0_306 = arith.constant 0 : index
    %488 = vector.load %arg9[%c0_305, %c0_306] : memref<3x512xf32, #tpu.memory_space<vmem>>, vector<3x512xf32>
    tpu.vector_store %arg9[%c0_305, %c0_306], %487 {strides = array<i32>} : memref<3x512xf32, #tpu.memory_space<vmem>>, vector<3x512xf32>,
    return
  }
  func.func @transform_0(%arg0: i32) -> (i32, i32) {
    %c0_i32 = arith.constant 0 : i32
    %c0_i32_0 = arith.constant 0 : i32
    %c0_i32_1 = arith.constant 0 : i32
    return %c0_i32, %c0_i32_0 : i32, i32
  }
  func.func @transform_1(%arg0: i32) -> (i32, i32) {
    %c0_i32 = arith.constant 0 : i32
    %c0_i32_0 = arith.constant 0 : i32
    %c0_i32_1 = arith.constant 0 : i32
    return %c0_i32, %c0_i32_0 : i32, i32
  }
  func.func @transform_2(%arg0: i32) -> (i32, i32, i32) {
    %c0_i32 = arith.constant 0 : i32
    %c0_i32_0 = arith.constant 0 : i32
    %c0_i32_1 = arith.constant 0 : i32
    %c0_i32_2 = arith.constant 0 : i32
    return %c0_i32, %c0_i32_0, %c0_i32_1 : i32, i32, i32
  }
  func.func @transform_3(%arg0: i32) -> (i32, i32) {
    %c0_i32 = arith.constant 0 : i32
    %c0_i32_0 = arith.constant 0 : i32
    %c0_i32_1 = arith.constant 0 : i32
    return %c0_i32, %c0_i32_0 : i32, i32
  }
  func.func @transform_4(%arg0: i32) -> (i32, i32, i32) {
    %c0_i32 = arith.constant 0 : i32
    %c0_i32_0 = arith.constant 0 : i32
    %c0_i32_1 = arith.constant 0 : i32
    %c0_i32_2 = arith.constant 0 : i32
    return %c0_i32, %c0_i32_0, %c0_i32_1 : i32, i32, i32
  }
  func.func @transform_5(%arg0: i32) -> (i32, i32) {
    %c0_i32 = arith.constant 0 : i32
    %c0_i32_0 = arith.constant 0 : i32
    %c0_i32_1 = arith.constant 0 : i32
    return %c0_i32, %c0_i32_0 : i32, i32
  }
  func.func @transform_6(%arg0: i32) -> (i32, i32, i32) {
    %c0_i32 = arith.constant 0 : i32
    %c0_i32_0 = arith.constant 0 : i32
    %c0_i32_1 = arith.constant 0 : i32
    %c0_i32_2 = arith.constant 0 : i32
    return %c0_i32, %c0_i32_0, %c0_i32_1 : i32, i32, i32
  }
  func.func @transform_7(%arg0: i32) -> (i32, i32) {
    %c0_i32 = arith.constant 0 : i32
    %c0_i32_0 = arith.constant 0 : i32
    %c0_i32_1 = arith.constant 0 : i32
    return %c0_i32, %c0_i32_0 : i32, i32
  }
  func.func @transform_8(%arg0: i32) -> (i32, i32) {
    %c0_i32 = arith.constant 0 : i32
    %c0_i32_0 = arith.constant 0 : i32
    %c0_i32_1 = arith.constant 0 : i32
    return %c0_i32, %c0_i32_0 : i32, i32
  }
}

</mosaic_0001>

<bundles_post_ra>
// kernel: tpu_custom_call.1
= control target key start
LH: loop header
LB: loop body
LE: loop exit
PB: predicated region body
PF: predicated region fallthrough
CT: control target
= control target key end

     0   :  { %13 = vsyncpa [#allocation3], 0  ;;  %s17312_s0 = inlined_call_operand.vmem [shape: f32[1,512], index: 0, kind: input, shape index: {}]   ;;  %s17313_s1 = inlined_call_operand.hbm [shape: f32[25,512], index: 1, kind: input, shape index: {}]   ;;  %s17314_s2 = inlined_call_operand.vmem [shape: f32[25,32,1], index: 2, kind: input, shape index: {}]   ;;  %s17315_s3 = inlined_call_operand.vmem [shape: f32[32,1], index: 3, kind: input, shape index: {}]   ;;  %s17316_s4 = inlined_call_operand.vmem [shape: f32[25,32,32], index: 4, kind: input, shape index: {}]   ;;  %s17317_s5 = inlined_call_operand.vmem [shape: f32[32,1], index: 5, kind: input, shape index: {}]   ;;  %s17318_s6 = inlined_call_operand.vmem [shape: f32[1,3,32], index: 6, kind: input, shape index: {}]   ;;  %s17319_s7 = inlined_call_operand.vmem [shape: f32[3,1], index: 7, kind: input, shape index: {}]   ;;  %s17320_s8 = inlined_call_operand.hbm [shape: f32[3,512], index: 8, kind: output, shape index: {}]  }
   0x1   :  { %14 = vsyncpa [#allocation4], 0  ;;  %s11525_s27 = smov [#allocation2]   ;;  %s11477_s9 = scalar_lea.hbm %s17313_s1, 2048 }
   0x2   :  { %s22_s28 = sshll.u32 %s11525_s27, 4  ;;  %p11478_p0 = scmp.ne.s32.totalorder %s17313_s1, %s11477_s9  ;;  %s23_s28 = int_to_ptr.vmem [resolvable:$true] %s22_s28 }
   0x3   :  { %p11481_p1 = scmp.lt.u32.totalorder %s11477_s9, %s17313_s1 }
   0x5   :  { %p11483_p2 = pnand %p11481_p1, %p11478_p0 }
   0x7   :  { %11486 = shalt.err (!%p11483_p2)
}
   0x8   :  { %s11487_s14 = scalar_lea.vmem %s23_s28, 2048  ;;  %p11492_p4 = scmp.lt.s32.totalorder %s23_s28, %s23_s28 }
   0x9   :  { %p11488_p3 = scmp.ne.s32.totalorder %s23_s28, %s11487_s14  ;;  %p11493_p5 = scmp.lt.s32.totalorder %s11487_s14, %s11487_s14 }
   0xb   :  { %p11494_p6 = por %p11493_p5, %p11492_p4 }
   0xd   :  { %p11495_p7 = pnand %p11494_p6, %p11488_p3 }
   0xf   :  { %11498 = shalt.err (!%p11495_p7)
}
  0x10   :  { %s11526_s15 = smov 512   ;;  %s11527_s16 = smov 32  }
  0x11   :  { %28 = dma.hbm_to_vmem [thread:$0]  %s17313_s1, 2048, %s23_s28, [#allocation3], %s11526_s15, %s11526_s15, %s11527_s16  }
  0x12   :  { %11521 = dma.done.wait [#allocation3], 2048  }
  0x13   :  { %11522 = vsyncadd [#allocation3], 4294965248  ;;  %v11528_v0 = vmov 0   ;;  %v17321_v1 = vlaneseq  ;;  %v110_v3 = vld [vmem:[%s17314_s2 + $0x8] sm:$0xff]  ;;  %v109_v4 = vld [vmem:[%s17314_s2] sm:$0xff]  ;;  %s11530_s28 = smov 33  }
  0x14   :  { %11402 = vset.pattern.permute.xlu1 %v11528_v0  ;;  %11401 = vset.pattern.permute.xlu0 %v11528_v0  ;;  %v44_v5 = vld [vmem:[%s17312_s0] sm:$0xf]  ;;  %v111_v6 = vld [vmem:[%s17314_s2 + $0x10] sm:$0xff]  ;;  %s11529_s0 = smov 34   ;;  %v112_v17 = vld [vmem:[%s17314_s2 + $0x18] sm:$0xff]  ;;  %s11531_s1 = smov 31  }
  0x15   :  { %v49_v2 = vshrl.u32 %v17321_v1, 7  ;;  %120 = vperm.xlu1 %11402, %v110_v3   ;;  %115 = vperm.xlu0 %11401, %v109_v4   ;;  %v45_v7 = vmul.f32 2.0, %v44_v5  ;;  %v10142_v18 = vld [vmem:[%s17314_s2 + $0x20] sm:$0xff]  ;;  %v10143_v19 = vld [vmem:[%s17314_s2 + $0x28] sm:$0xff]  ;;  %v10144_v20 = vld [vmem:[%s17314_s2 + $0x30] sm:$0xff]  ;;  %s11532_s11 = smov 30  }
  0x16   :  { %v10145_v21 = vld [vmem:[%s17314_s2 + $0x38] sm:$0xff]  ;;  %v10146_v22 = vld [vmem:[%s17314_s2 + $0x40] sm:$0xff]  ;;  %v10147_v23 = vld [vmem:[%s17314_s2 + $0x48] sm:$0xff]  ;;  %s11533_s21 = smov 18   ;;  %s11534_s9 = smov 17  }
  0x17   :  { %v11625_v8 = vsub.s32 0, %v49_v2  ;;  %v11627_v9 = vsub.s32 2, %v49_v2  ;;  %v10141_v10 = vadd.f32 -1.0, %v45_v7  ;;  %v11629_v11 = vsub.s32 1, %v49_v2  ;;  %v10148_v24 = vld [vmem:[%s17314_s2 + $0x50] sm:$0xff]  ;;  %v10149_v25 = vld [vmem:[%s17314_s2 + $0x58] sm:$0xff] }
  0x18   :  { %v11631_v12 = vsub.s32 3, %v49_v2  ;;  %v10150_v26 = vld [vmem:[%s17314_s2 + $0x60] sm:$0xff]  ;;  %v10151_v27 = vld [vmem:[%s17314_s2 + $0x68] sm:$0xff]  ;;  %v10152_v28 = vld [vmem:[%s17314_s2 + $0x70] sm:$0xff]  ;;  %s11535_s25 = smov 16   ;;  %s11536_s15 = smov 15  }
  0x19   :  { %125 = vperm.xlu1 %11402, %v111_v6   ;;  %v11634_v13 = vrot.slane %v10141_v10, %v11625_v8  ;;  %v11637_v14 = vrot.slane %v10141_v10, %v11627_v9  ;;  %v11642_v15 = vrot.slane %v10141_v10, %v11629_v11  ;;  %v10153_v29 = vld [vmem:[%s17314_s2 + $0x78] sm:$0xff]  ;;  %v10154_v30 = vld [vmem:[%s17314_s2 + $0x80] sm:$0xff]  ;;  %v10155_v31 = vld [vmem:[%s17314_s2 + $0x88] sm:$0xff]  ;;  %s11537_s27 = smov 14   ;;  %s11538_s19 = smov 2  }
  0x1a   :  { %v11647_v16 = vrot.slane %v10141_v10, %v11631_v12  ;;  %v10156_v32 = vld [vmem:[%s17314_s2 + $0x90] sm:$0xff]  ;;  %v10157_v33 = vld [vmem:[%s17314_s2 + $0x98] sm:$0xff]  ;;  %v10158_v34 = vld [vmem:[%s17314_s2 + $0xa0] sm:$0xff]  ;;  %s11539_s12 = smov 1   ;;  %s11540_s20 = smov 127  }
  0x1b   :  { %17545 = vst [vmem:[#allocation8_spill] sm:$0xff] %v11637_v14  ;;  %68 = vrot.lane.b32.xlu0 %v11634_v13, %s11529_s0  ;;  %v10159_v35 = vld [vmem:[%s17314_s2 + $0xa8] sm:$0xff]  ;;  %v10160_v36 = vld [vmem:[%s17314_s2 + $0xb0] sm:$0xff]  ;;  %v10161_v37 = vld [vmem:[%s17314_s2 + $0xb8] sm:$0xff]  ;;  %s11541_s14 = smov 126   ;;  %s11542_s10 = smov 114  }
  0x1c   :  { %v10162_v38 = vld [vmem:[%s17314_s2 + $0xc0] sm:$0xff]  ;;  %v10163_v39 = vld [vmem:[%s17314_s2 + $0xc8] sm:$0xff]  ;;  %v10164_v40 = vld [vmem:[%s17314_s2 + $0xd0] sm:$0xff]  ;;  %s11543_s30 = smov 113   ;;  %s11544_s13 = smov 112  }
  0x1d   :  { %72 = vrot.lane.b32.xlu1 %v11637_v14, %s11529_s0  ;;  %v10165_v41 = vld [vmem:[%s17314_s2 + $0xd8] sm:$0xff]  ;;  %v10166_v42 = vld [vmem:[%s17314_s2 + $0xe0] sm:$0xff]  ;;  %v10167_v43 = vld [vmem:[%s17314_s2 + $0xe8] sm:$0xff]  ;;  %s11545_s18 = smov 111   ;;  %s11546_s24 = smov 110  }
  0x1e   :  { %v10170_v44 = vld [vmem:[%s17314_s2 + $0x100] sm:$0xff]  ;;  %v10171_v45 = vld [vmem:[%s17314_s2 + $0x108] sm:$0xff]  ;;  %v10168_v46 = vld [vmem:[%s17314_s2 + $0xf0] sm:$0xff]  ;;  %s17460_s22 = smov 98   ;;  %s17467_s23 = smov 97  }
  0x1f   :  { %70 = vrot.lane.b32.xlu0 %v11642_v15, %s11529_s0  ;;  %v10169_v49 = vld [vmem:[%s17314_s2 + $0xf8] sm:$0xff]  ;;  %v10174_v53 = vld [vmem:[%s17314_s2 + $0x120] sm:$0xff]  ;;  %v10175_v54 = vld [vmem:[%s17314_s2 + $0x128] sm:$0xff]  ;;  %s18094_s29 = smov 94  }
  0x20   :  { %v10172_v57 = vld [vmem:[%s17314_s2 + $0x110] sm:$0xff]  ;;  %v10173_v60 = vld [vmem:[%s17314_s2 + $0x118] sm:$0xff]  ;;  %v10178_v2 = vld [vmem:[%s17314_s2 + $0x140] sm:$0xff] }
  0x21   :  { %74 = vrot.lane.b32.xlu1 %v11647_v16, %s11529_s0  ;;  %v10179_v3 = vld [vmem:[%s17314_s2 + $0x148] sm:$0xff]  ;;  %v10176_v6 = vld [vmem:[%s17314_s2 + $0x130] sm:$0xff] }
  0x23   :  { %130 = vperm.xlu0 %11401, %v112_v17   ;;  %v10177_v17 = vld [vmem:[%s17314_s2 + $0x138] sm:$0xff] }
  0x25   :  { %181 = vrot.lane.b32.xlu1 %v11634_v13, %s11530_s28 }
  0x27   :  { %183 = vrot.lane.b32.xlu0 %v11642_v15, %s11530_s28 }
  0x29   :  { %185 = vrot.lane.b32.xlu1 %v11637_v14, %s11530_s28 }
  0x2b   :  { %187 = vrot.lane.b32.xlu0 %v11647_v16, %s11530_s28 }
  0x2d   :  { %228 = vperm.xlu1 %11402, %v10142_v18  }
  0x2f   :  { %233 = vperm.xlu0 %11401, %v10143_v19  }
  0x31   :  { %238 = vperm.xlu1 %11402, %v10144_v20  }
  0x33   :  { %243 = vperm.xlu0 %11401, %v10145_v21  }
  0x35   :  { %294 = vrot.lane.b32.xlu1 %v11634_v13, %s11527_s16 }
  0x37   :  { %296 = vrot.lane.b32.xlu0 %v11642_v15, %s11527_s16 }
  0x39   :  { %298 = vrot.lane.b32.xlu1 %v11637_v14, %s11527_s16 }
  0x3b   :  { %300 = vrot.lane.b32.xlu0 %v11647_v16, %s11527_s16 }
  0x3d   :  { %341 = vperm.xlu1 %11402, %v10146_v22   ;;  %v10182_v22 = vld [vmem:[%s17314_s2 + $0x160] sm:$0xff] }
  0x3f   :  { %346 = vperm.xlu0 %11401, %v10147_v23   ;;  %v10183_v23 = vld [vmem:[%s17314_s2 + $0x168] sm:$0xff] }
  0x41   :  { %351 = vperm.xlu1 %11402, %v10148_v24  }
  0x43   :  { %356 = vperm.xlu0 %11401, %v10149_v25  }
  0x45   :  { %407 = vrot.lane.b32.xlu1 %v11634_v13, %s11531_s1 }
  0x47   :  { %409 = vrot.lane.b32.xlu0 %v11642_v15, %s11531_s1 }
  0x49   :  { %411 = vrot.lane.b32.xlu1 %v11637_v14, %s11531_s1 }
  0x4b   :  { %413 = vrot.lane.b32.xlu0 %v11647_v16, %s11531_s1 }
  0x4d   :  { %454 = vperm.xlu1 %11402, %v10150_v26   ;;  %v10180_v26 = vld [vmem:[%s17314_s2 + $0x150] sm:$0xff] }
  0x4f   :  { %459 = vperm.xlu0 %11401, %v10151_v27  }
  0x51   :  { %464 = vperm.xlu1 %11402, %v10152_v28  }
  0x53   :  { %469 = vperm.xlu0 %11401, %v10153_v29   ;;  %v10181_v29 = vld [vmem:[%s17314_s2 + $0x158] sm:$0xff] }
  0x55   :  { %520 = vrot.lane.b32.xlu1 %v11634_v13, %s11532_s11 }
  0x57   :  { %522 = vrot.lane.b32.xlu0 %v11642_v15, %s11532_s11 }
  0x59   :  { %524 = vrot.lane.b32.xlu1 %v11637_v14, %s11532_s11 }
  0x5b   :  { %526 = vrot.lane.b32.xlu0 %v11647_v16, %s11532_s11 }
  0x5d   :  { %567 = vperm.xlu1 %11402, %v10154_v30  }
  0x5f   :  { %572 = vperm.xlu0 %11401, %v10155_v31  }
  0x61   :  { %577 = vperm.xlu1 %11402, %v10156_v32  }
  0x63   :  { %582 = vperm.xlu0 %11401, %v10157_v33  }
  0x65   :  { %633 = vrot.lane.b32.xlu1 %v11634_v13, %s11533_s21 }
  0x67   :  { %635 = vrot.lane.b32.xlu0 %v11642_v15, %s11533_s21 }
  0x69   :  { %637 = vrot.lane.b32.xlu1 %v11637_v14, %s11533_s21 }
  0x6b   :  { %639 = vrot.lane.b32.xlu0 %v11647_v16, %s11533_s21 }
  0x6d   :  { %680 = vperm.xlu1 %11402, %v10158_v34   ;;  %v10186_v34 = vld [vmem:[%s17314_s2 + $0x180] sm:$0xff] }
  0x6f   :  { %685 = vperm.xlu0 %11401, %v10159_v35   ;;  %v10187_v35 = vld [vmem:[%s17314_s2 + $0x188] sm:$0xff] }
  0x71   :  { %690 = vperm.xlu1 %11402, %v10160_v36  }
  0x73   :  { %695 = vperm.xlu0 %11401, %v10161_v37  }
  0x75   :  { %746 = vrot.lane.b32.xlu1 %v11634_v13, %s11534_s9 }
  0x77   :  { %748 = vrot.lane.b32.xlu0 %v11642_v15, %s11534_s9 }
  0x79   :  { %750 = vrot.lane.b32.xlu1 %v11637_v14, %s11534_s9 }
  0x7b   :  { %752 = vrot.lane.b32.xlu0 %v11647_v16, %s11534_s9 }
  0x7d   :  { %793 = vperm.xlu1 %11402, %v10162_v38   ;;  %v10184_v38 = vld [vmem:[%s17314_s2 + $0x170] sm:$0xff] }
  0x7f   :  { %798 = vperm.xlu0 %11401, %v10163_v39  }
  0x81   :  { %803 = vperm.xlu1 %11402, %v10164_v40  }
  0x83   :  { %808 = vperm.xlu0 %11401, %v10165_v41   ;;  %v10185_v41 = vld [vmem:[%s17314_s2 + $0x178] sm:$0xff] }
  0x85   :  { %906 = vperm.xlu1 %11402, %v10166_v42   ;;  %v10190_v42 = vld [vmem:[%s17314_s2 + $0x1a0] sm:$0xff] }
  0x87   :  { %911 = vperm.xlu0 %11401, %v10167_v43  }
  0x89   :  { %859 = vrot.lane.b32.xlu1 %v11634_v13, %s11535_s25 }
  0x8b   :  { %861 = vrot.lane.b32.xlu0 %v11642_v15, %s11535_s25 }
  0x8d   :  { %865 = vrot.lane.b32.xlu1 %v11647_v16, %s11535_s25 }
  0x8f   :  { %1019 = vperm.xlu0 %11401, %v10170_v44  }
  0x91   :  { %1024 = vperm.xlu1 %11402, %v10171_v45   ;;  %v10191_v45 = vld [vmem:[%s17314_s2 + $0x1a8] sm:$0xff] }
  0x93   :  { %863 = vrot.lane.b32.xlu0 %v11637_v14, %s11535_s25 }
  0x94   :  { %v11799_v47 = vpop.permute.xlu1 %120  ;;  %v11801_v48 = vpop.permute.xlu0 %115 }
  0x95   :  { %916 = vperm.xlu1 %11402, %v10168_v46   ;;  %v10188_v46 = vld [vmem:[%s17314_s2 + $0x190] sm:$0xff] }
  0x97   :  { %921 = vperm.xlu0 %11401, %v10169_v49  }
  0x98   :  { %v11806_v50 = vpop.permute.xlu1 %125  ;;  %v11808_v51 = vpop.permute.xlu0 %68 }
  0x99   :  { %972 = vrot.lane.b32.xlu1 %v11634_v13, %s11536_s15 }
  0x9b   :  { %974 = vrot.lane.b32.xlu0 %v11642_v15, %s11536_s15 }
  0x9c   :  { %v11814_v52 = vpop.permute.xlu1 %72  ;;  %v11824_v55 = vpop.permute.xlu0 %70 }
  0x9d   :  { %978 = vrot.lane.b32.xlu1 %v11647_v16, %s11536_s15 }
  0x9f   :  { %1132 = vperm.xlu0 %11401, %v10174_v53  }
  0xa0   :  { %v11826_v56 = vpop.permute.xlu1 %74 }
  0xa1   :  { %1137 = vperm.xlu1 %11402, %v10175_v54   ;;  %v10189_v54 = vld [vmem:[%s17314_s2 + $0x198] sm:$0xff] }
  0xa2   :  { %v11831_v58 = vpop.permute.xlu0 %130 }
  0xa3   :  { %976 = vrot.lane.b32.xlu0 %v11637_v14, %s11536_s15 }
  0xa4   :  { %v11835_v59 = vpop.permute.xlu1 %181 }
  0xa5   :  { %1029 = vperm.xlu1 %11402, %v10172_v57  }
  0xa6   :  { %v11840_v61 = vpop.permute.xlu0 %183 }
  0xa7   :  { %1034 = vperm.xlu0 %11401, %v10173_v60  }
  0xa8   :  { %v11842_v62 = vpop.permute.xlu1 %185 }
  0xa9   :  { %1085 = vrot.lane.b32.xlu1 %v11634_v13, %s11537_s27 }
  0xaa   :  { %v11846_v63 = vpop.permute.xlu0 %187 }
  0xab   :  { %1087 = vrot.lane.b32.xlu0 %v11642_v15, %s11537_s27 }
  0xac   :  { %v11850_v0 = vpop.permute.xlu1 %228 }
  0xad   :  { %1091 = vrot.lane.b32.xlu1 %v11647_v16, %s11537_s27 }
  0xae   :  { %v11860_v4 = vpop.permute.xlu0 %233 }
  0xaf   :  { %1245 = vperm.xlu0 %11401, %v10178_v2  }
  0xb0   :  { %v11862_v5 = vpop.permute.xlu1 %238 }
  0xb1   :  { %1250 = vperm.xlu1 %11402, %v10179_v3  }
  0xb2   :  { %v11867_v7 = vpop.permute.xlu0 %243 }
  0xb3   :  { %1089 = vrot.lane.b32.xlu0 %v11637_v14, %s11537_s27 }
  0xb4   :  { %v11871_v10 = vpop.permute.xlu1 %294 }
  0xb5   :  { %1142 = vperm.xlu1 %11402, %v10176_v6   ;;  %v10194_v6 = vld [vmem:[%s17314_s2 + $0x1c0] sm:$0xff] }
  0xb6   :  { %v11876_v18 = vpop.permute.xlu0 %296 }
  0xb7   :  { %1147 = vperm.xlu0 %11401, %v10177_v17   ;;  %v10195_v17 = vld [vmem:[%s17314_s2 + $0x1c8] sm:$0xff] }
  0xb8   :  { %v11878_v19 = vpop.permute.xlu1 %298 }
  0xb9   :  { %1198 = vrot.lane.b32.xlu1 %v11634_v13, %s11538_s19 }
  0xba   :  { %v11882_v20 = vpop.permute.xlu0 %300 }
  0xbb   :  { %1200 = vrot.lane.b32.xlu0 %v11642_v15, %s11538_s19 }
  0xbc   :  { %v11886_v21 = vpop.permute.xlu1 %341 }
  0xbd   :  { %1204 = vrot.lane.b32.xlu1 %v11647_v16, %s11538_s19 }
  0xbe   :  { %v11896_v24 = vpop.permute.xlu0 %346 }
  0xbf   :  { %1358 = vperm.xlu0 %11401, %v10182_v22  }
  0xc0   :  { %v11898_v25 = vpop.permute.xlu1 %351 }
  0xc1   :  { %17546 = vst [vmem:[#allocation9_spill] sm:$0xff] %v11898_v25  ;;  %1363 = vperm.xlu1 %11402, %v10183_v23  }
  0xc2   :  { %v11903_v27 = vpop.permute.xlu0 %356 }
  0xc3   :  { %17547 = vst [vmem:[#allocation10_spill] sm:$0xff] %v11903_v27  ;;  %1202 = vrot.lane.b32.xlu0 %v11637_v14, %s11538_s19 }
  0xc4   :  { %v11907_v28 = vpop.permute.xlu1 %407 }
  0xc5   :  { %1255 = vperm.xlu1 %11402, %v10180_v26   ;;  %v10192_v26 = vld [vmem:[%s17314_s2 + $0x1b0] sm:$0xff] }
  0xc6   :  { %v11912_v30 = vpop.permute.xlu0 %409 }
  0xc7   :  { %1260 = vperm.xlu0 %11401, %v10181_v29  }
  0xc8   :  { %v11914_v31 = vpop.permute.xlu1 %411 }
  0xc9   :  { %1311 = vrot.lane.b32.xlu1 %v11634_v13, %s11539_s12 }
  0xca   :  { %v11918_v32 = vpop.permute.xlu0 %413 }
  0xcb   :  { %17548 = vst [vmem:[#allocation11_spill] sm:$0xff] %v11918_v32  ;;  %1313 = vrot.lane.b32.xlu0 %v11642_v15, %s11539_s12 }
  0xcc   :  { %v11922_v33 = vpop.permute.xlu1 %454 }
  0xcd   :  { %17549 = vst [vmem:[#allocation12_spill] sm:$0xff] %v11922_v33  ;;  %1317 = vrot.lane.b32.xlu1 %v11647_v16, %s11539_s12 }
  0xce   :  { %v11932_v36 = vpop.permute.xlu0 %459 }
  0xcf   :  { %17550 = vst [vmem:[#allocation13_spill] sm:$0xff] %v11932_v36  ;;  %1431 = vperm.xlu0 %11401, %v10186_v34  }
  0xd0   :  { %v11934_v37 = vpop.permute.xlu1 %464 }
  0xd1   :  { %17551 = vst [vmem:[#allocation14_spill] sm:$0xff] %v11934_v37  ;;  %1436 = vperm.xlu1 %11402, %v10187_v35   ;;  %v10193_v35 = vld [vmem:[%s17314_s2 + $0x1b8] sm:$0xff] }
  0xd2   :  { %v11939_v39 = vpop.permute.xlu0 %469 }
  0xd3   :  { %17552 = vst [vmem:[#allocation15_spill] sm:$0xff] %v11939_v39  ;;  %1315 = vrot.lane.b32.xlu0 %v11637_v14, %s11539_s12  ;;  %v10203_v39 = vld [vmem:[%s17314_s2 + $0x208] sm:$0xff] }
  0xd4   :  { %v11943_v40 = vpop.permute.xlu1 %520 }
  0xd5   :  { %17553 = vst [vmem:[#allocation16_spill] sm:$0xff] %v11943_v40  ;;  %1368 = vperm.xlu1 %11402, %v10184_v38  }
  0xd6   :  { %v11951_v43 = vpop.permute.xlu0 %522 }
  0xd7   :  { %17554 = vst [vmem:[#allocation17_spill] sm:$0xff] %v11951_v43  ;;  %1373 = vperm.xlu0 %11401, %v10185_v41  }
  0xd8   :  { %v11953_v44 = vpop.permute.xlu1 %524 }
  0xd9   :  { %17555 = vst [vmem:[#allocation18_spill] sm:$0xff] %v11953_v44  ;;  %1528 = vperm.xlu1 %11402, %v10190_v42  }
  0xda   :  { %v11961_v49 = vpop.permute.xlu0 %526 }
  0xdb   :  { %17556 = vst [vmem:[#allocation19_spill] sm:$0xff] %v11961_v49  ;;  %1533 = vperm.xlu0 %11401, %v10191_v45  }
  0xdc   :  { %v11963_v53 = vpop.permute.xlu1 %567 }
  0xdd   :  { %17557 = vst [vmem:[#allocation20_spill] sm:$0xff] %v11963_v53  ;;  %1441 = vperm.xlu1 %11402, %v10188_v46   ;;  %v10198_v46 = vld [vmem:[%s17314_s2 + $0x1e0] sm:$0xff] }
  0xde   :  { %v11968_v57 = vpop.permute.xlu0 %572 }
  0xdf   :  { %17558 = vst [vmem:[#allocation21_spill] sm:$0xff] %v11968_v57  ;;  %1446 = vperm.xlu0 %11401, %v10189_v54   ;;  %v10199_v54 = vld [vmem:[%s17314_s2 + $0x1e8] sm:$0xff] }
  0xe0   :  { %v11970_v60 = vpop.permute.xlu1 %577 }
  0xe1   :  { %17559 = vst [vmem:[#allocation22_spill] sm:$0xff] %v11970_v60  ;;  %1481 = vrot.lane.b32.xlu1 %v11634_v13, %s11540_s20  ;;  %v534_v60 = vld [vmem:[#allocation2 + $0x4] ss:$8 sm:$0xf] }
  0xe2   :  { %v11974_v2 = vpop.permute.xlu0 %582  ;;  %v12122_v36 = vrot.slane %v534_v60, %v11629_v11  ;;  %v12132_v33 = vrot.slane %v534_v60, %v11627_v9  ;;  %v12135_v27 = vrot.slane %v534_v60, %v11625_v8 }
  0xe3   :  { %17560 = vst [vmem:[#allocation23_spill] sm:$0xff] %v11974_v2  ;;  %1483 = vrot.lane.b32.xlu0 %v11642_v15, %s11540_s20 }
  0xe4   :  { %v11978_v3 = vpop.permute.xlu1 %633  ;;  %17595 = vst [vmem:[#allocation57_spill] sm:$0xff] %v12122_v36  ;;  %17597 = vst [vmem:[#allocation59_spill] sm:$0xff] %v12132_v33 }
  0xe5   :  { %17561 = vst [vmem:[#allocation24_spill] sm:$0xff] %v11978_v3  ;;  %1485 = vrot.lane.b32.xlu1 %v11637_v14, %s11540_s20  ;;  %17598 = vst [vmem:[#allocation60_spill] sm:$0xff] %v12135_v27 }
  0xe6   :  { %v11988_v22 = vpop.permute.xlu0 %635 }
  0xe7   :  { %17562 = vst [vmem:[#allocation25_spill] sm:$0xff] %v11988_v22  ;;  %1641 = vperm.xlu0 %11401, %v10194_v6  }
  0xe8   :  { %v11990_v23 = vpop.permute.xlu1 %637 }
  0xe9   :  { %17563 = vst [vmem:[#allocation26_spill] sm:$0xff] %v11990_v23  ;;  %1646 = vperm.xlu1 %11402, %v10195_v17  }
  0xea   :  { %v11995_v29 = vpop.permute.xlu0 %639 }
  0xeb   :  { %17564 = vst [vmem:[#allocation27_spill] sm:$0xff] %v11995_v29  ;;  %1487 = vrot.lane.b32.xlu0 %v11647_v16, %s11540_s20 }
  0xec   :  { %v11999_v34 = vpop.permute.xlu1 %680 }
  0xed   :  { %17565 = vst [vmem:[#allocation28_spill] sm:$0xff] %v11999_v34  ;;  %1538 = vperm.xlu1 %11402, %v10192_v26   ;;  %v10196_v26 = vld [vmem:[%s17314_s2 + $0x1d0] sm:$0xff] }
  0xee   :  { %v12004_v38 = vpop.permute.xlu0 %685 }
  0xef   :  { %17566 = vst [vmem:[#allocation29_spill] sm:$0xff] %v12004_v38  ;;  %1543 = vperm.xlu0 %11401, %v10193_v35   ;;  %v83_v38 = vld [vmem:[#allocation2] ss:$8 sm:$0xf] }
  0xf0   :  { %v12006_v41 = vpop.permute.xlu1 %690 }
  0xf1   :  { %17567 = vst [vmem:[#allocation30_spill] sm:$0xff] %v12006_v41  ;;  %1594 = vrot.lane.b32.xlu1 %v11634_v13, %s11541_s14 }
  0xf2   :  { %v12010_v42 = vpop.permute.xlu0 %695 }
  0xf3   :  { %17568 = vst [vmem:[#allocation31_spill] sm:$0xff] %v12010_v42  ;;  %1596 = vrot.lane.b32.xlu0 %v11642_v15, %s11541_s14  ;;  %v10197_v42 = vld [vmem:[%s17314_s2 + $0x1d8] sm:$0xff] }
  0xf4   :  { %v12014_v45 = vpop.permute.xlu1 %746 }
  0xf5   :  { %17569 = vst [vmem:[#allocation32_spill] sm:$0xff] %v12014_v45  ;;  %1598 = vrot.lane.b32.xlu1 %v11637_v14, %s11541_s14 }
  0xf6   :  { %v12024_v6 = vpop.permute.xlu0 %748 }
  0xf7   :  { %17570 = vst [vmem:[#allocation33_spill] sm:$0xff] %v12024_v6  ;;  %1754 = vperm.xlu0 %11401, %v10198_v46   ;;  %v17574_v46 = vlaneseq }
  0xf8   :  { %v12026_v17 = vpop.permute.xlu1 %750 }
  0xf9   :  { %17571 = vst [vmem:[#allocation34_spill] sm:$0xff] %v12026_v17  ;;  %1759 = vperm.xlu1 %11402, %v10199_v54   ;;  %v12041_v41 = vand.u32 127, %v17574_v46  ;;  %v12054_v46 = vrot.slane %v83_v38, %v11627_v9 }
  0xfa   :  { %v12031_v35 = vpop.permute.xlu0 %752 }
  0xfb   :  { %17572 = vst [vmem:[#allocation35_spill] sm:$0xff] %v12031_v35  ;;  %1600 = vrot.lane.b32.xlu0 %v11647_v16, %s11541_s14  ;;  %v195_v35 = vld [vmem:[#allocation2 + $0x1] ss:$8 sm:$0xf]  ;;  %vm78_vm0 = vcmp.lt.s32.totalorder %v12041_v41, 34  ;;  %17578 = vst [vmem:[#allocation40_spill] sm:$0xff] %v12054_v46 }
  0xfc   :  { %v12035_v1 = vpop.permute.xlu1 %793  ;;  %vm189_vm1 = vcmp.lt.s32.totalorder %v12041_v41, 33  ;;  %v12066_v6 = vrot.slane %v195_v35, %v11629_v11  ;;  %v12069_v34 = vrot.slane %v195_v35, %v11627_v9  ;;  %v12072_v2 = vrot.slane %v195_v35, %v11625_v8 }
  0xfd   :  { %17573 = vst [vmem:[#allocation36_spill] sm:$0xff] %v12035_v1  ;;  %1651 = vperm.xlu1 %11402, %v10196_v26   ;;  %v308_v26 = vld [vmem:[#allocation2 + $0x2] ss:$8 sm:$0xf]  ;;  %v12051_v1 = vrot.slane %v83_v38, %v11629_v11  ;;  %v12083_v29 = vrot.slane %v195_v35, %v11631_v12  ;;  %v80_v3 = vsel %vm78_vm0, %v11824_v55, %v11814_v52  ;;  %vm302_vm2 = vcmp.lt.s32.totalorder %v12041_v41, 32 }
  0xfe   :  { %v12043_v54 = vpop.permute.xlu0 %798  ;;  %17582 = vst [vmem:[#allocation44_spill] sm:$0xff] %v12066_v6  ;;  %17583 = vst [vmem:[#allocation45_spill] sm:$0xff] %v12069_v34  ;;  %v12086_v57 = vrot.slane %v308_v26, %v11629_v11  ;;  %v12089_v23 = vrot.slane %v308_v26, %v11627_v9  ;;  %v12101_v35 = vrot.slane %v308_v26, %v11625_v8  ;;  %vm415_vm3 = vcmp.lt.s32.totalorder %v12041_v41, 31 }
  0xff   :  { %17575 = vst [vmem:[#allocation37_spill] sm:$0xff] %v12043_v54  ;;  %1656 = vperm.xlu0 %11401, %v10197_v42   ;;  %17577 = vst [vmem:[#allocation39_spill] sm:$0xff] %v12051_v1  ;;  %v12057_v54 = vrot.slane %v83_v38, %v11625_v8  ;;  %v12060_v42 = vrot.slane %v83_v38, %v11631_v12  ;;  %v12104_v22 = vrot.slane %v308_v26, %v11631_v12  ;;  %v647_v26 = vld [vmem:[#allocation2 + $0x5] ss:$8 sm:$0xf] }
 0x100   :  { %v12045_v17 = vpop.permute.xlu1 %803  ;;  %17584 = vst [vmem:[#allocation46_spill] sm:$0xff] %v12072_v2  ;;  %17586 = vst [vmem:[#allocation48_spill] sm:$0xff] %v12083_v29  ;;  %v82_v43 = vsel %vm78_vm0, %v11826_v56, %v11808_v51  ;;  %v107_v36 = vmul.f32 %v12054_v46, %v80_v3  ;;  %v12154_v3 = vrot.slane %v534_v60, %v11631_v12  ;;  %v873_v46 = vld [vmem:[#allocation2 + $0x7] ss:$8 sm:$0xf]  ;;  %vm528_vm4 = vcmp.lt.s32.totalorder %v12041_v41, 30 }
 0x101   :  { %17576 = vst [vmem:[#allocation38_spill] sm:$0xff] %v12045_v17  ;;  %1707 = vrot.lane.b32.xlu1 %v11634_v13, %s11542_s10  ;;  %17579 = vst [vmem:[#allocation41_spill] sm:$0xff] %v12057_v54  ;;  %v421_v17 = vld [vmem:[#allocation2 + $0x3] ss:$8 sm:$0xf]  ;;  %vm641_vm5 = vcmp.lt.s32.totalorder %v12041_v41, 18 }
 0x102   :  { %17580 = vst [vmem:[#allocation42_spill] sm:$0xff] %v12060_v42  ;;  %v12062_v45 = vpop.permute.xlu0 %808  ;;  %17587 = vst [vmem:[#allocation49_spill] sm:$0xff] %v12086_v57  ;;  %v12107_v53 = vrot.slane %v421_v17, %v11629_v11  ;;  %v12113_v37 = vrot.slane %v421_v17, %v11627_v9  ;;  %v12116_v49 = vrot.slane %v421_v17, %v11625_v8  ;;  %vm754_vm6 = vcmp.lt.s32.totalorder %v12041_v41, 17 }
 0x103   :  { %17581 = vst [vmem:[#allocation43_spill] sm:$0xff] %v12062_v45  ;;  %1709 = vrot.lane.b32.xlu0 %v11642_v15, %s11542_s10  ;;  %v81_v45 = vsel %vm78_vm0, %v11808_v51, %v11824_v55  ;;  %17588 = vst [vmem:[#allocation50_spill] sm:$0xff] %v12089_v23  ;;  %v12119_v55 = vrot.slane %v421_v17, %v11631_v12  ;;  %v760_v17 = vld [vmem:[#allocation2 + $0x6] ss:$8 sm:$0xf]  ;;  %v192_v51 = vsel %vm189_vm1, %v11835_v59, %v11840_v61 }
 0x104   :  { %v12076_v38 = vpop.permute.xlu1 %906  ;;  %17589 = vst [vmem:[#allocation51_spill] sm:$0xff] %v12101_v35  ;;  %17590 = vst [vmem:[#allocation52_spill] sm:$0xff] %v12104_v22  ;;  %v106_v40 = vmul.f32 %v12051_v1, %v81_v45  ;;  %v79_v45 = vsel %vm78_vm0, %v11814_v52, %v11826_v56  ;;  %v191_v1 = vsel %vm189_vm1, %v11840_v61, %v11842_v62  ;;  %v10200_v61 = vld [vmem:[%s17314_s2 + $0x1f0] sm:$0xff]  ;;  %vm867_vm7 = vcmp.lt.s32.totalorder %v12041_v41, 16 }
 0x105   :  { %17585 = vst [vmem:[#allocation47_spill] sm:$0xff] %v12076_v38  ;;  %1711 = vrot.lane.b32.xlu1 %v11637_v14, %s11542_s10  ;;  %v10202_v38 = vld [vmem:[%s17314_s2 + $0x200] sm:$0xff]  ;;  %17591 = vst [vmem:[#allocation53_spill] sm:$0xff] %v12107_v53  ;;  %v12160_v52 = vrot.slane %v647_v26, %v11627_v9  ;;  %v12163_v56 = vrot.slane %v647_v26, %v11625_v8  ;;  %v12173_v60 = vrot.slane %v760_v17, %v11629_v11 }
 0x106   :  { %17592 = vst [vmem:[#allocation54_spill] sm:$0xff] %v12113_v37  ;;  %17593 = vst [vmem:[#allocation55_spill] sm:$0xff] %v12116_v49  ;;  %v12124_v44 = vpop.permute.xlu0 %911  ;;  %v219_v27 = vmul.f32 %v12069_v34, %v191_v1  ;;  %v10201_v1 = vld [vmem:[%s17314_s2 + $0x1f8] sm:$0xff]  ;;  %v12219_v34 = vrot.slane %v873_v46, %v11631_v12  ;;  %vm980_vm8 = vcmp.lt.s32.totalorder %v12041_v41, 15  ;;  %vm1093_vm9 = vcmp.lt.s32.totalorder %v12041_v41, 14 }
 0x107   :  { %17594 = vst [vmem:[#allocation56_spill] sm:$0xff] %v12119_v55  ;;  %17596 = vst [vmem:[#allocation58_spill] sm:$0xff] %v12124_v44  ;;  %1867 = vperm.xlu0 %11401, %v10202_v38   ;;  %v12157_v38 = vrot.slane %v647_v26, %v11629_v11  ;;  %v12170_v44 = vrot.slane %v647_v26, %v11631_v12  ;;  %v986_v26 = vld [vmem:[#allocation2 + $0x20] ss:$8 sm:$0xf]  ;;  %vm1206_vm10 = vcmp.lt.s32.totalorder %v12041_v41, 2 }
 0x108   :  { %v12137_v55 = vpop.permute.xlu1 %859  ;;  %17600 = vst [vmem:[#allocation62_spill] sm:$0xff] %v12154_v3  ;;  %17602 = vst [vmem:[#allocation64_spill] sm:$0xff] %v12160_v52  ;;  %v218_v3 = vmul.f32 %v12066_v6, %v192_v51  ;;  %v12213_v51 = vrot.slane %v873_v46, %v11627_v9  ;;  %v12225_v6 = vrot.slane %v986_v26, %v11625_v8  ;;  %vm1319_vm11 = vcmp.lt.s32.totalorder %v12041_v41, 1 }
 0x109   :  { %17599 = vst [vmem:[#allocation61_spill] sm:$0xff] %v12137_v55  ;;  %1872 = vperm.xlu1 %11402, %v10203_v39   ;;  %17601 = vst [vmem:[#allocation63_spill] sm:$0xff] %v12157_v38  ;;  %v105_v39 = vmul.f32 %v12057_v54, %v82_v43  ;;  %v12176_v55 = vrot.slane %v760_v17, %v11627_v9  ;;  %v108_v38 = vmul.f32 %v12060_v42, %v79_v45 }
 0x10a   :  { %17603 = vst [vmem:[#allocation65_spill] sm:$0xff] %v12163_v56  ;;  %17604 = vst [vmem:[#allocation66_spill] sm:$0xff] %v12170_v44  ;;  %v12178_v52 = vpop.permute.xlu0 %861  ;;  %v140_v56 = vrot.slane %v106_v40, %v11625_v8  ;;  %v144_v54 = vrot.slane %v107_v36, %v11625_v8  ;;  %v12196_v40 = vrot.slane %v873_v46, %v11629_v11  ;;  %vm1489_vm12 = vcmp.lt.s32.totalorder %v12041_v41, 127 }
 0x10b   :  { %17605 = vst [vmem:[#allocation67_spill] sm:$0xff] %v12173_v60  ;;  %17606 = vst [vmem:[#allocation68_spill] sm:$0xff] %v12176_v55  ;;  %1713 = vrot.lane.b32.xlu0 %v11647_v16, %s11542_s10  ;;  %v12190_v55 = vrot.slane %v760_v17, %v11625_v8  ;;  %v190_v45 = vsel %vm189_vm1, %v11842_v62, %v11846_v63  ;;  %v193_v36 = vsel %vm189_vm1, %v11846_v63, %v11835_v59 }
 0x10c   :  { %17607 = vst [vmem:[#allocation69_spill] sm:$0xff] %v12178_v52  ;;  %v12186_v43 = vpop.permute.xlu1 %865  ;;  %v12193_v52 = vrot.slane %v760_v17, %v11631_v12  ;;  %17611 = vst [vmem:[#allocation73_spill] sm:$0xff] %v12196_v40  ;;  %v12210_v17 = vrot.slane %v873_v46, %v11625_v8  ;;  %v12222_v62 = vrot.slane %v986_v26, %v11629_v11  ;;  %vm17544_vm13 = vcmp.lt.s32.totalorder %v12041_v41, 126 }
 0x10d   :  { %17608 = vst [vmem:[#allocation70_spill] sm:$0xff] %v12186_v43  ;;  %17609 = vst [vmem:[#allocation71_spill] sm:$0xff] %v12190_v55  ;;  %1764 = vperm.xlu1 %11402, %v10200_v61   ;;  %v136_v61 = vrot.slane %v105_v39, %v11625_v8  ;;  %v148_v59 = vrot.slane %v108_v38, %v11625_v8  ;;  %v12229_v63 = vrot.slane %v218_v3, %v11625_v8 }
 0x10e   :  { %17610 = vst [vmem:[#allocation72_spill] sm:$0xff] %v12193_v52  ;;  %17612 = vst [vmem:[#allocation74_spill] sm:$0xff] %v12210_v17  ;;  %v12216_v42 = vpop.permute.xlu0 %1019  ;;  %v150_v39 = vmul.f32 %v140_v56, %v11801_v48  ;;  %v217_v46 = vmul.f32 %v12072_v2, %v193_v36  ;;  %v155_v3 = vmul.f32 %v144_v54, %v11799_v47  ;;  %vm17522_vm14 = vcmp.lt.s32.totalorder %v12041_v41, 114 }
 0x10f   :  { %17613 = vst [vmem:[#allocation75_spill] sm:$0xff] %v12213_v51  ;;  %17614 = vst [vmem:[#allocation76_spill] sm:$0xff] %v12216_v42  ;;  %v12232_v51 = vrot.slane %v219_v27, %v11625_v8  ;;  %1769 = vperm.xlu0 %11401, %v10201_v1   ;;  %v12244_v27 = vmul.f32 %v140_v56, %v11831_v58  ;;  %v12248_v38 = vmul.f32 %v140_v56, %v11806_v50 }
 0x110   :  { %17615 = vst [vmem:[#allocation77_spill] sm:$0xff] %v12219_v34  ;;  %17616 = vst [vmem:[#allocation78_spill] sm:$0xff] %v12222_v62  ;;  %v12235_v42 = vpop.permute.xlu1 %1024  ;;  %v220_v62 = vmul.f32 %v12083_v29, %v190_v45  ;;  %v151_v34 = vmul.f32 %v144_v54, %v11801_v48  ;;  %v12251_v1 = vmul.f32 %v144_v54, %v11806_v50  ;;  %vm17527_vm15 = vcmp.lt.s32.totalorder %v12041_v41, 113 }
 0x111   :  { %17617 = vst [vmem:[#allocation79_spill] sm:$0xff] %v12225_v6  ;;  %17618 = vst [vmem:[#allocation80_spill] sm:$0xff] %v12235_v42  ;;  %v154_v6 = vmul.f32 %v140_v56, %v11799_v47  ;;  %1820 = vrot.lane.b32.xlu1 %v11634_v13, %s11543_s30  ;;  %v12254_v45 = vmul.f32 %v136_v61, %v11831_v58  ;;  %v12257_v36 = vmul.f32 %v144_v54, %v11831_v58 }
 0x112   :  { %v12259_v29 = vpop.permute.xlu0 %863  ;;  %v12262_v2 = vrot.slane %v986_v26, %v11627_v9  ;;  %v12265_v42 = vrot.slane %v986_v26, %v11631_v12  ;;  %v12268_v56 = vmul.f32 %v148_v59, %v11831_v58  ;;  %v152_v17 = vmul.f32 %v148_v59, %v11801_v48 }
 0x113   :  { %17619 = vst [vmem:[#allocation81_spill] sm:$0xff] %v12259_v29  ;;  %v263_v40 = vmul.f32 %v12229_v63, %v11850_v0  ;;  %v264_v54 = vmul.f32 %v12232_v51, %v11850_v0  ;;  %1822 = vrot.lane.b32.xlu0 %v11642_v15, %s11543_s30  ;;  %v249_v26 = vrot.slane %v217_v46, %v11625_v8 }
 0x114   :  { %17620 = vst [vmem:[#allocation82_spill] sm:$0xff] %v12262_v2  ;;  %17621 = vst [vmem:[#allocation83_spill] sm:$0xff] %v12265_v42  ;;  %v12277_v29 = vpop.permute.xlu1 %916  ;;  %v12279_v2 = vld [vmem:[#allocation2 + $0x21] ss:$8 sm:$0xf]  ;;  %v261_v58 = vrot.slane %v220_v62, %v11625_v8  ;;  %v305_v42 = vsel %vm302_vm2, %v11871_v10, %v11876_v18  ;;  %v304_v43 = vsel %vm302_vm2, %v11876_v18, %v11878_v19 }
 0x115   :  { %17622 = vst [vmem:[#allocation84_spill] sm:$0xff] %v12277_v29  ;;  %1824 = vrot.lane.b32.xlu1 %v11637_v14, %s11543_s30  ;;  %v10206_v29 = vld [vmem:[%s17314_s2 + $0x220] sm:$0xff]  ;;  %v149_v46 = vmul.f32 %v136_v61, %v11801_v48  ;;  %v153_v62 = vmul.f32 %v136_v61, %v11799_v47  ;;  %v156_v52 = vmul.f32 %v148_v59, %v11799_v47  ;;  %v10207_v18 = vld [vmem:[%s17314_s2 + $0x228] sm:$0xff] }
 0x116   :  { %v267_v55 = vmul.f32 %v12229_v63, %v11860_v4  ;;  %v268_v60 = vmul.f32 %v12232_v51, %v11860_v4  ;;  %v160_v44 = vmul.f32 %v148_v59, %v11806_v50  ;;  %v157_v48 = vmul.f32 %v136_v61, %v11806_v50  ;;  %v12309_v33 = vpop.permute.xlu0 %921 }
 0x117   :  { %v12313_v47 = vrot.slane %v12279_v2, %v11629_v11  ;;  %v12315_v49 = vadd.f32 %v263_v40, %v150_v39  ;;  %v12317_v25 = vadd.f32 %v264_v54, %v151_v34  ;;  %v331_v37 = vmul.f32 %v12086_v57, %v305_v42  ;;  %1980 = vperm.xlu0 %11401, %v10206_v29  }
 0x118   :  { %v332_v14 = vmul.f32 %v12089_v23, %v304_v43  ;;  %v12321_v32 = vpop.permute.xlu1 %972  ;;  %v262_v59 = vmul.f32 %v249_v26, %v11850_v0  ;;  %v265_v50 = vmul.f32 %v261_v58, %v11850_v0  ;;  %v266_v61 = vmul.f32 %v249_v26, %v11860_v4  ;;  %v10204_v0 = vld [vmem:[%s17314_s2 + $0x210] sm:$0xff] }
 0x119   :  { %17623 = vst [vmem:[#allocation85_spill] sm:$0xff] %v12313_v47  ;;  %v306_v40 = vsel %vm302_vm2, %v11882_v20, %v11871_v10  ;;  %1985 = vperm.xlu1 %11402, %v10207_v18   ;;  %v269_v34 = vmul.f32 %v261_v58, %v11860_v4  ;;  %v12331_v42 = vadd.f32 %v267_v55, %v154_v6  ;;  %v17669_v47 = vld [vmem:[#allocation64_spill] sm:$0xff] }
 0x11a   :  { %v303_v29 = vsel %vm302_vm2, %v11878_v19, %v11882_v20  ;;  %v12342_v43 = vrot.slane %v12279_v2, %v11625_v8  ;;  %v12344_v39 = vadd.f32 %v268_v60, %v155_v3  ;;  %v270_v10 = vmul.f32 %v249_v26, %v11862_v5  ;;  %v12351_v55 = vpop.permute.xlu0 %974 }
 0x11b   :  { %v271_v4 = vmul.f32 %v12229_v63, %v11862_v5  ;;  %v272_v6 = vmul.f32 %v12232_v51, %v11862_v5  ;;  %v273_v19 = vmul.f32 %v261_v58, %v11862_v5  ;;  %v12355_v20 = vrot.slane %v331_v37, %v11625_v8  ;;  %1826 = vrot.lane.b32.xlu0 %v11647_v16, %s11543_s30 }
 0x11c   :  { %17624 = vst [vmem:[#allocation86_spill] sm:$0xff] %v12342_v43  ;;  %v12358_v54 = vrot.slane %v332_v14, %v11625_v8  ;;  %v330_v60 = vmul.f32 %v12101_v35, %v306_v40  ;;  %v12363_v3 = vpop.permute.xlu1 %978  ;;  %v278_v18 = vadd.f32 %v262_v59, %v149_v46  ;;  %v12365_v23 = vadd.f32 %v265_v50, %v152_v17  ;;  %v10205_v14 = vld [vmem:[%s17314_s2 + $0x218] sm:$0xff] }
 0x11d   :  { %v12367_v57 = vadd.f32 %v266_v61, %v153_v62  ;;  %v333_v5 = vmul.f32 %v12104_v22, %v303_v29  ;;  %1877 = vperm.xlu1 %11402, %v10204_v0   ;;  %v12373_v37 = vadd.f32 %v269_v34, %v156_v52  ;;  %v274_v40 = vmul.f32 %v249_v26, %v11867_v7  ;;  %v17634_v22 = vld [vmem:[#allocation9_spill] sm:$0xff] }
 0x11e   :  { %v275_v35 = vmul.f32 %v12229_v63, %v11867_v7  ;;  %v276_v17 = vmul.f32 %v12232_v51, %v11867_v7  ;;  %v12380_v46 = vadd.f32 %v270_v10, %v157_v48  ;;  %v12383_v62 = vadd.f32 %v271_v4, %v12248_v38  ;;  %v12389_v52 = vpop.permute.xlu0 %1132  ;;  %v12400_v48 = vld [vmem:[#allocation2 + $0x22] ss:$8 sm:$0xf] }
 0x11f   :  { %v12386_v59 = vadd.f32 %v272_v6, %v12251_v1  ;;  %v277_v50 = vmul.f32 %v261_v58, %v11867_v7  ;;  %17625 = vst [vmem:[#allocation87_spill] sm:$0xff] %v12389_v52  ;;  %v12391_v61 = vadd.f32 %v273_v19, %v160_v44  ;;  %v362_v26 = vrot.slane %v330_v60, %v11625_v8  ;;  %v17637_v52 = vld [vmem:[#allocation10_spill] sm:$0xff] }
 0x120   :  { %v376_v63 = vmul.f32 %v12355_v20, %v11886_v21  ;;  %v377_v51 = vmul.f32 %v12358_v54, %v11886_v21  ;;  %1882 = vperm.xlu0 %11401, %v10205_v14   ;;  %v12398_v38 = vpop.permute.xlu1 %1137  ;;  %v374_v1 = vrot.slane %v333_v5, %v11625_v8  ;;  %v418_v7 = vsel %vm415_vm3, %v11907_v28, %v11912_v30  ;;  %v17630_v14 = vld [vmem:[#allocation11_spill] sm:$0xff] }
 0x121   :  { %17626 = vst [vmem:[#allocation88_spill] sm:$0xff] %v12398_v38  ;;  %1933 = vrot.lane.b32.xlu1 %v11634_v13, %s11544_s13  ;;  %v12411_v44 = vrot.slane %v12279_v2, %v11627_v9  ;;  %v12415_v58 = vrot.slane %v12279_v2, %v11631_v12  ;;  %v290_v34 = vadd.f32 %v274_v40, %v12254_v45  ;;  %v17631_v40 = vld [vmem:[#allocation8_spill] sm:$0xff] }
 0x122   :  { %v12419_v29 = vadd.f32 %v275_v35, %v12244_v27  ;;  %v12422_v0 = vadd.f32 %v276_v17, %v12257_v36  ;;  %v380_v10 = vmul.f32 %v12355_v20, %v11896_v24  ;;  %v12428_v4 = vadd.f32 %v277_v50, %v12268_v56  ;;  %v12436_v27 = vpop.permute.xlu0 %976 }
 0x123   :  { %17627 = vst [vmem:[#allocation89_spill] sm:$0xff] %v12411_v44  ;;  %17628 = vst [vmem:[#allocation90_spill] sm:$0xff] %v12415_v58  ;;  %v381_v2 = vmul.f32 %v12358_v54, %v11896_v24  ;;  %v417_v35 = vsel %vm415_vm3, %v11912_v30, %v11914_v31  ;;  %v12440_v45 = vrot.slane %v12400_v48, %v11629_v11 }
 0x124   :  { %v375_v36 = vmul.f32 %v362_v26, %v11886_v21  ;;  %v12444_v6 = vadd.f32 %v376_v63, %v12315_v49  ;;  %v12447_v56 = vadd.f32 %v377_v51, %v12317_v25  ;;  %v444_v19 = vmul.f32 %v12107_v53, %v418_v7  ;;  %1935 = vrot.lane.b32.xlu0 %v11642_v15, %s11544_s13  ;;  %v12452_v30 = vpop.permute.xlu1 %1029  ;;  %v10210_v25 = vld [vmem:[%s17314_s2 + $0x240] sm:$0xff]  ;;  %v10211_v7 = vld [vmem:[%s17314_s2 + $0x248] sm:$0xff] }
 0x125   :  { %17629 = vst [vmem:[#allocation91_spill] sm:$0xff] %v12440_v45  ;;  %v378_v60 = vmul.f32 %v374_v1, %v11886_v21  ;;  %v379_v5 = vmul.f32 %v362_v26, %v11896_v24  ;;  %v419_v49 = vsel %vm415_vm3, %v17630_v14, %v11907_v28  ;;  %1937 = vrot.lane.b32.xlu1 %v17631_v40, %s11544_s13  ;;  %v17633_v63 = vld [vmem:[#allocation54_spill] sm:$0xff] }
 0x126   :  { %v12467_v17 = vrot.slane %v12400_v48, %v11625_v8  ;;  %v382_v21 = vmul.f32 %v374_v1, %v11896_v24  ;;  %v12471_v50 = vadd.f32 %v380_v10, %v12331_v42  ;;  %v445_v51 = vmul.f32 %v17633_v63, %v417_v35  ;;  %v12489_v10 = vpop.permute.xlu0 %1034  ;;  %v17636_v63 = vld [vmem:[#allocation55_spill] sm:$0xff] }
 0x127   :  { %v416_v28 = vsel %vm415_vm3, %v11914_v31, %v17630_v14  ;;  %v12482_v53 = vadd.f32 %v381_v2, %v12344_v39  ;;  %v383_v45 = vmul.f32 %v362_v26, %v17634_v22  ;;  %v384_v24 = vmul.f32 %v12355_v20, %v17634_v22  ;;  %17635 = vst [vmem:[#allocation8_spill] sm:$0xff] %v12489_v10  ;;  %v17656_v10 = vld [vmem:[#allocation62_spill] sm:$0xff] }
 0x128   :  { %17632 = vst [vmem:[#allocation11_spill] sm:$0xff] %v12467_v17  ;;  %v385_v42 = vmul.f32 %v12358_v54, %v17634_v22  ;;  %v12491_v35 = vadd.f32 %v375_v36, %v278_v18  ;;  %v386_v31 = vmul.f32 %v374_v1, %v17634_v22  ;;  %v12495_v14 = vrot.slane %v444_v19, %v11625_v8  ;;  %v12498_v2 = vpop.permute.xlu1 %1085  ;;  %v17638_v18 = vld [vmem:[#allocation56_spill] sm:$0xff] }
 0x129   :  { %v443_v39 = vmul.f32 %v17636_v63, %v419_v49  ;;  %2093 = vperm.xlu0 %11401, %v10210_v25   ;;  %v12501_v17 = vadd.f32 %v378_v60, %v12365_v23  ;;  %v12504_v38 = vadd.f32 %v379_v5, %v12367_v57  ;;  %v387_v58 = vmul.f32 %v362_v26, %v17637_v52  ;;  %v10208_v57 = vld [vmem:[%s17314_s2 + $0x230] sm:$0xff] }
 0x12a   :  { %v446_v36 = vmul.f32 %v17638_v18, %v416_v28  ;;  %2098 = vperm.xlu1 %11402, %v10211_v7   ;;  %v12509_v22 = vadd.f32 %v382_v21, %v12373_v37  ;;  %v388_v19 = vmul.f32 %v12355_v20, %v17637_v52  ;;  %v389_v49 = vmul.f32 %v12358_v54, %v17637_v52  ;;  %v12527_v20 = vpop.permute.xlu0 %1087  ;;  %v17639_v21 = vld [vmem:[#allocation12_spill] sm:$0xff]  ;;  %v10209_v7 = vld [vmem:[%s17314_s2 + $0x238] sm:$0xff] }
 0x12b   :  { %v12516_v23 = vrot.slane %v445_v51, %v11625_v8  ;;  %v399_v26 = vadd.f32 %v383_v45, %v12380_v46  ;;  %v400_v60 = vadd.f32 %v384_v24, %v12383_v62  ;;  %v12524_v37 = vadd.f32 %v385_v42, %v12386_v59  ;;  %v12543_v59 = vld [vmem:[#allocation2 + $0x23] ss:$8 sm:$0xf] }
 0x12c   :  { %v390_v5 = vmul.f32 %v374_v1, %v17637_v52  ;;  %v12530_v54 = vadd.f32 %v386_v31, %v12391_v61  ;;  %v475_v25 = vrot.slane %v443_v39, %v11625_v8  ;;  %v489_v51 = vmul.f32 %v12495_v14, %v17639_v21  ;;  %v12537_v46 = vpop.permute.xlu1 %1091  ;;  %v17641_v1 = vld [vmem:[#allocation17_spill] sm:$0xff]  ;;  %v17642_v45 = vld [vmem:[#allocation16_spill] sm:$0xff]  ;;  %v17644_v31 = vld [vmem:[#allocation18_spill] sm:$0xff] }
 0x12d   :  { %1939 = vrot.lane.b32.xlu0 %v11647_v16, %s11544_s13  ;;  %v12541_v62 = vrot.slane %v12400_v48, %v11627_v9  ;;  %v12545_v52 = vadd.f32 %v387_v58, %v290_v34  ;;  %v487_v61 = vrot.slane %v446_v36, %v11625_v8  ;;  %v531_v28 = vsel %vm528_vm4, %v17642_v45, %v17641_v1  ;;  %v17648_v18 = vld [vmem:[#allocation57_spill] sm:$0xff] }
 0x12e   :  { %1990 = vperm.xlu1 %11402, %v10208_v57   ;;  %v12557_v24 = vrot.slane %v12400_v48, %v11631_v12  ;;  %v12560_v42 = vadd.f32 %v388_v19, %v12419_v29  ;;  %v12563_v58 = vadd.f32 %v389_v49, %v12422_v0  ;;  %v490_v34 = vmul.f32 %v12516_v23, %v17639_v21  ;;  %v17645_v48 = vld [vmem:[#allocation13_spill] sm:$0xff]  ;;  %v12579_v19 = vpop.permute.xlu0 %1245 }
 0x12f   :  { %17640 = vst [vmem:[#allocation9_spill] sm:$0xff] %v12541_v62  ;;  %v530_v39 = vsel %vm528_vm4, %v17641_v1, %v17644_v31  ;;  %v12573_v36 = vadd.f32 %v390_v5, %v12428_v4  ;;  %v493_v29 = vmul.f32 %v12495_v14, %v17645_v48  ;;  %v494_v0 = vmul.f32 %v12516_v23, %v17645_v48  ;;  %v17649_v5 = vld [vmem:[#allocation19_spill] sm:$0xff] }
 0x130   :  { %17643 = vst [vmem:[#allocation10_spill] sm:$0xff] %v12557_v24  ;;  %17646 = vst [vmem:[#allocation12_spill] sm:$0xff] %v12579_v19  ;;  %v12583_v49 = vrot.slane %v12543_v59, %v11629_v11  ;;  %v488_v57 = vmul.f32 %v475_v25, %v17639_v21  ;;  %v12587_v1 = vadd.f32 %v489_v51, %v12444_v6  ;;  %v12594_v24 = vpop.permute.xlu1 %1250 }
 0x131   :  { %v557_v4 = vmul.f32 %v17648_v18, %v531_v28  ;;  %v532_v63 = vsel %vm528_vm4, %v17649_v5, %v17642_v45  ;;  %1995 = vperm.xlu0 %11401, %v10209_v7   ;;  %17650 = vst [vmem:[#allocation16_spill] sm:$0xff] %v12594_v24  ;;  %v491_v19 = vmul.f32 %v487_v61, %v17639_v21  ;;  %v17652_v28 = vld [vmem:[#allocation14_spill] sm:$0xff]  ;;  %v17653_v18 = vld [vmem:[#allocation60_spill] sm:$0xff] }
 0x132   :  { %17647 = vst [vmem:[#allocation17_spill] sm:$0xff] %v12583_v49  ;;  %v492_v62 = vmul.f32 %v475_v25, %v17645_v48  ;;  %v17651_v49 = vld [vmem:[#allocation59_spill] sm:$0xff]  ;;  %v529_v6 = vsel %vm528_vm4, %v17644_v31, %v17649_v5  ;;  %2046 = vrot.lane.b32.xlu1 %v11634_v13, %s11545_s18  ;;  %v506_v51 = vadd.f32 %v490_v34, %v12447_v56  ;;  %v12613_v31 = vpop.permute.xlu0 %1089 }
 0x133   :  { %v558_v44 = vmul.f32 %v17651_v49, %v530_v39  ;;  %v495_v45 = vmul.f32 %v487_v61, %v17645_v48  ;;  %v496_v7 = vmul.f32 %v475_v25, %v17652_v28  ;;  %v497_v21 = vmul.f32 %v12495_v14, %v17652_v28  ;;  %17654 = vst [vmem:[#allocation18_spill] sm:$0xff] %v12613_v31  ;;  %v17668_v31 = vld [vmem:[#allocation63_spill] sm:$0xff] }
 0x134   :  { %v509_v39 = vadd.f32 %v493_v29, %v12471_v50  ;;  %v510_v49 = vadd.f32 %v494_v0, %v12482_v53  ;;  %v556_v24 = vmul.f32 %v17653_v18, %v532_v63  ;;  %v12617_v5 = vrot.slane %v12543_v59, %v11625_v8  ;;  %v12628_v53 = vpop.permute.xlu1 %1142 }
 0x135   :  { %v498_v56 = vmul.f32 %v12516_v23, %v17652_v28  ;;  %v499_v34 = vmul.f32 %v487_v61, %v17652_v28  ;;  %v12623_v48 = vrot.slane %v557_v4, %v11625_v8  ;;  %v559_v50 = vmul.f32 %v17656_v10, %v529_v6  ;;  %2048 = vrot.lane.b32.xlu0 %v11642_v15, %s11545_s18  ;;  %v10214_v4 = vld [vmem:[%s17314_s2 + $0x260] sm:$0xff] }
 0x136   :  { %17655 = vst [vmem:[#allocation13_spill] sm:$0xff] %v12617_v5  ;;  %17657 = vst [vmem:[#allocation19_spill] sm:$0xff] %v12628_v53  ;;  %v504_v63 = vadd.f32 %v488_v57, %v12491_v35  ;;  %v507_v29 = vadd.f32 %v491_v19, %v12501_v17  ;;  %v12633_v0 = vadd.f32 %v492_v62, %v12504_v38  ;;  %2050 = vrot.lane.b32.xlu1 %v17631_v40, %s11545_s18  ;;  %v17658_v17 = vld [vmem:[#allocation15_spill] sm:$0xff]  ;;  %v17664_v10 = vld [vmem:[#allocation26_spill] sm:$0xff] }
 0x137   :  { %v12636_v18 = vrot.slane %v558_v44, %v11625_v8  ;;  %v12644_v6 = vadd.f32 %v495_v45, %v12509_v22  ;;  %v12646_v28 = vadd.f32 %v496_v7, %v399_v26  ;;  %v12648_v35 = vadd.f32 %v497_v21, %v400_v60  ;;  %v10215_v44 = vld [vmem:[%s17314_s2 + $0x268] sm:$0xff]  ;;  %v12660_v26 = vpop.permute.xlu0 %1147  ;;  %v17660_v7 = vld [vmem:[#allocation20_spill] sm:$0xff] }
 0x138   :  { %v500_v38 = vmul.f32 %v475_v25, %v17658_v17  ;;  %v501_v62 = vmul.f32 %v12495_v14, %v17658_v17  ;;  %v502_v19 = vmul.f32 %v12516_v23, %v17658_v17  ;;  %v503_v57 = vmul.f32 %v487_v61, %v17658_v17  ;;  %17659 = vst [vmem:[#allocation14_spill] sm:$0xff] %v12660_v26  ;;  %v12667_v14 = vpop.permute.xlu1 %1198  ;;  %v17662_v61 = vld [vmem:[#allocation25_spill] sm:$0xff]  ;;  %v17663_v17 = vld [vmem:[#allocation24_spill] sm:$0xff] }
 0x139   :  { %v588_v22 = vrot.slane %v556_v24, %v11625_v8  ;;  %v514_v60 = vadd.f32 %v498_v56, %v12524_v37  ;;  %v515_v25 = vadd.f32 %v499_v34, %v12530_v54  ;;  %v600_v45 = vrot.slane %v559_v50, %v11625_v8  ;;  %2206 = vperm.xlu0 %11401, %v10214_v4   ;;  %v17666_v34 = vld [vmem:[#allocation21_spill] sm:$0xff]  ;;  %v10212_v5 = vld [vmem:[%s17314_s2 + $0x250] sm:$0xff] }
 0x13a   :  { %v602_v21 = vmul.f32 %v12623_v48, %v17660_v7  ;;  %17661 = vst [vmem:[#allocation15_spill] sm:$0xff] %v12667_v14  ;;  %v603_v23 = vmul.f32 %v12636_v18, %v17660_v7  ;;  %v644_v24 = vsel %vm641_vm5, %v17663_v17, %v17662_v61  ;;  %v643_v37 = vsel %vm641_vm5, %v17662_v61, %v17664_v10 }
 0x13b   :  { %2211 = vperm.xlu1 %11402, %v10215_v44   ;;  %v12682_v54 = vrot.slane %v12543_v59, %v11627_v9  ;;  %v516_v56 = vadd.f32 %v500_v38, %v12545_v52  ;;  %v606_v50 = vmul.f32 %v12623_v48, %v17666_v34  ;;  %v607_v4 = vmul.f32 %v12636_v18, %v17666_v34  ;;  %v12700_v26 = vpop.permute.xlu0 %1200 }
 0x13c   :  { %v12694_v61 = vrot.slane %v12543_v59, %v11631_v12  ;;  %v517_v44 = vadd.f32 %v501_v62, %v12560_v42  ;;  %v519_v52 = vadd.f32 %v503_v57, %v12573_v36  ;;  %v601_v38 = vmul.f32 %v588_v22, %v17660_v7  ;;  %v12710_v42 = vpop.permute.xlu1 %1204  ;;  %v10213_v57 = vld [vmem:[%s17314_s2 + $0x258] sm:$0xff] }
 0x13d   :  { %17665 = vst [vmem:[#allocation20_spill] sm:$0xff] %v12682_v54  ;;  %v518_v54 = vadd.f32 %v502_v19, %v12563_v58  ;;  %v604_v14 = vmul.f32 %v600_v45, %v17660_v7  ;;  %v12704_v53 = vadd.f32 %v602_v21, %v12587_v1  ;;  %v670_v43 = vmul.f32 %v17668_v31, %v644_v24  ;;  %v17670_v19 = vld [vmem:[#allocation27_spill] sm:$0xff]  ;;  %v17671_v24 = vld [vmem:[#allocation22_spill] sm:$0xff] }
 0x13e   :  { %17667 = vst [vmem:[#allocation25_spill] sm:$0xff] %v12694_v61  ;;  %v671_v59 = vmul.f32 %v17669_v47, %v643_v37  ;;  %2052 = vrot.lane.b32.xlu0 %v11647_v16, %s11545_s18  ;;  %v619_v58 = vadd.f32 %v603_v23, %v506_v51  ;;  %v605_v36 = vmul.f32 %v588_v22, %v17666_v34 }
 0x13f   :  { %v608_v62 = vmul.f32 %v600_v45, %v17666_v34  ;;  %v645_v1 = vsel %vm641_vm5, %v17670_v19, %v17663_v17  ;;  %2103 = vperm.xlu1 %11402, %v10212_v5   ;;  %v12721_v7 = vadd.f32 %v606_v50, %v509_v39  ;;  %v12723_v21 = vadd.f32 %v607_v4, %v510_v49  ;;  %v12737_v34 = vpop.permute.xlu0 %1358 }
 0x140   :  { %v609_v51 = vmul.f32 %v588_v22, %v17671_v24  ;;  %v642_v23 = vsel %vm641_vm5, %v17664_v10, %v17670_v19  ;;  %v12730_v37 = vadd.f32 %v601_v38, %v504_v63  ;;  %v610_v5 = vmul.f32 %v12623_v48, %v17671_v24  ;;  %17672 = vst [vmem:[#allocation24_spill] sm:$0xff] %v12737_v34  ;;  %v17673_v10 = vld [vmem:[#allocation65_spill] sm:$0xff]  ;;  %v12748_v38 = vpop.permute.xlu1 %1363 }
 0x141   :  { %v611_v17 = vmul.f32 %v12636_v18, %v17671_v24  ;;  %v612_v39 = vmul.f32 %v600_v45, %v17671_v24  ;;  %v12739_v49 = vadd.f32 %v604_v14, %v507_v29  ;;  %v12742_v50 = vrot.slane %v670_v43, %v11625_v8  ;;  %17674 = vst [vmem:[#allocation26_spill] sm:$0xff] %v12748_v38  ;;  %v1495_v19 = vld [vmem:[#allocation2 + $0x25] ss:$8 sm:$0xf] }
 0x142   :  { %v12745_v4 = vrot.slane %v671_v59, %v11625_v8  ;;  %v669_v63 = vmul.f32 %v17673_v10, %v645_v1  ;;  %2108 = vperm.xlu0 %11401, %v10213_v57   ;;  %v12751_v47 = vadd.f32 %v605_v36, %v12633_v0  ;;  %v17675_v24 = vld [vmem:[#allocation23_spill] sm:$0xff]  ;;  %v17676_v14 = vld [vmem:[#allocation66_spill] sm:$0xff]  ;;  %v12760_v59 = vadd.f32 %v608_v62, %v12644_v6  ;;  %v17679_v62 = vld [vmem:[#allocation28_spill] sm:$0xff] }
 0x143   :  { %v613_v31 = vmul.f32 %v588_v22, %v17675_v24  ;;  %v614_v29 = vmul.f32 %v12623_v48, %v17675_v24  ;;  %v672_v43 = vmul.f32 %v17676_v14, %v642_v23  ;;  %2159 = vrot.lane.b32.xlu1 %v11634_v13, %s11546_s24  ;;  %v12763_v1 = vadd.f32 %v609_v51, %v12646_v28  ;;  %v12775_v23 = vpop.permute.xlu0 %1202  ;;  %v10218_v14 = vld [vmem:[%s17314_s2 + $0x280] sm:$0xff] }
 0x144   :  { %v615_v0 = vmul.f32 %v12636_v18, %v17675_v24  ;;  %v616_v22 = vmul.f32 %v600_v45, %v17675_v24  ;;  %v12769_v36 = vadd.f32 %v610_v5, %v12648_v35  ;;  %v12771_v48 = vadd.f32 %v611_v17, %v514_v60  ;;  %17677 = vst [vmem:[#allocation21_spill] sm:$0xff] %v12775_v23  ;;  %v17680_v45 = vld [vmem:[#allocation33_spill] sm:$0xff]  ;;  %v17681_v35 = vld [vmem:[#allocation32_spill] sm:$0xff] }
 0x145   :  { %v12773_v57 = vadd.f32 %v612_v39, %v515_v25  ;;  %v12778_v6 = vrot.slane %v1495_v19, %v11625_v8  ;;  %v701_v28 = vrot.slane %v669_v63, %v11625_v8  ;;  %v715_v51 = vmul.f32 %v12742_v50, %v17679_v62  ;;  %v12791_v25 = vpop.permute.xlu1 %1255  ;;  %v17683_v63 = vld [vmem:[#allocation34_spill] sm:$0xff] }
 0x146   :  { %v716_v18 = vmul.f32 %v12745_v4, %v17679_v62  ;;  %v757_v60 = vsel %vm754_vm6, %v17681_v35, %v17680_v45  ;;  %2161 = vrot.lane.b32.xlu0 %v11642_v15, %s11546_s24  ;;  %17682 = vst [vmem:[#allocation22_spill] sm:$0xff] %v12791_v25  ;;  %v629_v5 = vadd.f32 %v613_v31, %v516_v56  ;;  %v17684_v31 = vld [vmem:[#allocation29_spill] sm:$0xff]  ;;  %v17690_v25 = vld [vmem:[#allocation68_spill] sm:$0xff] }
 0x147   :  { %17678 = vst [vmem:[#allocation27_spill] sm:$0xff] %v12778_v6  ;;  %v12793_v17 = vadd.f32 %v614_v29, %v517_v44  ;;  %v713_v39 = vrot.slane %v672_v43, %v11625_v8  ;;  %v756_v24 = vsel %vm754_vm6, %v17680_v45, %v17683_v63  ;;  %2163 = vrot.lane.b32.xlu1 %v17631_v40, %s11546_s24  ;;  %v10219_v29 = vld [vmem:[%s17314_s2 + $0x288] sm:$0xff]  ;;  %v12818_v61 = vpop.permute.xlu0 %1260 }
 0x148   :  { %v12805_v10 = vadd.f32 %v615_v0, %v518_v54  ;;  %v12807_v6 = vadd.f32 %v616_v22, %v519_v52  ;;  %v719_v56 = vmul.f32 %v12742_v50, %v17684_v31  ;;  %v720_v44 = vmul.f32 %v12745_v4, %v17684_v31  ;;  %v17685_v43 = vld [vmem:[#allocation67_spill] sm:$0xff]  ;;  %17686 = vst [vmem:[#allocation23_spill] sm:$0xff] %v12818_v61 }
 0x149   :  { %v783_v45 = vmul.f32 %v17685_v43, %v757_v60  ;;  %v12821_v54 = vrot.slane %v1495_v19, %v11629_v11  ;;  %v12824_v52 = vrot.slane %v1495_v19, %v11627_v9  ;;  %v12827_v0 = vrot.slane %v1495_v19, %v11631_v12  ;;  %v12834_v60 = vpop.permute.xlu1 %1311  ;;  %v17692_v19 = vld [vmem:[#allocation35_spill] sm:$0xff] }
 0x14a   :  { %v714_v22 = vmul.f32 %v701_v28, %v17679_v62  ;;  %v731_v38 = vadd.f32 %v715_v51, %v12704_v53  ;;  %v12831_v34 = vadd.f32 %v716_v18, %v619_v58  ;;  %v784_v23 = vmul.f32 %v17690_v25, %v756_v24  ;;  %2319 = vperm.xlu0 %11401, %v10218_v14   ;;  %v17693_v14 = vld [vmem:[#allocation30_spill] sm:$0xff]  ;;  %v10216_v18 = vld [vmem:[%s17314_s2 + $0x270] sm:$0xff] }
 0x14b   :  { %17687 = vst [vmem:[#allocation28_spill] sm:$0xff] %v12821_v54  ;;  %17688 = vst [vmem:[#allocation33_spill] sm:$0xff] %v12824_v52  ;;  %v717_v43 = vmul.f32 %v713_v39, %v17679_v62  ;;  %v718_v54 = vmul.f32 %v701_v28, %v17684_v31  ;;  %v721_v52 = vmul.f32 %v713_v39, %v17684_v31  ;;  %2324 = vperm.xlu1 %11402, %v10219_v29   ;;  %v12865_v31 = vpop.permute.xlu0 %1313 }
 0x14c   :  { %17689 = vst [vmem:[#allocation32_spill] sm:$0xff] %v12827_v0  ;;  %17691 = vst [vmem:[#allocation34_spill] sm:$0xff] %v12834_v60  ;;  %v758_v0 = vsel %vm754_vm6, %v17692_v19, %v17681_v35  ;;  %v12844_v53 = vadd.f32 %v719_v56, %v12721_v7  ;;  %v12847_v58 = vadd.f32 %v720_v44, %v12723_v21 }
 0x14d   :  { %v722_v51 = vmul.f32 %v701_v28, %v17693_v14  ;;  %v755_v62 = vsel %vm754_vm6, %v17683_v63, %v17692_v19  ;;  %v723_v35 = vmul.f32 %v12742_v50, %v17693_v14  ;;  %v724_v7 = vmul.f32 %v12745_v4, %v17693_v14  ;;  %17694 = vst [vmem:[#allocation29_spill] sm:$0xff] %v12865_v31  ;;  %v17695_v63 = vld [vmem:[#allocation31_spill] sm:$0xff]  ;;  %v12877_v61 = vpop.permute.xlu1 %1317 }
 0x14e   :  { %v725_v21 = vmul.f32 %v713_v39, %v17693_v14  ;;  %v12863_v24 = vrot.slane %v783_v45, %v11625_v8  ;;  %v12868_v56 = vadd.f32 %v714_v22, %v12730_v37  ;;  %v726_v44 = vmul.f32 %v701_v28, %v17695_v63  ;;  %v17696_v19 = vld [vmem:[#allocation71_spill] sm:$0xff]  ;;  %2165 = vrot.lane.b32.xlu0 %v11647_v16, %s11546_s24  ;;  %v17698_v28 = vld [vmem:[#allocation72_spill] sm:$0xff] }
 0x14f   :  { %v12872_v29 = vrot.slane %v784_v23, %v11625_v8  ;;  %v782_v25 = vmul.f32 %v17696_v19, %v758_v0  ;;  %17697 = vst [vmem:[#allocation35_spill] sm:$0xff] %v12877_v61  ;;  %v12880_v45 = vadd.f32 %v717_v43, %v12739_v49  ;;  %v12883_v14 = vadd.f32 %v718_v54, %v12751_v47  ;;  %v10217_v23 = vld [vmem:[%s17314_s2 + $0x278] sm:$0xff] }
 0x150   :  { %v727_v37 = vmul.f32 %v12742_v50, %v17695_v63  ;;  %v785_v22 = vmul.f32 %v17698_v28, %v755_v62  ;;  %2216 = vperm.xlu1 %11402, %v10216_v18   ;;  %v1608_v0 = vld [vmem:[#allocation2 + $0x26] ss:$8 sm:$0xf]  ;;  %v737_v19 = vadd.f32 %v721_v52, %v12760_v59  ;;  %v738_v61 = vadd.f32 %v722_v51, %v12763_v1  ;;  %v12907_v59 = vpop.permute.xlu0 %1431 }
 0x151   :  { %v728_v49 = vmul.f32 %v12745_v4, %v17695_v63  ;;  %v729_v47 = vmul.f32 %v713_v39, %v17695_v63  ;;  %v12897_v43 = vadd.f32 %v723_v35, %v12769_v36  ;;  %v12900_v50 = vadd.f32 %v724_v7, %v12771_v48  ;;  %v17699_v62 = vld [vmem:[#allocation36_spill] sm:$0xff]  ;;  %17700 = vst [vmem:[#allocation30_spill] sm:$0xff] %v12907_v59  ;;  %v12914_v36 = vpop.permute.xlu1 %1436  ;;  %v17703_v51 = vld [vmem:[#allocation69_spill] sm:$0xff] }
 0x152   :  { %v12903_v54 = vadd.f32 %v725_v21, %v12773_v57  ;;  %v828_v18 = vmul.f32 %v12863_v24, %v17699_v62  ;;  %v12909_v1 = vadd.f32 %v726_v44, %v629_v5  ;;  %v814_v4 = vrot.slane %v782_v25, %v11625_v8  ;;  %2221 = vperm.xlu0 %11401, %v10217_v23   ;;  %v17704_v35 = vld [vmem:[#allocation61_spill] sm:$0xff]  ;;  %v17705_v25 = vld [vmem:[#allocation70_spill] sm:$0xff] }
 0x153   :  { %v829_v39 = vmul.f32 %v12872_v29, %v17699_v62  ;;  %17701 = vst [vmem:[#allocation31_spill] sm:$0xff] %v12914_v36  ;;  %v12917_v48 = vrot.slane %v1608_v0, %v11625_v8  ;;  %v743_v57 = vadd.f32 %v727_v37, %v12793_v17  ;;  %v826_v52 = vrot.slane %v785_v22, %v11625_v8  ;;  %v17706_v63 = vld [vmem:[#allocation37_spill] sm:$0xff] }
 0x154   :  { %v870_v5 = vsel %vm867_vm7, %v17704_v35, %v17703_v51  ;;  %v871_v7 = vsel %vm867_vm7, %v17705_v25, %v17704_v35  ;;  %2272 = vrot.lane.b32.xlu1 %v11634_v13, %s17460_s22  ;;  %v12932_v21 = vadd.f32 %v728_v49, %v12805_v10  ;;  %v12935_v17 = vadd.f32 %v729_v47, %v12807_v6  ;;  %v12944_v23 = vpop.permute.xlu0 %1315  ;;  %v17711_v28 = vld [vmem:[#allocation73_spill] sm:$0xff] }
 0x155   :  { %17702 = vst [vmem:[#allocation36_spill] sm:$0xff] %v12917_v48  ;;  %v832_v44 = vmul.f32 %v12863_v24, %v17706_v63  ;;  %v833_v37 = vmul.f32 %v12872_v29, %v17706_v63  ;;  %v12942_v22 = vadd.f32 %v828_v18, %v731_v38  ;;  %17707 = vst [vmem:[#allocation69_spill] sm:$0xff] %v12944_v23  ;;  %v17712_v38 = vld [vmem:[#allocation74_spill] sm:$0xff]  ;;  %v12963_v36 = vpop.permute.xlu1 %1368  ;;  %v17716_v23 = vld [vmem:[#allocation81_spill] sm:$0xff] }
 0x156   :  { %v12947_v35 = vrot.slane %v1608_v0, %v11629_v11  ;;  %v12950_v10 = vrot.slane %v1608_v0, %v11627_v9  ;;  %v12953_v6 = vrot.slane %v1608_v0, %v11631_v12  ;;  %v827_v49 = vmul.f32 %v814_v4, %v17699_v62  ;;  %2274 = vrot.lane.b32.xlu0 %v11642_v15, %s17460_s22 }
 0x157   :  { %v12957_v47 = vadd.f32 %v829_v39, %v12831_v34  ;;  %v896_v48 = vmul.f32 %v17711_v28, %v870_v5  ;;  %v895_v18 = vmul.f32 %v17712_v38, %v871_v7  ;;  %17713 = vst [vmem:[#allocation92_spill] sm:$0xff] %v12963_v36  ;;  %v834_v0 = vmul.f32 %v826_v52, %v17706_v63  ;;  %v10222_v34 = vld [vmem:[%s17314_s2 + $0x2a0] sm:$0xff]  ;;  %v17715_v28 = vld [vmem:[#allocation43_spill] sm:$0xff] }
 0x158   :  { %17708 = vst [vmem:[#allocation61_spill] sm:$0xff] %v12947_v35  ;;  %17709 = vst [vmem:[#allocation70_spill] sm:$0xff] %v12950_v10  ;;  %v830_v35 = vmul.f32 %v826_v52, %v17699_v62  ;;  %v831_v10 = vmul.f32 %v814_v4, %v17706_v63  ;;  %2276 = vrot.lane.b32.xlu1 %v17631_v40, %s17460_s22  ;;  %v848_v39 = vadd.f32 %v832_v44, %v12844_v53  ;;  %v10223_v63 = vld [vmem:[%s17314_s2 + $0x2a8] sm:$0xff]  ;;  %v12995_v44 = vpop.permute.xlu0 %1373 }
 0x159   :  { %17710 = vst [vmem:[#allocation37_spill] sm:$0xff] %v12953_v6  ;;  %v17714_v6 = vld [vmem:[#allocation38_spill] sm:$0xff]  ;;  %v12976_v5 = vadd.f32 %v833_v37, %v12847_v58  ;;  %v839_v36 = vmul.f32 %v814_v4, %v17715_v28  ;;  %v868_v53 = vsel %vm867_vm7, %v17716_v23, %v17705_v25  ;;  %v869_v58 = vsel %vm867_vm7, %v17703_v51, %v17716_v23  ;;  %v13006_v25 = vpop.permute.xlu1 %1528 }
 0x15a   :  { %v835_v59 = vmul.f32 %v814_v4, %v17714_v6  ;;  %v836_v62 = vmul.f32 %v12863_v24, %v17714_v6  ;;  %v837_v7 = vmul.f32 %v12872_v29, %v17714_v6  ;;  %v838_v38 = vmul.f32 %v826_v52, %v17714_v6  ;;  %17717 = vst [vmem:[#allocation38_spill] sm:$0xff] %v12995_v44  ;;  %v17720_v44 = vld [vmem:[#allocation77_spill] sm:$0xff] }
 0x15b   :  { %v843_v37 = vadd.f32 %v827_v49, %v12868_v56  ;;  %v840_v60 = vmul.f32 %v12863_v24, %v17715_v28  ;;  %v13001_v6 = vrot.slane %v896_v48, %v11625_v8  ;;  %v13004_v4 = vrot.slane %v895_v18, %v11625_v8  ;;  %2432 = vperm.xlu0 %11401, %v10222_v34   ;;  %v17719_v49 = vld [vmem:[#allocation75_spill] sm:$0xff] }
 0x15c   :  { %17718 = vst [vmem:[#allocation43_spill] sm:$0xff] %v13006_v25  ;;  %v13009_v31 = vadd.f32 %v830_v35, %v12880_v45  ;;  %v847_v51 = vadd.f32 %v831_v10, %v12883_v14  ;;  %v13012_v23 = vadd.f32 %v834_v0, %v737_v19  ;;  %v851_v56 = vadd.f32 %v835_v59, %v738_v61  ;;  %v10220_v45 = vld [vmem:[%s17314_s2 + $0x290] sm:$0xff]  ;;  %v13032_v14 = vpop.permute.xlu0 %1533  ;;  %v17722_v59 = vld [vmem:[#allocation47_spill] sm:$0xff]  ;;  %v17723_v10 = vld [vmem:[#allocation58_spill] sm:$0xff] }
 0x15d   :  { %2437 = vperm.xlu1 %11402, %v10223_v63   ;;  %v841_v24 = vmul.f32 %v12872_v29, %v17715_v28  ;;  %v842_v48 = vmul.f32 %v826_v52, %v17715_v28  ;;  %v897_v18 = vmul.f32 %v17719_v49, %v869_v58  ;;  %v898_v34 = vmul.f32 %v17720_v44, %v868_v53  ;;  %v17730_v49 = vld [vmem:[#allocation79_spill] sm:$0xff] }
 0x15e   :  { %v852_v35 = vadd.f32 %v836_v62, %v12897_v43  ;;  %v13024_v19 = vadd.f32 %v837_v7, %v12900_v50  ;;  %v13027_v61 = vadd.f32 %v838_v38, %v12903_v54  ;;  %v13030_v29 = vadd.f32 %v839_v36, %v12909_v1  ;;  %17721 = vst [vmem:[#allocation81_spill] sm:$0xff] %v13032_v14  ;;  %v13044_v50 = vpop.permute.xlu1 %1441  ;;  %v1721_v54 = vld [vmem:[#allocation2 + $0x27] ss:$8 sm:$0xf] }
 0x15f   :  { %v13034_v28 = vadd.f32 %v840_v60, %v743_v57  ;;  %v941_v52 = vmul.f32 %v13001_v6, %v17722_v59  ;;  %v945_v0 = vmul.f32 %v13001_v6, %v17723_v10  ;;  %v940_v43 = vmul.f32 %v13004_v4, %v17722_v59  ;;  %2278 = vrot.lane.b32.xlu0 %v11647_v16, %s17460_s22  ;;  %v17724_v60 = vld [vmem:[#allocation84_spill] sm:$0xff]  ;;  %v10221_v62 = vld [vmem:[%s17314_s2 + $0x298] sm:$0xff]  ;;  %s17486_s22 = smov 96  }
 0x160   :  { %v944_v1 = vmul.f32 %v13004_v4, %v17723_v10  ;;  %v948_v36 = vmul.f32 %v13004_v4, %v17724_v60  ;;  %v983_v57 = vsel %vm980_vm8, %v12321_v32, %v12351_v55  ;;  %v984_v38 = vsel %vm980_vm8, %v12363_v3, %v12321_v32  ;;  %v13070_v44 = vpop.permute.xlu0 %1446 }
 0x161   :  { %2329 = vperm.xlu1 %11402, %v10220_v45   ;;  %v13062_v7 = vadd.f32 %v841_v24, %v12932_v21  ;;  %v13065_v63 = vadd.f32 %v842_v48, %v12935_v17  ;;  %v935_v53 = vrot.slane %v897_v18, %v11625_v8  ;;  %v939_v58 = vrot.slane %v898_v34, %v11625_v8  ;;  %v17729_v18 = vld [vmem:[#allocation78_spill] sm:$0xff] }
 0x162   :  { %v13073_v32 = vrot.slane %v1721_v54, %v11625_v8  ;;  %v13076_v45 = vrot.slane %v1721_v54, %v11629_v11  ;;  %v13079_v21 = vrot.slane %v1721_v54, %v11627_v9  ;;  %v13082_v17 = vrot.slane %v1721_v54, %v11631_v12 }
 0x163   :  { %v13085_v24 = vadd.f32 %v941_v52, %v12942_v22  ;;  %v949_v48 = vmul.f32 %v13001_v6, %v17724_v60  ;;  %v1009_v34 = vmul.f32 %v17729_v18, %v983_v57  ;;  %v1008_v14 = vmul.f32 %v17730_v49, %v984_v38  ;;  %2334 = vperm.xlu0 %11401, %v10221_v62   ;;  %v1834_v62 = vld [vmem:[#allocation2 + $0x40] ss:$8 sm:$0xf] }
 0x164   :  { %17725 = vst [vmem:[#allocation47_spill] sm:$0xff] %v13073_v32  ;;  %17726 = vst [vmem:[#allocation58_spill] sm:$0xff] %v13076_v45  ;;  %v13091_v32 = vpop.permute.xlu1 %1481  ;;  %v961_v45 = vadd.f32 %v945_v0, %v848_v39  ;;  %v13093_v25 = vadd.f32 %v940_v43, %v843_v37  ;;  %v13097_v54 = vadd.f32 %v948_v36, %v851_v56 }
 0x165   :  { %17727 = vst [vmem:[#allocation84_spill] sm:$0xff] %v13079_v21  ;;  %17728 = vst [vmem:[#allocation93_spill] sm:$0xff] %v13082_v17  ;;  %v13095_v21 = vadd.f32 %v944_v1, %v847_v51  ;;  %2385 = vrot.lane.b32.xlu1 %v11634_v13, %s17467_s23  ;;  %v942_v22 = vmul.f32 %v935_v53, %v17722_v59  ;;  %v943_v52 = vmul.f32 %v939_v58, %v17722_v59  ;;  %v13115_v59 = vpop.permute.xlu0 %1483 }
 0x166   :  { %v946_v57 = vmul.f32 %v935_v53, %v17723_v10  ;;  %v947_v38 = vmul.f32 %v939_v58, %v17723_v10  ;;  %v950_v39 = vmul.f32 %v935_v53, %v17724_v60  ;;  %v951_v37 = vmul.f32 %v939_v58, %v17724_v60 }
 0x167   :  { %v981_v51 = vsel %vm980_vm8, %v12436_v27, %v12363_v3  ;;  %v982_v56 = vsel %vm980_vm8, %v12351_v55, %v12436_v27  ;;  %v13117_v0 = vadd.f32 %v949_v48, %v852_v35  ;;  %v952_v10 = vmul.f32 %v13004_v4, %v12309_v33  ;;  %2387 = vrot.lane.b32.xlu0 %v11642_v15, %s17467_s23  ;;  %v10226_v4 = vld [vmem:[%s17314_s2 + $0x2c0] sm:$0xff]  ;;  %v17733_v48 = vld [vmem:[#allocation83_spill] sm:$0xff] }
 0x168   :  { %v13122_v43 = vrot.slane %v1009_v34, %v11625_v8  ;;  %v13125_v1 = vrot.slane %v1008_v14, %v11625_v8  ;;  %v13129_v3 = vpop.permute.xlu1 %1485  ;;  %v953_v55 = vmul.f32 %v13001_v6, %v12309_v33  ;;  %v954_v27 = vmul.f32 %v935_v53, %v12309_v33  ;;  %v17732_v6 = vld [vmem:[#allocation82_spill] sm:$0xff] }
 0x169   :  { %v955_v35 = vmul.f32 %v939_v58, %v12309_v33  ;;  %2389 = vrot.lane.b32.xlu1 %v17631_v40, %s17467_s23  ;;  %v13141_v14 = vrot.slane %v1834_v62, %v11625_v8  ;;  %v13144_v60 = vadd.f32 %v942_v22, %v12957_v47  ;;  %v13147_v36 = vadd.f32 %v943_v52, %v13009_v31  ;;  %v10227_v58 = vld [vmem:[%s17314_s2 + $0x2c8] sm:$0xff]  ;;  %v13166_v22 = vpop.permute.xlu0 %1641 }
 0x16a   :  { %v1010_v53 = vmul.f32 %v17732_v6, %v982_v56  ;;  %v1011_v33 = vmul.f32 %v17733_v48, %v981_v51  ;;  %v13155_v34 = vadd.f32 %v946_v57, %v12976_v5  ;;  %v13158_v49 = vadd.f32 %v947_v38, %v13012_v23  ;;  %17734 = vst [vmem:[#allocation95_spill] sm:$0xff] %v13166_v22  ;;  %v17735_v51 = vld [vmem:[#allocation76_spill] sm:$0xff] }
 0x16b   :  { %17731 = vst [vmem:[#allocation94_spill] sm:$0xff] %v13141_v14  ;;  %v13161_v47 = vadd.f32 %v950_v39, %v13024_v19  ;;  %v13164_v31 = vadd.f32 %v951_v37, %v13027_v61  ;;  %v13169_v52 = vadd.f32 %v952_v10, %v13030_v29  ;;  %v1054_v56 = vmul.f32 %v13122_v43, %v17735_v51  ;;  %v17736_v48 = vld [vmem:[#allocation80_spill] sm:$0xff] }
 0x16c   :  { %v1058_v5 = vmul.f32 %v13122_v43, %v17736_v48  ;;  %v1053_v23 = vmul.f32 %v13125_v1, %v17735_v51  ;;  %2545 = vperm.xlu0 %11401, %v10226_v4   ;;  %v13177_v19 = vpop.permute.xlu1 %1646  ;;  %v1057_v61 = vmul.f32 %v13125_v1, %v17736_v48  ;;  %v1061_v57 = vmul.f32 %v13125_v1, %v12452_v30  ;;  %v10224_v6 = vld [vmem:[%s17314_s2 + $0x2b0] sm:$0xff] }
 0x16d   :  { %17737 = vst [vmem:[#allocation76_spill] sm:$0xff] %v13177_v19  ;;  %v1096_v29 = vsel %vm1093_vm9, %v12498_v2, %v12527_v20  ;;  %v1097_v38 = vsel %vm1093_vm9, %v12537_v46, %v12498_v2  ;;  %2550 = vperm.xlu1 %11402, %v10227_v58   ;;  %v969_v39 = vadd.f32 %v953_v55, %v13034_v28  ;;  %v13204_v2 = vpop.permute.xlu0 %1487 }
 0x16e   :  { %v13193_v37 = vadd.f32 %v954_v27, %v13062_v7  ;;  %v1048_v10 = vrot.slane %v1010_v53, %v11625_v8  ;;  %v1052_v4 = vrot.slane %v1011_v33, %v11625_v8  ;;  %v13201_v18 = vadd.f32 %v955_v35, %v13065_v63  ;;  %v17741_v63 = vld [vmem:[#allocation85_spill] sm:$0xff]  ;;  %v17742_v33 = vld [vmem:[#allocation86_spill] sm:$0xff] }
 0x16f   :  { %v13207_v28 = vrot.slane %v1834_v62, %v11629_v11  ;;  %v13210_v7 = vrot.slane %v1834_v62, %v11627_v9  ;;  %v13213_v55 = vrot.slane %v1834_v62, %v11631_v12  ;;  %v13216_v27 = vadd.f32 %v1054_v56, %v13085_v24  ;;  %v10225_v62 = vld [vmem:[%s17314_s2 + $0x2b8] sm:$0xff] }
 0x170   :  { %v13218_v53 = vadd.f32 %v1058_v5, %v961_v45  ;;  %v1122_v35 = vmul.f32 %v17741_v63, %v1096_v29  ;;  %v1121_v58 = vmul.f32 %v17742_v33, %v1097_v38  ;;  %2391 = vrot.lane.b32.xlu0 %v11647_v16, %s17467_s23  ;;  %v13224_v14 = vpop.permute.xlu1 %1538  ;;  %v1062_v24 = vmul.f32 %v13122_v43, %v12452_v30  ;;  %v17746_v38 = vld [vmem:[#allocation8_spill] sm:$0xff]  ;;  %s11550_s23 = smov 95  }
 0x171   :  { %17738 = vst [vmem:[#allocation80_spill] sm:$0xff] %v13207_v28  ;;  %17739 = vst [vmem:[#allocation96_spill] sm:$0xff] %v13210_v7  ;;  %v1069_v28 = vadd.f32 %v1053_v23, %v13093_v25  ;;  %v13228_v7 = vadd.f32 %v1057_v61, %v13095_v21  ;;  %v13233_v45 = vadd.f32 %v1061_v57, %v13097_v54  ;;  %2442 = vperm.xlu1 %11402, %v10224_v6   ;;  %v1947_v23 = vld [vmem:[#allocation2 + $0x41] ss:$8 sm:$0xf] }
 0x172   :  { %17740 = vst [vmem:[#allocation97_spill] sm:$0xff] %v13213_v55  ;;  %17743 = vst [vmem:[#allocation98_spill] sm:$0xff] %v13224_v14  ;;  %v1055_v56 = vmul.f32 %v1048_v10, %v17735_v51  ;;  %v1056_v5 = vmul.f32 %v1052_v4, %v17735_v51  ;;  %v1059_v25 = vmul.f32 %v1048_v10, %v17736_v48  ;;  %v17744_v54 = vld [vmem:[#allocation18_spill] sm:$0xff]  ;;  %v13252_v51 = vpop.permute.xlu0 %1543 }
 0x173   :  { %v1060_v21 = vmul.f32 %v1052_v4, %v17736_v48  ;;  %v1063_v61 = vmul.f32 %v1048_v10, %v12452_v30  ;;  %v1064_v29 = vmul.f32 %v1052_v4, %v12452_v30  ;;  %v1094_v6 = vsel %vm1093_vm9, %v17744_v54, %v12537_v46  ;;  %17745 = vst [vmem:[#allocation18_spill] sm:$0xff] %v13252_v51 }
 0x174   :  { %v1095_v57 = vsel %vm1093_vm9, %v12527_v20, %v17744_v54  ;;  %v1065_v48 = vmul.f32 %v13125_v1, %v17746_v38  ;;  %v1066_v33 = vmul.f32 %v13122_v43, %v17746_v38  ;;  %v13259_v30 = vrot.slane %v1122_v35, %v11625_v8  ;;  %2447 = vperm.xlu0 %11401, %v10225_v62   ;;  %v13264_v46 = vpop.permute.xlu1 %1594 }
 0x175   :  { %v13262_v63 = vrot.slane %v1121_v58, %v11625_v8  ;;  %17747 = vst [vmem:[#allocation8_spill] sm:$0xff] %v13264_v46  ;;  %v1078_v55 = vadd.f32 %v1062_v24, %v13117_v0  ;;  %v1067_v20 = vmul.f32 %v1048_v10, %v17746_v38  ;;  %v1068_v54 = vmul.f32 %v1052_v4, %v17746_v38  ;;  %v17749_v58 = vld [vmem:[#allocation89_spill] sm:$0xff]  ;;  %v17750_v0 = vld [vmem:[#allocation90_spill] sm:$0xff] }
 0x176   :  { %2498 = vrot.lane.b32.xlu1 %v11634_v13, %s17486_s22  ;;  %v13272_v43 = vrot.slane %v1947_v23, %v11625_v8  ;;  %v13275_v1 = vadd.f32 %v1055_v56, %v13144_v60  ;;  %v13278_v35 = vadd.f32 %v1056_v5, %v13147_v36  ;;  %v1123_v62 = vmul.f32 %v17749_v58, %v1095_v57  ;;  %v13294_v60 = vpop.permute.xlu0 %1596  ;;  %v17751_v5 = vld [vmem:[#allocation87_spill] sm:$0xff] }
 0x177   :  { %v1124_v24 = vmul.f32 %v17750_v0, %v1094_v6  ;;  %v13283_v10 = vadd.f32 %v1059_v25, %v13155_v34  ;;  %v13286_v4 = vadd.f32 %v1060_v21, %v13158_v49  ;;  %v13289_v38 = vadd.f32 %v1063_v61, %v13161_v47  ;;  %v17754_v21 = vld [vmem:[#allocation19_spill] sm:$0xff] }
 0x178   :  { %17748 = vst [vmem:[#allocation99_spill] sm:$0xff] %v13272_v43  ;;  %v13292_v43 = vadd.f32 %v1064_v29, %v13164_v31  ;;  %v13297_v36 = vadd.f32 %v1065_v48, %v13169_v52  ;;  %v13299_v56 = vadd.f32 %v1066_v33, %v969_v39  ;;  %v1167_v34 = vmul.f32 %v13259_v30, %v17751_v5  ;;  %v13307_v47 = vpop.permute.xlu1 %1598  ;;  %v17753_v31 = vld [vmem:[#allocation88_spill] sm:$0xff]  ;;  %v17755_v33 = vld [vmem:[#allocation15_spill] sm:$0xff]  ;;  %v10230_v29 = vld [vmem:[%s17314_s2 + $0x2e0] sm:$0xff] }
 0x179   :  { %v1166_v49 = vmul.f32 %v13262_v63, %v17751_v5  ;;  %2500 = vrot.lane.b32.xlu0 %v11642_v15, %s17486_s22  ;;  %17752 = vst [vmem:[#allocation87_spill] sm:$0xff] %v13307_v47  ;;  %v1171_v25 = vmul.f32 %v13259_v30, %v17753_v31  ;;  %v1170_v52 = vmul.f32 %v13262_v63, %v17753_v31  ;;  %v10231_v58 = vld [vmem:[%s17314_s2 + $0x2e8] sm:$0xff] }
 0x17a   :  { %v1174_v39 = vmul.f32 %v13262_v63, %v17754_v21  ;;  %v1210_v61 = vsel %vm1206_vm10, %v12710_v42, %v17755_v33  ;;  %2502 = vrot.lane.b32.xlu1 %v17631_v40, %s17486_s22  ;;  %v13326_v6 = vadd.f32 %v1067_v20, %v13193_v37  ;;  %v1161_v57 = vrot.slane %v1123_v62, %v11625_v8  ;;  %v13340_v19 = vpop.permute.xlu0 %1754 }
 0x17b   :  { %v1165_v48 = vrot.slane %v1124_v24, %v11625_v8  ;;  %v1209_v0 = vsel %vm1206_vm10, %v17755_v33, %v12700_v26  ;;  %v13338_v17 = vadd.f32 %v1068_v54, %v13201_v18  ;;  %17756 = vst [vmem:[#allocation88_spill] sm:$0xff] %v13340_v19  ;;  %v13343_v37 = vrot.slane %v1947_v23, %v11629_v11  ;;  %v17760_v33 = vld [vmem:[#allocation11_spill] sm:$0xff] }
 0x17c   :  { %v13346_v20 = vrot.slane %v1947_v23, %v11627_v9  ;;  %v13349_v62 = vrot.slane %v1947_v23, %v11631_v12  ;;  %v1175_v24 = vmul.f32 %v13259_v30, %v17754_v21  ;;  %v1234_v22 = vmul.f32 %v17760_v33, %v1210_v61  ;;  %v13357_v54 = vpop.permute.xlu1 %1759  ;;  %v17762_v19 = vld [vmem:[#allocation91_spill] sm:$0xff] }
 0x17d   :  { %17757 = vst [vmem:[#allocation19_spill] sm:$0xff] %v13343_v37  ;;  %v1182_v51 = vadd.f32 %v1166_v49, %v1069_v28  ;;  %v13355_v18 = vadd.f32 %v1167_v34, %v13216_v27  ;;  %2658 = vperm.xlu0 %11401, %v10230_v29   ;;  %17761 = vst [vmem:[#allocation101_spill] sm:$0xff] %v13357_v54  ;;  %v13360_v37 = vadd.f32 %v1174_v39, %v13233_v45  ;;  %v10228_v45 = vld [vmem:[%s17314_s2 + $0x2d0] sm:$0xff]  ;;  %v17765_v39 = vld [vmem:[#allocation14_spill] sm:$0xff] }
 0x17e   :  { %17758 = vst [vmem:[#allocation15_spill] sm:$0xff] %v13346_v20  ;;  %17759 = vst [vmem:[#allocation100_spill] sm:$0xff] %v13349_v62  ;;  %v1235_v20 = vmul.f32 %v17762_v19, %v1209_v0  ;;  %v13364_v23 = vadd.f32 %v1170_v52, %v13228_v7  ;;  %v13367_v62 = vadd.f32 %v1171_v25, %v13218_v53  ;;  %2663 = vperm.xlu1 %11402, %v10231_v58   ;;  %v2060_v0 = vld [vmem:[#allocation2 + $0x42] ss:$8 sm:$0xf] }
 0x17f   :  { %v1168_v28 = vmul.f32 %v1161_v57, %v17751_v5  ;;  %v1169_v27 = vmul.f32 %v1165_v48, %v17751_v5  ;;  %v1172_v34 = vmul.f32 %v1161_v57, %v17753_v31  ;;  %v1173_v49 = vmul.f32 %v1165_v48, %v17753_v31  ;;  %v17763_v53 = vld [vmem:[#allocation21_spill] sm:$0xff]  ;;  %v13386_v31 = vpop.permute.xlu0 %1600  ;;  %v17769_v19 = vld [vmem:[#allocation10_spill] sm:$0xff] }
 0x180   :  { %v1176_v7 = vmul.f32 %v1161_v57, %v17754_v21  ;;  %v1177_v52 = vmul.f32 %v1165_v48, %v17754_v21  ;;  %v1207_v58 = vsel %vm1206_vm10, %v17763_v53, %v12710_v42  ;;  %v1208_v5 = vsel %vm1206_vm10, %v12700_v26, %v17763_v53  ;;  %17764 = vst [vmem:[#allocation21_spill] sm:$0xff] %v13386_v31  ;;  %v13397_v42 = vpop.permute.xlu1 %1651  ;;  %v17768_v53 = vld [vmem:[#allocation9_spill] sm:$0xff] }
 0x181   :  { %v1191_v25 = vadd.f32 %v1175_v24, %v1078_v55  ;;  %v1178_v61 = vmul.f32 %v13262_v63, %v17765_v39  ;;  %v1179_v29 = vmul.f32 %v13259_v30, %v17765_v39  ;;  %v13393_v21 = vrot.slane %v1234_v22, %v11625_v8  ;;  %2504 = vrot.lane.b32.xlu0 %v11647_v16, %s17486_s22  ;;  %v10229_v63 = vld [vmem:[%s17314_s2 + $0x2d8] sm:$0xff]  ;;  %s17499_s22 = smov 94  }
 0x182   :  { %17766 = vst [vmem:[#allocation14_spill] sm:$0xff] %v13397_v42  ;;  %v1180_v33 = vmul.f32 %v1161_v57, %v17765_v39  ;;  %v1181_v26 = vmul.f32 %v1165_v48, %v17765_v39  ;;  %v1270_v55 = vrot.slane %v1235_v20, %v11625_v8  ;;  %2555 = vperm.xlu1 %11402, %v10228_v45   ;;  %v17778_v42 = vld [vmem:[#allocation17_spill] sm:$0xff] }
 0x183   :  { %v13406_v30 = vrot.slane %v2060_v0, %v11625_v8  ;;  %v13409_v22 = vadd.f32 %v1168_v28, %v13275_v1  ;;  %v13412_v24 = vadd.f32 %v1169_v27, %v13278_v35  ;;  %v1236_v57 = vmul.f32 %v17768_v53, %v1208_v5  ;;  %v17771_v35 = vld [vmem:[#allocation12_spill] sm:$0xff]  ;;  %v17772_v27 = vld [vmem:[#allocation29_spill] sm:$0xff] }
 0x184   :  { %v1237_v48 = vmul.f32 %v17769_v19, %v1207_v58  ;;  %v1188_v20 = vadd.f32 %v1172_v34, %v13283_v10  ;;  %v1189_v45 = vadd.f32 %v1173_v49, %v13286_v4  ;;  %v13419_v39 = vadd.f32 %v1176_v7, %v13289_v38  ;;  %v17773_v58 = vld [vmem:[#allocation34_spill] sm:$0xff]  ;;  %v17774_v4 = vld [vmem:[#allocation35_spill] sm:$0xff]  ;;  %v17779_v31 = vld [vmem:[#allocation13_spill] sm:$0xff] }
 0x185   :  { %17767 = vst [vmem:[#allocation102_spill] sm:$0xff] %v13406_v30  ;;  %v13422_v54 = vadd.f32 %v1177_v52, %v13292_v43  ;;  %v13424_v30 = vpop.permute.xlu0 %1656  ;;  %v13427_v1 = vadd.f32 %v1178_v61, %v13297_v36  ;;  %v1279_v28 = vmul.f32 %v13393_v21, %v17771_v35  ;;  %v1322_v10 = vsel %vm1319_vm11, %v17773_v58, %v17772_v27  ;;  %v13439_v43 = vpop.permute.xlu1 %1707  ;;  %v17776_v36 = vld [vmem:[#allocation16_spill] sm:$0xff]  ;;  %v17777_v52 = vld [vmem:[#allocation22_spill] sm:$0xff] }
 0x186   :  { %17770 = vst [vmem:[#allocation103_spill] sm:$0xff] %v13424_v30  ;;  %v1323_v38 = vsel %vm1319_vm11, %v17774_v4, %v17773_v58  ;;  %2560 = vperm.xlu0 %11401, %v10229_v63   ;;  %17775 = vst [vmem:[#allocation12_spill] sm:$0xff] %v13439_v43  ;;  %v1280_v34 = vmul.f32 %v1270_v55, %v17771_v35  ;;  %v1284_v49 = vmul.f32 %v1270_v55, %v17776_v36 }
 0x187   :  { %v1283_v7 = vmul.f32 %v13393_v21, %v17776_v36  ;;  %v1287_v5 = vmul.f32 %v13393_v21, %v17777_v52  ;;  %2611 = vrot.lane.b32.xlu1 %v11634_v13, %s11550_s23  ;;  %v1195_v61 = vadd.f32 %v1179_v29, %v13299_v56  ;;  %v1196_v63 = vadd.f32 %v1180_v33, %v13326_v6 }
 0x188   :  { %v1274_v58 = vrot.slane %v1236_v57, %v11625_v8  ;;  %v1278_v19 = vrot.slane %v1237_v48, %v11625_v8  ;;  %v1197_v53 = vadd.f32 %v1181_v26, %v13338_v17  ;;  %v1288_v30 = vmul.f32 %v1270_v55, %v17777_v52  ;;  %v10234_v48 = vld [vmem:[%s17314_s2 + $0x300] sm:$0xff] }
 0x189   :  { %v1348_v43 = vmul.f32 %v17778_v42, %v1322_v10  ;;  %v1347_v14 = vmul.f32 %v17779_v31, %v1323_v38  ;;  %v13457_v47 = vpop.permute.xlu0 %1709  ;;  %v1295_v46 = vadd.f32 %v1279_v28, %v1182_v51  ;;  %v13461_v56 = vpop.permute.xlu1 %1711  ;;  %v13464_v6 = vrot.slane %v2060_v0, %v11629_v11  ;;  %v2173_v28 = vld [vmem:[#allocation2 + $0x43] ss:$8 sm:$0xf] }
 0x18a   :  { %2613 = vrot.lane.b32.xlu0 %v11642_v15, %s11550_s23  ;;  %v13467_v33 = vrot.slane %v2060_v0, %v11627_v9  ;;  %v13470_v17 = vrot.slane %v2060_v0, %v11631_v12  ;;  %v13473_v29 = vadd.f32 %v1287_v5, %v13360_v37  ;;  %v1296_v26 = vadd.f32 %v1280_v34, %v13355_v18  ;;  %v17784_v5 = vld [vmem:[#allocation23_spill] sm:$0xff] }
 0x18b   :  { %17780 = vst [vmem:[#allocation29_spill] sm:$0xff] %v13464_v6  ;;  %v1299_v51 = vadd.f32 %v1283_v7, %v13364_v23  ;;  %v1300_v57 = vadd.f32 %v1284_v49, %v13367_v62  ;;  %2615 = vrot.lane.b32.xlu1 %v17631_v40, %s11550_s23  ;;  %v1281_v0 = vmul.f32 %v1274_v58, %v17771_v35  ;;  %v10235_v62 = vld [vmem:[%s17314_s2 + $0x308] sm:$0xff] }
 0x18c   :  { %17781 = vst [vmem:[#allocation34_spill] sm:$0xff] %v13467_v33  ;;  %17782 = vst [vmem:[#allocation35_spill] sm:$0xff] %v13470_v17  ;;  %v1282_v10 = vmul.f32 %v1278_v19, %v17771_v35  ;;  %v1285_v37 = vmul.f32 %v1274_v58, %v17776_v36  ;;  %v1286_v18 = vmul.f32 %v1278_v19, %v17776_v36 }
 0x18d   :  { %v1289_v23 = vmul.f32 %v1274_v58, %v17777_v52  ;;  %v13491_v38 = vadd.f32 %v1288_v30, %v1191_v25  ;;  %v1383_v34 = vrot.slane %v1348_v43, %v11625_v8  ;;  %v1379_v49 = vrot.slane %v1347_v14, %v11625_v8  ;;  %v13495_v7 = vpop.permute.xlu0 %1867  ;;  %v13501_v42 = vpop.permute.xlu1 %1872  ;;  %v17787_v14 = vld [vmem:[#allocation69_spill] sm:$0xff] }
 0x18e   :  { %17783 = vst [vmem:[#allocation16_spill] sm:$0xff] %v13495_v7  ;;  %v1290_v35 = vmul.f32 %v1278_v19, %v17777_v52  ;;  %v1291_v31 = vmul.f32 %v13393_v21, %v17784_v5  ;;  %v1292_v36 = vmul.f32 %v1270_v55, %v17784_v5  ;;  %2771 = vperm.xlu0 %11401, %v10234_v48   ;;  %17785 = vst [vmem:[#allocation22_spill] sm:$0xff] %v13501_v42  ;;  %v13609_v7 = vld [vmem:[#allocation2 + $0x44] ss:$8 sm:$0xf] }
 0x18f   :  { %v13504_v17 = vrot.slane %v2173_v28, %v11625_v8  ;;  %v1293_v25 = vmul.f32 %v1274_v58, %v17784_v5  ;;  %v1294_v30 = vmul.f32 %v1278_v19, %v17784_v5  ;;  %v1320_v43 = vsel %vm1319_vm11, %v17787_v14, %v17774_v4  ;;  %2776 = vperm.xlu1 %11402, %v10235_v62   ;;  %v10232_v4 = vld [vmem:[%s17314_s2 + $0x2f0] sm:$0xff]  ;;  %v17791_v5 = vld [vmem:[#allocation25_spill] sm:$0xff] }
 0x190   :  { %v1321_v21 = vsel %vm1319_vm11, %v17772_v27, %v17787_v14  ;;  %v13517_v55 = vadd.f32 %v1281_v0, %v13409_v22  ;;  %v13520_v52 = vadd.f32 %v1282_v10, %v13412_v24  ;;  %v13522_v58 = vadd.f32 %v1285_v37, %v1188_v20  ;;  %v17788_v27 = vld [vmem:[#allocation24_spill] sm:$0xff]  ;;  %v17789_v0 = vld [vmem:[#allocation26_spill] sm:$0xff] }
 0x191   :  { %17786 = vst [vmem:[#allocation23_spill] sm:$0xff] %v13504_v17  ;;  %v13524_v19 = vadd.f32 %v1286_v18, %v1189_v45  ;;  %v13531_v48 = vadd.f32 %v1289_v23, %v13419_v39  ;;  %v1392_v62 = vmul.f32 %v1379_v49, %v17788_v27  ;;  %v1393_v22 = vmul.f32 %v1383_v34, %v17788_v27  ;;  %v13536_v10 = vpop.permute.xlu0 %1713  ;;  %v17790_v37 = vld [vmem:[#allocation20_spill] sm:$0xff]  ;;  %v13546_v39 = vpop.permute.xlu1 %1764 }
 0x192   :  { %v1396_v24 = vmul.f32 %v1379_v49, %v17789_v0  ;;  %v13539_v20 = vadd.f32 %v1290_v35, %v13422_v54  ;;  %v1397_v45 = vmul.f32 %v1383_v34, %v17789_v0  ;;  %v1349_v18 = vmul.f32 %v17790_v37, %v1321_v21  ;;  %2617 = vrot.lane.b32.xlu0 %v11647_v16, %s11550_s23  ;;  %v10233_v54 = vld [vmem:[%s17314_s2 + $0x2f8] sm:$0xff]  ;;  %v17792_v35 = vld [vmem:[#allocation30_spill] sm:$0xff] }
 0x193   :  { %v1350_v14 = vmul.f32 %v17791_v5, %v1320_v43  ;;  %v1307_v23 = vadd.f32 %v1291_v31, %v13427_v1  ;;  %v1308_v17 = vadd.f32 %v1292_v36, %v1195_v61  ;;  %v13549_v33 = vadd.f32 %v1293_v25, %v1196_v63  ;;  %2668 = vperm.xlu1 %11402, %v10232_v4  }
 0x194   :  { %v13551_v6 = vadd.f32 %v1294_v30, %v1197_v53  ;;  %v1449_v43 = vmul.f32 %v17792_v35, %v11634_v13  ;;  %v13559_v21 = vrot.slane %v2173_v28, %v11629_v11  ;;  %v13562_v5 = vrot.slane %v2173_v28, %v11627_v9  ;;  %v17797_v30 = vld [vmem:[#allocation31_spill] sm:$0xff] }
 0x195   :  { %v13565_v31 = vrot.slane %v2173_v28, %v11631_v12  ;;  %v1408_v1 = vadd.f32 %v1392_v62, %v1295_v46  ;;  %v1409_v53 = vadd.f32 %v1393_v22, %v1296_v26  ;;  %v1450_v61 = vmul.f32 %v17792_v35, %v11642_v15  ;;  %v13569_v36 = vpop.permute.xlu0 %1769 }
 0x196   :  { %17793 = vst [vmem:[#allocation69_spill] sm:$0xff] %v13559_v21  ;;  %17794 = vst [vmem:[#allocation24_spill] sm:$0xff] %v13562_v5  ;;  %v1412_v63 = vadd.f32 %v1396_v24, %v1299_v51  ;;  %v1413_v25 = vadd.f32 %v1397_v45, %v1300_v57  ;;  %v1454_v4 = vmul.f32 %v17797_v30, %v11642_v15  ;;  %2673 = vperm.xlu0 %11401, %v10233_v54   ;;  %v13575_v5 = vpop.permute.xlu1 %1820  ;;  %v17798_v51 = vld [vmem:[#allocation92_spill] sm:$0xff]  ;;  %v17799_v24 = vld [vmem:[#allocation38_spill] sm:$0xff] }
 0x197   :  { %17795 = vst [vmem:[#allocation26_spill] sm:$0xff] %v13565_v31  ;;  %17796 = vst [vmem:[#allocation30_spill] sm:$0xff] %v13569_v36  ;;  %v1387_v37 = vrot.slane %v1349_v18, %v11625_v8  ;;  %v1391_v21 = vrot.slane %v1350_v14, %v11625_v8  ;;  %v13579_v46 = vmul.f32 %v17792_v35, %v17631_v40  ;;  %2724 = vrot.lane.b32.xlu1 %v11634_v13, %s17499_s22 }
 0x198   :  { %v1453_v26 = vmul.f32 %v17797_v30, %v11634_v13  ;;  %v1400_v28 = vmul.f32 %v1379_v49, %v17798_v51  ;;  %v1401_v57 = vmul.f32 %v1383_v34, %v17798_v51  ;;  %v13589_v62 = vmul.f32 %v17792_v35, %v11647_v16 }
 0x199   :  { %v13593_v22 = vmul.f32 %v17797_v30, %v17631_v40  ;;  %v1404_v45 = vmul.f32 %v1379_v49, %v17799_v24  ;;  %v1405_v18 = vmul.f32 %v1383_v34, %v17799_v24  ;;  %v13597_v14 = vadd.f32 %v1449_v43, %v1408_v1  ;;  %v13607_v35 = vpop.permute.xlu0 %1822 }
 0x19a   :  { %v13599_v54 = vadd.f32 %v1450_v61, %v1409_v53  ;;  %v13603_v31 = vmul.f32 %v17797_v30, %v11647_v16  ;;  %v13605_v42 = vadd.f32 %v1453_v26, %v1412_v63  ;;  %v13611_v36 = vadd.f32 %v1454_v4, %v1413_v25  ;;  %2726 = vrot.lane.b32.xlu0 %v11642_v15, %s17499_s22  ;;  %v13618_v1 = vpop.permute.xlu1 %1824 }
 0x19b   :  { %v1394_v49 = vmul.f32 %v1387_v37, %v17788_v27  ;;  %v1395_v34 = vmul.f32 %v1391_v21, %v17788_v27  ;;  %v1398_v43 = vmul.f32 %v1387_v37, %v17789_v0  ;;  %v1399_v53 = vmul.f32 %v1391_v21, %v17789_v0  ;;  %2728 = vrot.lane.b32.xlu1 %v17631_v40, %s17499_s22 }
 0x19c   :  { %v1416_v61 = vadd.f32 %v1400_v28, %v13473_v29  ;;  %v1417_v63 = vadd.f32 %v1401_v57, %v13491_v38  ;;  %v1492_v25 = vsel %vm1489_vm12, %v13091_v32, %v13115_v59  ;;  %v1420_v27 = vadd.f32 %v1404_v45, %v1307_v23  ;;  %v10236_v29 = vld [vmem:[%s17314_s2 + $0x310] sm:$0xff] }
 0x19d   :  { %v1421_v30 = vadd.f32 %v1405_v18, %v1308_v17  ;;  %v1491_v4 = vsel %vm1489_vm12, %v13115_v59, %v13129_v3  ;;  %v13638_v38 = vrot.slane %v13609_v7, %v11625_v8  ;;  %v1402_v0 = vmul.f32 %v1387_v37, %v17798_v51  ;;  %v13645_v28 = vpop.permute.xlu0 %1980  ;;  %v17802_v18 = vld [vmem:[#allocation27_spill] sm:$0xff] }
 0x19e   :  { %v1403_v26 = vmul.f32 %v1391_v21, %v17798_v51  ;;  %v1406_v23 = vmul.f32 %v1387_v37, %v17799_v24  ;;  %v1407_v17 = vmul.f32 %v1391_v21, %v17799_v24  ;;  %17801 = vst [vmem:[#allocation92_spill] sm:$0xff] %v13645_v28  ;;  %v1410_v59 = vadd.f32 %v1394_v49, %v13517_v55  ;;  %v13653_v51 = vpop.permute.xlu1 %1985  ;;  %v17804_v55 = vld [vmem:[#allocation28_spill] sm:$0xff] }
 0x19f   :  { %17800 = vst [vmem:[#allocation31_spill] sm:$0xff] %v13638_v38  ;;  %v1411_v57 = vadd.f32 %v1395_v34, %v13520_v52  ;;  %v1414_v45 = vadd.f32 %v1398_v43, %v13522_v58  ;;  %v1517_v38 = vmul.f32 %v17802_v18, %v1492_v25  ;;  %2730 = vrot.lane.b32.xlu0 %v11647_v16, %s17499_s22  ;;  %17803 = vst [vmem:[#allocation38_spill] sm:$0xff] %v13653_v51  ;;  %v10237_v52 = vld [vmem:[%s17314_s2 + $0x318] sm:$0xff]  ;;  %s18012_s22 = smov 98  }
 0x1a0   :  { %v1415_v37 = vadd.f32 %v1399_v53, %v13524_v19  ;;  %v1457_v21 = vmul.f32 %v13044_v50, %v11634_v13  ;;  %v1458_v24 = vmul.f32 %v13044_v50, %v11642_v15  ;;  %v1518_v49 = vmul.f32 %v17804_v55, %v1491_v4  ;;  %2781 = vperm.xlu1 %11402, %v10236_v29   ;;  %v2837_v53 = vld [vmem:[%s17315_s3] sm:$0xff] }
 0x1a1   :  { %v1459_v58 = vmul.f32 %v13044_v50, %v17631_v40  ;;  %v1460_v34 = vmul.f32 %v13044_v50, %v11647_v16  ;;  %v1461_v19 = vmul.f32 %v13070_v44, %v11634_v13  ;;  %v1462_v43 = vmul.f32 %v13070_v44, %v11642_v15  ;;  %v13681_v18 = vpop.permute.xlu0 %1826 }
 0x1a2   :  { %v1418_v25 = vadd.f32 %v1402_v0, %v13531_v48  ;;  %v1419_v4 = vadd.f32 %v1403_v26, %v13539_v20  ;;  %v1463_v29 = vmul.f32 %v13070_v44, %v17631_v40  ;;  %v1464_v50 = vmul.f32 %v13070_v44, %v11647_v16  ;;  %v13693_v40 = vpop.permute.xlu1 %1877 }
 0x1a3   :  { %v1422_v13 = vadd.f32 %v1406_v23, %v13549_v33  ;;  %v1549_v15 = vrot.slane %v1517_v38, %v11625_v8  ;;  %v1490_v55 = vsel %vm1489_vm12, %v13129_v3, %v13204_v2  ;;  %v1493_v48 = vsel %vm1489_vm12, %v13204_v2, %v13091_v32  ;;  %2786 = vperm.xlu0 %11401, %v10237_v52   ;;  %v2838_v38 = vld [vmem:[%s17315_s3 + $0x8] sm:$0xff]  ;;  %v2839_v2 = vld [vmem:[%s17315_s3 + $0x10] sm:$0xff] }
 0x1a4   :  { %17805 = vst [vmem:[#allocation104_spill] sm:$0xff] %v13693_v40  ;;  %v1423_v16 = vadd.f32 %v1407_v17, %v13551_v6  ;;  %v1473_v44 = vadd.f32 %v1457_v21, %v1416_v61  ;;  %v1474_v20 = vadd.f32 %v1458_v24, %v1417_v63  ;;  %v1553_v33 = vrot.slane %v1518_v49, %v11625_v8  ;;  %v17806_v63 = vld [vmem:[#allocation33_spill] sm:$0xff]  ;;  %v17807_v17 = vld [vmem:[#allocation32_spill] sm:$0xff]  ;;  %v17809_v49 = vld [vmem:[#allocation43_spill] sm:$0xff] }
 0x1a5   :  { %2843 = vperm.xlu1 %11402, %v2837_v53   ;;  %v13700_v3 = vadd.f32 %v1459_v58, %v1418_v25  ;;  %v13702_v0 = vadd.f32 %v1460_v34, %v1419_v4  ;;  %v13704_v26 = vadd.f32 %v1461_v19, %v1420_v27  ;;  %v13706_v32 = vadd.f32 %v1462_v43, %v1421_v30  ;;  %v13717_v24 = vpop.permute.xlu0 %1882  ;;  %v17810_v27 = vld [vmem:[#allocation81_spill] sm:$0xff] }
 0x1a6   :  { %v13711_v6 = vadd.f32 %v1463_v29, %v1422_v13  ;;  %v13713_v61 = vadd.f32 %v1464_v50, %v1423_v16  ;;  %v1519_v23 = vmul.f32 %v17806_v63, %v1490_v55  ;;  %v1520_v21 = vmul.f32 %v17807_v17, %v1493_v48  ;;  %17808 = vst [vmem:[#allocation105_spill] sm:$0xff] %v13717_v24  ;;  %v13723_v19 = vpop.permute.xlu1 %1933  ;;  %v2399_v43 = vld [vmem:[#allocation2 + $0x45] ss:$8 sm:$0xf] }
 0x1a7   :  { %v1562_v52 = vmul.f32 %v1549_v15, %v17809_v49  ;;  %v1566_v58 = vmul.f32 %v1549_v15, %v17810_v27  ;;  %v1467_v30 = vadd.f32 %v13579_v46, %v1410_v59  ;;  %v1468_v34 = vadd.f32 %v13589_v62, %v1411_v57  ;;  %2848 = vperm.xlu0 %11401, %v2838_v38   ;;  %v2840_v4 = vld [vmem:[%s17315_s3 + $0x18] sm:$0xff]  ;;  %v17812_v59 = vld [vmem:[#allocation8_spill] sm:$0xff]  ;;  %v17815_v29 = vld [vmem:[#allocation87_spill] sm:$0xff] }
 0x1a8   :  { %v1563_v53 = vmul.f32 %v1553_v33, %v17809_v49  ;;  %v1471_v55 = vadd.f32 %v13593_v22, %v1414_v45  ;;  %v1472_v25 = vadd.f32 %v13603_v31, %v1415_v37  ;;  %v13733_v46 = vrot.slane %v13609_v7, %v11629_v11 }
 0x1a9   :  { %2853 = vperm.xlu1 %11402, %v2839_v2   ;;  %v1567_v62 = vmul.f32 %v1553_v33, %v17810_v27  ;;  %v1605_v57 = vsel %vm17544_vm13, %v17812_v59, %v13294_v60  ;;  %v13743_v31 = vrot.slane %v13609_v7, %v11627_v9  ;;  %v13747_v22 = vrot.slane %v13609_v7, %v11631_v12  ;;  %v13755_v13 = vpop.permute.xlu0 %1935 }
 0x1aa   :  { %17811 = vst [vmem:[#allocation43_spill] sm:$0xff] %v13733_v46  ;;  %v1557_v45 = vrot.slane %v1519_v23, %v11625_v8  ;;  %v1561_v37 = vrot.slane %v1520_v21, %v11625_v8  ;;  %v1604_v50 = vsel %vm17544_vm13, %v13294_v60, %v17815_v29  ;;  %v13758_v48 = vrot.slane %v2399_v43, %v11625_v8  ;;  %v13762_v7 = vpop.permute.xlu1 %1937  ;;  %v17819_v21 = vld [vmem:[#allocation98_spill] sm:$0xff] }
 0x1ab   :  { %17813 = vst [vmem:[#allocation81_spill] sm:$0xff] %v13743_v31  ;;  %17814 = vst [vmem:[#allocation8_spill] sm:$0xff] %v13747_v22  ;;  %v1578_v16 = vadd.f32 %v1562_v52, %v13597_v14  ;;  %v1582_v38 = vadd.f32 %v1566_v58, %v13605_v42  ;;  %2858 = vperm.xlu0 %11401, %v2840_v4   ;;  %v13765_v2 = vrot.slane %v2399_v43, %v11629_v11  ;;  %v17821_v42 = vld [vmem:[#allocation18_spill] sm:$0xff]  ;;  %v17822_v58 = vld [vmem:[#allocation61_spill] sm:$0xff] }
 0x1ac   :  { %17816 = vst [vmem:[#allocation87_spill] sm:$0xff] %v13758_v48  ;;  %v13768_v23 = vrot.slane %v2399_v43, %v11627_v9  ;;  %v1579_v60 = vadd.f32 %v1563_v53, %v13599_v54  ;;  %v1570_v63 = vmul.f32 %v1549_v15, %v17819_v21  ;;  %v1571_v17 = vmul.f32 %v1553_v33, %v17819_v21  ;;  %v17820_v48 = vld [vmem:[#allocation36_spill] sm:$0xff]  ;;  %v17824_v53 = vld [vmem:[#allocation21_spill] sm:$0xff] }
 0x1ad   :  { %17817 = vst [vmem:[#allocation106_spill] sm:$0xff] %v13765_v2  ;;  %v1630_v22 = vmul.f32 %v17820_v48, %v1605_v57  ;;  %v1583_v14 = vadd.f32 %v1567_v62, %v13611_v36  ;;  %v1574_v52 = vmul.f32 %v1549_v15, %v17821_v42  ;;  %v1631_v4 = vmul.f32 %v17822_v58, %v1604_v50  ;;  %v13787_v48 = vpop.permute.xlu0 %2093 }
 0x1ae   :  { %17818 = vst [vmem:[#allocation107_spill] sm:$0xff] %v13768_v23  ;;  %v13778_v31 = vrot.slane %v2399_v43, %v11631_v12  ;;  %v1564_v2 = vmul.f32 %v1557_v45, %v17809_v49  ;;  %v1565_v23 = vmul.f32 %v1561_v37, %v17809_v49  ;;  %v1568_v54 = vmul.f32 %v1557_v45, %v17810_v27  ;;  %v13796_v62 = vpop.permute.xlu1 %2098 }
 0x1af   :  { %v1603_v57 = vsel %vm17544_vm13, %v17815_v29, %v17824_v53  ;;  %17825 = vst [vmem:[#allocation18_spill] sm:$0xff] %v13787_v48  ;;  %v1569_v36 = vmul.f32 %v1561_v37, %v17810_v27  ;;  %v1572_v15 = vmul.f32 %v1557_v45, %v17819_v21  ;;  %v1573_v43 = vmul.f32 %v1561_v37, %v17819_v21  ;;  %v17827_v21 = vld [vmem:[#allocation70_spill] sm:$0xff] }
 0x1b0   :  { %17823 = vst [vmem:[#allocation98_spill] sm:$0xff] %v13778_v31  ;;  %v1606_v49 = vsel %vm17544_vm13, %v17824_v53, %v17812_v59  ;;  %17826 = vst [vmem:[#allocation21_spill] sm:$0xff] %v13796_v62  ;;  %v1586_v50 = vadd.f32 %v1570_v63, %v1473_v44  ;;  %v1587_v58 = vadd.f32 %v1571_v17, %v1474_v20  ;;  %v17828_v59 = vld [vmem:[#allocation37_spill] sm:$0xff] }
 0x1b1   :  { %v1575_v31 = vmul.f32 %v1553_v33, %v17821_v42  ;;  %v1662_v29 = vrot.slane %v1630_v22, %v11625_v8  ;;  %v1576_v46 = vmul.f32 %v1557_v45, %v17821_v42  ;;  %v1577_v27 = vmul.f32 %v1561_v37, %v17821_v42  ;;  %v13805_v62 = vpop.permute.xlu0 %1939  ;;  %v2512_v22 = vld [vmem:[#allocation2 + $0x46] ss:$8 sm:$0xf] }
 0x1b2   :  { %v1666_v48 = vrot.slane %v1631_v4, %v11625_v8  ;;  %v1632_v51 = vmul.f32 %v17827_v21, %v1603_v57  ;;  %v1580_v28 = vadd.f32 %v1564_v2, %v1467_v30  ;;  %v1581_v24 = vadd.f32 %v1565_v23, %v1468_v34  ;;  %v13810_v17 = vpop.permute.xlu1 %1990  ;;  %v17830_v37 = vld [vmem:[#allocation95_spill] sm:$0xff]  ;;  %v17831_v34 = vld [vmem:[#allocation76_spill] sm:$0xff] }
 0x1b3   :  { %v1584_v40 = vadd.f32 %v1568_v54, %v1471_v55  ;;  %v1633_v53 = vmul.f32 %v17828_v59, %v1606_v49  ;;  %v1585_v44 = vadd.f32 %v1569_v36, %v1472_v25  ;;  %v1588_v20 = vadd.f32 %v1572_v15, %v13700_v3  ;;  %17829 = vst [vmem:[#allocation108_spill] sm:$0xff] %v13810_v17  ;;  %v17832_v2 = vld [vmem:[#allocation12_spill] sm:$0xff]  ;;  %v17835_v54 = vld [vmem:[#allocation47_spill] sm:$0xff]  ;;  %v17840_v15 = vld [vmem:[#allocation14_spill] sm:$0xff] }
 0x1b4   :  { %v1589_v33 = vadd.f32 %v1573_v43, %v13702_v0  ;;  %v1590_v63 = vadd.f32 %v1574_v52, %v13704_v26  ;;  %v1591_v45 = vadd.f32 %v1575_v31, %v13706_v32  ;;  %v1675_v30 = vmul.f32 %v1662_v29, %v17830_v37  ;;  %v17841_v49 = vld [vmem:[#allocation58_spill] sm:$0xff] }
 0x1b5   :  { %v1679_v55 = vmul.f32 %v1662_v29, %v17831_v34  ;;  %v1718_v25 = vsel %vm17522_vm14, %v17832_v2, %v13457_v47  ;;  %v1676_v3 = vmul.f32 %v1666_v48, %v17830_v37  ;;  %v1680_v0 = vmul.f32 %v1666_v48, %v17831_v34  ;;  %v13830_v52 = vpop.permute.xlu0 %1995 }
 0x1b6   :  { %v1670_v26 = vrot.slane %v1632_v51, %v11625_v8  ;;  %v1717_v32 = vsel %vm17522_vm14, %v13457_v47, %v13461_v56  ;;  %v1592_v31 = vadd.f32 %v1576_v46, %v13711_v6  ;;  %v1593_v23 = vadd.f32 %v1577_v27, %v13713_v61  ;;  %17833 = vst [vmem:[#allocation95_spill] sm:$0xff] %v13830_v52  ;;  %v13836_v57 = vpop.permute.xlu1 %2046 }
 0x1b7   :  { %v1674_v42 = vrot.slane %v1633_v53, %v11625_v8  ;;  %v13833_v4 = vrot.slane %v2512_v22, %v11625_v8  ;;  %v1743_v51 = vmul.f32 %v17835_v54, %v1718_v25  ;;  %17836 = vst [vmem:[#allocation12_spill] sm:$0xff] %v13836_v57  ;;  %v13839_v36 = vrot.slane %v2512_v22, %v11629_v11 }
 0x1b8   :  { %v13842_v47 = vrot.slane %v2512_v22, %v11627_v9  ;;  %v13845_v6 = vrot.slane %v2512_v22, %v11631_v12  ;;  %v1691_v61 = vadd.f32 %v1675_v30, %v1578_v16  ;;  %v1695_v46 = vadd.f32 %v1679_v55, %v1582_v38  ;;  %v17843_v55 = vld [vmem:[#allocation103_spill] sm:$0xff] }
 0x1b9   :  { %17834 = vst [vmem:[#allocation76_spill] sm:$0xff] %v13833_v4  ;;  %17837 = vst [vmem:[#allocation109_spill] sm:$0xff] %v13839_v36  ;;  %v1683_v43 = vmul.f32 %v1662_v29, %v17840_v15  ;;  %v1744_v27 = vmul.f32 %v17841_v49, %v1717_v32  ;;  %v1692_v53 = vadd.f32 %v1676_v3, %v1579_v60  ;;  %v13858_v38 = vpop.permute.xlu0 %2048 }
 0x1ba   :  { %17838 = vst [vmem:[#allocation110_spill] sm:$0xff] %v13842_v47  ;;  %17839 = vst [vmem:[#allocation111_spill] sm:$0xff] %v13845_v6  ;;  %v1696_v59 = vadd.f32 %v1680_v0, %v1583_v14  ;;  %v1677_v25 = vmul.f32 %v1670_v26, %v17830_v37  ;;  %v1684_v54 = vmul.f32 %v1666_v48, %v17840_v15  ;;  %v13867_v30 = vpop.permute.xlu1 %2050 }
 0x1bb   :  { %v1678_v21 = vmul.f32 %v1674_v42, %v17830_v37  ;;  %v1681_v36 = vmul.f32 %v1670_v26, %v17831_v34  ;;  %v1682_v47 = vmul.f32 %v1674_v42, %v17831_v34  ;;  %v1716_v16 = vsel %vm17522_vm14, %v13461_v56, %v13536_v10  ;;  %17842 = vst [vmem:[#allocation14_spill] sm:$0xff] %v13867_v30 }
 0x1bc   :  { %v1685_v60 = vmul.f32 %v1670_v26, %v17840_v15  ;;  %v1686_v14 = vmul.f32 %v1674_v42, %v17840_v15  ;;  %v1775_v22 = vrot.slane %v1743_v51, %v11625_v8  ;;  %v1719_v37 = vsel %vm17522_vm14, %v13536_v10, %v17832_v2  ;;  %v17844_v51 = vld [vmem:[#allocation84_spill] sm:$0xff]  ;;  %v17845_v10 = vld [vmem:[#allocation93_spill] sm:$0xff] }
 0x1bd   :  { %v1699_v34 = vadd.f32 %v1683_v43, %v1586_v50  ;;  %v1687_v3 = vmul.f32 %v1662_v29, %v17843_v55  ;;  %v1688_v56 = vmul.f32 %v1666_v48, %v17843_v55  ;;  %v1779_v0 = vrot.slane %v1744_v27, %v11625_v8  ;;  %v13876_v30 = vpop.permute.xlu0 %2206  ;;  %v17846_v48 = vld [vmem:[#allocation88_spill] sm:$0xff] }
 0x1be   :  { %v1700_v32 = vadd.f32 %v1684_v54, %v1587_v58  ;;  %v1689_v49 = vmul.f32 %v1670_v26, %v17843_v55  ;;  %v1690_v15 = vmul.f32 %v1674_v42, %v17843_v55  ;;  %v1745_v6 = vmul.f32 %v17844_v51, %v1716_v16  ;;  %v13879_v27 = vpop.permute.xlu1 %2211  ;;  %v2625_v58 = vld [vmem:[#allocation2 + $0x47] ss:$8 sm:$0xf] }
 0x1bf   :  { %v1693_v4 = vadd.f32 %v1677_v25, %v1580_v28  ;;  %v1694_v52 = vadd.f32 %v1678_v21, %v1581_v24  ;;  %v1697_v17 = vadd.f32 %v1681_v36, %v1584_v40  ;;  %v1746_v2 = vmul.f32 %v17845_v10, %v1719_v37  ;;  %v17847_v42 = vld [vmem:[#allocation101_spill] sm:$0xff]  ;;  %v17854_v10 = vld [vmem:[#allocation30_spill] sm:$0xff] }
 0x1c0   :  { %v1698_v50 = vadd.f32 %v1682_v47, %v1585_v44  ;;  %v1701_v29 = vadd.f32 %v1685_v60, %v1588_v20  ;;  %v1702_v43 = vadd.f32 %v1686_v14, %v1589_v33  ;;  %v1788_v57 = vmul.f32 %v1775_v22, %v17846_v48  ;;  %v17852_v60 = vld [vmem:[#allocation94_spill] sm:$0xff] }
 0x1c1   :  { %v1703_v26 = vadd.f32 %v1687_v3, %v1590_v63  ;;  %v1704_v54 = vadd.f32 %v1688_v56, %v1591_v45  ;;  %v1792_v55 = vmul.f32 %v1775_v22, %v17847_v42  ;;  %v1789_v28 = vmul.f32 %v1779_v0, %v17846_v48  ;;  %v13895_v45 = vpop.permute.xlu0 %2052  ;;  %v17853_v3 = vld [vmem:[#allocation80_spill] sm:$0xff] }
 0x1c2   :  { %v1705_v24 = vadd.f32 %v1689_v49, %v1592_v31  ;;  %v1793_v40 = vmul.f32 %v1779_v0, %v17847_v42  ;;  %v1783_v21 = vrot.slane %v1745_v6, %v11625_v8  ;;  %v1831_v44 = vsel %vm17527_vm15, %v13575_v5, %v13607_v35  ;;  %v13900_v47 = vpop.permute.xlu1 %2103 }
 0x1c3   :  { %vm17529_vm14 = vcmp.lt.s32.totalorder %v12041_v41, 112  ;;  %v1706_v20 = vadd.f32 %v1690_v15, %v1593_v23  ;;  %v1787_v33 = vrot.slane %v1746_v2, %v11625_v8  ;;  %v1830_v63 = vsel %vm17527_vm15, %v13607_v35, %v13618_v1 }
 0x1c4   :  { %v13898_v31 = vrot.slane %v2625_v58, %v11625_v8  ;;  %v1804_v36 = vadd.f32 %v1788_v57, %v1691_v61  ;;  %v13903_v6 = vrot.slane %v2625_v58, %v11629_v11  ;;  %v13906_v23 = vrot.slane %v2625_v58, %v11627_v9 }
 0x1c5   :  { %v13909_v49 = vrot.slane %v2625_v58, %v11631_v12  ;;  %v1808_v25 = vadd.f32 %v1792_v55, %v1695_v46  ;;  %v1805_v16 = vadd.f32 %v1789_v28, %v1692_v53  ;;  %v1796_v35 = vmul.f32 %v1775_v22, %v13546_v39  ;;  %v13920_v53 = vpop.permute.xlu0 %2108 }
 0x1c6   :  { %17848 = vst [vmem:[#allocation103_spill] sm:$0xff] %v13898_v31  ;;  %17849 = vst [vmem:[#allocation88_spill] sm:$0xff] %v13903_v6  ;;  %v1856_v14 = vmul.f32 %v17852_v60, %v1831_v44  ;;  %v1809_v37 = vadd.f32 %v1793_v40, %v1696_v59  ;;  %v1790_v57 = vmul.f32 %v1783_v21, %v17846_v48  ;;  %v13932_v40 = vpop.permute.xlu1 %2159 }
 0x1c7   :  { %17850 = vst [vmem:[#allocation101_spill] sm:$0xff] %v13906_v23  ;;  %17851 = vst [vmem:[#allocation112_spill] sm:$0xff] %v13909_v49  ;;  %v1797_v61 = vmul.f32 %v1779_v0, %v13546_v39  ;;  %v1857_v56 = vmul.f32 %v17853_v3, %v1830_v63  ;;  %v1791_v15 = vmul.f32 %v1787_v33, %v17846_v48  ;;  %v17855_v23 = vld [vmem:[#allocation96_spill] sm:$0xff] }
 0x1c8   :  { %v1794_v2 = vmul.f32 %v1783_v21, %v17847_v42  ;;  %v1795_v58 = vmul.f32 %v1787_v33, %v17847_v42  ;;  %v1800_v46 = vmul.f32 %v1775_v22, %v17854_v10  ;;  %v1798_v55 = vmul.f32 %v1783_v21, %v13546_v39 }
 0x1c9   :  { %v1799_v59 = vmul.f32 %v1787_v33, %v13546_v39  ;;  %v1829_v28 = vsel %vm17527_vm15, %v13618_v1, %v13681_v18  ;;  %v1832_v48 = vsel %vm17527_vm15, %v13681_v18, %v13575_v5  ;;  %v1812_v42 = vadd.f32 %v1796_v35, %v1699_v34  ;;  %v17856_v5 = vld [vmem:[#allocation97_spill] sm:$0xff]  ;;  %v13941_v31 = vpop.permute.xlu0 %2161 }
 0x1ca   :  { %v1801_v22 = vmul.f32 %v1779_v0, %v17854_v10  ;;  %v1802_v44 = vmul.f32 %v1783_v21, %v17854_v10  ;;  %v1888_v63 = vrot.slane %v1856_v14, %v11625_v8  ;;  %v1806_v39 = vadd.f32 %v1790_v57, %v1693_v4  ;;  %v13949_v4 = vpop.permute.xlu1 %2163 }
 0x1cb   :  { %v1813_v60 = vadd.f32 %v1797_v61, %v1700_v32  ;;  %v1803_v3 = vmul.f32 %v1787_v33, %v17854_v10  ;;  %v1892_v1 = vrot.slane %v1857_v56, %v11625_v8  ;;  %v1807_v51 = vadd.f32 %v1791_v15, %v1694_v52  ;;  %v2738_v32 = vld [vmem:[#allocation2 + $0x60] ss:$8 sm:$0xf] }
 0x1cc   :  { %v1810_v49 = vadd.f32 %v1794_v2, %v1697_v17  ;;  %v1858_v6 = vmul.f32 %v17855_v23, %v1829_v28  ;;  %v1859_v18 = vmul.f32 %v17856_v5, %v1832_v48  ;;  %v1811_v34 = vadd.f32 %v1795_v58, %v1698_v50  ;;  %v17857_v17 = vld [vmem:[#allocation16_spill] sm:$0xff] }
 0x1cd   :  { %v13943_v0 = vadd.f32 %v1798_v55, %v1701_v29  ;;  %v13945_v21 = vadd.f32 %v1799_v59, %v1702_v43  ;;  %v13947_v35 = vadd.f32 %v1800_v46, %v1703_v26  ;;  %v13951_v10 = vadd.f32 %v1801_v22, %v1704_v54  ;;  %v17858_v29 = vld [vmem:[#allocation22_spill] sm:$0xff]  ;;  %v13970_v56 = vpop.permute.xlu0 %2319  ;;  %v17861_v2 = vld [vmem:[#allocation104_spill] sm:$0xff]  ;;  %v17862_v55 = vld [vmem:[#allocation99_spill] sm:$0xff] }
 0x1ce   :  { %v13953_v52 = vadd.f32 %v1802_v44, %v1705_v24  ;;  %v1901_v33 = vmul.f32 %v1888_v63, %v17857_v17  ;;  %v1944_v50 = vsel %vm17529_vm14, %v13723_v19, %v13755_v13  ;;  %vm17534_vm15 = vcmp.lt.s32.totalorder %v12041_v41, 111  ;;  %17859 = vst [vmem:[#allocation30_spill] sm:$0xff] %v13970_v56  ;;  %v13978_v28 = vpop.permute.xlu1 %2324  ;;  %v17871_v23 = vld [vmem:[#allocation92_spill] sm:$0xff] }
 0x1cf   :  { %v1905_v43 = vmul.f32 %v1888_v63, %v17858_v29  ;;  %v1902_v26 = vmul.f32 %v1892_v1, %v17857_v17  ;;  %v1906_v14 = vmul.f32 %v1892_v1, %v17858_v29  ;;  %v1943_v54 = vsel %vm17529_vm14, %v13755_v13, %v13762_v7  ;;  %17863 = vst [vmem:[#allocation22_spill] sm:$0xff] %v13978_v28 }
 0x1d0   :  { %v1819_v24 = vadd.f32 %v1803_v3, %v1706_v20  ;;  %v1896_v57 = vrot.slane %v1858_v6, %v11625_v8  ;;  %v1900_v61 = vrot.slane %v1859_v18, %v11625_v8  ;;  %v13973_v15 = vrot.slane %v2738_v32, %v11625_v8  ;;  %v17865_v6 = vld [vmem:[#allocation19_spill] sm:$0xff] }
 0x1d1   :  { %v1909_v58 = vmul.f32 %v1888_v63, %v17861_v2  ;;  %v1910_v46 = vmul.f32 %v1892_v1, %v17861_v2  ;;  %v1969_v59 = vmul.f32 %v17862_v55, %v1944_v50  ;;  %v13981_v13 = vrot.slane %v2738_v32, %v11629_v11 }
 0x1d2   :  { %17860 = vst [vmem:[#allocation16_spill] sm:$0xff] %v13973_v15  ;;  %v1917_v20 = vadd.f32 %v1901_v33, %v1804_v36  ;;  %v1970_v3 = vmul.f32 %v17865_v6, %v1943_v54  ;;  %v13985_v48 = vrot.slane %v2738_v32, %v11627_v9  ;;  %v13988_v22 = vrot.slane %v2738_v32, %v11631_v12  ;;  %v14001_v12 = vpop.permute.xlu0 %2165  ;;  %v17869_v54 = vld [vmem:[#allocation15_spill] sm:$0xff] }
 0x1d3   :  { %17864 = vst [vmem:[#allocation104_spill] sm:$0xff] %v13981_v13  ;;  %v1921_v44 = vadd.f32 %v1905_v43, %v1808_v25  ;;  %v1918_v18 = vadd.f32 %v1902_v26, %v1805_v16  ;;  %v1922_v5 = vadd.f32 %v1906_v14, %v1809_v37  ;;  %v1942_v50 = vsel %vm17529_vm14, %v13762_v7, %v13805_v62  ;;  %v14005_v7 = vpop.permute.xlu1 %2216  ;;  %v17868_v43 = vld [vmem:[#allocation105_spill] sm:$0xff] }
 0x1d4   :  { %17866 = vst [vmem:[#allocation113_spill] sm:$0xff] %v13985_v48  ;;  %17867 = vst [vmem:[#allocation114_spill] sm:$0xff] %v13988_v22  ;;  %v1903_v11 = vmul.f32 %v1896_v57, %v17857_v17  ;;  %v1904_v36 = vmul.f32 %v1900_v61, %v17857_v17  ;;  %v1907_v33 = vmul.f32 %v1896_v57, %v17858_v29  ;;  %v17872_v22 = vld [vmem:[#allocation38_spill] sm:$0xff] }
 0x1d5   :  { %v1945_v9 = vsel %vm17529_vm14, %v13805_v62, %v13723_v19  ;;  %v1908_v25 = vmul.f32 %v1900_v61, %v17858_v29  ;;  %v1925_v16 = vadd.f32 %v1909_v58, %v1812_v42  ;;  %v1926_v37 = vadd.f32 %v1910_v46, %v1813_v60  ;;  %v17870_v42 = vld [vmem:[#allocation100_spill] sm:$0xff] }
 0x1d6   :  { %v2001_v32 = vrot.slane %v1969_v59, %v11625_v8  ;;  %v1913_v26 = vmul.f32 %v1888_v63, %v17868_v43  ;;  %v1914_v17 = vmul.f32 %v1892_v1, %v17868_v43  ;;  %v2005_v14 = vrot.slane %v1970_v3, %v11625_v8  ;;  %v14016_v63 = vpop.permute.xlu0 %2221 }
 0x1d7   :  { %v1971_v55 = vmul.f32 %v17869_v54, %v1942_v50  ;;  %v1911_v19 = vmul.f32 %v1896_v57, %v17861_v2  ;;  %v1912_v62 = vmul.f32 %v1900_v61, %v17861_v2  ;;  %v1915_v29 = vmul.f32 %v1896_v57, %v17868_v43  ;;  %v17873_v54 = vld [vmem:[#allocation12_spill] sm:$0xff]  ;;  %v14025_v57 = vpop.permute.xlu1 %2272 }
 0x1d8   :  { %v1972_v60 = vmul.f32 %v17870_v42, %v1945_v9  ;;  %v1919_v58 = vadd.f32 %v1903_v11, %v1806_v39  ;;  %v1920_v46 = vadd.f32 %v1904_v36, %v1807_v51  ;;  %v1923_v59 = vadd.f32 %v1907_v33, %v1810_v49  ;;  %v17875_v42 = vld [vmem:[#allocation108_spill] sm:$0xff] }
 0x1d9   :  { %v1916_v6 = vmul.f32 %v1900_v61, %v17868_v43  ;;  %v1924_v1 = vadd.f32 %v1908_v25, %v1811_v34  ;;  %v2014_v3 = vmul.f32 %v2001_v32, %v17871_v23  ;;  %v2018_v50 = vmul.f32 %v2001_v32, %v17872_v22  ;;  %v17874_v34 = vld [vmem:[#allocation14_spill] sm:$0xff] }
 0x1da   :  { %v2057_v2 = vsel %vm17534_vm15, %v17873_v54, %v13858_v38  ;;  %vm17538_vm14 = vcmp.lt.s32.totalorder %v12041_v41, 110  ;;  %v2015_v51 = vmul.f32 %v2005_v14, %v17871_v23  ;;  %v2019_v49 = vmul.f32 %v2005_v14, %v17872_v22  ;;  %v14042_v15 = vpop.permute.xlu0 %2274 }
 0x1db   :  { %v2009_v39 = vrot.slane %v1971_v55, %v11625_v8  ;;  %v2056_v61 = vsel %vm17534_vm15, %v13858_v38, %v17874_v34  ;;  %v1927_v11 = vadd.f32 %v1911_v19, %v13943_v0  ;;  %v1928_v36 = vadd.f32 %v1912_v62, %v13945_v21  ;;  %v17876_v55 = vld [vmem:[#allocation102_spill] sm:$0xff]  ;;  %v17877_v19 = vld [vmem:[#allocation29_spill] sm:$0xff]  ;;  %v14046_v62 = vpop.permute.xlu1 %2276 }
 0x1dc   :  { %v1929_v33 = vadd.f32 %v1913_v26, %v13947_v35  ;;  %v2013_v9 = vrot.slane %v1972_v60, %v11625_v8  ;;  %v1930_v25 = vadd.f32 %v1914_v17, %v13951_v10  ;;  %v1931_v43 = vadd.f32 %v1915_v29, %v13953_v52 }
 0x1dd   :  { %v2022_v48 = vmul.f32 %v2001_v32, %v17875_v42  ;;  %v2082_v13 = vmul.f32 %v17876_v55, %v2057_v2  ;;  %v1932_v28 = vadd.f32 %v1916_v6, %v1819_v24  ;;  %v2030_v38 = vadd.f32 %v2014_v3, %v1917_v20  ;;  %v17879_v3 = vld [vmem:[#allocation95_spill] sm:$0xff] }
 0x1de   :  { %v2023_v0 = vmul.f32 %v2005_v14, %v17875_v42  ;;  %v2083_v21 = vmul.f32 %v17877_v19, %v2056_v61  ;;  %v2034_v35 = vadd.f32 %v2018_v50, %v1921_v44  ;;  %v2031_v26 = vadd.f32 %v2015_v51, %v1918_v18 }
 0x1df   :  { %v2035_v60 = vadd.f32 %v2019_v49, %v1922_v5  ;;  %v2016_v10 = vmul.f32 %v2009_v39, %v17871_v23  ;;  %v2017_v52 = vmul.f32 %v2013_v9, %v17871_v23  ;;  %v2020_v17 = vmul.f32 %v2009_v39, %v17872_v22  ;;  %v14062_v23 = vpop.permute.xlu0 %2432  ;;  %v14067_v49 = vpop.permute.xlu1 %2437 }
 0x1e0   :  { %v2055_v24 = vsel %vm17534_vm15, %v17874_v34, %v13895_v45  ;;  %v2058_v20 = vsel %vm17534_vm15, %v13895_v45, %v17873_v54  ;;  %v2021_v6 = vmul.f32 %v2013_v9, %v17872_v22  ;;  %v2024_v5 = vmul.f32 %v2009_v39, %v17875_v42  ;;  %17878 = vst [vmem:[#allocation105_spill] sm:$0xff] %v14062_v23  ;;  %v17881_v54 = vld [vmem:[#allocation34_spill] sm:$0xff]  ;;  %v17886_v23 = vld [vmem:[#allocation69_spill] sm:$0xff] }
 0x1e1   :  { %v2038_v44 = vadd.f32 %v2022_v48, %v1925_v16  ;;  %v2114_v18 = vrot.slane %v2082_v13, %v11625_v8  ;;  %v2039_v29 = vadd.f32 %v2023_v0, %v1926_v37  ;;  %v2026_v50 = vmul.f32 %v2001_v32, %v17879_v3  ;;  %17880 = vst [vmem:[#allocation92_spill] sm:$0xff] %v14067_v49  ;;  %v17882_v48 = vld [vmem:[#allocation35_spill] sm:$0xff] }
 0x1e2   :  { %v2027_v2 = vmul.f32 %v2005_v14, %v17879_v3  ;;  %v2118_v51 = vrot.slane %v2083_v21, %v11625_v8  ;;  %v2025_v45 = vmul.f32 %v2013_v9, %v17875_v42  ;;  %v2028_v22 = vmul.f32 %v2009_v39, %v17879_v3  ;;  %v17883_v14 = vld [vmem:[#allocation18_spill] sm:$0xff]  ;;  %v17884_v21 = vld [vmem:[#allocation21_spill] sm:$0xff] }
 0x1e3   :  { %v2084_v34 = vmul.f32 %v17881_v54, %v2055_v24  ;;  %v2085_v16 = vmul.f32 %v17882_v48, %v2058_v20  ;;  %v2032_v13 = vadd.f32 %v2016_v10, %v1919_v58  ;;  %v2033_v61 = vadd.f32 %v2017_v52, %v1920_v46  ;;  %v14080_v39 = vpop.permute.xlu0 %2278 }
 0x1e4   :  { %v2036_v55 = vadd.f32 %v2020_v17, %v1923_v59  ;;  %v2029_v37 = vmul.f32 %v2013_v9, %v17879_v3  ;;  %v2037_v32 = vadd.f32 %v2021_v6, %v1924_v1  ;;  %v2040_v0 = vadd.f32 %v2024_v5, %v1927_v11  ;;  %v14089_v1 = vpop.permute.xlu1 %2329  ;;  %v17885_v5 = vld [vmem:[#allocation23_spill] sm:$0xff] }
 0x1e5   :  { %v2127_v19 = vmul.f32 %v2114_v18, %v17883_v14  ;;  %v2170_v42 = vsel %vm17538_vm14, %v13932_v40, %v13941_v31  ;;  %vm17539_vm15 = vcmp.lt.s32.totalorder %v12041_v41, 98  ;;  %v2131_v24 = vmul.f32 %v2114_v18, %v17884_v21 }
 0x1e6   :  { %v2128_v58 = vmul.f32 %v2118_v51, %v17883_v14  ;;  %v2132_v46 = vmul.f32 %v2118_v51, %v17884_v21  ;;  %v2169_v59 = vsel %vm17538_vm14, %v13941_v31, %v13949_v4  ;;  %v2041_v11 = vadd.f32 %v2025_v45, %v1928_v36 }
 0x1e7   :  { %v2042_v9 = vadd.f32 %v2026_v50, %v1929_v33  ;;  %v2122_v10 = vrot.slane %v2084_v34, %v11625_v8  ;;  %v2126_v52 = vrot.slane %v2085_v16, %v11625_v8  ;;  %v2043_v17 = vadd.f32 %v2027_v2, %v1930_v25  ;;  %v14097_v56 = vpop.permute.xlu0 %2334  ;;  %v17887_v16 = vld [vmem:[#allocation24_spill] sm:$0xff] }
 0x1e8   :  { %v2135_v20 = vmul.f32 %v2114_v18, %v13900_v47  ;;  %v2136_v6 = vmul.f32 %v2118_v51, %v13900_v47  ;;  %v2195_v3 = vmul.f32 %v17885_v5, %v2170_v42  ;;  %v2044_v48 = vadd.f32 %v2028_v22, %v1931_v43  ;;  %v14103_v2 = vpop.permute.xlu1 %2385 }
 0x1e9   :  { %v2045_v54 = vadd.f32 %v2029_v37, %v1932_v28  ;;  %v2143_v49 = vadd.f32 %v2127_v19, %v2030_v38  ;;  %v2196_v31 = vmul.f32 %v17886_v23, %v2169_v59  ;;  %v2147_v36 = vadd.f32 %v2131_v24, %v2034_v35 }
 0x1ea   :  { %v2144_v33 = vadd.f32 %v2128_v58, %v2031_v26  ;;  %v2148_v50 = vadd.f32 %v2132_v46, %v2035_v60  ;;  %v2168_v25 = vsel %vm17538_vm14, %v13949_v4, %v14001_v12  ;;  %v2129_v45 = vmul.f32 %v2122_v10, %v17883_v14 }
 0x1eb   :  { %v2130_v43 = vmul.f32 %v2126_v52, %v17883_v14  ;;  %v2133_v28 = vmul.f32 %v2122_v10, %v17884_v21  ;;  %v2171_v38 = vsel %vm17538_vm14, %v14001_v12, %v13932_v40  ;;  %v2134_v19 = vmul.f32 %v2126_v52, %v17884_v21  ;;  %v14118_v14 = vpop.permute.xlu0 %2387 }
 0x1ec   :  { %v2151_v35 = vadd.f32 %v2135_v20, %v2038_v44  ;;  %v2152_v26 = vadd.f32 %v2136_v6, %v2039_v29  ;;  %v2227_v60 = vrot.slane %v2195_v3, %v11625_v8  ;;  %v2139_v4 = vmul.f32 %v2114_v18, %v13920_v53  ;;  %v17888_v44 = vld [vmem:[#allocation26_spill] sm:$0xff]  ;;  %v14124_v21 = vpop.permute.xlu1 %2389 }
 0x1ed   :  { %v2140_v22 = vmul.f32 %v2118_v51, %v13920_v53  ;;  %v2231_v34 = vrot.slane %v2196_v31, %v11625_v8  ;;  %v2197_v37 = vmul.f32 %v17887_v16, %v2168_v25  ;;  %v2137_v42 = vmul.f32 %v2122_v10, %v13900_v47 }
 0x1ee   :  { %v2138_v40 = vmul.f32 %v2126_v52, %v13900_v47  ;;  %v2141_v12 = vmul.f32 %v2122_v10, %v13920_v53  ;;  %v2198_v29 = vmul.f32 %v17888_v44, %v2171_v38  ;;  %v2145_v24 = vadd.f32 %v2129_v45, %v2032_v13 }
 0x1ef   :  { %v2146_v18 = vadd.f32 %v2130_v43, %v2033_v61  ;;  %v2149_v58 = vadd.f32 %v2133_v28, %v2036_v55  ;;  %v2142_v51 = vmul.f32 %v2126_v52, %v13920_v53  ;;  %v2150_v46 = vadd.f32 %v2134_v19, %v2037_v32  ;;  %v14141_v61 = vpop.permute.xlu0 %2545  ;;  %v17889_v28 = vld [vmem:[#allocation31_spill] sm:$0xff] }
 0x1f0   :  { %v2240_v59 = vmul.f32 %v2227_v60, %v13876_v30  ;;  %v2244_v20 = vmul.f32 %v2227_v60, %v13879_v27  ;;  %v2283_v47 = vsel %vm17539_vm15, %v14025_v57, %v14042_v15  ;;  %vm17540_vm14 = vcmp.lt.s32.totalorder %v12041_v41, 97  ;;  %v14144_v31 = vpop.permute.xlu1 %2550 }
 0x1f1   :  { %v2241_v10 = vmul.f32 %v2231_v34, %v13876_v30  ;;  %v2245_v13 = vmul.f32 %v2231_v34, %v13879_v27  ;;  %v2235_v55 = vrot.slane %v2197_v37, %v11625_v8  ;;  %v2282_v53 = vsel %vm17539_vm15, %v14042_v15, %v14046_v62  ;;  %v17890_v15 = vld [vmem:[#allocation43_spill] sm:$0xff] }
 0x1f2   :  { %v2153_v32 = vadd.f32 %v2137_v42, %v2040_v0  ;;  %v2154_v52 = vadd.f32 %v2138_v40, %v2041_v11  ;;  %v2155_v6 = vadd.f32 %v2139_v4, %v2042_v9  ;;  %v2239_v3 = vrot.slane %v2198_v29, %v11625_v8 }
 0x1f3   :  { %v2156_v25 = vadd.f32 %v2140_v22, %v2043_v17  ;;  %v2248_v45 = vmul.f32 %v2227_v60, %v14005_v7  ;;  %v2249_v43 = vmul.f32 %v2231_v34, %v14005_v7  ;;  %v2308_v38 = vmul.f32 %v17889_v28, %v2283_v47  ;;  %v2392_v4 = vpop.permute.xlu0 %2391 }
 0x1f4   :  { %v2157_v19 = vadd.f32 %v2141_v12, %v2044_v48  ;;  %v2158_v37 = vadd.f32 %v2142_v51, %v2045_v54  ;;  %v2256_v44 = vadd.f32 %v2240_v59, %v2143_v49  ;;  %v2309_v16 = vmul.f32 %v17890_v15, %v2282_v53  ;;  %v14161_v54 = vpop.permute.xlu1 %2442  ;;  %v17892_v59 = vld [vmem:[#allocation8_spill] sm:$0xff]  ;;  %v17894_v53 = vld [vmem:[#allocation22_spill] sm:$0xff] }
 0x1f5   :  { %v2260_v5 = vadd.f32 %v2244_v20, %v2147_v36  ;;  %v2257_v0 = vadd.f32 %v2241_v10, %v2144_v33  ;;  %v2261_v11 = vadd.f32 %v2245_v13, %v2148_v50  ;;  %v2242_v9 = vmul.f32 %v2235_v55, %v13876_v30  ;;  %v17893_v13 = vld [vmem:[#allocation30_spill] sm:$0xff] }
 0x1f6   :  { %v2243_v42 = vmul.f32 %v2239_v3, %v13876_v30  ;;  %v2246_v17 = vmul.f32 %v2235_v55, %v13879_v27  ;;  %v2281_v22 = vsel %vm17539_vm15, %v14046_v62, %v14080_v39  ;;  %v2284_v49 = vsel %vm17539_vm15, %v14080_v39, %v14025_v57  ;;  %v17891_v39 = vld [vmem:[#allocation81_spill] sm:$0xff]  ;;  %v17896_v15 = vld [vmem:[#allocation106_spill] sm:$0xff] }
 0x1f7   :  { %v2247_v48 = vmul.f32 %v2239_v3, %v13879_v27  ;;  %v2264_v36 = vadd.f32 %v2248_v45, %v2151_v35  ;;  %v2265_v33 = vadd.f32 %v2249_v43, %v2152_v26  ;;  %v2340_v30 = vrot.slane %v2308_v38, %v11625_v8  ;;  %v14173_v35 = vpop.permute.xlu0 %2447 }
 0x1f8   :  { %v2250_v50 = vmul.f32 %v2235_v55, %v14005_v7  ;;  %v2252_v40 = vmul.f32 %v2227_v60, %v14016_v63  ;;  %v2253_v12 = vmul.f32 %v2231_v34, %v14016_v63  ;;  %v2344_v62 = vrot.slane %v2309_v16, %v11625_v8  ;;  %v14176_v60 = vpop.permute.xlu1 %2498 }
 0x1f9   :  { %v2251_v29 = vmul.f32 %v2239_v3, %v14005_v7  ;;  %v2254_v57 = vmul.f32 %v2235_v55, %v14016_v63  ;;  %v2310_v51 = vmul.f32 %v17891_v39, %v2281_v22  ;;  %v2311_v27 = vmul.f32 %v17892_v59, %v2284_v49  ;;  %v17895_v22 = vld [vmem:[#allocation87_spill] sm:$0xff] }
 0x1fa   :  { %v2258_v26 = vadd.f32 %v2242_v9, %v2145_v24  ;;  %v2259_v20 = vadd.f32 %v2243_v42, %v2146_v18  ;;  %v2262_v47 = vadd.f32 %v2246_v17, %v2149_v58  ;;  %v2255_v10 = vmul.f32 %v2239_v3, %v14016_v63 }
 0x1fb   :  { %v2263_v34 = vadd.f32 %v2247_v48, %v2150_v46  ;;  %v2353_v16 = vmul.f32 %v2340_v30, %v17893_v13  ;;  %v2357_v7 = vmul.f32 %v2340_v30, %v17894_v53  ;;  %v2396_v55 = vsel %vm17540_vm14, %v14103_v2, %v14118_v14  ;;  %v2501_v38 = vpop.permute.xlu0 %2500 }
 0x1fc   :  { %vm17541_vm15 = vcmp.lt.s32.totalorder %v12041_v41, 96  ;;  %v2354_v24 = vmul.f32 %v2344_v62, %v17893_v13  ;;  %v2358_v18 = vmul.f32 %v2344_v62, %v17894_v53  ;;  %v2361_v63 = vmul.f32 %v2340_v30, %v14089_v1  ;;  %v14195_v48 = vpop.permute.xlu1 %2502 }
 0x1fd   :  { %v2395_v58 = vsel %vm17540_vm14, %v14118_v14, %v14124_v21  ;;  %v2266_v46 = vadd.f32 %v2250_v50, %v2153_v32  ;;  %v2267_v3 = vadd.f32 %v2251_v29, %v2154_v52  ;;  %v2348_v45 = vrot.slane %v2310_v51, %v11625_v8 }
 0x1fe   :  { %v2352_v43 = vrot.slane %v2311_v27, %v11625_v8  ;;  %v2268_v9 = vadd.f32 %v2252_v40, %v2155_v6  ;;  %v2269_v42 = vadd.f32 %v2253_v12, %v2156_v25  ;;  %v2270_v17 = vadd.f32 %v2254_v57, %v2157_v19 }
 0x1ff   :  { %v2421_v49 = vmul.f32 %v17895_v22, %v2396_v55  ;;  %v2271_v59 = vadd.f32 %v2255_v10, %v2158_v37  ;;  %v2369_v39 = vadd.f32 %v2353_v16, %v2256_v44  ;;  %v2362_v28 = vmul.f32 %v2344_v62, %v14089_v1  ;;  %v14205_v37 = vpop.permute.xlu0 %2658  ;;  %v17897_v16 = vld [vmem:[#allocation107_spill] sm:$0xff] }
 0x200   :  { %v2422_v14 = vmul.f32 %v17896_v15, %v2395_v58  ;;  %v2373_v32 = vadd.f32 %v2357_v7, %v2260_v5  ;;  %v2370_v52 = vadd.f32 %v2354_v24, %v2257_v0  ;;  %v2374_v50 = vadd.f32 %v2358_v18, %v2261_v11  ;;  %v14213_v11 = vpop.permute.xlu1 %2663  ;;  %v17899_v24 = vld [vmem:[#allocation105_spill] sm:$0xff] }
 0x201   :  { %v2377_v29 = vadd.f32 %v2361_v63, %v2264_v36  ;;  %v2355_v51 = vmul.f32 %v2348_v45, %v17893_v13  ;;  %v2356_v6 = vmul.f32 %v2352_v43, %v17893_v13  ;;  %v2359_v25 = vmul.f32 %v2348_v45, %v17894_v53 }
 0x202   :  { %v2394_v19 = vsel %vm17540_vm14, %v14124_v21, %v2392_v4  ;;  %v2360_v44 = vmul.f32 %v2352_v43, %v17894_v53  ;;  %v2363_v40 = vmul.f32 %v2348_v45, %v14089_v1  ;;  %v2453_v5 = vrot.slane %v2421_v49, %v11625_v8 }
 0x203   :  { %v2397_v0 = vsel %vm17540_vm14, %v2392_v4, %v14103_v2  ;;  %v2378_v36 = vadd.f32 %v2362_v28, %v2265_v33  ;;  %v2365_v12 = vmul.f32 %v2340_v30, %v14097_v56  ;;  %v2366_v57 = vmul.f32 %v2344_v62, %v14097_v56  ;;  %v17898_v4 = vld [vmem:[#allocation98_spill] sm:$0xff]  ;;  %v2505_v33 = vpop.permute.xlu0 %2504 }
 0x204   :  { %v2457_v21 = vrot.slane %v2422_v14, %v11625_v8  ;;  %v2364_v27 = vmul.f32 %v2352_v43, %v14089_v1  ;;  %v2367_v10 = vmul.f32 %v2348_v45, %v14097_v56  ;;  %v2368_v13 = vmul.f32 %v2352_v43, %v14097_v56  ;;  %v14231_v63 = vpop.permute.xlu1 %2555  ;;  %v17900_v56 = vld [vmem:[#allocation92_spill] sm:$0xff] }
 0x205   :  { %v2423_v53 = vmul.f32 %v17897_v16, %v2394_v19  ;;  %v2371_v7 = vadd.f32 %v2355_v51, %v2258_v26  ;;  %v2372_v55 = vadd.f32 %v2356_v6, %v2259_v20  ;;  %v14222_v2 = vadd.f32 %v2359_v25, %v2262_v47  ;;  %v17901_v6 = vld [vmem:[#allocation76_spill] sm:$0xff] }
 0x206   :  { %v2424_v28 = vmul.f32 %v17898_v4, %v2397_v0  ;;  %v14225_v30 = vadd.f32 %v2360_v44, %v2263_v34  ;;  %v2379_v62 = vadd.f32 %v2363_v40, %v2266_v46  ;;  %v2466_v18 = vmul.f32 %v2453_v5, %v17899_v24  ;;  %v17902_v0 = vld [vmem:[#allocation109_spill] sm:$0xff] }
 0x207   :  { %v2509_v1 = vsel %vm17541_vm15, %v14176_v60, %v2501_v38  ;;  %vm17543_vm14 = vcmp.lt.s32.totalorder %v12041_v41, 95  ;;  %v2470_v26 = vmul.f32 %v2453_v5, %v17900_v56  ;;  %v2467_v20 = vmul.f32 %v2457_v21, %v17899_v24  ;;  %v14244_v19 = vpop.permute.xlu0 %2560 }
 0x208   :  { %v2471_v47 = vmul.f32 %v2457_v21, %v17900_v56  ;;  %v2508_v34 = vsel %vm17541_vm15, %v2501_v38, %v14195_v48  ;;  %v2380_v58 = vadd.f32 %v2364_v27, %v2267_v3  ;;  %v2381_v46 = vadd.f32 %v2365_v12, %v2268_v9  ;;  %v14248_v38 = vpop.permute.xlu1 %2611 }
 0x209   :  { %v2382_v45 = vadd.f32 %v2366_v57, %v2269_v42  ;;  %v2461_v43 = vrot.slane %v2423_v53, %v11625_v8  ;;  %v2383_v49 = vadd.f32 %v2367_v10, %v2270_v17  ;;  %v2465_v14 = vrot.slane %v2424_v28, %v11625_v8 }
 0x20a   :  { %v2474_v51 = vmul.f32 %v2453_v5, %v14161_v54  ;;  %v2534_v25 = vmul.f32 %v17901_v6, %v2509_v1  ;;  %v2384_v44 = vadd.f32 %v2368_v13, %v2271_v59  ;;  %v2475_v40 = vmul.f32 %v2457_v21, %v14161_v54  ;;  %v17904_v1 = vld [vmem:[#allocation111_spill] sm:$0xff] }
 0x20b   :  { %v2535_v4 = vmul.f32 %v17902_v0, %v2508_v34  ;;  %v2482_v3 = vadd.f32 %v2466_v18, %v2369_v39  ;;  %v2478_v9 = vmul.f32 %v2453_v5, %v14173_v35  ;;  %v2483_v42 = vadd.f32 %v2467_v20, %v2370_v52  ;;  %v2614_v52 = vpop.permute.xlu0 %2613 }
 0x20c   :  { %v2486_v17 = vadd.f32 %v2470_v26, %v2373_v32  ;;  %v2487_v12 = vadd.f32 %v2471_v47, %v2374_v50  ;;  %v2468_v57 = vmul.f32 %v2461_v43, %v17899_v24  ;;  %v2479_v27 = vmul.f32 %v2457_v21, %v14173_v35 }
 0x20d   :  { %v2507_v59 = vsel %vm17541_vm15, %v14195_v48, %v2505_v33  ;;  %v2510_v10 = vsel %vm17541_vm15, %v2505_v33, %v14176_v60  ;;  %v2469_v13 = vmul.f32 %v2465_v14, %v17899_v24  ;;  %v2476_v39 = vmul.f32 %v2461_v43, %v14161_v54  ;;  %v2616_v48 = vpop.permute.xlu1 %2615  ;;  %v17903_v33 = vld [vmem:[#allocation110_spill] sm:$0xff] }
 0x20e   :  { %v2490_v5 = vadd.f32 %v2474_v51, %v2377_v29  ;;  %v2566_v32 = vrot.slane %v2534_v25, %v11625_v8  ;;  %v2472_v50 = vmul.f32 %v2461_v43, %v17900_v56  ;;  %v2473_v21 = vmul.f32 %v2465_v14, %v17900_v56 }
 0x20f   :  { %v2491_v53 = vadd.f32 %v2475_v40, %v2378_v36  ;;  %v2570_v28 = vrot.slane %v2535_v4, %v11625_v8  ;;  %v2477_v18 = vmul.f32 %v2465_v14, %v14161_v54  ;;  %v2480_v60 = vmul.f32 %v2461_v43, %v14173_v35  ;;  %v14274_v4 = vpop.permute.xlu0 %2771 }
 0x210   :  { %v2536_v24 = vmul.f32 %v17903_v33, %v2507_v59  ;;  %v2537_v26 = vmul.f32 %v17904_v1, %v2510_v10  ;;  %v2481_v29 = vmul.f32 %v2465_v14, %v14173_v35  ;;  %v2494_v20 = vadd.f32 %v2478_v9, %v2381_v46  ;;  %v17905_v9 = vld [vmem:[#allocation103_spill] sm:$0xff] }
 0x211   :  { %v2495_v47 = vadd.f32 %v2479_v27, %v2382_v45  ;;  %v2484_v34 = vadd.f32 %v2468_v57, %v2371_v7  ;;  %v2492_v51 = vadd.f32 %v2476_v39, %v2379_v62  ;;  %v2579_v56 = vmul.f32 %v2566_v32, %v14141_v61  ;;  %v14281_v7 = vpop.permute.xlu1 %2776  ;;  %v17906_v39 = vld [vmem:[#allocation88_spill] sm:$0xff] }
 0x212   :  { %v2622_v36 = vsel %vm17543_vm14, %v14248_v38, %v2614_v52  ;;  %v2485_v54 = vadd.f32 %v2469_v13, %v2372_v55  ;;  %v2583_v43 = vmul.f32 %v2566_v32, %v14144_v31  ;;  %v2580_v25 = vmul.f32 %v2570_v28, %v14141_v61 }
 0x213   :  { %v2584_v40 = vmul.f32 %v2570_v28, %v14144_v31  ;;  %v2621_v35 = vsel %vm17543_vm14, %v2614_v52, %v2616_v48  ;;  %v2493_v62 = vadd.f32 %v2477_v18, %v2380_v58  ;;  %v2496_v46 = vadd.f32 %v2480_v60, %v2383_v49  ;;  %v2618_v49 = vpop.permute.xlu0 %2617 }
 0x214   :  { %v2574_v45 = vrot.slane %v2536_v24, %v11625_v8  ;;  %v2578_v14 = vrot.slane %v2537_v26, %v11625_v8  ;;  %vm17542_vm15 = vcmp.lt.s32.totalorder %v12041_v41, 94  ;;  %v2497_v55 = vadd.f32 %v2481_v29, %v2384_v44 }
 0x215   :  { %v2647_v57 = vmul.f32 %v17905_v9, %v2622_v36  ;;  %v2488_v27 = vadd.f32 %v2472_v50, %v14222_v2  ;;  %v2489_v59 = vadd.f32 %v2473_v21, %v14225_v30  ;;  %v2587_v10 = vmul.f32 %v2566_v32, %v14231_v63  ;;  %v14293_v60 = vpop.permute.xlu1 %2668 }
 0x216   :  { %v2588_v13 = vmul.f32 %v2570_v28, %v14231_v63  ;;  %v2648_v58 = vmul.f32 %v17906_v39, %v2621_v35  ;;  %v2595_v52 = vadd.f32 %v2579_v56, %v2482_v3  ;;  %v2591_v18 = vmul.f32 %v2566_v32, %v14244_v19 }
 0x217   :  { %v2596_v24 = vadd.f32 %v2580_v25, %v2483_v42  ;;  %v2599_v44 = vadd.f32 %v2583_v43, %v2486_v17  ;;  %v2600_v26 = vadd.f32 %v2584_v40, %v2487_v12  ;;  %v2581_v29 = vmul.f32 %v2574_v45, %v14141_v61  ;;  %v17907_v43 = vld [vmem:[#allocation101_spill] sm:$0xff] }
 0x218   :  { %v2582_v2 = vmul.f32 %v2578_v14, %v14141_v61  ;;  %v2592_v30 = vmul.f32 %v2570_v28, %v14244_v19  ;;  %v2620_v50 = vsel %vm17543_vm14, %v2616_v48, %v2618_v49  ;;  %v2589_v21 = vmul.f32 %v2574_v45, %v14231_v63  ;;  %v14308_v28 = vpop.permute.xlu0 %2673 }
 0x219   :  { %v2590_v3 = vmul.f32 %v2578_v14, %v14231_v63  ;;  %v2679_v32 = vrot.slane %v2647_v57, %v11625_v8  ;;  %v2623_v42 = vsel %vm17543_vm14, %v2618_v49, %v14248_v38  ;;  %v2603_v17 = vadd.f32 %v2587_v10, %v2490_v5  ;;  %v2725_v40 = vpop.permute.xlu1 %2724  ;;  %v17908_v5 = vld [vmem:[#allocation112_spill] sm:$0xff] }
 0x21a   :  { %v2604_v12 = vadd.f32 %v2588_v13, %v2491_v53  ;;  %v2593_v56 = vmul.f32 %v2574_v45, %v14244_v19  ;;  %v2683_v61 = vrot.slane %v2648_v58, %v11625_v8  ;;  %v2585_v48 = vmul.f32 %v2574_v45, %v14144_v31 }
 0x21b   :  { %v2586_v36 = vmul.f32 %v2578_v14, %v14144_v31  ;;  %v2594_v63 = vmul.f32 %v2578_v14, %v14244_v19  ;;  %v2649_v25 = vmul.f32 %v17907_v43, %v2620_v50  ;;  %v14314_v35 = vadd.f32 %v2591_v18, %v2494_v20  ;;  %v17909_v18 = vld [vmem:[#allocation16_spill] sm:$0xff] }
 0x21c   :  { %v14316_v38 = vadd.f32 %v2592_v30, %v2495_v47  ;;  %v2650_v53 = vmul.f32 %v17908_v5, %v2623_v42  ;;  %v2597_v57 = vadd.f32 %v2581_v29, %v2484_v34  ;;  %v14319_v10 = vadd.f32 %v2589_v21, %v2492_v51  ;;  %v2727_v19 = vpop.permute.xlu0 %2726  ;;  %v17910_v21 = vld [vmem:[#allocation104_spill] sm:$0xff] }
 0x21d   :  { %v14321_v13 = vadd.f32 %v2590_v3, %v2493_v62  ;;  %v2598_v58 = vadd.f32 %v2582_v2, %v2485_v54  ;;  %v2692_v45 = vmul.f32 %v2679_v32, %v14205_v37  ;;  %v14324_v31 = vadd.f32 %v2593_v56, %v2496_v46  ;;  %v2729_v54 = vpop.permute.xlu1 %2728 }
 0x21e   :  { %v2693_v14 = vmul.f32 %v2683_v61, %v14205_v37  ;;  %v2696_v20 = vmul.f32 %v2679_v32, %v14213_v11  ;;  %v2697_v47 = vmul.f32 %v2683_v61, %v14213_v11  ;;  %v14329_v49 = vadd.f32 %v2594_v63, %v2497_v55 }
 0x21f   :  { %v14332_v34 = vrot.slane %v2649_v25, %v11625_v8  ;;  %v2735_v51 = vsel %vm17542_vm15, %v2725_v40, %v2727_v19  ;;  %v2601_v62 = vadd.f32 %v2585_v48, %v2488_v27  ;;  %v14337_v46 = vrot.slane %v2650_v53, %v11625_v8 }
 0x220   :  { %v2760_v29 = vmul.f32 %v17909_v18, %v2735_v51  ;;  %v2734_v2 = vsel %vm17542_vm15, %v2727_v19, %v2729_v54  ;;  %v2602_v30 = vadd.f32 %v2586_v36, %v2489_v59  ;;  %v2700_v55 = vmul.f32 %v2679_v32, %v14293_v60  ;;  %v2731_v27 = vpop.permute.xlu0 %2730 }
 0x221   :  { %v2701_v50 = vmul.f32 %v2683_v61, %v14293_v60  ;;  %v2761_v3 = vmul.f32 %v17910_v21, %v2734_v2  ;;  %v2708_v42 = vadd.f32 %v2692_v45, %v2595_v52  ;;  %v2709_v48 = vadd.f32 %v2693_v14, %v2596_v24  ;;  %v14355_v19 = vpop.permute.xlu1 %2781  ;;  %v17911_v45 = vld [vmem:[#allocation113_spill] sm:$0xff] }
 0x222   :  { %v14346_v56 = vrot.slane %v2760_v29, %v11625_v8  ;;  %v2712_v63 = vadd.f32 %v2696_v20, %v2599_v44  ;;  %v2713_v25 = vadd.f32 %v2697_v47, %v2600_v26  ;;  %v2733_v59 = vsel %vm17542_vm15, %v2729_v54, %v2731_v27  ;;  %v17912_v29 = vld [vmem:[#allocation114_spill] sm:$0xff] }
 0x223   :  { %v14349_v53 = vrot.slane %v2761_v3, %v11625_v8  ;;  %v2736_v36 = vsel %vm17542_vm15, %v2731_v27, %v2725_v40  ;;  %v2694_v52 = vmul.f32 %v14332_v34, %v14205_v37  ;;  %v2762_v51 = vmul.f32 %v17911_v45, %v2733_v59 }
 0x224   :  { %v2763_v24 = vmul.f32 %v17912_v29, %v2736_v36  ;;  %v2695_v44 = vmul.f32 %v14337_v46, %v14205_v37  ;;  %v2805_v26 = vmul.f32 %v14346_v56, %v14274_v4  ;;  %v2716_v14 = vadd.f32 %v2700_v55, %v2603_v17  ;;  %v14375_v3 = vpop.permute.xlu0 %2786 }
 0x225   :  { %v2717_v20 = vadd.f32 %v2701_v50, %v2604_v12  ;;  %v2806_v40 = vmul.f32 %v14349_v53, %v14274_v4  ;;  %v2699_v47 = vmul.f32 %v14337_v46, %v14213_v11  ;;  %v14370_v54 = vrot.slane %v2762_v51, %v11625_v8  ;;  %v2844_v12 = vpop.permute.xlu1 %2843 }
 0x226   :  { %v14373_v2 = vrot.slane %v2763_v24, %v11625_v8  ;;  %v2821_v37 = vadd.f32 %v2805_v26, %v2708_v42  ;;  %v2810_v27 = vmul.f32 %v14349_v53, %v14281_v7  ;;  %v14380_v17 = vmul.f32 %v2679_v32, %v14308_v28 }
 0x227   :  { %v2822_v55 = vadd.f32 %v2806_v40, %v2709_v48  ;;  %v2698_v50 = vmul.f32 %v14332_v34, %v14213_v11  ;;  %v2809_v59 = vmul.f32 %v14346_v56, %v14281_v7  ;;  %v2703_v8 = vmul.f32 %v14337_v46, %v14293_v60 }
 0x228   :  { %v2705_v36 = vmul.f32 %v2683_v61, %v14308_v28  ;;  %v2710_v42 = vadd.f32 %v2694_v52, %v2597_v57  ;;  %v2711_v51 = vadd.f32 %v2695_v44, %v2598_v58  ;;  %v2807_v24 = vmul.f32 %v14370_v54, %v14274_v4  ;;  %v2849_v57 = vpop.permute.xlu0 %2848 }
 0x229   :  { %v2808_v32 = vmul.f32 %v14373_v2, %v14274_v4  ;;  %v14393_v48 = vadd.f32 %v2844_v12, %v2821_v37  ;;  %v14395_v26 = vadd.f32 %v2844_v12, %v2822_v55  ;;  %v2715_v11 = vadd.f32 %v2699_v47, %v2602_v30 }
 0x22a   :  { %v2811_v40 = vmul.f32 %v14370_v54, %v14281_v7  ;;  %v2812_v29 = vmul.f32 %v14373_v2, %v14281_v7  ;;  %v2826_v61 = vadd.f32 %v2810_v27, %v2713_v25  ;;  %v2823_v58 = vadd.f32 %v2807_v24, %v2710_v42  ;;  %v2854_v24 = vpop.permute.xlu1 %2853 }
 0x22b   :  { %v2824_v52 = vadd.f32 %v2808_v32, %v2711_v51  ;;  %v2714_v44 = vadd.f32 %v2698_v50, %v2601_v62  ;;  %v2825_v45 = vadd.f32 %v2809_v59, %v2712_v63  ;;  %v2813_v4 = vmul.f32 %v14346_v56, %v14355_v19 }
 0x22c   :  { %v2893_v37 = vmin.f32 %v14393_v48, 0.0  ;;  %v2894_v55 = vmin.f32 %v14395_v26, 0.0  ;;  %v2828_v30 = vadd.f32 %v2812_v29, %v2715_v11  ;;  %v14405_v47 = vadd.f32 %v2844_v12, %v2823_v58 }
 0x22d   :  { %v14407_v18 = vadd.f32 %v2844_v12, %v2824_v52  ;;  %v2827_v21 = vadd.f32 %v2811_v40, %v2714_v44  ;;  %v14409_v7 = vadd.f32 %v2849_v57, %v2825_v45  ;;  %v14411_v42 = vadd.f32 %v2849_v57, %v2826_v61 }
 0x22e   :  { %v2909_v25 = vmul.f32 1.442695, %v2893_v37  ;;  %v2911_v27 = vmul.f32 1.442695, %v2894_v55  ;;  %v14413_v62 = vadd.f32 %v2849_v57, %v2828_v30  ;;  %v2702_v63 = vmul.f32 %v14332_v34, %v14293_v60 }
 0x22f   :  { %v2814_v50 = vmul.f32 %v14349_v53, %v14355_v19  ;;  %v2895_v29 = vmin.f32 %v14405_v47, 0.0  ;;  %v2896_v12 = vmin.f32 %v14407_v18, 0.0  ;;  %v2706_v45 = vmul.f32 %v14332_v34, %v14308_v28 }
 0x230   :  { %v2707_v59 = vmul.f32 %v14337_v46, %v14308_v28  ;;  %v2816_v51 = vmul.f32 %v14373_v2, %v14355_v19  ;;  %11403 = vpow2.f32 %v2909_v25  ;;  %v2719_v60 = vadd.f32 %v2703_v8, %v14321_v13 }
 0x231   :  { %11405 = vpow2.f32 %v2911_v27  ;;  %v2915_v32 = vmul.f32 1.442695, %v2896_v12  ;;  %v2829_v11 = vadd.f32 %v2813_v4, %v2716_v14  ;;  %v14428_v40 = vadd.f32 %v2849_v57, %v2827_v21 }
 0x232   :  { %v2897_v61 = vmin.f32 %v14409_v7, 0.0  ;;  %v2898_v58 = vmin.f32 %v14411_v42, 0.0  ;;  %v2900_v34 = vmin.f32 %v14413_v62, 0.0  ;;  %v2815_v28 = vmul.f32 %v14370_v54, %v14355_v19 }
 0x233   :  { %v2913_v46 = vmul.f32 1.442695, %v2895_v29  ;;  %v2830_v52 = vadd.f32 %v2814_v50, %v2717_v20  ;;  %v14435_v44 = vadd.f32 %v2854_v24, %v2829_v11  ;;  %11407 = vpow2.f32 %v2915_v32 }
 0x234   :  { %v2917_v13 = vmul.f32 1.442695, %v2897_v61  ;;  %v2919_v8 = vmul.f32 1.442695, %v2898_v58  ;;  %v2832_v37 = vadd.f32 %v2816_v51, %v2719_v60  ;;  %v2718_v21 = vadd.f32 %v2702_v63, %v14319_v10  ;;  %v2859_v63 = vpop.permute.xlu0 %2858 }
 0x235   :  { %v2817_v14 = vmul.f32 %v14346_v56, %v14375_v3  ;;  %v2818_v57 = vmul.f32 %v14349_v53, %v14375_v3  ;;  %v14442_v4 = vadd.f32 %v2854_v24, %v2830_v52  ;;  %v2899_v19 = vmin.f32 %v14428_v40, 0.0 }
 0x236   :  { %11409 = vpow2.f32 %v2917_v13  ;;  %v2923_v20 = vmul.f32 1.442695, %v2900_v34  ;;  %v2901_v55 = vmin.f32 %v14435_v44, 0.0  ;;  %v2720_v30 = vadd.f32 %v14380_v17, %v14314_v35 }
 0x237   :  { %v2721_v25 = vadd.f32 %v2705_v36, %v14316_v38  ;;  %11411 = vpow2.f32 %v2919_v8  ;;  %v2831_v10 = vadd.f32 %v2815_v28, %v2718_v21  ;;  %v2820_v56 = vmul.f32 %v14373_v2, %v14375_v3 }
 0x238   :  { %11413 = vpow2.f32 %v2913_v46  ;;  %v14451_v53 = vadd.f32 %v2854_v24, %v2832_v37  ;;  %v2902_v27 = vmin.f32 %v14442_v4, 0.0  ;;  %v2723_v50 = vadd.f32 %v2707_v59, %v14329_v49 }
 0x239   :  { %v2925_v29 = vmul.f32 1.442695, %v2901_v55  ;;  %v2833_v12 = vadd.f32 %v2817_v14, %v2720_v30  ;;  %v2834_v51 = vadd.f32 %v2818_v57, %v2721_v25  ;;  %v2819_v35 = vmul.f32 %v14370_v54, %v14375_v3 }
 0x23a   :  { %v11404_v60 = vpop.eup %11403  ;;  %vm2877_vm15 = vcmp.gt.f32.partialorder %v14393_v48, 0.0  ;;  %v2921_v38 = vmul.f32 1.442695, %v2899_v19  ;;  %11415 = vpow2.f32 %v2923_v20  ;;  %v14458_v36 = vadd.f32 %v2854_v24, %v2831_v10 }
 0x23b   :  { %v11406_v2 = vpop.eup %11405  ;;  %v10238_v17 = vadd.f32 -1.0, %v11404_v60  ;;  %v14460_v32 = vadd.f32 %v2859_v63, %v2833_v12  ;;  %v14462_v11 = vadd.f32 %v2859_v63, %v2834_v51  ;;  %v2904_v49 = vmin.f32 %v14451_v53, 0.0 }
 0x23c   :  { %11417 = vpow2.f32 %v2925_v29  ;;  %v2927_v59 = vmul.f32 1.442695, %v2902_v27  ;;  %v2836_v61 = vadd.f32 %v2820_v56, %v2723_v50  ;;  %v10239_v58 = vadd.f32 -1.0, %v11406_v2 }
 0x23d   :  { %v14466_v54 = vsel %vm2877_vm15, %v14393_v48, %v10238_v17  ;;  %v11408_v3 = vpop.eup %11407  ;;  %v2722_v34 = vadd.f32 %v2706_v45, %v14324_v31  ;;  %11419 = vpow2.f32 %v2921_v38  ;;  %vm2878_vm14 = vcmp.gt.f32.partialorder %v14395_v26, 0.0 }
 0x23e   :  { %v14469_v28 = vadd.f32 %v2859_v63, %v2836_v61  ;;  %3041 = vrot.lane.b32.xlu1 %v14466_v54, %s11530_s28  ;;  %v2905_v24 = vmin.f32 %v14460_v32, 0.0  ;;  %v2906_v46 = vmin.f32 %v14462_v11, 0.0  ;;  %v2903_v13 = vmin.f32 %v14458_v36, 0.0 }
 0x23f   :  { %11421 = vpow2.f32 %v2927_v59  ;;  %v2931_v48 = vmul.f32 1.442695, %v2904_v49  ;;  %v2835_v8 = vadd.f32 %v2819_v35, %v2722_v34  ;;  %v10241_v31 = vadd.f32 -1.0, %v11408_v3 }
 0x240   :  { %v11410_v52 = vpop.eup %11409  ;;  %v14478_v45 = vsel %vm2878_vm14, %v14395_v26, %v10239_v58  ;;  %v2933_v14 = vmul.f32 1.442695, %v2905_v24  ;;  %vm2881_vm15 = vcmp.gt.f32.partialorder %v14409_v7, 0.0  ;;  %v2908_v20 = vmin.f32 %v14469_v28, 0.0 }
 0x241   :  { %v11412_v37 = vpop.eup %11411  ;;  %v10242_v21 = vadd.f32 -1.0, %v11410_v52  ;;  %v14481_v19 = vadd.f32 %v2859_v63, %v2835_v8  ;;  %v2935_v55 = vmul.f32 1.442695, %v2906_v46  ;;  %vm2880_vm14 = vcmp.gt.f32.partialorder %v14407_v18, 0.0 }
 0x242   :  { %v11414_v57 = vpop.eup %11413  ;;  %3049 = vrot.lane.b32.xlu1 %v14478_v45, %s11530_s28  ;;  %v10243_v30 = vadd.f32 -1.0, %v11412_v37  ;;  %11423 = vpow2.f32 %v2933_v14  ;;  %v2929_v10 = vmul.f32 1.442695, %v2903_v13  ;;  %v14493_v27 = vsel %vm2880_vm14, %v14407_v18, %v10241_v31 }
 0x243   :  { %v14487_v25 = vsel %vm2881_vm15, %v14409_v7, %v10242_v21  ;;  %11425 = vpow2.f32 %v2931_v48  ;;  %v10240_v56 = vadd.f32 -1.0, %v11414_v57  ;;  %vm2882_vm13 = vcmp.gt.f32.partialorder %v14411_v42, 0.0 }
 0x244   :  { %v11416_v26 = vpop.eup %11415  ;;  %3043 = vrot.lane.b32.xlu0 %v14487_v25, %s11530_s28  ;;  %v2907_v50 = vmin.f32 %v14481_v19, 0.0  ;;  %11427 = vpow2.f32 %v2935_v55  ;;  %v2939_v7 = vmul.f32 1.442695, %v2908_v20  ;;  %v14500_v12 = vsel %vm2882_vm13, %v14411_v42, %v10243_v30  ;;  %v17913_v30 = vld [vmem:[#allocation44_spill] sm:$0xff] }
 0x245   :  { %v10245_v29 = vadd.f32 -1.0, %v11416_v26  ;;  %vm2879_vm15 = vcmp.gt.f32.partialorder %v14405_v47, 0.0  ;;  %11429 = vpow2.f32 %v2929_v10  ;;  %vm2884_vm14 = vcmp.gt.f32.partialorder %v14413_v62, 0.0 }
 0x246   :  { %v11418_v63 = vpop.eup %11417  ;;  %3065 = vrot.lane.b32.xlu1 %v14493_v27, %s11530_s28  ;;  %v14506_v18 = vsel %vm2879_vm15, %v14405_v47, %v10240_v56  ;;  %v2937_v38 = vmul.f32 1.442695, %v2907_v50  ;;  %11431 = vpow2.f32 %v2939_v7  ;;  %vm2885_vm13 = vcmp.gt.f32.partialorder %v14435_v44, 0.0 }
 0x247   :  { %v11420_v51 = vpop.eup %11419  ;;  %v10246_v60 = vadd.f32 -1.0, %v11418_v63  ;;  %v14512_v2 = vsel %vm2884_vm14, %v14413_v62, %v10245_v29  ;;  %vm2883_vm15 = vcmp.gt.f32.partialorder %v14428_v40, 0.0  ;;  %vm2886_vm14 = vcmp.gt.f32.partialorder %v14442_v4, 0.0 }
 0x248   :  { %3051 = vrot.lane.b32.xlu0 %v14500_v12, %s11530_s28  ;;  %v10244_v42 = vadd.f32 -1.0, %v11420_v51  ;;  %11433 = vpow2.f32 %v2937_v38  ;;  %v17914_v51 = vld [vmem:[#allocation46_spill] sm:$0xff] }
 0x249   :  { %v11422_v35 = vpop.eup %11421  ;;  %v14518_v49 = vsel %vm2885_vm13, %v14435_v44, %v10246_v60  ;;  %vm2889_vm13 = vcmp.gt.f32.partialorder %v14460_v32, 0.0 }
 0x24a   :  { %3057 = vrot.lane.b32.xlu1 %v14506_v18, %s11530_s28  ;;  %v10247_v17 = vadd.f32 -1.0, %v11422_v35  ;;  %v14524_v62 = vsel %vm2883_vm15, %v14428_v40, %v10244_v42  ;;  %vm2888_vm15 = vcmp.gt.f32.partialorder %v14451_v53, 0.0 }
 0x24c   :  { %3067 = vrot.lane.b32.xlu0 %v14512_v2, %s11530_s28  ;;  %v11424_v47 = vpop.eup %11423  ;;  %v14530_v44 = vsel %vm2886_vm14, %v14442_v4, %v10247_v17  ;;  %vm2890_vm14 = vcmp.gt.f32.partialorder %v14462_v11, 0.0 }
 0x24d   :  { %v11426_v59 = vpop.eup %11425  ;;  %v10250_v61 = vadd.f32 -1.0, %v11424_v47 }
 0x24e   :  { %3045 = vrot.lane.b32.xlu1 %v14518_v49, %s11530_s28  ;;  %v11428_v58 = vpop.eup %11427  ;;  %v10249_v3 = vadd.f32 -1.0, %v11426_v59 }
 0x24f   :  { %v11430_v34 = vpop.eup %11429  ;;  %v10251_v24 = vadd.f32 -1.0, %v11428_v58  ;;  %v14536_v40 = vsel %vm2889_vm13, %v14460_v32, %v10250_v61  ;;  %vm2887_vm13 = vcmp.gt.f32.partialorder %v14458_v36, 0.0  ;;  %v17915_v58 = vld [vmem:[#allocation48_spill] sm:$0xff] }
 0x250   :  { %3059 = vrot.lane.b32.xlu0 %v14524_v62, %s11530_s28  ;;  %v11432_v46 = vpop.eup %11431  ;;  %v10248_v52 = vadd.f32 -1.0, %v11430_v34  ;;  %v14542_v4 = vsel %vm2888_vm15, %v14451_v53, %v10249_v3  ;;  %vm2892_vm15 = vcmp.gt.f32.partialorder %v14469_v28, 0.0 }
 0x251   :  { %v10253_v13 = vadd.f32 -1.0, %v11432_v46  ;;  %v14548_v48 = vsel %vm2890_vm14, %v14462_v11, %v10251_v24  ;;  %vm2891_vm14 = vcmp.gt.f32.partialorder %v14481_v19, 0.0  ;;  %v11552_v11 = vmov 0.0   ;;  %v17916_v46 = vld [vmem:[#allocation45_spill] sm:$0xff] }
 0x252   :  { %3053 = vrot.lane.b32.xlu1 %v14530_v44, %s11530_s28  ;;  %v11434_v32 = vpop.eup %11433  ;;  %v14554_v8 = vsel %vm2887_vm13, %v14458_v36, %v10248_v52  ;;  %3187 = vmatprep.mubr.f32.mxu0 %v11552_v11  ;;  %vm3110_vm13 = vcmask 261120  }
 0x253   :  { %v10252_v53 = vadd.f32 -1.0, %v11434_v32  ;;  %v14560_v37 = vsel %vm2892_vm15, %v14469_v28, %v10253_v13  ;;  %3276 = vmatprep.mubr.f32.mxu1 %v11552_v11 }
 0x254   :  { %3047 = vrot.lane.b32.xlu0 %v14536_v40, %s11530_s28 }
 0x255   :  { %v14568_v36 = vsel %vm2891_vm14, %v14481_v19, %v10252_v53 }
 0x256   :  { %3069 = vrot.lane.b32.xlu1 %v14542_v4, %s11530_s28 }
 0x258   :  { %3055 = vrot.lane.b32.xlu0 %v14548_v48, %s11530_s28 }
 0x25a   :  { %3061 = vrot.lane.b32.xlu1 %v14554_v8, %s11530_s28 }
 0x25c   :  { %3071 = vrot.lane.b32.xlu0 %v14560_v37, %s11530_s28 }
 0x25e   :  { %2973 = vrot.lane.b32.xlu1 %v14466_v54, %s11529_s0 }
 0x260   :  { %3063 = vrot.lane.b32.xlu0 %v14568_v36, %s11530_s28 }
 0x262   :  { %2981 = vrot.lane.b32.xlu1 %v14478_v45, %s11529_s0 }
 0x264   :  { %2975 = vrot.lane.b32.xlu0 %v14487_v25, %s11529_s0 }
 0x266   :  { %2997 = vrot.lane.b32.xlu1 %v14493_v27, %s11529_s0 }
 0x268   :  { %2983 = vrot.lane.b32.xlu0 %v14500_v12, %s11529_s0 }
 0x26a   :  { %2989 = vrot.lane.b32.xlu1 %v14506_v18, %s11529_s0 }
 0x26c   :  { %2999 = vrot.lane.b32.xlu0 %v14512_v2, %s11529_s0 }
 0x26e   :  { %2977 = vrot.lane.b32.xlu1 %v14518_v49, %s11529_s0 }
 0x270   :  { %2991 = vrot.lane.b32.xlu0 %v14524_v62, %s11529_s0 }
 0x272   :  { %2985 = vrot.lane.b32.xlu1 %v14530_v44, %s11529_s0 }
 0x274   :  { %2979 = vrot.lane.b32.xlu0 %v14536_v40, %s11529_s0 }
 0x276   :  { %3001 = vrot.lane.b32.xlu1 %v14542_v4, %s11529_s0 }
 0x278   :  { %2987 = vrot.lane.b32.xlu0 %v14548_v48, %s11529_s0 }
 0x27a   :  { %2993 = vrot.lane.b32.xlu1 %v14554_v8, %s11529_s0 }
 0x27c   :  { %3003 = vrot.lane.b32.xlu0 %v14560_v37, %s11529_s0 }
 0x27e   :  { %3491 = vrot.lane.b32.xlu1 %v14466_v54, %s11527_s16 }
 0x280   :  { %2995 = vrot.lane.b32.xlu0 %v14568_v36, %s11529_s0 }
 0x282   :  { %3499 = vrot.lane.b32.xlu1 %v14478_v45, %s11527_s16 }
 0x284   :  { %3493 = vrot.lane.b32.xlu0 %v14487_v25, %s11527_s16 }
 0x286   :  { %3515 = vrot.lane.b32.xlu1 %v14493_v27, %s11527_s16 }
 0x288   :  { %3501 = vrot.lane.b32.xlu0 %v14500_v12, %s11527_s16 }
 0x28a   :  { %3507 = vrot.lane.b32.xlu1 %v14506_v18, %s11527_s16 }
 0x28c   :  { %3517 = vrot.lane.b32.xlu0 %v14512_v2, %s11527_s16 }
 0x28e   :  { %3495 = vrot.lane.b32.xlu1 %v14518_v49, %s11527_s16 }
 0x290   :  { %3509 = vrot.lane.b32.xlu0 %v14524_v62, %s11527_s16 }
 0x292   :  { %3503 = vrot.lane.b32.xlu1 %v14530_v44, %s11527_s16 }
 0x294   :  { %3497 = vrot.lane.b32.xlu0 %v14536_v40, %s11527_s16 }
 0x296   :  { %3519 = vrot.lane.b32.xlu1 %v14542_v4, %s11527_s16 }
 0x298   :  { %3505 = vrot.lane.b32.xlu0 %v14548_v48, %s11527_s16 }
 0x29a   :  { %3511 = vrot.lane.b32.xlu1 %v14554_v8, %s11527_s16 }
 0x29c   :  { %3521 = vrot.lane.b32.xlu0 %v14560_v37, %s11527_s16 }
 0x29e   :  { %3766 = vrot.lane.b32.xlu1 %v14466_v54, %s11531_s1 }
 0x2a0   :  { %3513 = vrot.lane.b32.xlu0 %v14568_v36, %s11527_s16 }
 0x2a2   :  { %3774 = vrot.lane.b32.xlu1 %v14478_v45, %s11531_s1 }
 0x2a4   :  { %3768 = vrot.lane.b32.xlu0 %v14487_v25, %s11531_s1 }
 0x2a6   :  { %3790 = vrot.lane.b32.xlu1 %v14493_v27, %s11531_s1 }
 0x2a8   :  { %3776 = vrot.lane.b32.xlu0 %v14500_v12, %s11531_s1 }
 0x2aa   :  { %3782 = vrot.lane.b32.xlu1 %v14506_v18, %s11531_s1 }
 0x2ac   :  { %3792 = vrot.lane.b32.xlu0 %v14512_v2, %s11531_s1 }
 0x2ae   :  { %3770 = vrot.lane.b32.xlu1 %v14518_v49, %s11531_s1 }
 0x2b0   :  { %3784 = vrot.lane.b32.xlu0 %v14524_v62, %s11531_s1  ;;  %v3042_v28 = vpop.permute.xlu1 %3041 }
 0x2b2   :  { %3778 = vrot.lane.b32.xlu1 %v14530_v44, %s11531_s1 }
 0x2b4   :  { %3772 = vrot.lane.b32.xlu0 %v14536_v40, %s11531_s1  ;;  %v3050_v31 = vpop.permute.xlu1 %3049 }
 0x2b5   :  { %v3081_v57 = vsel %vm189_vm1, %v3042_v28, %v3050_v31 }
 0x2b6   :  { %v3044_v21 = vpop.permute.xlu0 %3043  ;;  %3794 = vrot.lane.b32.xlu1 %v14542_v4, %s11531_s1  ;;  %v3090_v26 = vmul.f32 %v3081_v57, %v17913_v30 }
 0x2b8   :  { %3780 = vrot.lane.b32.xlu0 %v14548_v48, %s11531_s1  ;;  %v3066_v14 = vpop.permute.xlu1 %3065 }
 0x2b9   :  { %v3085_v56 = vsel %vm189_vm1, %v3066_v14, %v3042_v28 }
 0x2ba   :  { %v3052_v19 = vpop.permute.xlu0 %3051  ;;  %3786 = vrot.lane.b32.xlu1 %v14554_v8, %s11531_s1  ;;  %v3089_v60 = vmul.f32 %v3085_v56, %v17914_v51 }
 0x2bb   :  { %v3082_v20 = vsel %vm189_vm1, %v3044_v21, %v3052_v19 }
 0x2bc   :  { %3796 = vrot.lane.b32.xlu0 %v14560_v37, %s11531_s1  ;;  %v3058_v55 = vpop.permute.xlu1 %3057  ;;  %v3094_v10 = vmul.f32 %v3082_v20, %v17913_v30 }
 0x2bd   :  { %v3073_v38 = vsel %vm189_vm1, %v3058_v55, %v3066_v14  ;;  %v3077_v42 = vsel %vm189_vm1, %v3050_v31, %v3058_v55 }
 0x2be   :  { %v3068_v63 = vpop.permute.xlu0 %3067  ;;  %v10572_v50 = vpack.c.bf16 %v3094_v10, %v3090_v26  ;;  %4041 = vrot.lane.b32.xlu1 %v14466_v54, %s11532_s11  ;;  %v3092_v3 = vmul.f32 %v3073_v38, %v17915_v58  ;;  %v3091_v52 = vmul.f32 %v3077_v42, %v17916_v46 }
 0x2bf   :  { %v3086_v7 = vsel %vm189_vm1, %v3068_v63, %v3044_v21 }
 0x2c0   :  { %3788 = vrot.lane.b32.xlu0 %v14568_v36, %s11531_s1  ;;  %10573 = vmatprep.subr.bf16.mxu0 %v10572_v50  ;;  %v3046_v29 = vpop.permute.xlu1 %3045  ;;  %v3093_v35 = vmul.f32 %v3086_v7, %v17914_v51 }
 0x2c2   :  { %v3060_v47 = vpop.permute.xlu0 %3059  ;;  %v10574_v17 = vpack.c.bf16 %v3093_v35, %v3089_v60  ;;  %4049 = vrot.lane.b32.xlu1 %v14478_v45, %s11532_s11 }
 0x2c3   :  { %v3078_v59 = vsel %vm189_vm1, %v3052_v19, %v3060_v47  ;;  %v3074_v61 = vsel %vm189_vm1, %v3060_v47, %v3068_v63 }
 0x2c4   :  { %4043 = vrot.lane.b32.xlu0 %v14487_v25, %s11532_s11  ;;  %10575 = vmatpush1.bf16.msra.mxu0 %v10574_v17  ;;  %v3054_v34 = vpop.permute.xlu1 %3053  ;;  %v3096_v24 = vmul.f32 %v3074_v61, %v17915_v58  ;;  %v3095_v13 = vmul.f32 %v3078_v59, %v17916_v46 }
 0x2c5   :  { %v3083_v21 = vsel %vm189_vm1, %v3046_v29, %v3054_v34 }
 0x2c6   :  { %v3048_v32 = vpop.permute.xlu0 %3047  ;;  %v10580_v53 = vpack.c.bf16 %v3096_v24, %v3092_v3  ;;  %v10582_v28 = vpack.c.bf16 %v3095_v13, %v3091_v52  ;;  %4065 = vrot.lane.b32.xlu1 %v14493_v27, %s11532_s11  ;;  %v3098_v19 = vmul.f32 %v3083_v21, %v17913_v30 }
 0x2c8   :  { %4051 = vrot.lane.b32.xlu0 %v14500_v12, %s11532_s11  ;;  %10581 = vmatprep.subr.bf16.mxu1 %v10580_v53  ;;  %v3070_v31 = vpop.permute.xlu1 %3069 }
 0x2c9   :  { %10583 = vmatpush1.bf16.msra.mxu1 %v10582_v28  ;;  %v3087_v26 = vsel %vm189_vm1, %v3070_v31, %v3046_v29 }
 0x2ca   :  { %v3056_v14 = vpop.permute.xlu0 %3055  ;;  %4057 = vrot.lane.b32.xlu1 %v14506_v18, %s11532_s11  ;;  %v3097_v50 = vmul.f32 %v3087_v26, %v17914_v51 }
 0x2cb   :  { %v3084_v57 = vsel %vm189_vm1, %v3048_v32, %v3056_v14 }
 0x2cc   :  { %v3102_v20 = vmul.f32 %v3084_v57, %v17913_v30  ;;  %4067 = vrot.lane.b32.xlu0 %v14512_v2, %s11532_s11  ;;  %v3062_v55 = vpop.permute.xlu1 %3061 }
 0x2cd   :  { %v3079_v30 = vsel %vm189_vm1, %v3054_v34, %v3062_v55  ;;  %v3075_v60 = vsel %vm189_vm1, %v3062_v55, %v3070_v31  ;;  %v10254_v34 = vld [vmem:[%s17316_s4 + $0x20] sm:$0xff]  ;;  %v17917_v31 = vld [vmem:[#allocation39_spill] sm:$0xff] }
 0x2ce   :  { %v3072_v10 = vpop.permute.xlu0 %3071  ;;  %v10576_v56 = vpack.c.bf16 %v3102_v20, %v3098_v19  ;;  %4045 = vrot.lane.b32.xlu1 %v14518_v49, %s11532_s11  ;;  %v3099_v42 = vmul.f32 %v3079_v30, %v17916_v46  ;;  %v3100_v17 = vmul.f32 %v3075_v60, %v17915_v58  ;;  %v10256_v19 = vld [vmem:[%s17316_s4 + $0x30] sm:$0xff] }
 0x2cf   :  { %v3088_v63 = vsel %vm189_vm1, %v3072_v10, %v3048_v32 }
 0x2d0   :  { %v3101_v7 = vmul.f32 %v3088_v63, %v17914_v51  ;;  %4059 = vrot.lane.b32.xlu0 %v14524_v62, %s11532_s11  ;;  %10577 = vmatprep.subr.bf16.mxu0 %v10576_v56  ;;  %v2974_v29 = vpop.permute.xlu1 %2973  ;;  %v17918_v56 = vld [vmem:[#allocation41_spill] sm:$0xff] }
 0x2d2   :  { %v3064_v35 = vpop.permute.xlu0 %3063  ;;  %v10578_v38 = vpack.c.bf16 %v3101_v7, %v3097_v50  ;;  %4053 = vrot.lane.b32.xlu1 %v14530_v44, %s11532_s11 }
 0x2d3   :  { %v3076_v51 = vsel %vm189_vm1, %v3064_v35, %v3072_v10  ;;  %v3080_v47 = vsel %vm189_vm1, %v3056_v14, %v3064_v35 }
 0x2d4   :  { %v3103_v59 = vmul.f32 %v3080_v47, %v17916_v46  ;;  %v3104_v61 = vmul.f32 %v3076_v51, %v17915_v58  ;;  %4047 = vrot.lane.b32.xlu0 %v14536_v40, %s11532_s11  ;;  %10579 = vmatpush1.bf16.msra.mxu0 %v10578_v38  ;;  %v2982_v3 = vpop.permute.xlu1 %2981  ;;  %v10255_v46 = vld [vmem:[%s17316_s4 + $0x28] sm:$0xff] }
 0x2d5   :  { %v3013_v32 = vsel %vm78_vm0, %v2974_v29, %v2982_v3 }
 0x2d6   :  { %v2976_v24 = vpop.permute.xlu0 %2975  ;;  %v10584_v52 = vpack.c.bf16 %v3104_v61, %v3100_v17  ;;  %v10586_v13 = vpack.c.bf16 %v3103_v59, %v3099_v42  ;;  %4069 = vrot.lane.b32.xlu1 %v14542_v4, %s11532_s11  ;;  %v3022_v21 = vmul.f32 %v3013_v32, %v17917_v31  ;;  %v17919_v42 = vld [vmem:[#allocation40_spill] sm:$0xff]  ;;  %v17920_v59 = vld [vmem:[#allocation42_spill] sm:$0xff] }
 0x2d7   :  { %10258 = vmatmul.mubr.msk.f32.vlgmr.msra.gmra.mrb[0].mxu0 %vm3110_vm13, %v10254_v34 }
 0x2d8   :  { %4055 = vrot.lane.b32.xlu0 %v14548_v48, %s11532_s11  ;;  %10585 = vmatprep.subr.bf16.mxu1 %v10584_v52  ;;  %v2998_v58 = vpop.permute.xlu1 %2997 }
 0x2d9   :  { %10587 = vmatpush1.bf16.msra.mxu1 %v10586_v13  ;;  %3193 = vmatprep.mubr.f32.mxu0 %v11552_v11  ;;  %v3017_v20 = vsel %vm78_vm0, %v2998_v58, %v2974_v29  ;;  %v10257_v29 = vld [vmem:[%s17316_s4 + $0x38] sm:$0xff] }
 0x2da   :  { %v2984_v53 = vpop.permute.xlu0 %2983  ;;  %4061 = vrot.lane.b32.xlu1 %v14554_v8, %s11532_s11  ;;  %v3021_v63 = vmul.f32 %v3017_v20, %v17918_v56 }
 0x2db   :  { %v3014_v28 = vsel %vm78_vm0, %v2976_v24, %v2984_v53  ;;  %10259 = vmatmul.mubr.msk.f32.gmra.mrb[2].mxu0 %vm3110_vm13, %v10255_v46 }
 0x2dc   :  { %v3026_v14 = vmul.f32 %v3014_v28, %v17917_v31  ;;  %4071 = vrot.lane.b32.xlu0 %v14560_v37, %s11532_s11  ;;  %v2990_v57 = vpop.permute.xlu1 %2989  ;;  %10262 = vmatmul.mubr.msk.f32.vlgmr.msra.gmra.mrb[0].mxu1 %vm3110_vm13, %v10254_v34 }
 0x2dd   :  { %3199 = vmatprep.mubr.f32.mxu0 %v11552_v11  ;;  %3282 = vmatprep.mubr.f32.mxu1 %v11552_v11  ;;  %v3009_v7 = vsel %vm78_vm0, %v2982_v3, %v2990_v57  ;;  %v3005_v60 = vsel %vm78_vm0, %v2990_v57, %v2998_v58 }
 0x2de   :  { %v3000_v55 = vpop.permute.xlu0 %2999  ;;  %v10588_v26 = vpack.c.bf16 %v3026_v14, %v3022_v21  ;;  %4316 = vrot.lane.b32.xlu1 %v14466_v54, %s11533_s21  ;;  %v3023_v51 = vmul.f32 %v3009_v7, %v17919_v42  ;;  %v3024_v61 = vmul.f32 %v3005_v60, %v17920_v59 }
 0x2df   :  { %v3018_v10 = vsel %vm78_vm0, %v3000_v55, %v2976_v24  ;;  %10260 = vmatmul.mubr.msk.f32.gmra.mrb[4].mxu0 %vm3110_vm13, %v10256_v19 }
 0x2e0   :  { %v3025_v50 = vmul.f32 %v3018_v10, %v17918_v56  ;;  %4063 = vrot.lane.b32.xlu0 %v14568_v36, %s11532_s11  ;;  %10589 = vmatprep.subr.bf16.mxu0 %v10588_v26  ;;  %v2978_v30 = vpop.permute.xlu1 %2977 }
 0x2e1   :  { %10263 = vmatmul.mubr.msk.f32.gmra.mrb[2].mxu1 %vm3110_vm13, %v10255_v46  ;;  %3205 = vmatprep.mubr.f32.mxu0 %v11552_v11 }
 0x2e2   :  { %v10590_v35 = vpack.c.bf16 %v3025_v50, %v3021_v63  ;;  %v2992_v38 = vpop.permute.xlu0 %2991  ;;  %4324 = vrot.lane.b32.xlu1 %v14478_v45, %s11533_s21  ;;  %3288 = vmatprep.mubr.f32.mxu1 %v11552_v11 }
 0x2e3   :  { %v3006_v47 = vsel %vm78_vm0, %v2992_v38, %v3000_v55  ;;  %v3010_v17 = vsel %vm78_vm0, %v2984_v53, %v2992_v38  ;;  %10261 = vmatmul.mubr.msk.f32.gmra.mrb[6].mxu0 %vm3110_vm13, %v10257_v29 }
 0x2e4   :  { %v3027_v3 = vmul.f32 %v3010_v17, %v17919_v42  ;;  %v3028_v34 = vmul.f32 %v3006_v47, %v17920_v59  ;;  %4318 = vrot.lane.b32.xlu0 %v14487_v25, %s11533_s21  ;;  %10591 = vmatpush1.bf16.msra.mxu0 %v10590_v35  ;;  %v2986_v24 = vpop.permute.xlu1 %2985 }
 0x2e5   :  { %10264 = vmatmul.mubr.msk.f32.gmra.mrb[4].mxu1 %vm3110_vm13, %v10256_v19  ;;  %3377 = vmatprep.mubr.f32.mxu0 %v11552_v11  ;;  %v3015_v32 = vsel %vm78_vm0, %v2978_v30, %v2986_v24 }
 0x2e6   :  { %v10598_v52 = vpack.c.bf16 %v3027_v3, %v3023_v51  ;;  %v2980_v13 = vpop.permute.xlu0 %2979  ;;  %v10596_v58 = vpack.c.bf16 %v3028_v34, %v3024_v61  ;;  %4340 = vrot.lane.b32.xlu1 %v14493_v27, %s11533_s21  ;;  %3294 = vmatprep.mubr.f32.mxu1 %v11552_v11  ;;  %v3030_v21 = vmul.f32 %v3015_v32, %v17917_v31  ;;  %v3037_v61 = vld [vmem:[%s17316_s4] sm:$0xff] }
 0x2e8   :  { %4326 = vrot.lane.b32.xlu0 %v14500_v12, %s11533_s21  ;;  %10597 = vmatprep.subr.bf16.mxu1 %v10596_v58  ;;  %v3002_v46 = vpop.permute.xlu1 %3001 }
 0x2e9   :  { %10599 = vmatpush1.bf16.msra.mxu1 %v10598_v52  ;;  %v3019_v19 = vsel %vm78_vm0, %v3002_v46, %v2978_v30 }
 0x2ea   :  { %v2988_v53 = vpop.permute.xlu0 %2987  ;;  %4332 = vrot.lane.b32.xlu1 %v14506_v18, %s11533_s21  ;;  %10265 = vmatmul.mubr.msk.f32.gmra.mrb[6].mxu1 %vm3110_vm13, %v10257_v29  ;;  %v3029_v10 = vmul.f32 %v3019_v19, %v17918_v56 }
 0x2eb   :  { %v3016_v28 = vsel %vm78_vm0, %v2980_v13, %v2988_v53  ;;  %3466 = vmatprep.mubr.f32.mxu1 %v11552_v11 }
 0x2ec   :  { %v3034_v14 = vmul.f32 %v3016_v28, %v17917_v31  ;;  %4342 = vrot.lane.b32.xlu0 %v14512_v2, %s11533_s21  ;;  %v2994_v57 = vpop.permute.xlu1 %2993 }
 0x2ed   :  { %v3011_v31 = vsel %vm78_vm0, %v2986_v24, %v2994_v57  ;;  %v3007_v7 = vsel %vm78_vm0, %v2994_v57, %v3002_v46  ;;  %v17921_v46 = vld [vmem:[#allocation49_spill] sm:$0xff] }
 0x2ee   :  { %v3004_v20 = vpop.permute.xlu0 %3003  ;;  %v10592_v55 = vpack.c.bf16 %v3034_v14, %v3030_v21  ;;  %4320 = vrot.lane.b32.xlu1 %v14518_v49, %s11533_s21  ;;  %v3031_v60 = vmul.f32 %v3011_v31, %v17919_v42  ;;  %v3032_v38 = vmul.f32 %v3007_v7, %v17920_v59  ;;  %v3039_v21 = vld [vmem:[%s17316_s4 + $0x10] sm:$0xff] }
 0x2ef   :  { %v3020_v26 = vsel %vm78_vm0, %v3004_v20, %v2980_v13 }
 0x2f0   :  { %v3033_v63 = vmul.f32 %v3020_v26, %v17918_v56  ;;  %4334 = vrot.lane.b32.xlu0 %v14524_v62, %s11533_s21  ;;  %10593 = vmatprep.subr.bf16.mxu0 %v10592_v55  ;;  %v3492_v50 = vpop.permute.xlu1 %3491  ;;  %v17922_v55 = vld [vmem:[#allocation51_spill] sm:$0xff] }
 0x2f2   :  { %v10594_v30 = vpack.c.bf16 %v3033_v63, %v3029_v10  ;;  %v2996_v29 = vpop.permute.xlu0 %2995  ;;  %4328 = vrot.lane.b32.xlu1 %v14530_v44, %s11533_s21 }
 0x2f3   :  { %v3008_v56 = vsel %vm78_vm0, %v2996_v29, %v3004_v20  ;;  %v3012_v35 = vsel %vm78_vm0, %v2988_v53, %v2996_v29  ;;  %vm17965_vm0 = vcmp.lt.s32.totalorder %v12041_v41, 126 }
 0x2f4   :  { %v3035_v51 = vmul.f32 %v3012_v35, %v17919_v42  ;;  %v3036_v47 = vmul.f32 %v3008_v56, %v17920_v59  ;;  %4322 = vrot.lane.b32.xlu0 %v14536_v40, %s11533_s21  ;;  %10595 = vmatpush1.bf16.msra.mxu0 %v10594_v30  ;;  %v3500_v17 = vpop.permute.xlu1 %3499  ;;  %v3038_v59 = vld [vmem:[%s17316_s4 + $0x8] sm:$0xff]  ;;  %vm17966_vm1 = vmmov %vm17965_vm0 }
 0x2f5   :  { %v3531_v52 = vsel %vm302_vm2, %v3492_v50, %v3500_v17  ;;  %vm17982_vm15 = vmmov %vm17965_vm0 }
 0x2f6   :  { %v10602_v3 = vpack.c.bf16 %v3035_v51, %v3031_v60  ;;  %v3494_v34 = vpop.permute.xlu0 %3493  ;;  %v10600_v24 = vpack.c.bf16 %v3036_v47, %v3032_v38  ;;  %4344 = vrot.lane.b32.xlu1 %v14542_v4, %s11533_s21  ;;  %v3540_v32 = vmul.f32 %v3531_v52, %v17921_v46  ;;  %v17923_v60 = vld [vmem:[#allocation50_spill] sm:$0xff]  ;;  %v17924_v51 = vld [vmem:[#allocation52_spill] sm:$0xff]  ;;  %vm17983_vm14 = vmmov %vm17965_vm0 }
 0x2f7   :  { %10266 = vmatmul.mubr.msk.f32.vlgmr.msra.gmra.mrb[0].mxu0 %vm3110_vm13, %v3037_v61 }
 0x2f8   :  { %4330 = vrot.lane.b32.xlu0 %v14548_v48, %s11533_s21  ;;  %10601 = vmatprep.subr.bf16.mxu1 %v10600_v24  ;;  %v3516_v42 = vpop.permute.xlu1 %3515 }
 0x2f9   :  { %10603 = vmatpush1.bf16.msra.mxu1 %v10602_v3  ;;  %3383 = vmatprep.mubr.f32.mxu0 %v11552_v11  ;;  %v3535_v14 = vsel %vm302_vm2, %v3516_v42, %v3492_v50  ;;  %v3040_v50 = vld [vmem:[%s17316_s4 + $0x18] sm:$0xff] }
 0x2fa   :  { %v3502_v13 = vpop.permute.xlu0 %3501  ;;  %4336 = vrot.lane.b32.xlu1 %v14554_v8, %s11533_s21  ;;  %v3539_v26 = vmul.f32 %v3535_v14, %v17922_v55 }
 0x2fb   :  { %v3532_v58 = vsel %vm302_vm2, %v3494_v34, %v3502_v13  ;;  %10267 = vmatmul.mubr.msk.f32.gmra.mrb[2].mxu0 %vm3110_vm13, %v3038_v59 }
 0x2fc   :  { %v3544_v53 = vmul.f32 %v3532_v58, %v17921_v46  ;;  %4346 = vrot.lane.b32.xlu0 %v14560_v37, %s11533_s21  ;;  %v3508_v28 = vpop.permute.xlu1 %3507  ;;  %10270 = vmatmul.mubr.msk.f32.vlgmr.msra.gmra.mrb[0].mxu1 %vm3110_vm13, %v3037_v61 }
 0x2fd   :  { %3389 = vmatprep.mubr.f32.mxu0 %v11552_v11  ;;  %3472 = vmatprep.mubr.f32.mxu1 %v11552_v11  ;;  %v3527_v63 = vsel %vm302_vm2, %v3500_v17, %v3508_v28  ;;  %v3523_v7 = vsel %vm302_vm2, %v3508_v28, %v3516_v42 }
 0x2fe   :  { %v3518_v57 = vpop.permute.xlu0 %3517  ;;  %v10604_v19 = vpack.c.bf16 %v3544_v53, %v3540_v32  ;;  %4591 = vrot.lane.b32.xlu1 %v14466_v54, %s11534_s9  ;;  %v3541_v56 = vmul.f32 %v3527_v63, %v17923_v60  ;;  %v3542_v47 = vmul.f32 %v3523_v7, %v17924_v51 }
 0x2ff   :  { %v3536_v20 = vsel %vm302_vm2, %v3518_v57, %v3494_v34  ;;  %10268 = vmatmul.mubr.msk.f32.gmra.mrb[4].mxu0 %vm3110_vm13, %v3039_v21 }
 0x300   :  { %v3543_v10 = vmul.f32 %v3536_v20, %v17922_v55  ;;  %4338 = vrot.lane.b32.xlu0 %v14568_v36, %s11533_s21  ;;  %10605 = vmatprep.subr.bf16.mxu0 %v10604_v19  ;;  %v3496_v31 = vpop.permute.xlu1 %3495 }
 0x301   :  { %10271 = vmatmul.mubr.msk.f32.gmra.mrb[2].mxu1 %vm3110_vm13, %v3038_v59  ;;  %3395 = vmatprep.mubr.f32.mxu0 %v11552_v11 }
 0x302   :  { %v10606_v30 = vpack.c.bf16 %v3543_v10, %v3539_v26  ;;  %v3510_v29 = vpop.permute.xlu0 %3509  ;;  %4599 = vrot.lane.b32.xlu1 %v14478_v45, %s11534_s9  ;;  %3478 = vmatprep.mubr.f32.mxu1 %v11552_v11 }
 0x303   :  { %v3524_v35 = vsel %vm302_vm2, %v3510_v29, %v3518_v57  ;;  %v3528_v38 = vsel %vm302_vm2, %v3502_v13, %v3510_v29  ;;  %10269 = vmatmul.mubr.msk.f32.gmra.mrb[6].mxu0 %vm3110_vm13, %v3040_v50 }
 0x304   :  { %v3545_v17 = vmul.f32 %v3528_v38, %v17923_v60  ;;  %v3546_v61 = vmul.f32 %v3524_v35, %v17924_v51  ;;  %4593 = vrot.lane.b32.xlu0 %v14487_v25, %s11534_s9  ;;  %10607 = vmatpush1.bf16.msra.mxu0 %v10606_v30  ;;  %v3504_v3 = vpop.permute.xlu1 %3503 }
 0x305   :  { %10272 = vmatmul.mubr.msk.f32.gmra.mrb[4].mxu1 %vm3110_vm13, %v3039_v21  ;;  %3636 = vmatprep.mubr.f32.mxu0 %v11552_v11  ;;  %v3533_v52 = vsel %vm302_vm2, %v3496_v31, %v3504_v3 }
 0x306   :  { %v10614_v34 = vpack.c.bf16 %v3545_v17, %v3541_v56  ;;  %v3498_v24 = vpop.permute.xlu0 %3497  ;;  %v10612_v42 = vpack.c.bf16 %v3546_v61, %v3542_v47  ;;  %4615 = vrot.lane.b32.xlu1 %v14493_v27, %s11534_s9  ;;  %3484 = vmatprep.mubr.f32.mxu1 %v11552_v11  ;;  %v3548_v32 = vmul.f32 %v3533_v52, %v17921_v46  ;;  %v10274_v47 = vld [vmem:[%s17316_s4 + $0x40] sm:$0xff] }
 0x308   :  { %4601 = vrot.lane.b32.xlu0 %v14500_v12, %s11534_s9  ;;  %10613 = vmatprep.subr.bf16.mxu1 %v10612_v42  ;;  %v3520_v59 = vpop.permute.xlu1 %3519 }
 0x309   :  { %10615 = vmatpush1.bf16.msra.mxu1 %v10614_v34  ;;  %v3537_v21 = vsel %vm302_vm2, %v3520_v59, %v3496_v31 }
 0x30a   :  { %v3506_v13 = vpop.permute.xlu0 %3505  ;;  %4607 = vrot.lane.b32.xlu1 %v14506_v18, %s11534_s9  ;;  %10273 = vmatmul.mubr.msk.f32.gmra.mrb[6].mxu1 %vm3110_vm13, %v3040_v50  ;;  %v3547_v20 = vmul.f32 %v3537_v21, %v17922_v55 }
 0x30b   :  { %v3534_v58 = vsel %vm302_vm2, %v3498_v24, %v3506_v13  ;;  %3725 = vmatprep.mubr.f32.mxu1 %v11552_v11 }
 0x30c   :  { %v3552_v53 = vmul.f32 %v3534_v58, %v17921_v46  ;;  %4617 = vrot.lane.b32.xlu0 %v14512_v2, %s11534_s9  ;;  %v3512_v28 = vpop.permute.xlu1 %3511 }
 0x30d   :  { %v3529_v46 = vsel %vm302_vm2, %v3504_v3, %v3512_v28  ;;  %v3525_v63 = vsel %vm302_vm2, %v3512_v28, %v3520_v59  ;;  %v17925_v59 = vld [vmem:[#allocation53_spill] sm:$0xff] }
 0x30e   :  { %v3522_v14 = vpop.permute.xlu0 %3521  ;;  %v10608_v57 = vpack.c.bf16 %v3552_v53, %v3548_v32  ;;  %4595 = vrot.lane.b32.xlu1 %v14518_v49, %s11534_s9  ;;  %v3549_v7 = vmul.f32 %v3529_v46, %v17923_v60  ;;  %v3550_v29 = vmul.f32 %v3525_v63, %v17924_v51  ;;  %v10276_v32 = vld [vmem:[%s17316_s4 + $0x50] sm:$0xff] }
 0x30f   :  { %v3538_v19 = vsel %vm302_vm2, %v3522_v14, %v3498_v24 }
 0x310   :  { %v3551_v26 = vmul.f32 %v3538_v19, %v17922_v55  ;;  %4609 = vrot.lane.b32.xlu0 %v14524_v62, %s11534_s9  ;;  %10609 = vmatprep.subr.bf16.mxu0 %v10608_v57  ;;  %v3767_v10 = vpop.permute.xlu1 %3766  ;;  %v17926_v57 = vld [vmem:[#allocation55_spill] sm:$0xff] }
 0x312   :  { %v10610_v31 = vpack.c.bf16 %v3551_v26, %v3547_v20  ;;  %v3514_v50 = vpop.permute.xlu0 %3513  ;;  %4603 = vrot.lane.b32.xlu1 %v14530_v44, %s11534_s9 }
 0x313   :  { %v3526_v55 = vsel %vm302_vm2, %v3514_v50, %v3522_v14  ;;  %v3530_v30 = vsel %vm302_vm2, %v3506_v13, %v3514_v50  ;;  %vm17968_vm2 = vmmov %vm17965_vm0 }
 0x314   :  { %v3553_v56 = vmul.f32 %v3530_v30, %v17923_v60  ;;  %v3554_v35 = vmul.f32 %v3526_v55, %v17924_v51  ;;  %4597 = vrot.lane.b32.xlu0 %v14536_v40, %s11534_s9  ;;  %10611 = vmatpush1.bf16.msra.mxu0 %v10610_v31  ;;  %v3775_v38 = vpop.permute.xlu1 %3774  ;;  %v10275_v51 = vld [vmem:[%s17316_s4 + $0x48] sm:$0xff] }
 0x315   :  { %v3806_v34 = vsel %vm415_vm3, %v3767_v10, %v3775_v38 }
 0x316   :  { %v10618_v17 = vpack.c.bf16 %v3553_v56, %v3549_v7  ;;  %v3769_v61 = vpop.permute.xlu0 %3768  ;;  %v10616_v3 = vpack.c.bf16 %v3554_v35, %v3550_v29  ;;  %4619 = vrot.lane.b32.xlu1 %v14542_v4, %s11534_s9  ;;  %v3815_v52 = vmul.f32 %v3806_v34, %v17925_v59  ;;  %v17927_v7 = vld [vmem:[#allocation54_spill] sm:$0xff]  ;;  %v17928_v56 = vld [vmem:[#allocation56_spill] sm:$0xff] }
 0x317   :  { %10278 = vmatmul.mubr.msk.f32.vlgmr.msra.gmra.mrb[0].mxu0 %vm3110_vm13, %v10274_v47 }
 0x318   :  { %4605 = vrot.lane.b32.xlu0 %v14548_v48, %s11534_s9  ;;  %10617 = vmatprep.subr.bf16.mxu1 %v10616_v3  ;;  %v3791_v60 = vpop.permute.xlu1 %3790 }
 0x319   :  { %10619 = vmatpush1.bf16.msra.mxu1 %v10618_v17  ;;  %3642 = vmatprep.mubr.f32.mxu0 %v11552_v11  ;;  %v3810_v53 = vsel %vm415_vm3, %v3791_v60, %v3767_v10  ;;  %v10277_v10 = vld [vmem:[%s17316_s4 + $0x58] sm:$0xff] }
 0x31a   :  { %v3777_v24 = vpop.permute.xlu0 %3776  ;;  %4611 = vrot.lane.b32.xlu1 %v14554_v8, %s11534_s9  ;;  %v3814_v19 = vmul.f32 %v3810_v53, %v17926_v57 }
 0x31b   :  { %v3807_v42 = vsel %vm415_vm3, %v3769_v61, %v3777_v24  ;;  %10279 = vmatmul.mubr.msk.f32.gmra.mrb[2].mxu0 %vm3110_vm13, %v10275_v51 }
 0x31c   :  { %v3819_v13 = vmul.f32 %v3807_v42, %v17925_v59  ;;  %4621 = vrot.lane.b32.xlu0 %v14560_v37, %s11534_s9  ;;  %v3783_v58 = vpop.permute.xlu1 %3782  ;;  %10282 = vmatmul.mubr.msk.f32.vlgmr.msra.gmra.mrb[0].mxu1 %vm3110_vm13, %v10274_v47 }
 0x31d   :  { %3648 = vmatprep.mubr.f32.mxu0 %v11552_v11  ;;  %3731 = vmatprep.mubr.f32.mxu1 %v11552_v11  ;;  %v3802_v26 = vsel %vm415_vm3, %v3775_v38, %v3783_v58  ;;  %v3798_v63 = vsel %vm415_vm3, %v3783_v58, %v3791_v60 }
 0x31e   :  { %v3793_v28 = vpop.permute.xlu0 %3792  ;;  %v10620_v21 = vpack.c.bf16 %v3819_v13, %v3815_v52  ;;  %4866 = vrot.lane.b32.xlu1 %v14466_v54, %s11535_s25  ;;  %v3816_v55 = vmul.f32 %v3802_v26, %v17927_v7  ;;  %v3817_v35 = vmul.f32 %v3798_v63, %v17928_v56 }
 0x31f   :  { %v3811_v14 = vsel %vm415_vm3, %v3793_v28, %v3769_v61  ;;  %10280 = vmatmul.mubr.msk.f32.gmra.mrb[4].mxu0 %vm3110_vm13, %v10276_v32 }
 0x320   :  { %v3818_v20 = vmul.f32 %v3811_v14, %v17926_v57  ;;  %4613 = vrot.lane.b32.xlu0 %v14568_v36, %s11534_s9  ;;  %10621 = vmatprep.subr.bf16.mxu0 %v10620_v21  ;;  %v3771_v46 = vpop.permute.xlu1 %3770 }
 0x321   :  { %10283 = vmatmul.mubr.msk.f32.gmra.mrb[2].mxu1 %vm3110_vm13, %v10275_v51  ;;  %3654 = vmatprep.mubr.f32.mxu0 %v11552_v11 }
 0x322   :  { %v10622_v31 = vpack.c.bf16 %v3818_v20, %v3814_v19  ;;  %v3785_v50 = vpop.permute.xlu0 %3784  ;;  %4874 = vrot.lane.b32.xlu1 %v14478_v45, %s11535_s25  ;;  %3737 = vmatprep.mubr.f32.mxu1 %v11552_v11 }
 0x323   :  { %v3799_v30 = vsel %vm415_vm3, %v3785_v50, %v3793_v28  ;;  %v3803_v29 = vsel %vm415_vm3, %v3777_v24, %v3785_v50  ;;  %10281 = vmatmul.mubr.msk.f32.gmra.mrb[6].mxu0 %vm3110_vm13, %v10277_v10 }
 0x324   :  { %v3820_v38 = vmul.f32 %v3803_v29, %v17927_v7  ;;  %v3821_v47 = vmul.f32 %v3799_v30, %v17928_v56  ;;  %4868 = vrot.lane.b32.xlu0 %v14487_v25, %s11535_s25  ;;  %10623 = vmatpush1.bf16.msra.mxu0 %v10622_v31  ;;  %v3779_v17 = vpop.permute.xlu1 %3778 }
 0x325   :  { %10284 = vmatmul.mubr.msk.f32.gmra.mrb[4].mxu1 %vm3110_vm13, %v10276_v32  ;;  %3911 = vmatprep.mubr.f32.mxu0 %v11552_v11  ;;  %v3808_v34 = vsel %vm415_vm3, %v3771_v46, %v3779_v17 }
 0x326   :  { %v10630_v61 = vpack.c.bf16 %v3820_v38, %v3816_v55  ;;  %v3773_v3 = vpop.permute.xlu0 %3772  ;;  %v10628_v60 = vpack.c.bf16 %v3821_v47, %v3817_v35  ;;  %4890 = vrot.lane.b32.xlu1 %v14493_v27, %s11535_s25  ;;  %3743 = vmatprep.mubr.f32.mxu1 %v11552_v11  ;;  %v3823_v52 = vmul.f32 %v3808_v34, %v17925_v59  ;;  %v10286_v35 = vld [vmem:[%s17316_s4 + $0x60] sm:$0xff] }
 0x328   :  { %4876 = vrot.lane.b32.xlu0 %v14500_v12, %s11535_s25  ;;  %10629 = vmatprep.subr.bf16.mxu1 %v10628_v60  ;;  %v3795_v51 = vpop.permute.xlu1 %3794 }
 0x329   :  { %10631 = vmatpush1.bf16.msra.mxu1 %v10630_v61  ;;  %v3812_v32 = vsel %vm415_vm3, %v3795_v51, %v3771_v46 }
 0x32a   :  { %v3781_v24 = vpop.permute.xlu0 %3780  ;;  %4882 = vrot.lane.b32.xlu1 %v14506_v18, %s11535_s25  ;;  %10285 = vmatmul.mubr.msk.f32.gmra.mrb[6].mxu1 %vm3110_vm13, %v10277_v10  ;;  %v3822_v14 = vmul.f32 %v3812_v32, %v17926_v57 }
 0x32b   :  { %v3809_v42 = vsel %vm415_vm3, %v3773_v3, %v3781_v24  ;;  %4000 = vmatprep.mubr.f32.mxu1 %v11552_v11 }
 0x32c   :  { %v3827_v13 = vmul.f32 %v3809_v42, %v17925_v59  ;;  %4892 = vrot.lane.b32.xlu0 %v14512_v2, %s11535_s25  ;;  %v3787_v58 = vpop.permute.xlu1 %3786 }
 0x32d   :  { %v3804_v59 = vsel %vm415_vm3, %v3779_v17, %v3787_v58  ;;  %v3800_v26 = vsel %vm415_vm3, %v3787_v58, %v3795_v51  ;;  %v17929_v51 = vld [vmem:[#allocation57_spill] sm:$0xff] }
 0x32e   :  { %v3797_v53 = vpop.permute.xlu0 %3796  ;;  %v10624_v28 = vpack.c.bf16 %v3827_v13, %v3823_v52  ;;  %4870 = vrot.lane.b32.xlu1 %v14518_v49, %s11535_s25  ;;  %v3824_v63 = vmul.f32 %v3804_v59, %v17927_v7  ;;  %v3825_v50 = vmul.f32 %v3800_v26, %v17928_v56  ;;  %v10288_v52 = vld [vmem:[%s17316_s4 + $0x70] sm:$0xff] }
 0x32f   :  { %v3813_v21 = vsel %vm415_vm3, %v3797_v53, %v3773_v3 }
 0x330   :  { %v3826_v19 = vmul.f32 %v3813_v21, %v17926_v57  ;;  %4884 = vrot.lane.b32.xlu0 %v14524_v62, %s11535_s25  ;;  %10625 = vmatprep.subr.bf16.mxu0 %v10624_v28  ;;  %v4042_v20 = vpop.permute.xlu1 %4041  ;;  %v17930_v28 = vld [vmem:[#allocation60_spill] sm:$0xff] }
 0x332   :  { %v10626_v46 = vpack.c.bf16 %v3826_v19, %v3822_v14  ;;  %v3789_v10 = vpop.permute.xlu0 %3788  ;;  %4878 = vrot.lane.b32.xlu1 %v14530_v44, %s11535_s25 }
 0x333   :  { %v3801_v57 = vsel %vm415_vm3, %v3789_v10, %v3797_v53  ;;  %v3805_v31 = vsel %vm415_vm3, %v3781_v24, %v3789_v10  ;;  %vm17969_vm3 = vmmov %vm17965_vm0 }
 0x334   :  { %v3828_v55 = vmul.f32 %v3805_v31, %v17927_v7  ;;  %v3829_v30 = vmul.f32 %v3801_v57, %v17928_v56  ;;  %4872 = vrot.lane.b32.xlu0 %v14536_v40, %s11535_s25  ;;  %10627 = vmatpush1.bf16.msra.mxu0 %v10626_v46  ;;  %v4050_v29 = vpop.permute.xlu1 %4049  ;;  %v10287_v56 = vld [vmem:[%s17316_s4 + $0x68] sm:$0xff] }
 0x335   :  { %v4081_v61 = vsel %vm528_vm4, %v4042_v20, %v4050_v29 }
 0x336   :  { %v10634_v38 = vpack.c.bf16 %v3828_v55, %v3824_v63  ;;  %v4044_v47 = vpop.permute.xlu0 %4043  ;;  %v10632_v17 = vpack.c.bf16 %v3829_v30, %v3825_v50  ;;  %4894 = vrot.lane.b32.xlu1 %v14542_v4, %s11535_s25  ;;  %v4090_v34 = vmul.f32 %v4081_v61, %v17929_v51  ;;  %v17931_v63 = vld [vmem:[#allocation59_spill] sm:$0xff]  ;;  %v17932_v55 = vld [vmem:[#allocation62_spill] sm:$0xff] }
 0x337   :  { %10290 = vmatmul.mubr.msk.f32.vlgmr.msra.gmra.mrb[0].mxu0 %vm3110_vm13, %v10286_v35 }
 0x338   :  { %4880 = vrot.lane.b32.xlu0 %v14548_v48, %s11535_s25  ;;  %10633 = vmatprep.subr.bf16.mxu1 %v10632_v17  ;;  %v4066_v7 = vpop.permute.xlu1 %4065 }
 0x339   :  { %10635 = vmatpush1.bf16.msra.mxu1 %v10634_v38  ;;  %3917 = vmatprep.mubr.f32.mxu0 %v11552_v11  ;;  %v4085_v13 = vsel %vm528_vm4, %v4066_v7, %v4042_v20  ;;  %v10289_v20 = vld [vmem:[%s17316_s4 + $0x78] sm:$0xff] }
 0x33a   :  { %v4052_v3 = vpop.permute.xlu0 %4051  ;;  %4886 = vrot.lane.b32.xlu1 %v14554_v8, %s11535_s25  ;;  %v4089_v21 = vmul.f32 %v4085_v13, %v17930_v28 }
 0x33b   :  { %v4082_v60 = vsel %vm528_vm4, %v4044_v47, %v4052_v3  ;;  %10291 = vmatmul.mubr.msk.f32.gmra.mrb[2].mxu0 %vm3110_vm13, %v10287_v56 }
 0x33c   :  { %v4094_v24 = vmul.f32 %v4082_v60, %v17929_v51  ;;  %4896 = vrot.lane.b32.xlu0 %v14560_v37, %s11535_s25  ;;  %v4058_v42 = vpop.permute.xlu1 %4057  ;;  %10294 = vmatmul.mubr.msk.f32.vlgmr.msra.gmra.mrb[0].mxu1 %vm3110_vm13, %v10286_v35 }
 0x33d   :  { %3923 = vmatprep.mubr.f32.mxu0 %v11552_v11  ;;  %4006 = vmatprep.mubr.f32.mxu1 %v11552_v11  ;;  %v4077_v19 = vsel %vm528_vm4, %v4050_v29, %v4058_v42  ;;  %v4073_v26 = vsel %vm528_vm4, %v4058_v42, %v4066_v7 }
 0x33e   :  { %v4068_v58 = vpop.permute.xlu0 %4067  ;;  %v10636_v32 = vpack.c.bf16 %v4094_v24, %v4090_v34  ;;  %5141 = vrot.lane.b32.xlu1 %v14466_v54, %s11536_s15  ;;  %v4091_v57 = vmul.f32 %v4077_v19, %v17931_v63  ;;  %v4092_v30 = vmul.f32 %v4073_v26, %v17932_v55 }
 0x33f   :  { %v4086_v53 = vsel %vm528_vm4, %v4068_v58, %v4044_v47  ;;  %10292 = vmatmul.mubr.msk.f32.gmra.mrb[4].mxu0 %vm3110_vm13, %v10288_v52 }
 0x340   :  { %v4093_v14 = vmul.f32 %v4086_v53, %v17930_v28  ;;  %4888 = vrot.lane.b32.xlu0 %v14568_v36, %s11535_s25  ;;  %10637 = vmatprep.subr.bf16.mxu0 %v10636_v32  ;;  %v4046_v59 = vpop.permute.xlu1 %4045 }
 0x341   :  { %10295 = vmatmul.mubr.msk.f32.gmra.mrb[2].mxu1 %vm3110_vm13, %v10287_v56  ;;  %3929 = vmatprep.mubr.f32.mxu0 %v11552_v11 }
 0x342   :  { %v10638_v46 = vpack.c.bf16 %v4093_v14, %v4089_v21  ;;  %v4060_v10 = vpop.permute.xlu0 %4059  ;;  %5149 = vrot.lane.b32.xlu1 %v14478_v45, %s11536_s15  ;;  %4012 = vmatprep.mubr.f32.mxu1 %v11552_v11 }
 0x343   :  { %v4074_v31 = vsel %vm528_vm4, %v4060_v10, %v4068_v58  ;;  %v4078_v50 = vsel %vm528_vm4, %v4052_v3, %v4060_v10  ;;  %10293 = vmatmul.mubr.msk.f32.gmra.mrb[6].mxu0 %vm3110_vm13, %v10289_v20 }
 0x344   :  { %v4095_v29 = vmul.f32 %v4078_v50, %v17931_v63  ;;  %v4096_v35 = vmul.f32 %v4074_v31, %v17932_v55  ;;  %5143 = vrot.lane.b32.xlu0 %v14487_v25, %s11536_s15  ;;  %10639 = vmatpush1.bf16.msra.mxu0 %v10638_v46  ;;  %v4054_v38 = vpop.permute.xlu1 %4053 }
 0x345   :  { %10296 = vmatmul.mubr.msk.f32.gmra.mrb[4].mxu1 %vm3110_vm13, %v10288_v52  ;;  %4186 = vmatprep.mubr.f32.mxu0 %v11552_v11  ;;  %v4083_v61 = vsel %vm528_vm4, %v4046_v59, %v4054_v38 }
 0x346   :  { %v10646_v47 = vpack.c.bf16 %v4095_v29, %v4091_v57  ;;  %v4048_v17 = vpop.permute.xlu0 %4047  ;;  %v10644_v7 = vpack.c.bf16 %v4096_v35, %v4092_v30  ;;  %5165 = vrot.lane.b32.xlu1 %v14493_v27, %s11536_s15  ;;  %4018 = vmatprep.mubr.f32.mxu1 %v11552_v11  ;;  %v4098_v34 = vmul.f32 %v4083_v61, %v17929_v51  ;;  %v10298_v30 = vld [vmem:[%s17316_s4 + $0x80] sm:$0xff] }
 0x348   :  { %5151 = vrot.lane.b32.xlu0 %v14500_v12, %s11536_s15  ;;  %10645 = vmatprep.subr.bf16.mxu1 %v10644_v7  ;;  %v4070_v56 = vpop.permute.xlu1 %4069 }
 0x349   :  { %10647 = vmatpush1.bf16.msra.mxu1 %v10646_v47  ;;  %v4087_v52 = vsel %vm528_vm4, %v4070_v56, %v4046_v59 }
 0x34a   :  { %v4056_v3 = vpop.permute.xlu0 %4055  ;;  %5157 = vrot.lane.b32.xlu1 %v14506_v18, %s11536_s15  ;;  %10297 = vmatmul.mubr.msk.f32.gmra.mrb[6].mxu1 %vm3110_vm13, %v10289_v20  ;;  %v4097_v53 = vmul.f32 %v4087_v52, %v17930_v28 }
 0x34b   :  { %v4084_v60 = vsel %vm528_vm4, %v4048_v17, %v4056_v3  ;;  %4275 = vmatprep.mubr.f32.mxu1 %v11552_v11 }
 0x34c   :  { %v4102_v24 = vmul.f32 %v4084_v60, %v17929_v51  ;;  %5167 = vrot.lane.b32.xlu0 %v14512_v2, %s11536_s15  ;;  %v4062_v42 = vpop.permute.xlu1 %4061 }
 0x34d   :  { %v4079_v51 = vsel %vm528_vm4, %v4054_v38, %v4062_v42  ;;  %v4075_v19 = vsel %vm528_vm4, %v4062_v42, %v4070_v56  ;;  %v17933_v56 = vld [vmem:[#allocation63_spill] sm:$0xff] }
 0x34e   :  { %v4072_v13 = vpop.permute.xlu0 %4071  ;;  %v10640_v58 = vpack.c.bf16 %v4102_v24, %v4098_v34  ;;  %5145 = vrot.lane.b32.xlu1 %v14518_v49, %s11536_s15  ;;  %v4099_v26 = vmul.f32 %v4079_v51, %v17931_v63  ;;  %v4100_v10 = vmul.f32 %v4075_v19, %v17932_v55  ;;  %v10300_v34 = vld [vmem:[%s17316_s4 + $0x90] sm:$0xff] }
 0x34f   :  { %v4088_v32 = vsel %vm528_vm4, %v4072_v13, %v4048_v17 }
 0x350   :  { %v4101_v21 = vmul.f32 %v4088_v32, %v17930_v28  ;;  %5159 = vrot.lane.b32.xlu0 %v14524_v62, %s11536_s15  ;;  %10641 = vmatprep.subr.bf16.mxu0 %v10640_v58  ;;  %v4317_v14 = vpop.permute.xlu1 %4316  ;;  %v17934_v58 = vld [vmem:[#allocation65_spill] sm:$0xff] }
 0x352   :  { %v10642_v59 = vpack.c.bf16 %v4101_v21, %v4097_v53  ;;  %v4064_v20 = vpop.permute.xlu0 %4063  ;;  %5153 = vrot.lane.b32.xlu1 %v14530_v44, %s11536_s15 }
 0x353   :  { %v4076_v28 = vsel %vm528_vm4, %v4064_v20, %v4072_v13  ;;  %v4080_v46 = vsel %vm528_vm4, %v4056_v3, %v4064_v20  ;;  %vm17971_vm4 = vmmov %vm17965_vm0 }
 0x354   :  { %v4103_v57 = vmul.f32 %v4080_v46, %v17931_v63  ;;  %v4104_v31 = vmul.f32 %v4076_v28, %v17932_v55  ;;  %5147 = vrot.lane.b32.xlu0 %v14536_v40, %s11536_s15  ;;  %10643 = vmatpush1.bf16.msra.mxu0 %v10642_v59  ;;  %v4325_v50 = vpop.permute.xlu1 %4324  ;;  %v10299_v55 = vld [vmem:[%s17316_s4 + $0x88] sm:$0xff] }
 0x355   :  { %v4356_v47 = vsel %vm641_vm5, %v4317_v14, %v4325_v50 }
 0x356   :  { %v10650_v29 = vpack.c.bf16 %v4103_v57, %v4099_v26  ;;  %v4319_v35 = vpop.permute.xlu0 %4318  ;;  %v10648_v38 = vpack.c.bf16 %v4104_v31, %v4100_v10  ;;  %5169 = vrot.lane.b32.xlu1 %v14542_v4, %s11536_s15  ;;  %v4365_v61 = vmul.f32 %v4356_v47, %v17933_v56  ;;  %v17935_v26 = vld [vmem:[#allocation64_spill] sm:$0xff]  ;;  %v17936_v57 = vld [vmem:[#allocation66_spill] sm:$0xff] }
 0x357   :  { %10302 = vmatmul.mubr.msk.f32.vlgmr.msra.gmra.mrb[0].mxu0 %vm3110_vm13, %v10298_v30 }
 0x358   :  { %5155 = vrot.lane.b32.xlu0 %v14548_v48, %s11536_s15  ;;  %10649 = vmatprep.subr.bf16.mxu1 %v10648_v38  ;;  %v4341_v63 = vpop.permute.xlu1 %4340 }
 0x359   :  { %10651 = vmatpush1.bf16.msra.mxu1 %v10650_v29  ;;  %4192 = vmatprep.mubr.f32.mxu0 %v11552_v11  ;;  %v4360_v24 = vsel %vm641_vm5, %v4341_v63, %v4317_v14  ;;  %v10301_v14 = vld [vmem:[%s17316_s4 + $0x98] sm:$0xff] }
 0x35a   :  { %v4327_v17 = vpop.permute.xlu0 %4326  ;;  %5161 = vrot.lane.b32.xlu1 %v14554_v8, %s11536_s15  ;;  %v4364_v32 = vmul.f32 %v4360_v24, %v17934_v58 }
 0x35b   :  { %v4357_v7 = vsel %vm641_vm5, %v4319_v35, %v4327_v17  ;;  %10303 = vmatmul.mubr.msk.f32.gmra.mrb[2].mxu0 %vm3110_vm13, %v10299_v55 }
 0x35c   :  { %v4369_v3 = vmul.f32 %v4357_v7, %v17933_v56  ;;  %5171 = vrot.lane.b32.xlu0 %v14560_v37, %s11536_s15  ;;  %v4333_v60 = vpop.permute.xlu1 %4332  ;;  %10306 = vmatmul.mubr.msk.f32.vlgmr.msra.gmra.mrb[0].mxu1 %vm3110_vm13, %v10298_v30 }
 0x35d   :  { %4198 = vmatprep.mubr.f32.mxu0 %v11552_v11  ;;  %4281 = vmatprep.mubr.f32.mxu1 %v11552_v11  ;;  %v4352_v21 = vsel %vm641_vm5, %v4325_v50, %v4333_v60  ;;  %v4348_v19 = vsel %vm641_vm5, %v4333_v60, %v4341_v63 }
 0x35e   :  { %v4343_v42 = vpop.permute.xlu0 %4342  ;;  %v10652_v52 = vpack.c.bf16 %v4369_v3, %v4365_v61  ;;  %5416 = vrot.lane.b32.xlu1 %v14466_v54, %s11537_s27  ;;  %v4366_v28 = vmul.f32 %v4352_v21, %v17935_v26  ;;  %v4367_v31 = vmul.f32 %v4348_v19, %v17936_v57 }
 0x35f   :  { %v4361_v13 = vsel %vm641_vm5, %v4343_v42, %v4319_v35  ;;  %10304 = vmatmul.mubr.msk.f32.gmra.mrb[4].mxu0 %vm3110_vm13, %v10300_v34 }
 0x360   :  { %v4368_v53 = vmul.f32 %v4361_v13, %v17934_v58  ;;  %5163 = vrot.lane.b32.xlu0 %v14568_v36, %s11536_s15  ;;  %10653 = vmatprep.subr.bf16.mxu0 %v10652_v52  ;;  %v4321_v51 = vpop.permute.xlu1 %4320 }
 0x361   :  { %10307 = vmatmul.mubr.msk.f32.gmra.mrb[2].mxu1 %vm3110_vm13, %v10299_v55  ;;  %4204 = vmatprep.mubr.f32.mxu0 %v11552_v11 }
 0x362   :  { %v10654_v59 = vpack.c.bf16 %v4368_v53, %v4364_v32  ;;  %v4335_v20 = vpop.permute.xlu0 %4334  ;;  %5424 = vrot.lane.b32.xlu1 %v14478_v45, %s11537_s27  ;;  %4287 = vmatprep.mubr.f32.mxu1 %v11552_v11 }
 0x363   :  { %v4349_v46 = vsel %vm641_vm5, %v4335_v20, %v4343_v42  ;;  %v4353_v10 = vsel %vm641_vm5, %v4327_v17, %v4335_v20  ;;  %10305 = vmatmul.mubr.msk.f32.gmra.mrb[6].mxu0 %vm3110_vm13, %v10301_v14 }
 0x364   :  { %v4370_v50 = vmul.f32 %v4353_v10, %v17935_v26  ;;  %v4371_v30 = vmul.f32 %v4349_v46, %v17936_v57  ;;  %5418 = vrot.lane.b32.xlu0 %v14487_v25, %s11537_s27  ;;  %10655 = vmatpush1.bf16.msra.mxu0 %v10654_v59  ;;  %v4329_v29 = vpop.permute.xlu1 %4328 }
 0x365   :  { %10308 = vmatmul.mubr.msk.f32.gmra.mrb[4].mxu1 %vm3110_vm13, %v10300_v34  ;;  %4461 = vmatprep.mubr.f32.mxu0 %v11552_v11  ;;  %v4358_v47 = vsel %vm641_vm5, %v4321_v51, %v4329_v29 }
 0x366   :  { %v10662_v35 = vpack.c.bf16 %v4370_v50, %v4366_v28  ;;  %v4323_v38 = vpop.permute.xlu0 %4322  ;;  %v10660_v63 = vpack.c.bf16 %v4371_v30, %v4367_v31  ;;  %5440 = vrot.lane.b32.xlu1 %v14493_v27, %s11537_s27  ;;  %4293 = vmatprep.mubr.f32.mxu1 %v11552_v11  ;;  %v4373_v61 = vmul.f32 %v4358_v47, %v17933_v56  ;;  %v10310_v31 = vld [vmem:[%s17316_s4 + $0xa0] sm:$0xff] }
 0x368   :  { %5426 = vrot.lane.b32.xlu0 %v14500_v12, %s11537_s27  ;;  %10661 = vmatprep.subr.bf16.mxu1 %v10660_v63  ;;  %v4345_v55 = vpop.permute.xlu1 %4344 }
 0x369   :  { %10663 = vmatpush1.bf16.msra.mxu1 %v10662_v35  ;;  %v4362_v34 = vsel %vm641_vm5, %v4345_v55, %v4321_v51 }
 0x36a   :  { %v4331_v17 = vpop.permute.xlu0 %4330  ;;  %5432 = vrot.lane.b32.xlu1 %v14506_v18, %s11537_s27  ;;  %10309 = vmatmul.mubr.msk.f32.gmra.mrb[6].mxu1 %vm3110_vm13, %v10301_v14  ;;  %v4372_v13 = vmul.f32 %v4362_v34, %v17934_v58 }
 0x36b   :  { %v4359_v7 = vsel %vm641_vm5, %v4323_v38, %v4331_v17  ;;  %4550 = vmatprep.mubr.f32.mxu1 %v11552_v11 }
 0x36c   :  { %v4377_v3 = vmul.f32 %v4359_v7, %v17933_v56  ;;  %5442 = vrot.lane.b32.xlu0 %v14512_v2, %s11537_s27  ;;  %v4337_v60 = vpop.permute.xlu1 %4336 }
 0x36d   :  { %v4354_v56 = vsel %vm641_vm5, %v4329_v29, %v4337_v60  ;;  %v4350_v21 = vsel %vm641_vm5, %v4337_v60, %v4345_v55  ;;  %v17937_v55 = vld [vmem:[#allocation67_spill] sm:$0xff] }
 0x36e   :  { %v4347_v24 = vpop.permute.xlu0 %4346  ;;  %v10656_v42 = vpack.c.bf16 %v4377_v3, %v4373_v61  ;;  %5420 = vrot.lane.b32.xlu1 %v14518_v49, %s11537_s27  ;;  %v4374_v19 = vmul.f32 %v4354_v56, %v17935_v26  ;;  %v4375_v20 = vmul.f32 %v4350_v21, %v17936_v57  ;;  %v10312_v61 = vld [vmem:[%s17316_s4 + $0xb0] sm:$0xff] }
 0x36f   :  { %v4363_v52 = vsel %vm641_vm5, %v4347_v24, %v4323_v38 }
 0x370   :  { %v4376_v32 = vmul.f32 %v4363_v52, %v17934_v58  ;;  %5434 = vrot.lane.b32.xlu0 %v14524_v62, %s11537_s27  ;;  %10657 = vmatprep.subr.bf16.mxu0 %v10656_v42  ;;  %v4592_v53 = vpop.permute.xlu1 %4591  ;;  %v17938_v42 = vld [vmem:[#allocation71_spill] sm:$0xff] }
 0x372   :  { %v10658_v51 = vpack.c.bf16 %v4376_v32, %v4372_v13  ;;  %v4339_v14 = vpop.permute.xlu0 %4338  ;;  %5428 = vrot.lane.b32.xlu1 %v14530_v44, %s11537_s27 }
 0x373   :  { %v4351_v58 = vsel %vm641_vm5, %v4339_v14, %v4347_v24  ;;  %v4355_v59 = vsel %vm641_vm5, %v4331_v17, %v4339_v14  ;;  %vm17972_vm5 = vmmov %vm17965_vm0 }
 0x374   :  { %v4378_v28 = vmul.f32 %v4355_v59, %v17935_v26  ;;  %v4379_v46 = vmul.f32 %v4351_v58, %v17936_v57  ;;  %5422 = vrot.lane.b32.xlu0 %v14536_v40, %s11537_s27  ;;  %10659 = vmatpush1.bf16.msra.mxu0 %v10658_v51  ;;  %v4600_v10 = vpop.permute.xlu1 %4599  ;;  %v10311_v57 = vld [vmem:[%s17316_s4 + $0xa8] sm:$0xff] }
 0x375   :  { %v4631_v35 = vsel %vm754_vm6, %v4592_v53, %v4600_v10 }
 0x376   :  { %v10666_v50 = vpack.c.bf16 %v4378_v28, %v4374_v19  ;;  %v4594_v30 = vpop.permute.xlu0 %4593  ;;  %v10664_v29 = vpack.c.bf16 %v4379_v46, %v4375_v20  ;;  %5444 = vrot.lane.b32.xlu1 %v14542_v4, %s11537_s27  ;;  %v4640_v47 = vmul.f32 %v4631_v35, %v17937_v55  ;;  %v17939_v19 = vld [vmem:[#allocation68_spill] sm:$0xff] }
 0x377   :  { %10314 = vmatmul.mubr.msk.f32.vlgmr.msra.gmra.mrb[0].mxu0 %vm3110_vm13, %v10310_v31  ;;  %v17940_v28 = vld [vmem:[#allocation72_spill] sm:$0xff] }
 0x378   :  { %5430 = vrot.lane.b32.xlu0 %v14548_v48, %s11537_s27  ;;  %10665 = vmatprep.subr.bf16.mxu1 %v10664_v29  ;;  %v4616_v26 = vpop.permute.xlu1 %4615 }
 0x379   :  { %10667 = vmatpush1.bf16.msra.mxu1 %v10666_v50  ;;  %4467 = vmatprep.mubr.f32.mxu0 %v11552_v11  ;;  %v4635_v3 = vsel %vm754_vm6, %v4616_v26, %v4592_v53  ;;  %v10313_v53 = vld [vmem:[%s17316_s4 + $0xb8] sm:$0xff] }
 0x37a   :  { %v4602_v38 = vpop.permute.xlu0 %4601  ;;  %5436 = vrot.lane.b32.xlu1 %v14554_v8, %s11537_s27  ;;  %v4639_v52 = vmul.f32 %v4635_v3, %v17938_v42 }
 0x37b   :  { %v4632_v63 = vsel %vm754_vm6, %v4594_v30, %v4602_v38  ;;  %10315 = vmatmul.mubr.msk.f32.gmra.mrb[2].mxu0 %vm3110_vm13, %v10311_v57 }
 0x37c   :  { %v4644_v17 = vmul.f32 %v4632_v63, %v17937_v55  ;;  %5446 = vrot.lane.b32.xlu0 %v14560_v37, %s11537_s27  ;;  %v4608_v7 = vpop.permute.xlu1 %4607  ;;  %10318 = vmatmul.mubr.msk.f32.vlgmr.msra.gmra.mrb[0].mxu1 %vm3110_vm13, %v10310_v31 }
 0x37d   :  { %4473 = vmatprep.mubr.f32.mxu0 %v11552_v11  ;;  %4556 = vmatprep.mubr.f32.mxu1 %v11552_v11  ;;  %v4627_v32 = vsel %vm754_vm6, %v4600_v10, %v4608_v7  ;;  %v4623_v21 = vsel %vm754_vm6, %v4608_v7, %v4616_v26 }
 0x37e   :  { %v4618_v60 = vpop.permute.xlu0 %4617  ;;  %v10668_v34 = vpack.c.bf16 %v4644_v17, %v4640_v47  ;;  %5691 = vrot.lane.b32.xlu1 %v14466_v54, %s11538_s19  ;;  %v4641_v58 = vmul.f32 %v4627_v32, %v17939_v19  ;;  %v4642_v46 = vmul.f32 %v4623_v21, %v17940_v28 }
 0x37f   :  { %v4636_v24 = vsel %vm754_vm6, %v4618_v60, %v4594_v30  ;;  %10316 = vmatmul.mubr.msk.f32.gmra.mrb[4].mxu0 %vm3110_vm13, %v10312_v61 }
 0x380   :  { %v4643_v13 = vmul.f32 %v4636_v24, %v17938_v42  ;;  %5438 = vrot.lane.b32.xlu0 %v14568_v36, %s11537_s27  ;;  %10669 = vmatprep.subr.bf16.mxu0 %v10668_v34  ;;  %v4596_v56 = vpop.permute.xlu1 %4595 }
 0x381   :  { %10319 = vmatmul.mubr.msk.f32.gmra.mrb[2].mxu1 %vm3110_vm13, %v10311_v57  ;;  %4479 = vmatprep.mubr.f32.mxu0 %v11552_v11 }
 0x382   :  { %v10670_v51 = vpack.c.bf16 %v4643_v13, %v4639_v52  ;;  %v4610_v14 = vpop.permute.xlu0 %4609  ;;  %5699 = vrot.lane.b32.xlu1 %v14478_v45, %s11538_s19  ;;  %4562 = vmatprep.mubr.f32.mxu1 %v11552_v11 }
 0x383   :  { %v4624_v59 = vsel %vm754_vm6, %v4610_v14, %v4618_v60  ;;  %v4628_v20 = vsel %vm754_vm6, %v4602_v38, %v4610_v14  ;;  %10317 = vmatmul.mubr.msk.f32.gmra.mrb[6].mxu0 %vm3110_vm13, %v10313_v53 }
 0x384   :  { %v4645_v10 = vmul.f32 %v4628_v20, %v17939_v19  ;;  %v4646_v31 = vmul.f32 %v4624_v59, %v17940_v28  ;;  %5693 = vrot.lane.b32.xlu0 %v14487_v25, %s11538_s19  ;;  %10671 = vmatpush1.bf16.msra.mxu0 %v10670_v51  ;;  %v4604_v50 = vpop.permute.xlu1 %4603 }
 0x385   :  { %10320 = vmatmul.mubr.msk.f32.gmra.mrb[4].mxu1 %vm3110_vm13, %v10312_v61  ;;  %4736 = vmatprep.mubr.f32.mxu0 %v11552_v11  ;;  %v4633_v35 = vsel %vm754_vm6, %v4596_v56, %v4604_v50 }
 0x386   :  { %v10678_v30 = vpack.c.bf16 %v4645_v10, %v4641_v58  ;;  %v4598_v29 = vpop.permute.xlu0 %4597  ;;  %v10676_v26 = vpack.c.bf16 %v4646_v31, %v4642_v46  ;;  %5715 = vrot.lane.b32.xlu1 %v14493_v27, %s11538_s19  ;;  %4568 = vmatprep.mubr.f32.mxu1 %v11552_v11  ;;  %v4648_v47 = vmul.f32 %v4633_v35, %v17937_v55  ;;  %v10322_v46 = vld [vmem:[%s17316_s4 + $0xc0] sm:$0xff] }
 0x388   :  { %5701 = vrot.lane.b32.xlu0 %v14500_v12, %s11538_s19  ;;  %10677 = vmatprep.subr.bf16.mxu1 %v10676_v26  ;;  %v4620_v57 = vpop.permute.xlu1 %4619 }
 0x389   :  { %10679 = vmatpush1.bf16.msra.mxu1 %v10678_v30  ;;  %v4637_v61 = vsel %vm754_vm6, %v4620_v57, %v4596_v56 }
 0x38a   :  { %v4606_v38 = vpop.permute.xlu0 %4605  ;;  %5707 = vrot.lane.b32.xlu1 %v14506_v18, %s11538_s19  ;;  %10321 = vmatmul.mubr.msk.f32.gmra.mrb[6].mxu1 %vm3110_vm13, %v10313_v53  ;;  %v4647_v24 = vmul.f32 %v4637_v61, %v17938_v42 }
 0x38b   :  { %v4634_v63 = vsel %vm754_vm6, %v4598_v29, %v4606_v38  ;;  %4825 = vmatprep.mubr.f32.mxu1 %v11552_v11 }
 0x38c   :  { %v4652_v17 = vmul.f32 %v4634_v63, %v17937_v55  ;;  %5717 = vrot.lane.b32.xlu0 %v14512_v2, %s11538_s19  ;;  %v4612_v7 = vpop.permute.xlu1 %4611 }
 0x38d   :  { %v4629_v55 = vsel %vm754_vm6, %v4604_v50, %v4612_v7  ;;  %v4625_v32 = vsel %vm754_vm6, %v4612_v7, %v4620_v57  ;;  %v17941_v57 = vld [vmem:[#allocation73_spill] sm:$0xff] }
 0x38e   :  { %v4622_v3 = vpop.permute.xlu0 %4621  ;;  %v10672_v60 = vpack.c.bf16 %v4652_v17, %v4648_v47  ;;  %5695 = vrot.lane.b32.xlu1 %v14518_v49, %s11538_s19  ;;  %v4649_v21 = vmul.f32 %v4629_v55, %v17939_v19  ;;  %v4650_v14 = vmul.f32 %v4625_v32, %v17940_v28  ;;  %v10324_v47 = vld [vmem:[%s17316_s4 + $0xd0] sm:$0xff] }
 0x38f   :  { %v4638_v34 = vsel %vm754_vm6, %v4622_v3, %v4598_v29 }
 0x390   :  { %v4651_v52 = vmul.f32 %v4638_v34, %v17938_v42  ;;  %5709 = vrot.lane.b32.xlu0 %v14524_v62, %s11538_s19  ;;  %10673 = vmatprep.subr.bf16.mxu0 %v10672_v60  ;;  %v4867_v13 = vpop.permute.xlu1 %4866  ;;  %v17942_v60 = vld [vmem:[#allocation74_spill] sm:$0xff] }
 0x392   :  { %v10674_v56 = vpack.c.bf16 %v4651_v52, %v4647_v24  ;;  %v4614_v53 = vpop.permute.xlu0 %4613  ;;  %5703 = vrot.lane.b32.xlu1 %v14530_v44, %s11538_s19 }
 0x393   :  { %v4626_v42 = vsel %vm754_vm6, %v4614_v53, %v4622_v3  ;;  %v4630_v51 = vsel %vm754_vm6, %v4606_v38, %v4614_v53  ;;  %vm17974_vm6 = vmmov %vm17965_vm0 }
 0x394   :  { %v4653_v58 = vmul.f32 %v4630_v51, %v17939_v19  ;;  %v4654_v59 = vmul.f32 %v4626_v42, %v17940_v28  ;;  %5697 = vrot.lane.b32.xlu0 %v14536_v40, %s11538_s19  ;;  %10675 = vmatpush1.bf16.msra.mxu0 %v10674_v56  ;;  %v4875_v20 = vpop.permute.xlu1 %4874  ;;  %v10323_v28 = vld [vmem:[%s17316_s4 + $0xc8] sm:$0xff] }
 0x395   :  { %v4906_v30 = vsel %vm867_vm7, %v4867_v13, %v4875_v20 }
 0x396   :  { %v10682_v10 = vpack.c.bf16 %v4653_v58, %v4649_v21  ;;  %v4869_v31 = vpop.permute.xlu0 %4868  ;;  %v10680_v50 = vpack.c.bf16 %v4654_v59, %v4650_v14  ;;  %5719 = vrot.lane.b32.xlu1 %v14542_v4, %s11538_s19  ;;  %v4915_v35 = vmul.f32 %v4906_v30, %v17941_v57  ;;  %v17943_v21 = vld [vmem:[#allocation75_spill] sm:$0xff]  ;;  %v17944_v58 = vld [vmem:[#allocation77_spill] sm:$0xff] }
 0x397   :  { %10326 = vmatmul.mubr.msk.f32.vlgmr.msra.gmra.mrb[0].mxu0 %vm3110_vm13, %v10322_v46 }
 0x398   :  { %5705 = vrot.lane.b32.xlu0 %v14548_v48, %s11538_s19  ;;  %10681 = vmatprep.subr.bf16.mxu1 %v10680_v50  ;;  %v4891_v19 = vpop.permute.xlu1 %4890 }
 0x399   :  { %10683 = vmatpush1.bf16.msra.mxu1 %v10682_v10  ;;  %4742 = vmatprep.mubr.f32.mxu0 %v11552_v11  ;;  %v4910_v17 = vsel %vm867_vm7, %v4891_v19, %v4867_v13  ;;  %v10325_v13 = vld [vmem:[%s17316_s4 + $0xd8] sm:$0xff] }
 0x39a   :  { %v4877_v29 = vpop.permute.xlu0 %4876  ;;  %5711 = vrot.lane.b32.xlu1 %v14554_v8, %s11538_s19  ;;  %v4914_v34 = vmul.f32 %v4910_v17, %v17942_v60 }
 0x39b   :  { %v4907_v26 = vsel %vm867_vm7, %v4869_v31, %v4877_v29  ;;  %10327 = vmatmul.mubr.msk.f32.gmra.mrb[2].mxu0 %vm3110_vm13, %v10323_v28 }
 0x39c   :  { %v4919_v38 = vmul.f32 %v4907_v26, %v17941_v57  ;;  %5721 = vrot.lane.b32.xlu0 %v14560_v37, %s11538_s19  ;;  %v4883_v63 = vpop.permute.xlu1 %4882  ;;  %10330 = vmatmul.mubr.msk.f32.vlgmr.msra.gmra.mrb[0].mxu1 %vm3110_vm13, %v10322_v46 }
 0x39d   :  { %4748 = vmatprep.mubr.f32.mxu0 %v11552_v11  ;;  %4831 = vmatprep.mubr.f32.mxu1 %v11552_v11  ;;  %v4902_v52 = vsel %vm867_vm7, %v4875_v20, %v4883_v63  ;;  %v4898_v32 = vsel %vm867_vm7, %v4883_v63, %v4891_v19 }
 0x39e   :  { %v4893_v7 = vpop.permute.xlu0 %4892  ;;  %v10684_v61 = vpack.c.bf16 %v4919_v38, %v4915_v35  ;;  %5966 = vrot.lane.b32.xlu1 %v14466_v54, %s11539_s12  ;;  %v4916_v42 = vmul.f32 %v4902_v52, %v17943_v21  ;;  %v4917_v59 = vmul.f32 %v4898_v32, %v17944_v58 }
 0x39f   :  { %v4911_v3 = vsel %vm867_vm7, %v4893_v7, %v4869_v31  ;;  %10328 = vmatmul.mubr.msk.f32.gmra.mrb[4].mxu0 %vm3110_vm13, %v10324_v47 }
 0x3a0   :  { %v4918_v24 = vmul.f32 %v4911_v3, %v17942_v60  ;;  %5713 = vrot.lane.b32.xlu0 %v14568_v36, %s11538_s19  ;;  %10685 = vmatprep.subr.bf16.mxu0 %v10684_v61  ;;  %v4871_v55 = vpop.permute.xlu1 %4870  ;;  %s18054_s19 = smov 96  }
 0x3a1   :  { %10331 = vmatmul.mubr.msk.f32.gmra.mrb[2].mxu1 %vm3110_vm13, %v10323_v28  ;;  %4754 = vmatprep.mubr.f32.mxu0 %v11552_v11 }
 0x3a2   :  { %v10686_v56 = vpack.c.bf16 %v4918_v24, %v4914_v34  ;;  %v4885_v53 = vpop.permute.xlu0 %4884  ;;  %5974 = vrot.lane.b32.xlu1 %v14478_v45, %s11539_s12  ;;  %4837 = vmatprep.mubr.f32.mxu1 %v11552_v11 }
 0x3a3   :  { %v4899_v51 = vsel %vm867_vm7, %v4885_v53, %v4893_v7  ;;  %v4903_v14 = vsel %vm867_vm7, %v4877_v29, %v4885_v53  ;;  %10329 = vmatmul.mubr.msk.f32.gmra.mrb[6].mxu0 %vm3110_vm13, %v10325_v13 }
 0x3a4   :  { %v4920_v20 = vmul.f32 %v4903_v14, %v17943_v21  ;;  %v4921_v46 = vmul.f32 %v4899_v51, %v17944_v58  ;;  %5968 = vrot.lane.b32.xlu0 %v14487_v25, %s11539_s12  ;;  %10687 = vmatpush1.bf16.msra.mxu0 %v10686_v56  ;;  %v4879_v10 = vpop.permute.xlu1 %4878 }
 0x3a5   :  { %10332 = vmatmul.mubr.msk.f32.gmra.mrb[4].mxu1 %vm3110_vm13, %v10324_v47  ;;  %5011 = vmatprep.mubr.f32.mxu0 %v11552_v11  ;;  %v4908_v30 = vsel %vm867_vm7, %v4871_v55, %v4879_v10 }
 0x3a6   :  { %v10694_v31 = vpack.c.bf16 %v4920_v20, %v4916_v42  ;;  %v4873_v50 = vpop.permute.xlu0 %4872  ;;  %v10692_v19 = vpack.c.bf16 %v4921_v46, %v4917_v59  ;;  %5990 = vrot.lane.b32.xlu1 %v14493_v27, %s11539_s12  ;;  %4843 = vmatprep.mubr.f32.mxu1 %v11552_v11  ;;  %v4923_v35 = vmul.f32 %v4908_v30, %v17941_v57  ;;  %v10334_v59 = vld [vmem:[%s17316_s4 + $0xe0] sm:$0xff] }
 0x3a8   :  { %5976 = vrot.lane.b32.xlu0 %v14500_v12, %s11539_s12  ;;  %10693 = vmatprep.subr.bf16.mxu1 %v10692_v19  ;;  %v4895_v28 = vpop.permute.xlu1 %4894 }
 0x3a9   :  { %10695 = vmatpush1.bf16.msra.mxu1 %v10694_v31  ;;  %v4912_v47 = vsel %vm867_vm7, %v4895_v28, %v4871_v55 }
 0x3aa   :  { %v4881_v29 = vpop.permute.xlu0 %4880  ;;  %5982 = vrot.lane.b32.xlu1 %v14506_v18, %s11539_s12  ;;  %10333 = vmatmul.mubr.msk.f32.gmra.mrb[6].mxu1 %vm3110_vm13, %v10325_v13  ;;  %v4922_v3 = vmul.f32 %v4912_v47, %v17942_v60 }
 0x3ab   :  { %v4909_v26 = vsel %vm867_vm7, %v4873_v50, %v4881_v29  ;;  %5100 = vmatprep.mubr.f32.mxu1 %v11552_v11 }
 0x3ac   :  { %v4927_v38 = vmul.f32 %v4909_v26, %v17941_v57  ;;  %5992 = vrot.lane.b32.xlu0 %v14512_v2, %s11539_s12  ;;  %v4887_v63 = vpop.permute.xlu1 %4886 }
 0x3ad   :  { %v4904_v57 = vsel %vm867_vm7, %v4879_v10, %v4887_v63  ;;  %v4900_v52 = vsel %vm867_vm7, %v4887_v63, %v4895_v28  ;;  %v17945_v28 = vld [vmem:[#allocation78_spill] sm:$0xff] }
 0x3ae   :  { %v4897_v17 = vpop.permute.xlu0 %4896  ;;  %v10688_v7 = vpack.c.bf16 %v4927_v38, %v4923_v35  ;;  %5970 = vrot.lane.b32.xlu1 %v14518_v49, %s11539_s12  ;;  %v4924_v32 = vmul.f32 %v4904_v57, %v17943_v21  ;;  %v4925_v53 = vmul.f32 %v4900_v52, %v17944_v58  ;;  %v10336_v35 = vld [vmem:[%s17316_s4 + $0xf0] sm:$0xff] }
 0x3af   :  { %v4913_v61 = vsel %vm867_vm7, %v4897_v17, %v4873_v50 }
 0x3b0   :  { %v4926_v34 = vmul.f32 %v4913_v61, %v17942_v60  ;;  %5984 = vrot.lane.b32.xlu0 %v14524_v62, %s11539_s12  ;;  %10689 = vmatprep.subr.bf16.mxu0 %v10688_v7  ;;  %v5142_v24 = vpop.permute.xlu1 %5141  ;;  %v17946_v7 = vld [vmem:[#allocation79_spill] sm:$0xff] }
 0x3b2   :  { %v10690_v55 = vpack.c.bf16 %v4926_v34, %v4922_v3  ;;  %v4889_v13 = vpop.permute.xlu0 %4888  ;;  %5978 = vrot.lane.b32.xlu1 %v14530_v44, %s11539_s12 }
 0x3b3   :  { %v4901_v60 = vsel %vm867_vm7, %v4889_v13, %v4897_v17  ;;  %v4905_v56 = vsel %vm867_vm7, %v4881_v29, %v4889_v13  ;;  %vm17975_vm7 = vmmov %vm17965_vm0 }
 0x3b4   :  { %v4928_v42 = vmul.f32 %v4905_v56, %v17943_v21  ;;  %v4929_v51 = vmul.f32 %v4901_v60, %v17944_v58  ;;  %5972 = vrot.lane.b32.xlu0 %v14536_v40, %s11539_s12  ;;  %10691 = vmatpush1.bf16.msra.mxu0 %v10690_v55  ;;  %v5150_v14 = vpop.permute.xlu1 %5149  ;;  %v10335_v58 = vld [vmem:[%s17316_s4 + $0xe8] sm:$0xff] }
 0x3b5   :  { %v5181_v31 = vsel %vm980_vm8, %v5142_v24, %v5150_v14 }
 0x3b6   :  { %v10698_v20 = vpack.c.bf16 %v4928_v42, %v4924_v32  ;;  %v5144_v46 = vpop.permute.xlu0 %5143  ;;  %v10696_v10 = vpack.c.bf16 %v4929_v51, %v4925_v53  ;;  %5994 = vrot.lane.b32.xlu1 %v14542_v4, %s11539_s12  ;;  %v5190_v30 = vmul.f32 %v5181_v31, %v17945_v28  ;;  %v17947_v32 = vld [vmem:[#allocation82_spill] sm:$0xff]  ;;  %v17948_v42 = vld [vmem:[#allocation83_spill] sm:$0xff] }
 0x3b7   :  { %10338 = vmatmul.mubr.msk.f32.vlgmr.msra.gmra.mrb[0].mxu0 %vm3110_vm13, %v10334_v59 }
 0x3b8   :  { %5980 = vrot.lane.b32.xlu0 %v14548_v48, %s11539_s12  ;;  %10697 = vmatprep.subr.bf16.mxu1 %v10696_v10  ;;  %v5166_v21 = vpop.permute.xlu1 %5165 }
 0x3b9   :  { %10699 = vmatpush1.bf16.msra.mxu1 %v10698_v20  ;;  %5017 = vmatprep.mubr.f32.mxu0 %v11552_v11  ;;  %v5185_v38 = vsel %vm980_vm8, %v5166_v21, %v5142_v24  ;;  %v10337_v24 = vld [vmem:[%s17316_s4 + $0xf8] sm:$0xff] }
 0x3ba   :  { %v5152_v50 = vpop.permute.xlu0 %5151  ;;  %5986 = vrot.lane.b32.xlu1 %v14554_v8, %s11539_s12  ;;  %v5189_v61 = vmul.f32 %v5185_v38, %v17946_v7 }
 0x3bb   :  { %v5182_v19 = vsel %vm980_vm8, %v5144_v46, %v5152_v50  ;;  %10339 = vmatmul.mubr.msk.f32.gmra.mrb[2].mxu0 %vm3110_vm13, %v10335_v58 }
 0x3bc   :  { %v5194_v29 = vmul.f32 %v5182_v19, %v17945_v28  ;;  %5996 = vrot.lane.b32.xlu0 %v14560_v37, %s11539_s12  ;;  %v5158_v26 = vpop.permute.xlu1 %5157  ;;  %10342 = vmatmul.mubr.msk.f32.vlgmr.msra.gmra.mrb[0].mxu1 %vm3110_vm13, %v10334_v59 }
 0x3bd   :  { %5023 = vmatprep.mubr.f32.mxu0 %v11552_v11  ;;  %5106 = vmatprep.mubr.f32.mxu1 %v11552_v11  ;;  %v5177_v34 = vsel %vm980_vm8, %v5150_v14, %v5158_v26  ;;  %v5173_v52 = vsel %vm980_vm8, %v5158_v26, %v5166_v21 }
 0x3be   :  { %v5168_v63 = vpop.permute.xlu0 %5167  ;;  %v10700_v47 = vpack.c.bf16 %v5194_v29, %v5190_v30  ;;  %6460 = vrot.lane.b32.xlu1 %v14478_v45, %s11540_s20  ;;  %v5191_v60 = vmul.f32 %v5177_v34, %v17947_v32  ;;  %v5192_v51 = vmul.f32 %v5173_v52, %v17948_v42 }
 0x3bf   :  { %v5186_v17 = vsel %vm980_vm8, %v5168_v63, %v5144_v46  ;;  %10340 = vmatmul.mubr.msk.f32.gmra.mrb[4].mxu0 %vm3110_vm13, %v10336_v35 }
 0x3c0   :  { %v5193_v3 = vmul.f32 %v5186_v17, %v17946_v7  ;;  %5988 = vrot.lane.b32.xlu0 %v14568_v36, %s11539_s12  ;;  %10701 = vmatprep.subr.bf16.mxu0 %v10700_v47  ;;  %v5146_v57 = vpop.permute.xlu1 %5145 }
 0x3c1   :  { %10343 = vmatmul.mubr.msk.f32.gmra.mrb[2].mxu1 %vm3110_vm13, %v10335_v58  ;;  %5029 = vmatprep.mubr.f32.mxu0 %v11552_v11 }
 0x3c2   :  { %v10702_v55 = vpack.c.bf16 %v5193_v3, %v5189_v61  ;;  %v5160_v13 = vpop.permute.xlu0 %5159  ;;  %6468 = vrot.lane.b32.xlu1 %v14506_v18, %s11540_s20  ;;  %5112 = vmatprep.mubr.f32.mxu1 %v11552_v11 }
 0x3c3   :  { %v5174_v56 = vsel %vm980_vm8, %v5160_v13, %v5168_v63  ;;  %v5178_v53 = vsel %vm980_vm8, %v5152_v50, %v5160_v13  ;;  %10341 = vmatmul.mubr.msk.f32.gmra.mrb[6].mxu0 %vm3110_vm13, %v10337_v24 }
 0x3c4   :  { %v5195_v14 = vmul.f32 %v5178_v53, %v17947_v32  ;;  %v5196_v59 = vmul.f32 %v5174_v56, %v17948_v42  ;;  %6462 = vrot.lane.b32.xlu0 %v14500_v12, %s11540_s20  ;;  %10703 = vmatpush1.bf16.msra.mxu0 %v10702_v55  ;;  %v5154_v20 = vpop.permute.xlu1 %5153 }
 0x3c5   :  { %10344 = vmatmul.mubr.msk.f32.gmra.mrb[4].mxu1 %vm3110_vm13, %v10336_v35  ;;  %5286 = vmatprep.mubr.f32.mxu0 %v11552_v11  ;;  %v5183_v31 = vsel %vm980_vm8, %v5146_v57, %v5154_v20 }
 0x3c6   :  { %v10710_v46 = vpack.c.bf16 %v5195_v14, %v5191_v60  ;;  %v5148_v10 = vpop.permute.xlu0 %5147  ;;  %v10708_v21 = vpack.c.bf16 %v5196_v59, %v5192_v51  ;;  %6452 = vrot.lane.b32.xlu1 %v14466_v54, %s11540_s20  ;;  %5118 = vmatprep.mubr.f32.mxu1 %v11552_v11  ;;  %v5198_v30 = vmul.f32 %v5183_v31, %v17945_v28  ;;  %v10346_v51 = vld [vmem:[%s17316_s4 + $0x100] sm:$0xff] }
 0x3c8   :  { %6470 = vrot.lane.b32.xlu0 %v14524_v62, %s11540_s20  ;;  %10709 = vmatprep.subr.bf16.mxu1 %v10708_v21  ;;  %v5170_v58 = vpop.permute.xlu1 %5169 }
 0x3c9   :  { %10711 = vmatpush1.bf16.msra.mxu1 %v10710_v46  ;;  %v5187_v35 = vsel %vm980_vm8, %v5170_v58, %v5146_v57 }
 0x3ca   :  { %v5156_v50 = vpop.permute.xlu0 %5155  ;;  %6476 = vrot.lane.b32.xlu1 %v14493_v27, %s11540_s20  ;;  %10345 = vmatmul.mubr.msk.f32.gmra.mrb[6].mxu1 %vm3110_vm13, %v10337_v24  ;;  %v5197_v17 = vmul.f32 %v5187_v35, %v17946_v7 }
 0x3cb   :  { %v5184_v19 = vsel %vm980_vm8, %v5148_v10, %v5156_v50  ;;  %5375 = vmatprep.mubr.f32.mxu1 %v11552_v11 }
 0x3cc   :  { %v5202_v29 = vmul.f32 %v5184_v19, %v17945_v28  ;;  %6454 = vrot.lane.b32.xlu0 %v14487_v25, %s11540_s20  ;;  %v5162_v26 = vpop.permute.xlu1 %5161 }
 0x3cd   :  { %v5179_v28 = vsel %vm980_vm8, %v5154_v20, %v5162_v26  ;;  %v5175_v34 = vsel %vm980_vm8, %v5162_v26, %v5170_v58  ;;  %v17949_v58 = vld [vmem:[#allocation85_spill] sm:$0xff] }
 0x3ce   :  { %v5172_v38 = vpop.permute.xlu0 %5171  ;;  %v10704_v63 = vpack.c.bf16 %v5202_v29, %v5198_v30  ;;  %6464 = vrot.lane.b32.xlu1 %v14530_v44, %s11540_s20  ;;  %v5199_v52 = vmul.f32 %v5179_v28, %v17947_v32  ;;  %v5200_v13 = vmul.f32 %v5175_v34, %v17948_v42  ;;  %v10348_v30 = vld [vmem:[%s17316_s4 + $0x110] sm:$0xff] }
 0x3cf   :  { %v5188_v47 = vsel %vm980_vm8, %v5172_v38, %v5148_v10 }
 0x3d0   :  { %v5201_v61 = vmul.f32 %v5188_v47, %v17946_v7  ;;  %6478 = vrot.lane.b32.xlu0 %v14512_v2, %s11540_s20  ;;  %10705 = vmatprep.subr.bf16.mxu0 %v10704_v63  ;;  %v5417_v3 = vpop.permute.xlu1 %5416  ;;  %v17950_v63 = vld [vmem:[#allocation86_spill] sm:$0xff] }
 0x3d2   :  { %v10706_v57 = vpack.c.bf16 %v5201_v61, %v5197_v17  ;;  %v5164_v24 = vpop.permute.xlu0 %5163  ;;  %6472 = vrot.lane.b32.xlu1 %v14554_v8, %s11540_s20 }
 0x3d3   :  { %v5176_v7 = vsel %vm980_vm8, %v5164_v24, %v5172_v38  ;;  %v5180_v55 = vsel %vm980_vm8, %v5156_v50, %v5164_v24  ;;  %vm17977_vm8 = vmmov %vm17965_vm0 }
 0x3d4   :  { %v5203_v60 = vmul.f32 %v5180_v55, %v17947_v32  ;;  %v5204_v56 = vmul.f32 %v5176_v7, %v17948_v42  ;;  %6466 = vrot.lane.b32.xlu0 %v14548_v48, %s11540_s20  ;;  %10707 = vmatpush1.bf16.msra.mxu0 %v10706_v57  ;;  %v5425_v53 = vpop.permute.xlu1 %5424  ;;  %v10347_v42 = vld [vmem:[%s17316_s4 + $0x108] sm:$0xff] }
 0x3d5   :  { %v5456_v46 = vsel %vm1093_vm9, %v5417_v3, %v5425_v53 }
 0x3d6   :  { %v10714_v14 = vpack.c.bf16 %v5203_v60, %v5199_v52  ;;  %v5419_v59 = vpop.permute.xlu0 %5418  ;;  %v10712_v20 = vpack.c.bf16 %v5204_v56, %v5200_v13  ;;  %6456 = vrot.lane.b32.xlu1 %v14518_v49, %s11540_s20  ;;  %v5465_v31 = vmul.f32 %v5456_v46, %v17949_v58  ;;  %v17951_v52 = vld [vmem:[#allocation89_spill] sm:$0xff]  ;;  %v17952_v60 = vld [vmem:[#allocation90_spill] sm:$0xff] }
 0x3d7   :  { %10350 = vmatmul.mubr.msk.f32.vlgmr.msra.gmra.mrb[0].mxu0 %vm3110_vm13, %v10346_v51 }
 0x3d8   :  { %6474 = vrot.lane.b32.xlu0 %v14568_v36, %s11540_s20  ;;  %10713 = vmatprep.subr.bf16.mxu1 %v10712_v20  ;;  %v5441_v32 = vpop.permute.xlu1 %5440 }
 0x3d9   :  { %10715 = vmatpush1.bf16.msra.mxu1 %v10714_v14  ;;  %5292 = vmatprep.mubr.f32.mxu0 %v11552_v11  ;;  %v5460_v29 = vsel %vm1093_vm9, %v5441_v32, %v5417_v3  ;;  %v10349_v3 = vld [vmem:[%s17316_s4 + $0x118] sm:$0xff] }
 0x3da   :  { %v5427_v10 = vpop.permute.xlu0 %5426  ;;  %6480 = vrot.lane.b32.xlu1 %v14542_v4, %s11540_s20  ;;  %v5464_v47 = vmul.f32 %v5460_v29, %v17950_v63 }
 0x3db   :  { %v5457_v21 = vsel %vm1093_vm9, %v5419_v59, %v5427_v10  ;;  %10351 = vmatmul.mubr.msk.f32.gmra.mrb[2].mxu0 %vm3110_vm13, %v10347_v42 }
 0x3dc   :  { %v5469_v50 = vmul.f32 %v5457_v21, %v17949_v58  ;;  %6458 = vrot.lane.b32.xlu0 %v14536_v40, %s11540_s20  ;;  %v5433_v19 = vpop.permute.xlu1 %5432  ;;  %10354 = vmatmul.mubr.msk.f32.vlgmr.msra.gmra.mrb[0].mxu1 %vm3110_vm13, %v10346_v51 }
 0x3dd   :  { %5298 = vmatprep.mubr.f32.mxu0 %v11552_v11  ;;  %5381 = vmatprep.mubr.f32.mxu1 %v11552_v11  ;;  %v5452_v61 = vsel %vm1093_vm9, %v5425_v53, %v5433_v19  ;;  %v5448_v34 = vsel %vm1093_vm9, %v5433_v19, %v5441_v32 }
 0x3de   :  { %v5443_v26 = vpop.permute.xlu0 %5442  ;;  %v10716_v35 = vpack.c.bf16 %v5469_v50, %v5465_v31  ;;  %6735 = vrot.lane.b32.xlu1 %v14478_v45, %s11541_s14  ;;  %v5466_v7 = vmul.f32 %v5452_v61, %v17951_v52  ;;  %v5467_v56 = vmul.f32 %v5448_v34, %v17952_v60 }
 0x3df   :  { %v5461_v38 = vsel %vm1093_vm9, %v5443_v26, %v5419_v59  ;;  %10352 = vmatmul.mubr.msk.f32.gmra.mrb[4].mxu0 %vm3110_vm13, %v10348_v30 }
 0x3e0   :  { %v5468_v17 = vmul.f32 %v5461_v38, %v17950_v63  ;;  %6482 = vrot.lane.b32.xlu0 %v14560_v37, %s11540_s20  ;;  %10717 = vmatprep.subr.bf16.mxu0 %v10716_v35  ;;  %v5421_v28 = vpop.permute.xlu1 %5420 }
 0x3e1   :  { %10355 = vmatmul.mubr.msk.f32.gmra.mrb[2].mxu1 %vm3110_vm13, %v10347_v42  ;;  %5304 = vmatprep.mubr.f32.mxu0 %v11552_v11 }
 0x3e2   :  { %v10718_v57 = vpack.c.bf16 %v5468_v17, %v5464_v47  ;;  %v5435_v24 = vpop.permute.xlu0 %5434  ;;  %6743 = vrot.lane.b32.xlu1 %v14506_v18, %s11541_s14  ;;  %5387 = vmatprep.mubr.f32.mxu1 %v11552_v11 }
 0x3e3   :  { %v5449_v55 = vsel %vm1093_vm9, %v5435_v24, %v5443_v26  ;;  %v5453_v13 = vsel %vm1093_vm9, %v5427_v10, %v5435_v24  ;;  %10353 = vmatmul.mubr.msk.f32.gmra.mrb[6].mxu0 %vm3110_vm13, %v10349_v3 }
 0x3e4   :  { %v5470_v53 = vmul.f32 %v5453_v13, %v17951_v52  ;;  %v5471_v51 = vmul.f32 %v5449_v55, %v17952_v60  ;;  %6737 = vrot.lane.b32.xlu0 %v14500_v12, %s11541_s14  ;;  %10719 = vmatpush1.bf16.msra.mxu0 %v10718_v57  ;;  %v5429_v14 = vpop.permute.xlu1 %5428 }
 0x3e5   :  { %10356 = vmatmul.mubr.msk.f32.gmra.mrb[4].mxu1 %vm3110_vm13, %v10348_v30  ;;  %5561 = vmatprep.mubr.f32.mxu0 %v11552_v11  ;;  %v5458_v46 = vsel %vm1093_vm9, %v5421_v28, %v5429_v14 }
 0x3e6   :  { %v10726_v59 = vpack.c.bf16 %v5470_v53, %v5466_v7  ;;  %v5423_v20 = vpop.permute.xlu0 %5422  ;;  %v10724_v32 = vpack.c.bf16 %v5471_v51, %v5467_v56  ;;  %6727 = vrot.lane.b32.xlu1 %v14466_v54, %s11541_s14  ;;  %5393 = vmatprep.mubr.f32.mxu1 %v11552_v11  ;;  %v5473_v31 = vmul.f32 %v5458_v46, %v17949_v58  ;;  %v10358_v56 = vld [vmem:[%s17316_s4 + $0x120] sm:$0xff] }
 0x3e8   :  { %6745 = vrot.lane.b32.xlu0 %v14524_v62, %s11541_s14  ;;  %10725 = vmatprep.subr.bf16.mxu1 %v10724_v32  ;;  %v5445_v42 = vpop.permute.xlu1 %5444 }
 0x3e9   :  { %10727 = vmatpush1.bf16.msra.mxu1 %v10726_v59  ;;  %v5462_v30 = vsel %vm1093_vm9, %v5445_v42, %v5421_v28 }
 0x3ea   :  { %v5431_v10 = vpop.permute.xlu0 %5430  ;;  %6751 = vrot.lane.b32.xlu1 %v14493_v27, %s11541_s14  ;;  %10357 = vmatmul.mubr.msk.f32.gmra.mrb[6].mxu1 %vm3110_vm13, %v10349_v3  ;;  %v5472_v38 = vmul.f32 %v5462_v30, %v17950_v63 }
 0x3eb   :  { %v5459_v21 = vsel %vm1093_vm9, %v5423_v20, %v5431_v10  ;;  %5650 = vmatprep.mubr.f32.mxu1 %v11552_v11 }
 0x3ec   :  { %v5477_v50 = vmul.f32 %v5459_v21, %v17949_v58  ;;  %6729 = vrot.lane.b32.xlu0 %v14487_v25, %s11541_s14  ;;  %v5437_v19 = vpop.permute.xlu1 %5436 }
 0x3ed   :  { %v5454_v58 = vsel %vm1093_vm9, %v5429_v14, %v5437_v19  ;;  %v5450_v61 = vsel %vm1093_vm9, %v5437_v19, %v5445_v42  ;;  %v17953_v42 = vld [vmem:[#allocation91_spill] sm:$0xff] }
 0x3ee   :  { %v5447_v29 = vpop.permute.xlu0 %5446  ;;  %v10720_v26 = vpack.c.bf16 %v5477_v50, %v5473_v31  ;;  %6739 = vrot.lane.b32.xlu1 %v14530_v44, %s11541_s14  ;;  %v5474_v34 = vmul.f32 %v5454_v58, %v17951_v52  ;;  %v5475_v24 = vmul.f32 %v5450_v61, %v17952_v60  ;;  %v10360_v31 = vld [vmem:[%s17316_s4 + $0x130] sm:$0xff] }
 0x3ef   :  { %v5463_v35 = vsel %vm1093_vm9, %v5447_v29, %v5423_v20 }
 0x3f0   :  { %v5476_v47 = vmul.f32 %v5463_v35, %v17950_v63  ;;  %6753 = vrot.lane.b32.xlu0 %v14512_v2, %s11541_s14  ;;  %10721 = vmatprep.subr.bf16.mxu0 %v10720_v26  ;;  %v5692_v17 = vpop.permute.xlu1 %5691  ;;  %v17954_v26 = vld [vmem:[#allocation11_spill] sm:$0xff] }
 0x3f2   :  { %v10722_v28 = vpack.c.bf16 %v5476_v47, %v5472_v38  ;;  %v5439_v3 = vpop.permute.xlu0 %5438  ;;  %6747 = vrot.lane.b32.xlu1 %v14554_v8, %s11541_s14 }
 0x3f3   :  { %v5451_v63 = vsel %vm1093_vm9, %v5439_v3, %v5447_v29  ;;  %v5455_v57 = vsel %vm1093_vm9, %v5431_v10, %v5439_v3  ;;  %vm17978_vm9 = vmmov %vm17965_vm0 }
 0x3f4   :  { %v5478_v7 = vmul.f32 %v5455_v57, %v17951_v52  ;;  %v5479_v55 = vmul.f32 %v5451_v63, %v17952_v60  ;;  %6741 = vrot.lane.b32.xlu0 %v14548_v48, %s11541_s14  ;;  %10723 = vmatpush1.bf16.msra.mxu0 %v10722_v28  ;;  %v5700_v13 = vpop.permute.xlu1 %5699  ;;  %v10359_v60 = vld [vmem:[%s17316_s4 + $0x128] sm:$0xff] }
 0x3f5   :  { %v5731_v59 = vsel %vm1206_vm10, %v5692_v17, %v5700_v13 }
 0x3f6   :  { %v10730_v53 = vpack.c.bf16 %v5478_v7, %v5474_v34  ;;  %v5694_v51 = vpop.permute.xlu0 %5693  ;;  %v10728_v14 = vpack.c.bf16 %v5479_v55, %v5475_v24  ;;  %6731 = vrot.lane.b32.xlu1 %v14518_v49, %s11541_s14  ;;  %v5740_v46 = vmul.f32 %v5731_v59, %v17953_v42  ;;  %v17955_v34 = vld [vmem:[#allocation9_spill] sm:$0xff]  ;;  %v17956_v7 = vld [vmem:[#allocation10_spill] sm:$0xff] }
 0x3f7   :  { %10362 = vmatmul.mubr.msk.f32.vlgmr.msra.gmra.mrb[0].mxu0 %vm3110_vm13, %v10358_v56 }
 0x3f8   :  { %6749 = vrot.lane.b32.xlu0 %v14568_v36, %s11541_s14  ;;  %10729 = vmatprep.subr.bf16.mxu1 %v10728_v14  ;;  %v5716_v52 = vpop.permute.xlu1 %5715 }
 0x3f9   :  { %10731 = vmatpush1.bf16.msra.mxu1 %v10730_v53  ;;  %5567 = vmatprep.mubr.f32.mxu0 %v11552_v11  ;;  %v5735_v50 = vsel %vm1206_vm10, %v5716_v52, %v5692_v17  ;;  %v10361_v17 = vld [vmem:[%s17316_s4 + $0x138] sm:$0xff] }
 0x3fa   :  { %v5702_v20 = vpop.permute.xlu0 %5701  ;;  %6755 = vrot.lane.b32.xlu1 %v14542_v4, %s11541_s14  ;;  %v5739_v35 = vmul.f32 %v5735_v50, %v17954_v26 }
 0x3fb   :  { %v5732_v32 = vsel %vm1206_vm10, %v5694_v51, %v5702_v20  ;;  %10363 = vmatmul.mubr.msk.f32.gmra.mrb[2].mxu0 %vm3110_vm13, %v10359_v60 }
 0x3fc   :  { %v5744_v10 = vmul.f32 %v5732_v32, %v17953_v42  ;;  %6733 = vrot.lane.b32.xlu0 %v14536_v40, %s11541_s14  ;;  %v5708_v21 = vpop.permute.xlu1 %5707  ;;  %10366 = vmatmul.mubr.msk.f32.vlgmr.msra.gmra.mrb[0].mxu1 %vm3110_vm13, %v10358_v56 }
 0x3fd   :  { %5573 = vmatprep.mubr.f32.mxu0 %v11552_v11  ;;  %5656 = vmatprep.mubr.f32.mxu1 %v11552_v11  ;;  %v5727_v47 = vsel %vm1206_vm10, %v5700_v13, %v5708_v21  ;;  %v5723_v61 = vsel %vm1206_vm10, %v5708_v21, %v5716_v52 }
 0x3fe   :  { %v5718_v19 = vpop.permute.xlu0 %5717  ;;  %v10732_v30 = vpack.c.bf16 %v5744_v10, %v5740_v46  ;;  %7010 = vrot.lane.b32.xlu1 %v14478_v45, %s11542_s10  ;;  %v5741_v63 = vmul.f32 %v5727_v47, %v17955_v34  ;;  %v5742_v55 = vmul.f32 %v5723_v61, %v17956_v7 }
 0x3ff   :  { %v5736_v29 = vsel %vm1206_vm10, %v5718_v19, %v5694_v51  ;;  %10364 = vmatmul.mubr.msk.f32.gmra.mrb[4].mxu0 %vm3110_vm13, %v10360_v31 }
 0x400   :  { %v5743_v38 = vmul.f32 %v5736_v29, %v17954_v26  ;;  %6757 = vrot.lane.b32.xlu0 %v14560_v37, %s11541_s14  ;;  %10733 = vmatprep.subr.bf16.mxu0 %v10732_v30  ;;  %v5696_v58 = vpop.permute.xlu1 %5695 }
 0x401   :  { %10367 = vmatmul.mubr.msk.f32.gmra.mrb[2].mxu1 %vm3110_vm13, %v10359_v60  ;;  %5579 = vmatprep.mubr.f32.mxu0 %v11552_v11 }
 0x402   :  { %v10734_v28 = vpack.c.bf16 %v5743_v38, %v5739_v35  ;;  %v5710_v3 = vpop.permute.xlu0 %5709  ;;  %7018 = vrot.lane.b32.xlu1 %v14506_v18, %s11542_s10  ;;  %5662 = vmatprep.mubr.f32.mxu1 %v11552_v11 }
 0x403   :  { %v5724_v57 = vsel %vm1206_vm10, %v5710_v3, %v5718_v19  ;;  %v5728_v24 = vsel %vm1206_vm10, %v5702_v20, %v5710_v3  ;;  %10365 = vmatmul.mubr.msk.f32.gmra.mrb[6].mxu0 %vm3110_vm13, %v10361_v17 }
 0x404   :  { %v5745_v13 = vmul.f32 %v5728_v24, %v17955_v34  ;;  %v5746_v56 = vmul.f32 %v5724_v57, %v17956_v7  ;;  %7012 = vrot.lane.b32.xlu0 %v14500_v12, %s11542_s10  ;;  %10735 = vmatpush1.bf16.msra.mxu0 %v10734_v28  ;;  %v5704_v53 = vpop.permute.xlu1 %5703 }
 0x405   :  { %10368 = vmatmul.mubr.msk.f32.gmra.mrb[4].mxu1 %vm3110_vm13, %v10360_v31  ;;  %5836 = vmatprep.mubr.f32.mxu0 %v11552_v11  ;;  %v5733_v59 = vsel %vm1206_vm10, %v5696_v58, %v5704_v53 }
 0x406   :  { %v10742_v51 = vpack.c.bf16 %v5745_v13, %v5741_v63  ;;  %v5698_v14 = vpop.permute.xlu0 %5697  ;;  %v10740_v52 = vpack.c.bf16 %v5746_v56, %v5742_v55  ;;  %7002 = vrot.lane.b32.xlu1 %v14466_v54, %s11542_s10  ;;  %5668 = vmatprep.mubr.f32.mxu1 %v11552_v11  ;;  %v5748_v46 = vmul.f32 %v5733_v59, %v17953_v42  ;;  %v10370_v55 = vld [vmem:[%s17316_s4 + $0x140] sm:$0xff] }
 0x408   :  { %7020 = vrot.lane.b32.xlu0 %v14524_v62, %s11542_s10  ;;  %10741 = vmatprep.subr.bf16.mxu1 %v10740_v52  ;;  %v5720_v60 = vpop.permute.xlu1 %5719 }
 0x409   :  { %10743 = vmatpush1.bf16.msra.mxu1 %v10742_v51  ;;  %v5737_v31 = vsel %vm1206_vm10, %v5720_v60, %v5696_v58 }
 0x40a   :  { %v5706_v20 = vpop.permute.xlu0 %5705  ;;  %7026 = vrot.lane.b32.xlu1 %v14493_v27, %s11542_s10  ;;  %10369 = vmatmul.mubr.msk.f32.gmra.mrb[6].mxu1 %vm3110_vm13, %v10361_v17  ;;  %v5747_v29 = vmul.f32 %v5737_v31, %v17954_v26 }
 0x40b   :  { %v5734_v32 = vsel %vm1206_vm10, %v5698_v14, %v5706_v20  ;;  %5925 = vmatprep.mubr.f32.mxu1 %v11552_v11 }
 0x40c   :  { %v5752_v10 = vmul.f32 %v5734_v32, %v17953_v42  ;;  %7004 = vrot.lane.b32.xlu0 %v14487_v25, %s11542_s10  ;;  %v5712_v21 = vpop.permute.xlu1 %5711 }
 0x40d   :  { %v5729_v42 = vsel %vm1206_vm10, %v5704_v53, %v5712_v21  ;;  %v5725_v47 = vsel %vm1206_vm10, %v5712_v21, %v5720_v60  ;;  %v17957_v60 = vld [vmem:[#allocation17_spill] sm:$0xff] }
 0x40e   :  { %v5722_v50 = vpop.permute.xlu0 %5721  ;;  %v10736_v19 = vpack.c.bf16 %v5752_v10, %v5748_v46  ;;  %7014 = vrot.lane.b32.xlu1 %v14530_v44, %s11542_s10  ;;  %v5749_v61 = vmul.f32 %v5729_v42, %v17955_v34  ;;  %v5750_v3 = vmul.f32 %v5725_v47, %v17956_v7  ;;  %v10372_v46 = vld [vmem:[%s17316_s4 + $0x150] sm:$0xff] }
 0x40f   :  { %v5738_v30 = vsel %vm1206_vm10, %v5722_v50, %v5698_v14 }
 0x410   :  { %v5751_v35 = vmul.f32 %v5738_v30, %v17954_v26  ;;  %7028 = vrot.lane.b32.xlu0 %v14512_v2, %s11542_s10  ;;  %10737 = vmatprep.subr.bf16.mxu0 %v10736_v19  ;;  %v5967_v38 = vpop.permute.xlu1 %5966  ;;  %v17958_v19 = vld [vmem:[#allocation13_spill] sm:$0xff] }
 0x412   :  { %v10738_v58 = vpack.c.bf16 %v5751_v35, %v5747_v29  ;;  %v5714_v17 = vpop.permute.xlu0 %5713  ;;  %7022 = vrot.lane.b32.xlu1 %v14554_v8, %s11542_s10 }
 0x413   :  { %v5726_v26 = vsel %vm1206_vm10, %v5714_v17, %v5722_v50  ;;  %v5730_v28 = vsel %vm1206_vm10, %v5706_v20, %v5714_v17  ;;  %vm17979_vm10 = vmmov %vm17965_vm0 }
 0x414   :  { %v5753_v63 = vmul.f32 %v5730_v28, %v17955_v34  ;;  %v5754_v57 = vmul.f32 %v5726_v26, %v17956_v7  ;;  %7016 = vrot.lane.b32.xlu0 %v14548_v48, %s11542_s10  ;;  %10739 = vmatpush1.bf16.msra.mxu0 %v10738_v58  ;;  %v5975_v24 = vpop.permute.xlu1 %5974  ;;  %v10371_v7 = vld [vmem:[%s17316_s4 + $0x148] sm:$0xff] }
 0x415   :  { %v6006_v51 = vsel %vm1319_vm11, %v5967_v38, %v5975_v24 }
 0x416   :  { %v10746_v13 = vpack.c.bf16 %v5753_v63, %v5749_v61  ;;  %v5969_v56 = vpop.permute.xlu0 %5968  ;;  %v10744_v53 = vpack.c.bf16 %v5754_v57, %v5750_v3  ;;  %7006 = vrot.lane.b32.xlu1 %v14518_v49, %s11542_s10  ;;  %v6015_v59 = vmul.f32 %v6006_v51, %v17957_v60  ;;  %v17959_v61 = vld [vmem:[#allocation20_spill] sm:$0xff]  ;;  %v17960_v63 = vld [vmem:[#allocation25_spill] sm:$0xff] }
 0x417   :  { %10374 = vmatmul.mubr.msk.f32.vlgmr.msra.gmra.mrb[0].mxu0 %vm3110_vm13, %v10370_v55 }
 0x418   :  { %7024 = vrot.lane.b32.xlu0 %v14568_v36, %s11542_s10  ;;  %10745 = vmatprep.subr.bf16.mxu1 %v10744_v53  ;;  %v5991_v34 = vpop.permute.xlu1 %5990 }
 0x419   :  { %10747 = vmatpush1.bf16.msra.mxu1 %v10746_v13  ;;  %5842 = vmatprep.mubr.f32.mxu0 %v11552_v11  ;;  %v6010_v10 = vsel %vm1319_vm11, %v5991_v34, %v5967_v38  ;;  %v10373_v38 = vld [vmem:[%s17316_s4 + $0x158] sm:$0xff] }
 0x41a   :  { %v5977_v14 = vpop.permute.xlu0 %5976  ;;  %7030 = vrot.lane.b32.xlu1 %v14542_v4, %s11542_s10  ;;  %v6014_v30 = vmul.f32 %v6010_v10, %v17958_v19 }
 0x41b   :  { %v6007_v52 = vsel %vm1319_vm11, %v5969_v56, %v5977_v14  ;;  %10375 = vmatmul.mubr.msk.f32.gmra.mrb[2].mxu0 %vm3110_vm13, %v10371_v7 }
 0x41c   :  { %v6019_v20 = vmul.f32 %v6007_v52, %v17957_v60  ;;  %7008 = vrot.lane.b32.xlu0 %v14536_v40, %s11542_s10  ;;  %v5983_v32 = vpop.permute.xlu1 %5982  ;;  %10378 = vmatmul.mubr.msk.f32.vlgmr.msra.gmra.mrb[0].mxu1 %vm3110_vm13, %v10370_v55 }
 0x41d   :  { %5848 = vmatprep.mubr.f32.mxu0 %v11552_v11  ;;  %5931 = vmatprep.mubr.f32.mxu1 %v11552_v11  ;;  %v6002_v35 = vsel %vm1319_vm11, %v5975_v24, %v5983_v32  ;;  %v5998_v47 = vsel %vm1319_vm11, %v5983_v32, %v5991_v34 }
 0x41e   :  { %v5993_v21 = vpop.permute.xlu0 %5992  ;;  %v10748_v31 = vpack.c.bf16 %v6019_v20, %v6015_v59  ;;  %7285 = vrot.lane.b32.xlu1 %v14478_v45, %s11543_s30  ;;  %v6016_v26 = vmul.f32 %v6002_v35, %v17959_v61  ;;  %v6017_v57 = vmul.f32 %v5998_v47, %v17960_v63 }
 0x41f   :  { %v6011_v50 = vsel %vm1319_vm11, %v5993_v21, %v5969_v56  ;;  %10376 = vmatmul.mubr.msk.f32.gmra.mrb[4].mxu0 %vm3110_vm13, %v10372_v46 }
 0x420   :  { %v6018_v29 = vmul.f32 %v6011_v50, %v17958_v19  ;;  %7032 = vrot.lane.b32.xlu0 %v14560_v37, %s11542_s10  ;;  %10749 = vmatprep.subr.bf16.mxu0 %v10748_v31  ;;  %v5971_v42 = vpop.permute.xlu1 %5970 }
 0x421   :  { %10379 = vmatmul.mubr.msk.f32.gmra.mrb[2].mxu1 %vm3110_vm13, %v10371_v7  ;;  %5854 = vmatprep.mubr.f32.mxu0 %v11552_v11 }
 0x422   :  { %v10750_v58 = vpack.c.bf16 %v6018_v29, %v6014_v30  ;;  %v5985_v17 = vpop.permute.xlu0 %5984  ;;  %7293 = vrot.lane.b32.xlu1 %v14506_v18, %s11543_s30  ;;  %5937 = vmatprep.mubr.f32.mxu1 %v11552_v11 }
 0x423   :  { %v5999_v28 = vsel %vm1319_vm11, %v5985_v17, %v5993_v21  ;;  %v6003_v3 = vsel %vm1319_vm11, %v5977_v14, %v5985_v17  ;;  %10377 = vmatmul.mubr.msk.f32.gmra.mrb[6].mxu0 %vm3110_vm13, %v10373_v38  ;;  %v10764_v17 = vpack.c.bf16 %v14500_v12, %v14478_v45 }
 0x424   :  { %v6020_v24 = vmul.f32 %v6003_v3, %v17959_v61  ;;  %v6021_v55 = vmul.f32 %v5999_v28, %v17960_v63  ;;  %7287 = vrot.lane.b32.xlu0 %v14500_v12, %s11543_s30  ;;  %10751 = vmatpush1.bf16.msra.mxu0 %v10750_v58  ;;  %v5979_v13 = vpop.permute.xlu1 %5978 }
 0x425   :  { %10380 = vmatmul.mubr.msk.f32.gmra.mrb[4].mxu1 %vm3110_vm13, %v10372_v46  ;;  %6111 = vmatprep.mubr.f32.mxu0 %v11552_v11  ;;  %v6008_v51 = vsel %vm1319_vm11, %v5971_v42, %v5979_v13 }
 0x426   :  { %v10758_v56 = vpack.c.bf16 %v6020_v24, %v6016_v26  ;;  %v5973_v53 = vpop.permute.xlu0 %5972  ;;  %v10756_v34 = vpack.c.bf16 %v6021_v55, %v6017_v57  ;;  %7277 = vrot.lane.b32.xlu1 %v14466_v54, %s11543_s30  ;;  %5943 = vmatprep.mubr.f32.mxu1 %v11552_v11  ;;  %v6023_v59 = vmul.f32 %v6008_v51, %v17957_v60  ;;  %v10382_v57 = vld [vmem:[%s17316_s4 + $0x160] sm:$0xff] }
 0x427   :  { %v10772_v51 = vpack.c.bf16 %v14512_v2, %v14493_v27 }
 0x428   :  { %7295 = vrot.lane.b32.xlu0 %v14524_v62, %s11543_s30  ;;  %10757 = vmatprep.subr.bf16.mxu1 %v10756_v34  ;;  %v5995_v7 = vpop.permute.xlu1 %5994 }
 0x429   :  { %10759 = vmatpush1.bf16.msra.mxu1 %v10758_v56  ;;  %v6012_v46 = vsel %vm1319_vm11, %v5995_v7, %v5971_v42 }
 0x42a   :  { %v5981_v14 = vpop.permute.xlu0 %5980  ;;  %7301 = vrot.lane.b32.xlu1 %v14493_v27, %s11543_s30  ;;  %10381 = vmatmul.mubr.msk.f32.gmra.mrb[6].mxu1 %vm3110_vm13, %v10373_v38  ;;  %v6022_v50 = vmul.f32 %v6012_v46, %v17958_v19 }
 0x42b   :  { %v6009_v52 = vsel %vm1319_vm11, %v5973_v53, %v5981_v14  ;;  %6200 = vmatprep.mubr.f32.mxu1 %v11552_v11 }
 0x42c   :  { %v6027_v20 = vmul.f32 %v6009_v52, %v17957_v60  ;;  %7279 = vrot.lane.b32.xlu0 %v14487_v25, %s11543_s30  ;;  %v5987_v32 = vpop.permute.xlu1 %5986 }
 0x42d   :  { %v6004_v60 = vsel %vm1319_vm11, %v5979_v13, %v5987_v32  ;;  %v6000_v35 = vsel %vm1319_vm11, %v5987_v32, %v5995_v7  ;;  %v17961_v32 = vld [vmem:[#allocation28_spill] sm:$0xff] }
 0x42e   :  { %v5997_v10 = vpop.permute.xlu0 %5996  ;;  %v10752_v21 = vpack.c.bf16 %v6027_v20, %v6023_v59  ;;  %7289 = vrot.lane.b32.xlu1 %v14530_v44, %s11543_s30  ;;  %v6024_v47 = vmul.f32 %v6004_v60, %v17959_v61  ;;  %v6025_v26 = vmul.f32 %v6000_v35, %v17960_v63  ;;  %v10770_v59 = vpack.c.bf16 %v14536_v40, %v14518_v49 }
 0x42f   :  { %v6013_v31 = vsel %vm1319_vm11, %v5997_v10, %v5973_v53  ;;  %v10383_v53 = vld [vmem:[%s17316_s4 + $0x168] sm:$0xff]  ;;  %v10774_v20 = vpack.c.bf16 %v14524_v62, %v14506_v18 }
 0x430   :  { %v6026_v30 = vmul.f32 %v6013_v31, %v17958_v19  ;;  %7303 = vrot.lane.b32.xlu0 %v14512_v2, %s11543_s30  ;;  %10753 = vmatprep.subr.bf16.mxu0 %v10752_v21  ;;  %v15912_v29 = vpop.permute.xlu1 %6460  ;;  %v10384_v21 = vld [vmem:[%s17316_s4 + $0x170] sm:$0xff] }
 0x432   :  { %v10754_v42 = vpack.c.bf16 %v6026_v30, %v6022_v50  ;;  %v5989_v38 = vpop.permute.xlu0 %5988  ;;  %7297 = vrot.lane.b32.xlu1 %v14554_v8, %s11543_s30  ;;  %v10776_v50 = vpack.c.bf16 %v14560_v37, %v14542_v4 }
 0x433   :  { %v6001_v19 = vsel %vm1319_vm11, %v5989_v38, %v5997_v10  ;;  %v6005_v58 = vsel %vm1319_vm11, %v5981_v14, %v5989_v38  ;;  %vm17980_vm11 = vmmov %vm17965_vm0 }
 0x434   :  { %v6028_v28 = vmul.f32 %v6005_v58, %v17959_v61  ;;  %v6029_v3 = vmul.f32 %v6001_v19, %v17960_v63  ;;  %7291 = vrot.lane.b32.xlu0 %v14548_v48, %s11543_s30  ;;  %10755 = vmatpush1.bf16.msra.mxu0 %v10754_v42  ;;  %v15933_v24 = vpop.permute.xlu1 %6468  ;;  %v10766_v61 = vpack.c.bf16 %v14487_v25, %v14466_v54  ;;  %v10385_v19 = vld [vmem:[%s17316_s4 + $0x178] sm:$0xff] }
 0x435   :  { %10765 = vmatprep.subr.bf16.mxu0 %v10764_v17  ;;  %v10768_v63 = vpack.c.bf16 %v14548_v48, %v14530_v44  ;;  %v6488_v7 = vsel %vm1489_vm12, %v15912_v29, %v15933_v24  ;;  %v10778_v42 = vpack.c.bf16 %v14568_v36, %v14554_v8 }
 0x436   :  { %v10762_v55 = vpack.c.bf16 %v6028_v28, %v6024_v47  ;;  %v6463_v13 = vpop.permute.xlu0 %6462  ;;  %v10760_v56 = vpack.c.bf16 %v6029_v3, %v6025_v26  ;;  %7281 = vrot.lane.b32.xlu1 %v14518_v49, %s11543_s30  ;;  %v6501_v46 = vmul.f32 %v6488_v7, %v17961_v32  ;;  %v17962_v26 = vld [vmem:[#allocation27_spill] sm:$0xff] }
 0x437   :  { %10386 = vmatmul.mubr.msk.f32.vlgmr.msra.gmra.mrb[0].mxu0 %vm3110_vm13, %v10382_v57 }
 0x438   :  { %7299 = vrot.lane.b32.xlu0 %v14568_v36, %s11543_s30  ;;  %10761 = vmatprep.subr.bf16.mxu1 %v10760_v56  ;;  %v6453_v34 = vpop.permute.xlu1 %6452 }
 0x439   :  { %10767 = vmatpush1.bf16.msra.mxu0 %v10766_v61  ;;  %10763 = vmatpush1.bf16.msra.mxu1 %v10762_v55  ;;  %v6492_v58 = vsel %vm1489_vm12, %v6453_v34, %v15912_v29 }
 0x43a   :  { %10769 = vmatprep.subr.bf16.mxu0 %v10768_v63  ;;  %6117 = vmatprep.mubr.f32.mxu0 %v11552_v11  ;;  %v6471_v14 = vpop.permute.xlu0 %6470  ;;  %v6500_v56 = vmul.f32 %v6492_v58, %v17962_v26  ;;  %v10394_v63 = vld [vmem:[%s17316_s4 + $0x180] sm:$0xff] }
 0x43b   :  { %10773 = vmatprep.subr.bf16.mxu1 %v10772_v51  ;;  %v6489_v52 = vsel %vm1489_vm12, %v6463_v13, %v6471_v14  ;;  %10387 = vmatmul.mubr.msk.f32.gmra.mrb[2].mxu0 %vm3110_vm13, %v10383_v53 }
 0x43c   :  { %v6505_v10 = vmul.f32 %v6489_v52, %v17961_v32  ;;  %7283 = vrot.lane.b32.xlu0 %v14536_v40, %s11543_s30  ;;  %10390 = vmatmul.mubr.msk.f32.vlgmr.msra.gmra.mrb[0].mxu1 %vm3110_vm13, %v10382_v57  ;;  %v6477_v31 = vpop.permute.xlu1 %6476  ;;  %v17963_v57 = vld [vmem:[#allocation32_spill] sm:$0xff] }
 0x43d   :  { %10771 = vmatpush1.bf16.msra.mxu0 %v10770_v59  ;;  %10775 = vmatpush1.bf16.msra.mxu1 %v10774_v20  ;;  %v6496_v47 = vsel %vm1489_vm12, %v6477_v31, %v6453_v34  ;;  %v6484_v51 = vsel %vm1489_vm12, %v15933_v24, %v6477_v31 }
 0x43e   :  { %7305 = vrot.lane.b32.xlu1 %v14542_v4, %s11543_s30  ;;  %6123 = vmatprep.mubr.f32.mxu0 %v11552_v11  ;;  %v6455_v30 = vpop.permute.xlu0 %6454  ;;  %v10780_v60 = vpack.c.bf16 %v6505_v10, %v6501_v46  ;;  %v6503_v55 = vmul.f32 %v6496_v47, %v17963_v57  ;;  %v10395_v46 = vld [vmem:[%s17316_s4 + $0x188] sm:$0xff] }
 0x43f   :  { %10777 = vmatprep.subr.bf16.mxu1 %v10776_v50  ;;  %10388 = vmatmul.mubr.msk.f32.gmra.mrb[4].mxu0 %vm3110_vm13, %v10384_v21  ;;  %v6493_v35 = vsel %vm1489_vm12, %v6455_v30, %v6463_v13 }
 0x440   :  { %6206 = vmatprep.mubr.f32.mxu1 %v11552_v11  ;;  %7307 = vrot.lane.b32.xlu0 %v14560_v37, %s11543_s30  ;;  %v6465_v38 = vpop.permute.xlu1 %6464  ;;  %v6504_v28 = vmul.f32 %v6493_v35, %v17962_v26 }
 0x441   :  { %10391 = vmatmul.mubr.msk.f32.gmra.mrb[2].mxu1 %vm3110_vm13, %v10383_v53  ;;  %10781 = vmatprep.subr.bf16.mxu0 %v10780_v60 }
 0x442   :  { %10779 = vmatpush1.bf16.msra.mxu1 %v10778_v42  ;;  %7560 = vrot.lane.b32.xlu1 %v14478_v45, %s11544_s13  ;;  %v6479_v17 = vpop.permute.xlu0 %6478  ;;  %v10782_v7 = vpack.c.bf16 %v6504_v28, %v6500_v56 }
 0x443   :  { %6129 = vmatprep.mubr.f32.mxu0 %v11552_v11  ;;  %v6497_v3 = vsel %vm1489_vm12, %v6479_v17, %v6455_v30  ;;  %6212 = vmatprep.mubr.f32.mxu1 %v11552_v11  ;;  %v6485_v61 = vsel %vm1489_vm12, %v6471_v14, %v6479_v17  ;;  %v17964_v14 = vld [vmem:[#allocation33_spill] sm:$0xff] }
 0x444   :  { %v6507_v13 = vmul.f32 %v6497_v3, %v17963_v57  ;;  %10389 = vmatmul.mubr.msk.f32.gmra.mrb[6].mxu0 %vm3110_vm13, %v10385_v19  ;;  %7562 = vrot.lane.b32.xlu0 %v14500_v12, %s11544_s13  ;;  %v6473_v29 = vpop.permute.xlu1 %6472  ;;  %v6506_v52 = vmul.f32 %v6485_v61, %v17964_v14  ;;  %v6502_v24 = vmul.f32 %v6484_v51, %v17964_v14 }
 0x445   :  { %10392 = vmatmul.mubr.msk.f32.gmra.mrb[4].mxu1 %vm3110_vm13, %v10384_v21  ;;  %6322 = vmatprep.mubr.f32.mxu0 %v11552_v11  ;;  %v6490_v20 = vsel %vm1489_vm12, %v6465_v38, %v6473_v29 }
 0x446   :  { %7568 = vrot.lane.b32.xlu1 %v14506_v18, %s11544_s13  ;;  %v6467_v53 = vpop.permute.xlu0 %6466  ;;  %6218 = vmatprep.mubr.f32.mxu1 %v11552_v11  ;;  %v10788_v34 = vpack.c.bf16 %v6507_v13, %v6503_v55  ;;  %v10790_v31 = vpack.c.bf16 %v6506_v52, %v6502_v24  ;;  %v6509_v50 = vmul.f32 %v6490_v20, %v17961_v32  ;;  %v10397_v13 = vld [vmem:[%s17316_s4 + $0x198] sm:$0xff]  ;;  %v10407_v24 = vld [vmem:[%s17316_s4 + $0x1a8] sm:$0xff] }
 0x448   :  { %10398 = vmatmul.mubr.msk.f32.vlgmr.msra.gmra.mrb[0].mxu0 %vm3110_vm13, %v10394_v63  ;;  %7570 = vrot.lane.b32.xlu0 %v14524_v62, %s11544_s13  ;;  %v6457_v59 = vpop.permute.xlu1 %6456 }
 0x449   :  { %10783 = vmatpush1.bf16.msra.mxu0 %v10782_v7  ;;  %10393 = vmatmul.mubr.msk.f32.gmra.mrb[6].mxu1 %vm3110_vm13, %v10385_v19  ;;  %v6494_v35 = vsel %vm1489_vm12, %v6457_v59, %v6465_v38 }
 0x44a   :  { %10789 = vmatprep.subr.bf16.mxu1 %v10788_v34  ;;  %7552 = vrot.lane.b32.xlu1 %v14466_v54, %s11544_s13  ;;  %v6475_v10 = vpop.permute.xlu0 %6474  ;;  %v6508_v38 = vmul.f32 %v6494_v35, %v17962_v26 }
 0x44b   :  { %v6491_v21 = vsel %vm1489_vm12, %v6467_v53, %v6475_v10  ;;  %6411 = vmatprep.mubr.f32.mxu1 %v11552_v11  ;;  %6328 = vmatprep.mubr.f32.mxu0 %v11552_v11 }
 0x44c   :  { %v6513_v30 = vmul.f32 %v6491_v21, %v17961_v32  ;;  %7554 = vrot.lane.b32.xlu0 %v14487_v25, %s11544_s13  ;;  %v6481_v60 = vpop.permute.xlu1 %6480  ;;  %10399 = vmatmul.mubr.msk.f32.gmra.mrb[2].mxu0 %vm3110_vm13, %v10395_v46  ;;  %v10396_v32 = vld [vmem:[%s17316_s4 + $0x190] sm:$0xff]  ;;  %v17967_v21 = vld [vmem:[#allocation61_spill] sm:$0xff] }
 0x44d   :  { %10402 = vmatmul.mubr.msk.f32.vlgmr.msra.gmra.mrb[0].mxu1 %vm3110_vm13, %v10394_v63  ;;  %6334 = vmatprep.mubr.f32.mxu0 %v11552_v11  ;;  %v6486_v17 = vsel %vm1489_vm12, %v6473_v29, %v6481_v60  ;;  %v6498_v3 = vsel %vm1489_vm12, %v6481_v60, %v6457_v59 }
 0x44e   :  { %10791 = vmatpush1.bf16.msra.mxu1 %v10790_v31  ;;  %7576 = vrot.lane.b32.xlu1 %v14493_v27, %s11544_s13  ;;  %v6459_v42 = vpop.permute.xlu0 %6458  ;;  %v10784_v47 = vpack.c.bf16 %v6513_v30, %v6509_v50  ;;  %v6510_v29 = vmul.f32 %v6486_v17, %v17964_v14  ;;  %v6511_v63 = vmul.f32 %v6498_v3, %v17963_v57 }
 0x44f   :  { %v6495_v19 = vsel %vm1489_vm12, %v6459_v42, %v6467_v53  ;;  %6417 = vmatprep.mubr.f32.mxu1 %v11552_v11 }
 0x450   :  { %v6512_v58 = vmul.f32 %v6495_v19, %v17962_v26  ;;  %7578 = vrot.lane.b32.xlu0 %v14512_v2, %s11544_s13  ;;  %10785 = vmatprep.subr.bf16.mxu0 %v10784_v47  ;;  %v6736_v28 = vpop.permute.xlu1 %6735  ;;  %v10408_v47 = vld [vmem:[%s17316_s4 + $0x1b0] sm:$0xff] }
 0x451   :  { %10400 = vmatmul.mubr.msk.f32.gmra.mrb[4].mxu0 %vm3110_vm13, %v10396_v32  ;;  %10403 = vmatmul.mubr.msk.f32.gmra.mrb[2].mxu1 %vm3110_vm13, %v10395_v46  ;;  %v17970_v19 = vld [vmem:[#allocation36_spill] sm:$0xff] }
 0x452   :  { %v10786_v55 = vpack.c.bf16 %v6512_v58, %v6508_v38  ;;  %7564 = vrot.lane.b32.xlu1 %v14530_v44, %s11544_s13  ;;  %v6483_v26 = vpop.permute.xlu0 %6482  ;;  %6340 = vmatprep.mubr.f32.mxu0 %v11552_v11 }
 0x453   :  { %v6487_v56 = vsel %vm1489_vm12, %v6475_v10, %v6483_v26  ;;  %v6499_v61 = vsel %vm1489_vm12, %v6483_v26, %v6459_v42  ;;  %6423 = vmatprep.mubr.f32.mxu1 %v11552_v11  ;;  %vm17981_vm12 = vmmov %vm17965_vm0 }
 0x454   :  { %v6514_v53 = vmul.f32 %v6487_v56, %v17964_v14  ;;  %v6515_v34 = vmul.f32 %v6499_v61, %v17963_v57  ;;  %7566 = vrot.lane.b32.xlu0 %v14548_v48, %s11544_s13  ;;  %10787 = vmatpush1.bf16.msra.mxu0 %v10786_v55  ;;  %v6744_v7 = vpop.permute.xlu1 %6743  ;;  %v10406_v57 = vld [vmem:[%s17316_s4 + $0x1a0] sm:$0xff] }
 0x455   :  { %10401 = vmatmul.mubr.msk.f32.gmra.mrb[6].mxu0 %vm3110_vm13, %v10397_v13  ;;  %10404 = vmatmul.mubr.msk.f32.gmra.mrb[4].mxu1 %vm3110_vm13, %v10396_v32  ;;  %v6763_v20 = vsel %vm17965_vm0, %v6736_v28, %v6744_v7 }
 0x456   :  { %v10794_v51 = vpack.c.bf16 %v6514_v53, %v6510_v29  ;;  %7572 = vrot.lane.b32.xlu1 %v14554_v8, %s11544_s13  ;;  %v6738_v52 = vpop.permute.xlu0 %6737  ;;  %v10792_v59 = vpack.c.bf16 %v6515_v34, %v6511_v63  ;;  %6597 = vmatprep.mubr.f32.mxu0 %v11552_v11  ;;  %v6776_v31 = vmul.f32 %v6763_v20, %v17967_v21  ;;  %v17973_v29 = vld [vmem:[#allocation70_spill] sm:$0xff]  ;;  %v17976_v53 = vld [vmem:[#allocation37_spill] sm:$0xff] }
 0x457   :  { %6429 = vmatprep.mubr.f32.mxu1 %v11552_v11 }
 0x458   :  { %7574 = vrot.lane.b32.xlu0 %v14568_v36, %s11544_s13  ;;  %10793 = vmatprep.subr.bf16.mxu1 %v10792_v59  ;;  %v6728_v14 = vpop.permute.xlu1 %6727 }
 0x459   :  { %10795 = vmatpush1.bf16.msra.mxu1 %v10794_v51  ;;  %10410 = vmatmul.mubr.msk.f32.vlgmr.msra.gmra.mrb[0].mxu0 %vm3110_vm13, %v10406_v57  ;;  %v6767_v60 = vsel %vm17968_vm2, %v6728_v14, %v6736_v28 }
 0x45a   :  { %7556 = vrot.lane.b32.xlu1 %v14518_v49, %s11544_s13  ;;  %v6746_v46 = vpop.permute.xlu0 %6745  ;;  %10405 = vmatmul.mubr.msk.f32.gmra.mrb[6].mxu1 %vm3110_vm13, %v10397_v13  ;;  %v6775_v38 = vmul.f32 %v6767_v60, %v17970_v19  ;;  %v10409_v13 = vld [vmem:[%s17316_s4 + $0x1b8] sm:$0xff] }
 0x45b   :  { %v6764_v10 = vsel %vm17966_vm1, %v6738_v52, %v6746_v46  ;;  %6686 = vmatprep.mubr.f32.mxu1 %v11552_v11  ;;  %6603 = vmatprep.mubr.f32.mxu0 %v11552_v11  ;;  %vm17984_vm1 = vcmp.lt.s32.totalorder %v12041_v41, 114 }
 0x45c   :  { %v6780_v50 = vmul.f32 %v6764_v10, %v17967_v21  ;;  %7558 = vrot.lane.b32.xlu0 %v14536_v40, %s11544_s13  ;;  %v6752_v30 = vpop.permute.xlu1 %6751  ;;  %vm17985_vm2 = vmmov %vm17984_vm1 }
 0x45d   :  { %10411 = vmatmul.mubr.msk.f32.gmra.mrb[2].mxu0 %vm3110_vm13, %v10407_v24  ;;  %v6759_v17 = vsel %vm17971_vm4, %v6744_v7, %v6752_v30  ;;  %v6771_v3 = vsel %vm17972_vm5, %v6752_v30, %v6728_v14  ;;  %vm17988_vm4 = vmmov %vm17984_vm1 }
 0x45e   :  { %7580 = vrot.lane.b32.xlu1 %v14542_v4, %s11544_s13  ;;  %v6730_v35 = vpop.permute.xlu0 %6729  ;;  %v10796_v42 = vpack.c.bf16 %v6780_v50, %v6776_v31  ;;  %10414 = vmatmul.mubr.msk.f32.vlgmr.msra.gmra.mrb[0].mxu1 %vm3110_vm13, %v10406_v57  ;;  %v6777_v56 = vmul.f32 %v6759_v17, %v17973_v29  ;;  %v6778_v34 = vmul.f32 %v6771_v3, %v17976_v53  ;;  %vm17990_vm5 = vmmov %vm17984_vm1 }
 0x45f   :  { %v6768_v32 = vsel %vm17969_vm3, %v6730_v35, %v6738_v52  ;;  %6609 = vmatprep.mubr.f32.mxu0 %v11552_v11  ;;  %6692 = vmatprep.mubr.f32.mxu1 %v11552_v11  ;;  %vm17987_vm3 = vmmov %vm17984_vm1 }
 0x460   :  { %v6779_v58 = vmul.f32 %v6768_v32, %v17970_v19  ;;  %7582 = vrot.lane.b32.xlu0 %v14560_v37, %s11544_s13  ;;  %10797 = vmatprep.subr.bf16.mxu0 %v10796_v42  ;;  %v6740_v28 = vpop.permute.xlu1 %6739  ;;  %s18033_s13 = smov 97  }
 0x461   :  { %10412 = vmatmul.mubr.msk.f32.gmra.mrb[4].mxu0 %vm3110_vm13, %v10408_v47 }
 0x462   :  { %v10798_v55 = vpack.c.bf16 %v6779_v58, %v6775_v38  ;;  %7835 = vrot.lane.b32.xlu1 %v14478_v45, %s11545_s18  ;;  %v6754_v26 = vpop.permute.xlu0 %6753  ;;  %10415 = vmatmul.mubr.msk.f32.gmra.mrb[2].mxu1 %vm3110_vm13, %v10407_v24 }
 0x463   :  { %v6760_v61 = vsel %vm17974_vm6, %v6746_v46, %v6754_v26  ;;  %v6772_v63 = vsel %vm17975_vm7, %v6754_v26, %v6730_v35  ;;  %6615 = vmatprep.mubr.f32.mxu0 %v11552_v11  ;;  %6698 = vmatprep.mubr.f32.mxu1 %v11552_v11  ;;  %vm17991_vm6 = vmmov %vm17984_vm1 }
 0x464   :  { %v6781_v7 = vmul.f32 %v6760_v61, %v17973_v29  ;;  %v6782_v51 = vmul.f32 %v6772_v63, %v17976_v53  ;;  %7837 = vrot.lane.b32.xlu0 %v14500_v12, %s11545_s18  ;;  %10799 = vmatpush1.bf16.msra.mxu0 %v10798_v55  ;;  %v6748_v52 = vpop.permute.xlu1 %6747  ;;  %vm17993_vm7 = vmmov %vm17984_vm1 }
 0x465   :  { %10413 = vmatmul.mubr.msk.f32.gmra.mrb[6].mxu0 %vm3110_vm13, %v10409_v13  ;;  %v6765_v46 = vsel %vm17977_vm8, %v6740_v28, %v6748_v52  ;;  %vm17994_vm8 = vmmov %vm17984_vm1 }
 0x466   :  { %v10806_v59 = vpack.c.bf16 %v6781_v7, %v6777_v56  ;;  %7843 = vrot.lane.b32.xlu1 %v14506_v18, %s11545_s18  ;;  %v6742_v57 = vpop.permute.xlu0 %6741  ;;  %v10804_v14 = vpack.c.bf16 %v6782_v51, %v6778_v34  ;;  %10416 = vmatmul.mubr.msk.f32.gmra.mrb[4].mxu1 %vm3110_vm13, %v10408_v47  ;;  %v6784_v31 = vmul.f32 %v6765_v46, %v17967_v21  ;;  %v10418_v34 = vld [vmem:[%s17316_s4 + $0x1c0] sm:$0xff] }
 0x467   :  { %6872 = vmatprep.mubr.f32.mxu0 %v11552_v11  ;;  %6704 = vmatprep.mubr.f32.mxu1 %v11552_v11 }
 0x468   :  { %7845 = vrot.lane.b32.xlu0 %v14524_v62, %s11545_s18  ;;  %10805 = vmatprep.subr.bf16.mxu1 %v10804_v14  ;;  %v6732_v20 = vpop.permute.xlu1 %6731 }
 0x469   :  { %10807 = vmatpush1.bf16.msra.mxu1 %v10806_v59  ;;  %v6769_v60 = vsel %vm17979_vm10, %v6732_v20, %v6740_v28  ;;  %vm17997_vm10 = vmmov %vm17984_vm1 }
 0x46a   :  { %7827 = vrot.lane.b32.xlu1 %v14466_v54, %s11545_s18  ;;  %v6750_v24 = vpop.permute.xlu0 %6749  ;;  %10417 = vmatmul.mubr.msk.f32.gmra.mrb[6].mxu1 %vm3110_vm13, %v10409_v13  ;;  %v6783_v32 = vmul.f32 %v6769_v60, %v17970_v19 }
 0x46b   :  { %v6766_v10 = vsel %vm17978_vm9, %v6742_v57, %v6750_v24  ;;  %6961 = vmatprep.mubr.f32.mxu1 %v11552_v11  ;;  %vm17996_vm9 = vmmov %vm17984_vm1 }
 0x46c   :  { %v6788_v50 = vmul.f32 %v6766_v10, %v17967_v21  ;;  %7829 = vrot.lane.b32.xlu0 %v14487_v25, %s11545_s18  ;;  %v6756_v30 = vpop.permute.xlu1 %6755 }
 0x46d   :  { %v6761_v21 = vsel %vm17981_vm12, %v6748_v52, %v6756_v30  ;;  %v6773_v17 = vsel %vm17982_vm15, %v6756_v30, %v6732_v20  ;;  %v17986_v20 = vld [vmem:[#allocation58_spill] sm:$0xff]  ;;  %vm17999_vm12 = vmmov %vm17984_vm1 }
 0x46e   :  { %7851 = vrot.lane.b32.xlu1 %v14493_v27, %s11545_s18  ;;  %v6734_v35 = vpop.permute.xlu0 %6733  ;;  %v10800_v42 = vpack.c.bf16 %v6788_v50, %v6784_v31  ;;  %v6785_v55 = vmul.f32 %v6761_v21, %v17973_v29  ;;  %v6786_v13 = vmul.f32 %v6773_v17, %v17976_v53  ;;  %v10420_v31 = vld [vmem:[%s17316_s4 + $0x1d0] sm:$0xff]  ;;  %vm18000_vm15 = vmmov %vm17984_vm1 }
 0x46f   :  { %v6770_v47 = vsel %vm17980_vm11, %v6734_v35, %v6742_v57  ;;  %vm17998_vm11 = vmmov %vm17984_vm1 }
 0x470   :  { %v6787_v38 = vmul.f32 %v6770_v47, %v17970_v19  ;;  %7853 = vrot.lane.b32.xlu0 %v14512_v2, %s11545_s18  ;;  %10801 = vmatprep.subr.bf16.mxu0 %v10800_v42  ;;  %v7011_v58 = vpop.permute.xlu1 %7010  ;;  %v17989_v42 = vld [vmem:[#allocation47_spill] sm:$0xff] }
 0x472   :  { %v10802_v28 = vpack.c.bf16 %v6787_v38, %v6783_v32  ;;  %7839 = vrot.lane.b32.xlu1 %v14530_v44, %s11545_s18  ;;  %v6758_v3 = vpop.permute.xlu0 %6757 }
 0x473   :  { %v6762_v19 = vsel %vm17983_vm14, %v6750_v24, %v6758_v3  ;;  %v6774_v26 = vsel %vm17965_vm0, %v6758_v3, %v6734_v35  ;;  %vm18001_vm14 = vmmov %vm17984_vm1 }
 0x474   :  { %v6789_v56 = vmul.f32 %v6762_v19, %v17973_v29  ;;  %v6790_v61 = vmul.f32 %v6774_v26, %v17976_v53  ;;  %7841 = vrot.lane.b32.xlu0 %v14548_v48, %s11545_s18  ;;  %10803 = vmatpush1.bf16.msra.mxu0 %v10802_v28  ;;  %v7019_v63 = vpop.permute.xlu1 %7018  ;;  %v10419_v53 = vld [vmem:[%s17316_s4 + $0x1c8] sm:$0xff]  ;;  %vm18002_vm0 = vmmov %vm17984_vm1 }
 0x475   :  { %v7038_v59 = vsel %vm17984_vm1, %v7011_v58, %v7019_v63  ;;  %vm18003_vm1 = vmmov %vm18002_vm0 }
 0x476   :  { %v10810_v7 = vpack.c.bf16 %v6789_v56, %v6785_v55  ;;  %7847 = vrot.lane.b32.xlu1 %v14554_v8, %s11545_s18  ;;  %v7013_v51 = vpop.permute.xlu0 %7012  ;;  %v10808_v52 = vpack.c.bf16 %v6790_v61, %v6786_v13  ;;  %v7051_v46 = vmul.f32 %v7038_v59, %v17986_v20  ;;  %v17992_v55 = vld [vmem:[#allocation84_spill] sm:$0xff]  ;;  %v17995_v56 = vld [vmem:[#allocation93_spill] sm:$0xff] }
 0x477   :  { %10422 = vmatmul.mubr.msk.f32.vlgmr.msra.gmra.mrb[0].mxu0 %vm3110_vm13, %v10418_v34 }
 0x478   :  { %7849 = vrot.lane.b32.xlu0 %v14568_v36, %s11545_s18  ;;  %10809 = vmatprep.subr.bf16.mxu1 %v10808_v52  ;;  %v7003_v29 = vpop.permute.xlu1 %7002 }
 0x479   :  { %10811 = vmatpush1.bf16.msra.mxu1 %v10810_v7  ;;  %6878 = vmatprep.mubr.f32.mxu0 %v11552_v11  ;;  %v7042_v50 = vsel %vm17987_vm3, %v7003_v29, %v7011_v58  ;;  %v10421_v58 = vld [vmem:[%s17316_s4 + $0x1d8] sm:$0xff] }
 0x47a   :  { %7831 = vrot.lane.b32.xlu1 %v14518_v49, %s11545_s18  ;;  %v7021_v57 = vpop.permute.xlu0 %7020  ;;  %v7050_v47 = vmul.f32 %v7042_v50, %v17989_v42 }
 0x47b   :  { %v7039_v14 = vsel %vm17985_vm2, %v7013_v51, %v7021_v57  ;;  %10423 = vmatmul.mubr.msk.f32.gmra.mrb[2].mxu0 %vm3110_vm13, %v10419_v53  ;;  %vm18004_vm2 = vcmp.lt.s32.totalorder %v12041_v41, 113 }
 0x47c   :  { %v7055_v24 = vmul.f32 %v7039_v14, %v17986_v20  ;;  %7833 = vrot.lane.b32.xlu0 %v14536_v40, %s11545_s18  ;;  %v7027_v10 = vpop.permute.xlu1 %7026  ;;  %10426 = vmatmul.mubr.msk.f32.vlgmr.msra.gmra.mrb[0].mxu1 %vm3110_vm13, %v10418_v34  ;;  %vm18005_vm3 = vmmov %vm18004_vm2 }
 0x47d   :  { %6884 = vmatprep.mubr.f32.mxu0 %v11552_v11  ;;  %6967 = vmatprep.mubr.f32.mxu1 %v11552_v11  ;;  %v7034_v38 = vsel %vm17990_vm5, %v7019_v63, %v7027_v10  ;;  %v7046_v17 = vsel %vm17991_vm6, %v7027_v10, %v7003_v29  ;;  %vm18008_vm5 = vmmov %vm18004_vm2 }
 0x47e   :  { %7855 = vrot.lane.b32.xlu1 %v14542_v4, %s11545_s18  ;;  %v7005_v30 = vpop.permute.xlu0 %7004  ;;  %v10812_v60 = vpack.c.bf16 %v7055_v24, %v7051_v46  ;;  %v7052_v19 = vmul.f32 %v7034_v38, %v17992_v55  ;;  %v7053_v61 = vmul.f32 %v7046_v17, %v17995_v56  ;;  %vm18010_vm6 = vmmov %vm18004_vm2 }
 0x47f   :  { %v7043_v35 = vsel %vm17988_vm4, %v7005_v30, %v7013_v51  ;;  %10424 = vmatmul.mubr.msk.f32.gmra.mrb[4].mxu0 %vm3110_vm13, %v10420_v31  ;;  %vm18007_vm4 = vmmov %vm18004_vm2 }
 0x480   :  { %v7054_v32 = vmul.f32 %v7043_v35, %v17989_v42  ;;  %7857 = vrot.lane.b32.xlu0 %v14560_v37, %s11545_s18  ;;  %10813 = vmatprep.subr.bf16.mxu0 %v10812_v60  ;;  %v7015_v21 = vpop.permute.xlu1 %7014 }
 0x481   :  { %10427 = vmatmul.mubr.msk.f32.gmra.mrb[2].mxu1 %vm3110_vm13, %v10419_v53  ;;  %6890 = vmatprep.mubr.f32.mxu0 %v11552_v11 }
 0x482   :  { %v10814_v28 = vpack.c.bf16 %v7054_v32, %v7050_v47  ;;  %8110 = vrot.lane.b32.xlu1 %v14478_v45, %s11546_s24  ;;  %v7029_v3 = vpop.permute.xlu0 %7028  ;;  %6973 = vmatprep.mubr.f32.mxu1 %v11552_v11 }
 0x483   :  { %v7035_v26 = vsel %vm17993_vm7, %v7021_v57, %v7029_v3  ;;  %v7047_v13 = vsel %vm17994_vm8, %v7029_v3, %v7005_v30  ;;  %10425 = vmatmul.mubr.msk.f32.gmra.mrb[6].mxu0 %vm3110_vm13, %v10421_v58  ;;  %vm18011_vm7 = vmmov %vm18004_vm2 }
 0x484   :  { %v7056_v63 = vmul.f32 %v7035_v26, %v17992_v55  ;;  %v7057_v34 = vmul.f32 %v7047_v13, %v17995_v56  ;;  %8112 = vrot.lane.b32.xlu0 %v14500_v12, %s11546_s24  ;;  %10815 = vmatpush1.bf16.msra.mxu0 %v10814_v28  ;;  %v7023_v7 = vpop.permute.xlu1 %7022  ;;  %vm18014_vm8 = vmmov %vm18004_vm2 }
 0x485   :  { %10428 = vmatmul.mubr.msk.f32.gmra.mrb[4].mxu1 %vm3110_vm13, %v10420_v31  ;;  %7147 = vmatprep.mubr.f32.mxu0 %v11552_v11  ;;  %v7040_v59 = vsel %vm17996_vm9, %v7015_v21, %v7023_v7  ;;  %vm18015_vm9 = vmmov %vm18004_vm2 }
 0x486   :  { %v10822_v51 = vpack.c.bf16 %v7056_v63, %v7052_v19  ;;  %8118 = vrot.lane.b32.xlu1 %v14506_v18, %s11546_s24  ;;  %v7017_v52 = vpop.permute.xlu0 %7016  ;;  %v10820_v29 = vpack.c.bf16 %v7057_v34, %v7053_v61  ;;  %6979 = vmatprep.mubr.f32.mxu1 %v11552_v11  ;;  %v7059_v46 = vmul.f32 %v7040_v59, %v17986_v20  ;;  %v10430_v61 = vld [vmem:[%s17316_s4 + $0x1e0] sm:$0xff] }
 0x488   :  { %8120 = vrot.lane.b32.xlu0 %v14524_v62, %s11546_s24  ;;  %10821 = vmatprep.subr.bf16.mxu1 %v10820_v29  ;;  %v7007_v53 = vpop.permute.xlu1 %7006 }
 0x489   :  { %10823 = vmatpush1.bf16.msra.mxu1 %v10822_v51  ;;  %v7044_v31 = vsel %vm17998_vm11, %v7007_v53, %v7015_v21  ;;  %vm18018_vm11 = vmmov %vm18004_vm2 }
 0x48a   :  { %8102 = vrot.lane.b32.xlu1 %v14466_v54, %s11546_s24  ;;  %v7025_v57 = vpop.permute.xlu0 %7024  ;;  %10429 = vmatmul.mubr.msk.f32.gmra.mrb[6].mxu1 %vm3110_vm13, %v10421_v58  ;;  %v7058_v35 = vmul.f32 %v7044_v31, %v17989_v42 }
 0x48b   :  { %v7041_v14 = vsel %vm17997_vm10, %v7017_v52, %v7025_v57  ;;  %7236 = vmatprep.mubr.f32.mxu1 %v11552_v11  ;;  %vm18017_vm10 = vmmov %vm18004_vm2 }
 0x48c   :  { %v7063_v24 = vmul.f32 %v7041_v14, %v17986_v20  ;;  %8104 = vrot.lane.b32.xlu0 %v14487_v25, %s11546_s24  ;;  %v7031_v10 = vpop.permute.xlu1 %7030 }
 0x48d   :  { %v7036_v20 = vsel %vm18000_vm15, %v7023_v7, %v7031_v10  ;;  %v7048_v38 = vsel %vm18001_vm14, %v7031_v10, %v7007_v53  ;;  %v18006_v53 = vld [vmem:[#allocation80_spill] sm:$0xff]  ;;  %vm18020_vm15 = vmmov %vm18004_vm2 }
 0x48e   :  { %8126 = vrot.lane.b32.xlu1 %v14493_v27, %s11546_s24  ;;  %v7009_v50 = vpop.permute.xlu0 %7008  ;;  %v10816_v30 = vpack.c.bf16 %v7063_v24, %v7059_v46  ;;  %v7060_v17 = vmul.f32 %v7036_v20, %v17992_v55  ;;  %v7061_v3 = vmul.f32 %v7048_v38, %v17995_v56  ;;  %v10432_v46 = vld [vmem:[%s17316_s4 + $0x1f0] sm:$0xff]  ;;  %vm18021_vm14 = vmmov %vm18004_vm2 }
 0x48f   :  { %v7045_v60 = vsel %vm17999_vm12, %v7009_v50, %v7017_v52  ;;  %vm18019_vm12 = vmmov %vm18004_vm2 }
 0x490   :  { %v7062_v47 = vmul.f32 %v7045_v60, %v17989_v42  ;;  %8128 = vrot.lane.b32.xlu0 %v14512_v2, %s11546_s24  ;;  %10817 = vmatprep.subr.bf16.mxu0 %v10816_v30  ;;  %v7286_v32 = vpop.permute.xlu1 %7285  ;;  %v18009_v30 = vld [vmem:[#allocation94_spill] sm:$0xff] }
 0x492   :  { %v10818_v21 = vpack.c.bf16 %v7062_v47, %v7058_v35  ;;  %8114 = vrot.lane.b32.xlu1 %v14530_v44, %s11546_s24  ;;  %v7033_v58 = vpop.permute.xlu0 %7032 }
 0x493   :  { %v7037_v42 = vsel %vm18002_vm0, %v7025_v57, %v7033_v58  ;;  %v7049_v28 = vsel %vm18003_vm1, %v7033_v58, %v7009_v50  ;;  %vm18022_vm0 = vmmov %vm18004_vm2 }
 0x494   :  { %v7064_v19 = vmul.f32 %v7037_v42, %v17992_v55  ;;  %v7065_v26 = vmul.f32 %v7049_v28, %v17995_v56  ;;  %8116 = vrot.lane.b32.xlu0 %v14548_v48, %s11546_s24  ;;  %10819 = vmatpush1.bf16.msra.mxu0 %v10818_v21  ;;  %v7294_v13 = vpop.permute.xlu1 %7293  ;;  %v10431_v56 = vld [vmem:[%s17316_s4 + $0x1e8] sm:$0xff]  ;;  %vm18023_vm1 = vmmov %vm18022_vm0 }
 0x495   :  { %v7313_v51 = vsel %vm18004_vm2, %v7286_v32, %v7294_v13  ;;  %vm18024_vm2 = vmmov %vm18022_vm0 }
 0x496   :  { %v10826_v63 = vpack.c.bf16 %v7064_v19, %v7060_v17  ;;  %8122 = vrot.lane.b32.xlu1 %v14554_v8, %s11546_s24  ;;  %v7288_v34 = vpop.permute.xlu0 %7287  ;;  %v10824_v7 = vpack.c.bf16 %v7065_v26, %v7061_v3  ;;  %v7326_v59 = vmul.f32 %v7313_v51, %v18006_v53  ;;  %v18013_v17 = vld [vmem:[#allocation96_spill] sm:$0xff]  ;;  %v18016_v19 = vld [vmem:[#allocation97_spill] sm:$0xff] }
 0x497   :  { %10434 = vmatmul.mubr.msk.f32.vlgmr.msra.gmra.mrb[0].mxu0 %vm3110_vm13, %v10430_v61 }
 0x498   :  { %8124 = vrot.lane.b32.xlu0 %v14568_v36, %s11546_s24  ;;  %10825 = vmatprep.subr.bf16.mxu1 %v10824_v7  ;;  %v7278_v55 = vpop.permute.xlu1 %7277 }
 0x499   :  { %10827 = vmatpush1.bf16.msra.mxu1 %v10826_v63  ;;  %7153 = vmatprep.mubr.f32.mxu0 %v11552_v11  ;;  %v7317_v24 = vsel %vm18007_vm4, %v7278_v55, %v7286_v32  ;;  %v10433_v32 = vld [vmem:[%s17316_s4 + $0x1f8] sm:$0xff] }
 0x49a   :  { %8106 = vrot.lane.b32.xlu1 %v14518_v49, %s11546_s24  ;;  %v7296_v52 = vpop.permute.xlu0 %7295  ;;  %v7325_v60 = vmul.f32 %v7317_v24, %v18009_v30 }
 0x49b   :  { %v7314_v29 = vsel %vm18005_vm3, %v7288_v34, %v7296_v52  ;;  %10435 = vmatmul.mubr.msk.f32.gmra.mrb[2].mxu0 %vm3110_vm13, %v10431_v56  ;;  %vm18025_vm3 = vcmp.lt.s32.totalorder %v12041_v41, 112 }
 0x49c   :  { %v7330_v57 = vmul.f32 %v7314_v29, %v18006_v53  ;;  %8108 = vrot.lane.b32.xlu0 %v14536_v40, %s11546_s24  ;;  %v7302_v14 = vpop.permute.xlu1 %7301  ;;  %10438 = vmatmul.mubr.msk.f32.vlgmr.msra.gmra.mrb[0].mxu1 %vm3110_vm13, %v10430_v61  ;;  %vm18026_vm4 = vmmov %vm18025_vm3 }
 0x49d   :  { %7159 = vmatprep.mubr.f32.mxu0 %v11552_v11  ;;  %7242 = vmatprep.mubr.f32.mxu1 %v11552_v11  ;;  %v7309_v47 = vsel %vm18010_vm6, %v7294_v13, %v7302_v14  ;;  %v7321_v38 = vsel %vm18011_vm7, %v7302_v14, %v7278_v55  ;;  %vm18029_vm6 = vmmov %vm18025_vm3 }
 0x49e   :  { %8130 = vrot.lane.b32.xlu1 %v14542_v4, %s11546_s24  ;;  %v7280_v10 = vpop.permute.xlu0 %7279  ;;  %v10828_v31 = vpack.c.bf16 %v7330_v57, %v7326_v59  ;;  %v7327_v42 = vmul.f32 %v7309_v47, %v18013_v17  ;;  %v7328_v26 = vmul.f32 %v7321_v38, %v18016_v19  ;;  %vm18031_vm7 = vmmov %vm18025_vm3 }
 0x49f   :  { %v7318_v50 = vsel %vm18008_vm5, %v7280_v10, %v7288_v34  ;;  %10436 = vmatmul.mubr.msk.f32.gmra.mrb[4].mxu0 %vm3110_vm13, %v10432_v46  ;;  %vm18028_vm5 = vmmov %vm18025_vm3 }
 0x4a0   :  { %v7329_v35 = vmul.f32 %v7318_v50, %v18009_v30  ;;  %8132 = vrot.lane.b32.xlu0 %v14560_v37, %s11546_s24  ;;  %10829 = vmatprep.subr.bf16.mxu0 %v10828_v31  ;;  %v7290_v20 = vpop.permute.xlu1 %7289 }
 0x4a1   :  { %10439 = vmatmul.mubr.msk.f32.gmra.mrb[2].mxu1 %vm3110_vm13, %v10431_v56  ;;  %7165 = vmatprep.mubr.f32.mxu0 %v11552_v11 }
 0x4a2   :  { %v10830_v21 = vpack.c.bf16 %v7329_v35, %v7325_v60  ;;  %8385 = vrot.lane.b32.xlu1 %v14478_v45, %s18012_s22  ;;  %v7304_v58 = vpop.permute.xlu0 %7303  ;;  %7248 = vmatprep.mubr.f32.mxu1 %v11552_v11 }
 0x4a3   :  { %v7310_v28 = vsel %vm18014_vm8, %v7296_v52, %v7304_v58  ;;  %v7322_v3 = vsel %vm18015_vm9, %v7304_v58, %v7280_v10  ;;  %10437 = vmatmul.mubr.msk.f32.gmra.mrb[6].mxu0 %vm3110_vm13, %v10433_v32  ;;  %vm18032_vm8 = vmmov %vm18025_vm3 }
 0x4a4   :  { %v7331_v13 = vmul.f32 %v7310_v28, %v18013_v17  ;;  %v7332_v61 = vmul.f32 %v7322_v3, %v18016_v19  ;;  %8387 = vrot.lane.b32.xlu0 %v14500_v12, %s18012_s22  ;;  %10831 = vmatpush1.bf16.msra.mxu0 %v10830_v21  ;;  %v7298_v63 = vpop.permute.xlu1 %7297  ;;  %v10442_v3 = vld [vmem:[%s17316_s4 + $0x200] sm:$0xff]  ;;  %vm18035_vm9 = vmmov %vm18025_vm3 }
 0x4a5   :  { %10440 = vmatmul.mubr.msk.f32.gmra.mrb[4].mxu1 %vm3110_vm13, %v10432_v46  ;;  %7422 = vmatprep.mubr.f32.mxu0 %v11552_v11  ;;  %v7315_v56 = vsel %vm18017_vm10, %v7290_v20, %v7298_v63  ;;  %vm18036_vm10 = vmmov %vm18025_vm3 }
 0x4a6   :  { %v10838_v34 = vpack.c.bf16 %v7331_v13, %v7327_v42  ;;  %8393 = vrot.lane.b32.xlu1 %v14506_v18, %s18012_s22  ;;  %v7292_v7 = vpop.permute.xlu0 %7291  ;;  %v10836_v55 = vpack.c.bf16 %v7332_v61, %v7328_v26  ;;  %7254 = vmatprep.mubr.f32.mxu1 %v11552_v11  ;;  %v7334_v59 = vmul.f32 %v7315_v56, %v18006_v53 }
 0x4a8   :  { %8395 = vrot.lane.b32.xlu0 %v14524_v62, %s18012_s22  ;;  %10837 = vmatprep.subr.bf16.mxu1 %v10836_v55  ;;  %v7282_v52 = vpop.permute.xlu1 %7281  ;;  %v18027_v55 = vld [vmem:[#allocation19_spill] sm:$0xff] }
 0x4a9   :  { %10839 = vmatpush1.bf16.msra.mxu1 %v10838_v34  ;;  %v7319_v14 = vsel %vm18019_vm12, %v7282_v52, %v7290_v20  ;;  %vm18039_vm12 = vmmov %vm18025_vm3 }
 0x4aa   :  { %8377 = vrot.lane.b32.xlu1 %v14466_v54, %s18012_s22  ;;  %v7300_v51 = vpop.permute.xlu0 %7299  ;;  %10441 = vmatmul.mubr.msk.f32.gmra.mrb[6].mxu1 %vm3110_vm13, %v10433_v32  ;;  %v7333_v31 = vmul.f32 %v7319_v14, %v18009_v30 }
 0x4ab   :  { %v7316_v29 = vsel %vm18018_vm11, %v7292_v7, %v7300_v51  ;;  %7511 = vmatprep.mubr.f32.mxu1 %v11552_v11  ;;  %vm18038_vm11 = vmmov %vm18025_vm3 }
 0x4ac   :  { %v7338_v57 = vmul.f32 %v7316_v29, %v18006_v53  ;;  %8379 = vrot.lane.b32.xlu0 %v14487_v25, %s18012_s22  ;;  %v10444_v29 = vld [vmem:[%s17316_s4 + $0x210] sm:$0xff] }
 0x4ae   :  { %8401 = vrot.lane.b32.xlu1 %v14493_v27, %s18012_s22  ;;  %v7284_v46 = vpop.permute.xlu0 %7283  ;;  %v10832_v24 = vpack.c.bf16 %v7338_v57, %v7334_v59 }
 0x4af   :  { %v7320_v10 = vsel %vm18020_vm15, %v7284_v46, %v7292_v7  ;;  %vm18040_vm15 = vmmov %vm18025_vm3 }
 0x4b0   :  { %v7337_v50 = vmul.f32 %v7320_v10, %v18009_v30  ;;  %v7306_v60 = vpop.permute.xlu1 %7305  ;;  %8403 = vrot.lane.b32.xlu0 %v14512_v2, %s18012_s22  ;;  %10833 = vmatprep.subr.bf16.mxu0 %v10832_v24  ;;  %v18030_v24 = vld [vmem:[#allocation99_spill] sm:$0xff] }
 0x4b1   :  { %v7311_v53 = vsel %vm18021_vm14, %v7298_v63, %v7306_v60  ;;  %v7323_v35 = vsel %vm18022_vm0, %v7306_v60, %v7282_v52  ;;  %v10445_v60 = vld [vmem:[%s17316_s4 + $0x218] sm:$0xff]  ;;  %vm18041_vm14 = vmmov %vm18025_vm3 }
 0x4b2   :  { %v10834_v47 = vpack.c.bf16 %v7337_v50, %v7333_v31  ;;  %8389 = vrot.lane.b32.xlu1 %v14530_v44, %s18012_s22  ;;  %v7308_v20 = vpop.permute.xlu0 %7307  ;;  %v7335_v32 = vmul.f32 %v7311_v53, %v18013_v17  ;;  %v7336_v21 = vmul.f32 %v7323_v35, %v18016_v19  ;;  %vm18042_vm0 = vmmov %vm18025_vm3 }
 0x4b3   :  { %v7312_v30 = vsel %vm18023_vm1, %v7300_v51, %v7308_v20  ;;  %v7324_v38 = vsel %vm18024_vm2, %v7308_v20, %v7284_v46  ;;  %vm18043_vm1 = vmmov %vm18042_vm0 }
 0x4b4   :  { %v7339_v58 = vmul.f32 %v7312_v30, %v18013_v17  ;;  %v7340_v42 = vmul.f32 %v7324_v38, %v18016_v19  ;;  %v7561_v28 = vpop.permute.xlu1 %7560  ;;  %8391 = vrot.lane.b32.xlu0 %v14548_v48, %s18012_s22  ;;  %10835 = vmatpush1.bf16.msra.mxu0 %v10834_v47  ;;  %v10443_v19 = vld [vmem:[%s17316_s4 + $0x208] sm:$0xff]  ;;  %vm18044_vm2 = vmmov %vm18042_vm0 }
 0x4b6   :  { %v10842_v26 = vpack.c.bf16 %v7339_v58, %v7335_v32  ;;  %8397 = vrot.lane.b32.xlu1 %v14554_v8, %s18012_s22  ;;  %v7563_v13 = vpop.permute.xlu0 %7562  ;;  %v10840_v61 = vpack.c.bf16 %v7340_v42, %v7336_v21  ;;  %v18034_v32 = vld [vmem:[#allocation15_spill] sm:$0xff]  ;;  %v18037_v58 = vld [vmem:[#allocation100_spill] sm:$0xff] }
 0x4b7   :  { %10446 = vmatmul.mubr.msk.f32.vlgmr.msra.gmra.mrb[0].mxu0 %vm3110_vm13, %v10442_v3 }
 0x4b8   :  { %v7569_v17 = vpop.permute.xlu1 %7568  ;;  %8399 = vrot.lane.b32.xlu0 %v14568_v36, %s18012_s22  ;;  %10841 = vmatprep.subr.bf16.mxu1 %v10840_v61 }
 0x4b9   :  { %v7588_v63 = vsel %vm18025_vm3, %v7561_v28, %v7569_v17  ;;  %10843 = vmatpush1.bf16.msra.mxu1 %v10842_v26  ;;  %7428 = vmatprep.mubr.f32.mxu0 %v11552_v11  ;;  %vm18045_vm3 = vmmov %vm18042_vm0 }
 0x4ba   :  { %8381 = vrot.lane.b32.xlu1 %v14518_v49, %s18012_s22  ;;  %v7571_v34 = vpop.permute.xlu0 %7570  ;;  %v7601_v56 = vmul.f32 %v7588_v63, %v18027_v55 }
 0x4bb   :  { %v7589_v7 = vsel %vm18026_vm4, %v7563_v13, %v7571_v34  ;;  %10447 = vmatmul.mubr.msk.f32.gmra.mrb[2].mxu0 %vm3110_vm13, %v10443_v19  ;;  %vm18046_vm4 = vcmp.lt.s32.totalorder %v12041_v41, 111 }
 0x4bc   :  { %v7605_v51 = vmul.f32 %v7589_v7, %v18027_v55  ;;  %v7553_v52 = vpop.permute.xlu1 %7552  ;;  %8383 = vrot.lane.b32.xlu0 %v14536_v40, %s18012_s22  ;;  %10450 = vmatmul.mubr.msk.f32.vlgmr.msra.gmra.mrb[0].mxu1 %vm3110_vm13, %v10442_v3 }
 0x4bd   :  { %v7592_v59 = vsel %vm18028_vm5, %v7553_v52, %v7561_v28  ;;  %7434 = vmatprep.mubr.f32.mxu0 %v11552_v11  ;;  %7517 = vmatprep.mubr.f32.mxu1 %v11552_v11  ;;  %vm18047_vm5 = vmmov %vm18046_vm4 }
 0x4be   :  { %8405 = vrot.lane.b32.xlu1 %v14542_v4, %s18012_s22  ;;  %v7555_v57 = vpop.permute.xlu0 %7554  ;;  %v10844_v14 = vpack.c.bf16 %v7605_v51, %v7601_v56  ;;  %v7600_v10 = vmul.f32 %v7592_v59, %v18030_v24 }
 0x4bf   :  { %v7593_v46 = vsel %vm18029_vm6, %v7555_v57, %v7563_v13  ;;  %10448 = vmatmul.mubr.msk.f32.gmra.mrb[4].mxu0 %vm3110_vm13, %v10444_v29  ;;  %vm18049_vm6 = vmmov %vm18046_vm4 }
 0x4c0   :  { %v7604_v31 = vmul.f32 %v7593_v46, %v18030_v24  ;;  %v7577_v50 = vpop.permute.xlu1 %7576  ;;  %8407 = vrot.lane.b32.xlu0 %v14560_v37, %s18012_s22  ;;  %10845 = vmatprep.subr.bf16.mxu0 %v10844_v14 }
 0x4c1   :  { %v7584_v53 = vsel %vm18031_vm7, %v7569_v17, %v7577_v50  ;;  %v7596_v35 = vsel %vm18032_vm8, %v7577_v50, %v7553_v52  ;;  %10451 = vmatmul.mubr.msk.f32.gmra.mrb[2].mxu1 %vm3110_vm13, %v10443_v19  ;;  %7440 = vmatprep.mubr.f32.mxu0 %v11552_v11  ;;  %vm18050_vm7 = vmmov %vm18046_vm4 }
 0x4c2   :  { %v10846_v47 = vpack.c.bf16 %v7604_v31, %v7600_v10  ;;  %8660 = vrot.lane.b32.xlu1 %v14478_v45, %s18033_s13  ;;  %v7579_v20 = vpop.permute.xlu0 %7578  ;;  %7523 = vmatprep.mubr.f32.mxu1 %v11552_v11  ;;  %v7602_v30 = vmul.f32 %v7584_v53, %v18034_v32  ;;  %v7603_v42 = vmul.f32 %v7596_v35, %v18037_v58  ;;  %vm18052_vm8 = vmmov %vm18046_vm4 }
 0x4c3   :  { %v7585_v38 = vsel %vm18035_vm9, %v7571_v34, %v7579_v20  ;;  %v7597_v21 = vsel %vm18036_vm10, %v7579_v20, %v7555_v57  ;;  %10449 = vmatmul.mubr.msk.f32.gmra.mrb[6].mxu0 %vm3110_vm13, %v10445_v60  ;;  %vm18053_vm9 = vmmov %vm18046_vm4 }
 0x4c4   :  { %v7606_v28 = vmul.f32 %v7585_v38, %v18034_v32  ;;  %v7607_v3 = vmul.f32 %v7597_v21, %v18037_v58  ;;  %v7565_v26 = vpop.permute.xlu1 %7564  ;;  %8662 = vrot.lane.b32.xlu0 %v14500_v12, %s18033_s13  ;;  %10847 = vmatpush1.bf16.msra.mxu0 %v10846_v47  ;;  %vm18056_vm10 = vmmov %vm18046_vm4 }
 0x4c5   :  { %10452 = vmatmul.mubr.msk.f32.gmra.mrb[4].mxu1 %vm3110_vm13, %v10444_v29  ;;  %7697 = vmatprep.mubr.f32.mxu0 %v11552_v11 }
 0x4c6   :  { %v10854_v13 = vpack.c.bf16 %v7606_v28, %v7602_v30  ;;  %8668 = vrot.lane.b32.xlu1 %v14506_v18, %s18033_s13  ;;  %v7567_v61 = vpop.permute.xlu0 %7566  ;;  %v10852_v17 = vpack.c.bf16 %v7607_v3, %v7603_v42  ;;  %7529 = vmatprep.mubr.f32.mxu1 %v11552_v11  ;;  %v10454_v42 = vld [vmem:[%s17316_s4 + $0x220] sm:$0xff] }
 0x4c8   :  { %v7573_v19 = vpop.permute.xlu1 %7572  ;;  %8670 = vrot.lane.b32.xlu0 %v14524_v62, %s18033_s13  ;;  %10853 = vmatprep.subr.bf16.mxu1 %v10852_v17 }
 0x4c9   :  { %v7590_v63 = vsel %vm18038_vm11, %v7565_v26, %v7573_v19  ;;  %10855 = vmatpush1.bf16.msra.mxu1 %v10854_v13  ;;  %vm18057_vm11 = vmmov %vm18046_vm4 }
 0x4ca   :  { %8652 = vrot.lane.b32.xlu1 %v14466_v54, %s18033_s13  ;;  %v7575_v34 = vpop.permute.xlu0 %7574  ;;  %10453 = vmatmul.mubr.msk.f32.gmra.mrb[6].mxu1 %vm3110_vm13, %v10445_v60  ;;  %v7609_v56 = vmul.f32 %v7590_v63, %v18027_v55 }
 0x4cb   :  { %v7591_v7 = vsel %vm18039_vm12, %v7567_v61, %v7575_v34  ;;  %7786 = vmatprep.mubr.f32.mxu1 %v11552_v11  ;;  %vm18059_vm12 = vmmov %vm18046_vm4 }
 0x4cc   :  { %v7613_v51 = vmul.f32 %v7591_v7, %v18027_v55  ;;  %v7557_v52 = vpop.permute.xlu1 %7556  ;;  %8654 = vrot.lane.b32.xlu0 %v14487_v25, %s18033_s13 }
 0x4cd   :  { %v7594_v29 = vsel %vm18040_vm15, %v7557_v52, %v7565_v26  ;;  %vm18060_vm15 = vmmov %vm18046_vm4 }
 0x4ce   :  { %8676 = vrot.lane.b32.xlu1 %v14493_v27, %s18033_s13  ;;  %v7559_v59 = vpop.permute.xlu0 %7558  ;;  %v10848_v57 = vpack.c.bf16 %v7613_v51, %v7609_v56  ;;  %v7608_v46 = vmul.f32 %v7594_v29, %v18030_v24  ;;  %v10456_v56 = vld [vmem:[%s17316_s4 + $0x230] sm:$0xff] }
 0x4cf   :  { %v7595_v14 = vsel %vm18041_vm14, %v7559_v59, %v7567_v61  ;;  %vm18061_vm14 = vmmov %vm18046_vm4 }
 0x4d0   :  { %v7612_v10 = vmul.f32 %v7595_v14, %v18030_v24  ;;  %v7581_v55 = vpop.permute.xlu1 %7580  ;;  %8678 = vrot.lane.b32.xlu0 %v14512_v2, %s18033_s13  ;;  %10849 = vmatprep.subr.bf16.mxu0 %v10848_v57  ;;  %v18051_v57 = vld [vmem:[#allocation102_spill] sm:$0xff] }
 0x4d1   :  { %v7586_v31 = vsel %vm18042_vm0, %v7573_v19, %v7581_v55  ;;  %v7598_v50 = vsel %vm18043_vm1, %v7581_v55, %v7557_v52  ;;  %v18048_v19 = vld [vmem:[#allocation29_spill] sm:$0xff]  ;;  %vm18062_vm0 = vmmov %vm18046_vm4 }
 0x4d2   :  { %v10850_v60 = vpack.c.bf16 %v7612_v10, %v7608_v46  ;;  %8664 = vrot.lane.b32.xlu1 %v14530_v44, %s18033_s13  ;;  %v7583_v53 = vpop.permute.xlu0 %7582  ;;  %v7610_v35 = vmul.f32 %v7586_v31, %v18034_v32  ;;  %v7611_v20 = vmul.f32 %v7598_v50, %v18037_v58  ;;  %v10457_v55 = vld [vmem:[%s17316_s4 + $0x238] sm:$0xff]  ;;  %vm18063_vm1 = vmmov %vm18062_vm0 }
 0x4d3   :  { %v7587_v24 = vsel %vm18044_vm2, %v7575_v34, %v7583_v53  ;;  %v7599_v47 = vsel %vm18045_vm3, %v7583_v53, %v7559_v59  ;;  %vm18064_vm2 = vmmov %vm18062_vm0 }
 0x4d4   :  { %v7614_v30 = vmul.f32 %v7587_v24, %v18034_v32  ;;  %v7615_v38 = vmul.f32 %v7599_v47, %v18037_v58  ;;  %v7836_v21 = vpop.permute.xlu1 %7835  ;;  %8666 = vrot.lane.b32.xlu0 %v14548_v48, %s18033_s13  ;;  %10851 = vmatpush1.bf16.msra.mxu0 %v10850_v60  ;;  %v10455_v58 = vld [vmem:[%s17316_s4 + $0x228] sm:$0xff]  ;;  %vm18065_vm3 = vmmov %vm18062_vm0 }
 0x4d6   :  { %v10858_v28 = vpack.c.bf16 %v7614_v30, %v7610_v35  ;;  %8672 = vrot.lane.b32.xlu1 %v14554_v8, %s18033_s13  ;;  %v7838_v3 = vpop.permute.xlu0 %7837  ;;  %v10856_v26 = vpack.c.bf16 %v7615_v38, %v7611_v20  ;;  %v18055_v35 = vld [vmem:[#allocation34_spill] sm:$0xff]  ;;  %v18058_v30 = vld [vmem:[#allocation35_spill] sm:$0xff] }
 0x4d7   :  { %10458 = vmatmul.mubr.msk.f32.vlgmr.msra.gmra.mrb[0].mxu0 %vm3110_vm13, %v10454_v42 }
 0x4d8   :  { %v7844_v32 = vpop.permute.xlu1 %7843  ;;  %8674 = vrot.lane.b32.xlu0 %v14568_v36, %s18033_s13  ;;  %10857 = vmatprep.subr.bf16.mxu1 %v10856_v26 }
 0x4d9   :  { %v7863_v13 = vsel %vm18046_vm4, %v7836_v21, %v7844_v32  ;;  %10859 = vmatpush1.bf16.msra.mxu1 %v10858_v28  ;;  %7703 = vmatprep.mubr.f32.mxu0 %v11552_v11  ;;  %vm18066_vm4 = vmmov %vm18062_vm0 }
 0x4da   :  { %8656 = vrot.lane.b32.xlu1 %v14518_v49, %s18033_s13  ;;  %v7846_v61 = vpop.permute.xlu0 %7845  ;;  %v7876_v63 = vmul.f32 %v7863_v13, %v18048_v19 }
 0x4db   :  { %v7864_v17 = vsel %vm18047_vm5, %v7838_v3, %v7846_v61  ;;  %10459 = vmatmul.mubr.msk.f32.gmra.mrb[2].mxu0 %vm3110_vm13, %v10455_v58  ;;  %vm18067_vm5 = vcmp.lt.s32.totalorder %v12041_v41, 110 }
 0x4dc   :  { %v7880_v34 = vmul.f32 %v7864_v17, %v18048_v19  ;;  %v7828_v7 = vpop.permute.xlu1 %7827  ;;  %8658 = vrot.lane.b32.xlu0 %v14536_v40, %s18033_s13  ;;  %10462 = vmatmul.mubr.msk.f32.vlgmr.msra.gmra.mrb[0].mxu1 %vm3110_vm13, %v10454_v42 }
 0x4dd   :  { %v7867_v51 = vsel %vm18049_vm6, %v7828_v7, %v7836_v21  ;;  %7709 = vmatprep.mubr.f32.mxu0 %v11552_v11  ;;  %7792 = vmatprep.mubr.f32.mxu1 %v11552_v11  ;;  %vm18068_vm6 = vmmov %vm18067_vm5 }
 0x4de   :  { %8680 = vrot.lane.b32.xlu1 %v14542_v4, %s18033_s13  ;;  %v7830_v52 = vpop.permute.xlu0 %7829  ;;  %v10860_v29 = vpack.c.bf16 %v7880_v34, %v7876_v63  ;;  %v7875_v14 = vmul.f32 %v7867_v51, %v18051_v57 }
 0x4df   :  { %v7868_v59 = vsel %vm18050_vm7, %v7830_v52, %v7838_v3  ;;  %10460 = vmatmul.mubr.msk.f32.gmra.mrb[4].mxu0 %vm3110_vm13, %v10456_v56  ;;  %vm18069_vm7 = vmmov %vm18067_vm5 }
 0x4e0   :  { %v7879_v46 = vmul.f32 %v7868_v59, %v18051_v57  ;;  %v7852_v10 = vpop.permute.xlu1 %7851  ;;  %8682 = vrot.lane.b32.xlu0 %v14560_v37, %s18033_s13  ;;  %10861 = vmatprep.subr.bf16.mxu0 %v10860_v29 }
 0x4e1   :  { %v7859_v31 = vsel %vm18052_vm8, %v7844_v32, %v7852_v10  ;;  %v7871_v50 = vsel %vm18053_vm9, %v7852_v10, %v7828_v7  ;;  %10463 = vmatmul.mubr.msk.f32.gmra.mrb[2].mxu1 %vm3110_vm13, %v10455_v58  ;;  %7715 = vmatprep.mubr.f32.mxu0 %v11552_v11  ;;  %vm18070_vm8 = vmmov %vm18067_vm5 }
 0x4e2   :  { %v10862_v60 = vpack.c.bf16 %v7879_v46, %v7875_v14  ;;  %8935 = vrot.lane.b32.xlu1 %v14478_v45, %s18054_s19  ;;  %v7854_v53 = vpop.permute.xlu0 %7853  ;;  %7798 = vmatprep.mubr.f32.mxu1 %v11552_v11  ;;  %v7877_v24 = vmul.f32 %v7859_v31, %v18055_v35  ;;  %v7878_v38 = vmul.f32 %v7871_v50, %v18058_v30  ;;  %vm18072_vm9 = vmmov %vm18067_vm5 }
 0x4e3   :  { %v7860_v47 = vsel %vm18056_vm10, %v7846_v61, %v7854_v53  ;;  %v7872_v20 = vsel %vm18057_vm11, %v7854_v53, %v7830_v52  ;;  %10461 = vmatmul.mubr.msk.f32.gmra.mrb[6].mxu0 %vm3110_vm13, %v10457_v55  ;;  %vm18073_vm10 = vmmov %vm18067_vm5 }
 0x4e4   :  { %v7881_v21 = vmul.f32 %v7860_v47, %v18055_v35  ;;  %v7882_v42 = vmul.f32 %v7872_v20, %v18058_v30  ;;  %v7840_v28 = vpop.permute.xlu1 %7839  ;;  %8937 = vrot.lane.b32.xlu0 %v14500_v12, %s18054_s19  ;;  %10863 = vmatpush1.bf16.msra.mxu0 %v10862_v60  ;;  %vm18075_vm11 = vmmov %vm18067_vm5 }
 0x4e5   :  { %10464 = vmatmul.mubr.msk.f32.gmra.mrb[4].mxu1 %vm3110_vm13, %v10456_v56  ;;  %7972 = vmatprep.mubr.f32.mxu0 %v11552_v11 }
 0x4e6   :  { %v10870_v3 = vpack.c.bf16 %v7881_v21, %v7877_v24  ;;  %8943 = vrot.lane.b32.xlu1 %v14506_v18, %s18054_s19  ;;  %v7842_v26 = vpop.permute.xlu0 %7841  ;;  %v10868_v32 = vpack.c.bf16 %v7882_v42, %v7878_v38  ;;  %7804 = vmatprep.mubr.f32.mxu1 %v11552_v11  ;;  %v10466_v38 = vld [vmem:[%s17316_s4 + $0x240] sm:$0xff] }
 0x4e8   :  { %v7848_v58 = vpop.permute.xlu1 %7847  ;;  %8945 = vrot.lane.b32.xlu0 %v14524_v62, %s18054_s19  ;;  %10869 = vmatprep.subr.bf16.mxu1 %v10868_v32 }
 0x4e9   :  { %v7865_v13 = vsel %vm18059_vm12, %v7840_v28, %v7848_v58  ;;  %10871 = vmatpush1.bf16.msra.mxu1 %v10870_v3  ;;  %vm18076_vm12 = vmmov %vm18067_vm5 }
 0x4ea   :  { %8927 = vrot.lane.b32.xlu1 %v14466_v54, %s18054_s19  ;;  %v7850_v61 = vpop.permute.xlu0 %7849  ;;  %10465 = vmatmul.mubr.msk.f32.gmra.mrb[6].mxu1 %vm3110_vm13, %v10457_v55  ;;  %v7884_v63 = vmul.f32 %v7865_v13, %v18048_v19 }
 0x4eb   :  { %v7866_v17 = vsel %vm18060_vm15, %v7842_v26, %v7850_v61  ;;  %8061 = vmatprep.mubr.f32.mxu1 %v11552_v11  ;;  %vm18078_vm15 = vmmov %vm18067_vm5 }
 0x4ec   :  { %v7888_v34 = vmul.f32 %v7866_v17, %v18048_v19  ;;  %v7832_v7 = vpop.permute.xlu1 %7831  ;;  %8929 = vrot.lane.b32.xlu0 %v14487_v25, %s18054_s19  ;;  %v10468_v17 = vld [vmem:[%s17316_s4 + $0x250] sm:$0xff] }
 0x4ed   :  { %v7869_v56 = vsel %vm18061_vm14, %v7832_v7, %v7840_v28  ;;  %vm18079_vm14 = vmmov %vm18067_vm5 }
 0x4ee   :  { %8951 = vrot.lane.b32.xlu1 %v14493_v27, %s18054_s19  ;;  %v7834_v51 = vpop.permute.xlu0 %7833  ;;  %v10864_v52 = vpack.c.bf16 %v7888_v34, %v7884_v63  ;;  %v7883_v59 = vmul.f32 %v7869_v56, %v18051_v57 }
 0x4ef   :  { %v7870_v29 = vsel %vm18062_vm0, %v7834_v51, %v7842_v26  ;;  %vm18080_vm0 = vmmov %vm18067_vm5 }
 0x4f0   :  { %v7887_v14 = vmul.f32 %v7870_v29, %v18051_v57  ;;  %v7856_v19 = vpop.permute.xlu1 %7855  ;;  %8953 = vrot.lane.b32.xlu0 %v14512_v2, %s18054_s19  ;;  %10865 = vmatprep.subr.bf16.mxu0 %v10864_v52 }
 0x4f1   :  { %v7861_v46 = vsel %vm18063_vm1, %v7848_v58, %v7856_v19  ;;  %v7873_v10 = vsel %vm18064_vm2, %v7856_v19, %v7832_v7  ;;  %vm18081_vm1 = vmmov %vm18080_vm0 }
 0x4f2   :  { %v10866_v55 = vpack.c.bf16 %v7887_v14, %v7883_v59  ;;  %8939 = vrot.lane.b32.xlu1 %v14530_v44, %s18054_s19  ;;  %v7858_v31 = vpop.permute.xlu0 %7857  ;;  %v7885_v50 = vmul.f32 %v7861_v46, %v18055_v35  ;;  %v7886_v53 = vmul.f32 %v7873_v10, %v18058_v30  ;;  %v10469_v14 = vld [vmem:[%s17316_s4 + $0x258] sm:$0xff]  ;;  %vm18082_vm2 = vmmov %vm18080_vm0 }
 0x4f3   :  { %v7862_v57 = vsel %vm18065_vm3, %v7850_v61, %v7858_v31  ;;  %v7874_v60 = vsel %vm18066_vm4, %v7858_v31, %v7834_v51  ;;  %v18071_v51 = vld [vmem:[#allocation23_spill] sm:$0xff]  ;;  %v18074_v31 = vld [vmem:[#allocation24_spill] sm:$0xff]  ;;  %vm18083_vm3 = vmmov %vm18080_vm0 }
 0x4f4   :  { %v7889_v24 = vmul.f32 %v7862_v57, %v18055_v35  ;;  %v7890_v47 = vmul.f32 %v7874_v60, %v18058_v30  ;;  %v8111_v20 = vpop.permute.xlu1 %8110  ;;  %8941 = vrot.lane.b32.xlu0 %v14548_v48, %s18054_s19  ;;  %10867 = vmatpush1.bf16.msra.mxu0 %v10866_v55  ;;  %v10467_v30 = vld [vmem:[%s17316_s4 + $0x248] sm:$0xff]  ;;  %vm18084_vm4 = vmmov %vm18080_vm0 }
 0x4f6   :  { %v10874_v21 = vpack.c.bf16 %v7889_v24, %v7885_v50  ;;  %8947 = vrot.lane.b32.xlu1 %v14554_v8, %s18054_s19  ;;  %v8113_v42 = vpop.permute.xlu0 %8112  ;;  %v10872_v28 = vpack.c.bf16 %v7890_v47, %v7886_v53  ;;  %v18077_v53 = vld [vmem:[#allocation26_spill] sm:$0xff] }
 0x4f7   :  { %10470 = vmatmul.mubr.msk.f32.vlgmr.msra.gmra.mrb[0].mxu0 %vm3110_vm13, %v10466_v38 }
 0x4f8   :  { %v8119_v35 = vpop.permute.xlu1 %8118  ;;  %8949 = vrot.lane.b32.xlu0 %v14568_v36, %s18054_s19  ;;  %10873 = vmatprep.subr.bf16.mxu1 %v10872_v28 }
 0x4f9   :  { %v8138_v3 = vsel %vm18067_vm5, %v8111_v20, %v8119_v35  ;;  %10875 = vmatpush1.bf16.msra.mxu1 %v10874_v21  ;;  %7978 = vmatprep.mubr.f32.mxu0 %v11552_v11  ;;  %vm18085_vm5 = vmmov %vm18080_vm0 }
 0x4fa   :  { %8931 = vrot.lane.b32.xlu1 %v14518_v49, %s18054_s19  ;;  %v8121_v26 = vpop.permute.xlu0 %8120  ;;  %v8151_v58 = vmul.f32 %v8138_v3, %v17886_v23 }
 0x4fb   :  { %v8139_v32 = vsel %vm18068_vm6, %v8113_v42, %v8121_v26  ;;  %10471 = vmatmul.mubr.msk.f32.gmra.mrb[2].mxu0 %vm3110_vm13, %v10467_v30  ;;  %vm18086_vm6 = vcmp.lt.s32.totalorder %v12041_v41, 98 }
 0x4fc   :  { %v8155_v13 = vmul.f32 %v8139_v32, %v17886_v23  ;;  %v8103_v61 = vpop.permute.xlu1 %8102  ;;  %8933 = vrot.lane.b32.xlu0 %v14536_v40, %s18054_s19  ;;  %10474 = vmatmul.mubr.msk.f32.vlgmr.msra.gmra.mrb[0].mxu1 %vm3110_vm13, %v10466_v38 }
 0x4fd   :  { %v8142_v63 = vsel %vm18069_vm7, %v8103_v61, %v8111_v20  ;;  %7984 = vmatprep.mubr.f32.mxu0 %v11552_v11  ;;  %8067 = vmatprep.mubr.f32.mxu1 %v11552_v11  ;;  %vm18087_vm7 = vmmov %vm18086_vm6 }
 0x4fe   :  { %8955 = vrot.lane.b32.xlu1 %v14542_v4, %s18054_s19  ;;  %v8105_v34 = vpop.permute.xlu0 %8104  ;;  %v10876_v7 = vpack.c.bf16 %v8155_v13, %v8151_v58  ;;  %v8150_v52 = vmul.f32 %v8142_v63, %v18071_v51 }
 0x4ff   :  { %v8143_v56 = vsel %vm18070_vm8, %v8105_v34, %v8113_v42  ;;  %10472 = vmatmul.mubr.msk.f32.gmra.mrb[4].mxu0 %vm3110_vm13, %v10468_v17  ;;  %vm18089_vm8 = vmmov %vm18086_vm6 }
 0x500   :  { %v8154_v29 = vmul.f32 %v8143_v56, %v18071_v51  ;;  %v8127_v59 = vpop.permute.xlu1 %8126  ;;  %8957 = vrot.lane.b32.xlu0 %v14560_v37, %s18054_s19  ;;  %10877 = vmatprep.subr.bf16.mxu0 %v10876_v7 }
 0x501   :  { %v8134_v19 = vsel %vm18072_vm9, %v8119_v35, %v8127_v59  ;;  %v8146_v46 = vsel %vm18073_vm10, %v8127_v59, %v8103_v61  ;;  %10475 = vmatmul.mubr.msk.f32.gmra.mrb[2].mxu1 %vm3110_vm13, %v10467_v30  ;;  %7990 = vmatprep.mubr.f32.mxu0 %v11552_v11  ;;  %vm18090_vm9 = vmmov %vm18086_vm6 }
 0x502   :  { %v10878_v10 = vpack.c.bf16 %v8154_v29, %v8150_v52  ;;  %9210 = vrot.lane.b32.xlu1 %v14478_v45, %s11550_s23  ;;  %v8129_v55 = vpop.permute.xlu0 %8128  ;;  %8073 = vmatprep.mubr.f32.mxu1 %v11552_v11  ;;  %v8152_v50 = vmul.f32 %v8134_v19, %v18074_v31  ;;  %v8153_v24 = vmul.f32 %v8146_v46, %v18077_v53  ;;  %vm18092_vm10 = vmmov %vm18086_vm6 }
 0x503   :  { %v8135_v57 = vsel %vm18075_vm11, %v8121_v26, %v8129_v55  ;;  %v8147_v60 = vsel %vm18076_vm12, %v8129_v55, %v8105_v34  ;;  %10473 = vmatmul.mubr.msk.f32.gmra.mrb[6].mxu0 %vm3110_vm13, %v10469_v14  ;;  %vm18093_vm11 = vmmov %vm18086_vm6 }
 0x504   :  { %v8156_v47 = vmul.f32 %v8135_v57, %v18074_v31  ;;  %v8157_v20 = vmul.f32 %v8147_v60, %v18077_v53  ;;  %v8115_v38 = vpop.permute.xlu1 %8114  ;;  %9212 = vrot.lane.b32.xlu0 %v14500_v12, %s11550_s23  ;;  %10879 = vmatpush1.bf16.msra.mxu0 %v10878_v10  ;;  %v10478_v60 = vld [vmem:[%s17316_s4 + $0x260] sm:$0xff]  ;;  %vm18096_vm12 = vmmov %vm18086_vm6 }
 0x505   :  { %10476 = vmatmul.mubr.msk.f32.gmra.mrb[4].mxu1 %vm3110_vm13, %v10468_v17  ;;  %8247 = vmatprep.mubr.f32.mxu0 %v11552_v11 }
 0x506   :  { %v10886_v21 = vpack.c.bf16 %v8156_v47, %v8152_v50  ;;  %9218 = vrot.lane.b32.xlu1 %v14506_v18, %s11550_s23  ;;  %v8117_v42 = vpop.permute.xlu0 %8116  ;;  %v10884_v28 = vpack.c.bf16 %v8157_v20, %v8153_v24  ;;  %8079 = vmatprep.mubr.f32.mxu1 %v11552_v11 }
 0x508   :  { %v8123_v35 = vpop.permute.xlu1 %8122  ;;  %9220 = vrot.lane.b32.xlu0 %v14524_v62, %s11550_s23  ;;  %10885 = vmatprep.subr.bf16.mxu1 %v10884_v28  ;;  %v18088_v28 = vld [vmem:[#allocation43_spill] sm:$0xff] }
 0x509   :  { %v8140_v30 = vsel %vm18078_vm15, %v8115_v38, %v8123_v35  ;;  %10887 = vmatpush1.bf16.msra.mxu1 %v10886_v21  ;;  %vm18097_vm15 = vmmov %vm18086_vm6 }
 0x50a   :  { %9202 = vrot.lane.b32.xlu1 %v14466_v54, %s11550_s23  ;;  %v8125_v3 = vpop.permute.xlu0 %8124  ;;  %10477 = vmatmul.mubr.msk.f32.gmra.mrb[6].mxu1 %vm3110_vm13, %v10469_v14  ;;  %v8159_v32 = vmul.f32 %v8140_v30, %v17886_v23 }
 0x50b   :  { %v8141_v26 = vsel %vm18079_vm14, %v8117_v42, %v8125_v3  ;;  %8336 = vmatprep.mubr.f32.mxu1 %v11552_v11  ;;  %vm18099_vm14 = vmmov %vm18086_vm6 }
 0x50c   :  { %v8163_v58 = vmul.f32 %v8141_v26, %v17886_v23  ;;  %v8107_v13 = vpop.permute.xlu1 %8106  ;;  %9204 = vrot.lane.b32.xlu0 %v14487_v25, %s11550_s23  ;;  %v10480_v26 = vld [vmem:[%s17316_s4 + $0x270] sm:$0xff] }
 0x50d   :  { %v8144_v61 = vsel %vm18080_vm0, %v8107_v13, %v8115_v38  ;;  %vm18100_vm0 = vmmov %vm18086_vm6 }
 0x50e   :  { %9226 = vrot.lane.b32.xlu1 %v14493_v27, %s11550_s23  ;;  %v8109_v17 = vpop.permute.xlu0 %8108  ;;  %v10880_v63 = vpack.c.bf16 %v8163_v58, %v8159_v32  ;;  %v8158_v7 = vmul.f32 %v8144_v61, %v18071_v51 }
 0x50f   :  { %v8145_v34 = vsel %vm18081_vm1, %v8109_v17, %v8117_v42  ;;  %vm18101_vm1 = vmmov %vm18100_vm0 }
 0x510   :  { %v8162_v56 = vmul.f32 %v8145_v34, %v18071_v51  ;;  %v8131_v23 = vpop.permute.xlu1 %8130  ;;  %9228 = vrot.lane.b32.xlu0 %v14512_v2, %s11550_s23  ;;  %10881 = vmatprep.subr.bf16.mxu0 %v10880_v63 }
 0x511   :  { %v8136_v52 = vsel %vm18082_vm2, %v8123_v35, %v8131_v23  ;;  %v8148_v29 = vsel %vm18083_vm3, %v8131_v23, %v8107_v13  ;;  %vm18102_vm2 = vmmov %vm18100_vm0 }
 0x512   :  { %v10882_v59 = vpack.c.bf16 %v8162_v56, %v8158_v7  ;;  %9214 = vrot.lane.b32.xlu1 %v14530_v44, %s11550_s23  ;;  %v8133_v14 = vpop.permute.xlu0 %8132  ;;  %v8160_v19 = vmul.f32 %v8136_v52, %v18074_v31  ;;  %v8161_v10 = vmul.f32 %v8148_v29, %v18077_v53  ;;  %v10481_v56 = vld [vmem:[%s17316_s4 + $0x278] sm:$0xff]  ;;  %vm18103_vm3 = vmmov %vm18100_vm0 }
 0x513   :  { %v8137_v51 = vsel %vm18084_vm4, %v8125_v3, %v8133_v14  ;;  %v8149_v46 = vsel %vm18085_vm5, %v8133_v14, %v8109_v17  ;;  %v18091_v17 = vld [vmem:[#allocation31_spill] sm:$0xff]  ;;  %v18095_v14 = vld [vmem:[#allocation81_spill] sm:$0xff]  ;;  %vm18104_vm4 = vmmov %vm18100_vm0 }
 0x514   :  { %v8164_v55 = vmul.f32 %v8137_v51, %v18074_v31  ;;  %v8165_v50 = vmul.f32 %v8149_v46, %v18077_v53  ;;  %v8386_v57 = vpop.permute.xlu1 %8385  ;;  %9216 = vrot.lane.b32.xlu0 %v14548_v48, %s11550_s23  ;;  %10883 = vmatpush1.bf16.msra.mxu0 %v10882_v59  ;;  %v10479_v53 = vld [vmem:[%s17316_s4 + $0x268] sm:$0xff]  ;;  %vm18105_vm5 = vmmov %vm18100_vm0 }
 0x516   :  { %v10890_v24 = vpack.c.bf16 %v8164_v55, %v8160_v19  ;;  %9222 = vrot.lane.b32.xlu1 %v14554_v8, %s11550_s23  ;;  %v8388_v47 = vpop.permute.xlu0 %8387  ;;  %v10888_v20 = vpack.c.bf16 %v8165_v50, %v8161_v10  ;;  %v18098_v10 = vld [vmem:[#allocation8_spill] sm:$0xff] }
 0x517   :  { %10482 = vmatmul.mubr.msk.f32.vlgmr.msra.gmra.mrb[0].mxu0 %vm3110_vm13, %v10478_v60 }
 0x518   :  { %v8394_v31 = vpop.permute.xlu1 %8393  ;;  %9224 = vrot.lane.b32.xlu0 %v14568_v36, %s11550_s23  ;;  %10889 = vmatprep.subr.bf16.mxu1 %v10888_v20 }
 0x519   :  { %v8413_v38 = vsel %vm18086_vm6, %v8386_v57, %v8394_v31  ;;  %10891 = vmatpush1.bf16.msra.mxu1 %v10890_v24  ;;  %8253 = vmatprep.mubr.f32.mxu0 %v11552_v11  ;;  %vm18106_vm6 = vmmov %vm18100_vm0 }
 0x51a   :  { %9206 = vrot.lane.b32.xlu1 %v14518_v49, %s11550_s23  ;;  %v8396_v21 = vpop.permute.xlu0 %8395  ;;  %v8426_v35 = vmul.f32 %v8413_v38, %v18088_v28 }
 0x51b   :  { %v8414_v42 = vsel %vm18087_vm7, %v8388_v47, %v8396_v21  ;;  %10483 = vmatmul.mubr.msk.f32.gmra.mrb[2].mxu0 %vm3110_vm13, %v10479_v53  ;;  %vm18107_vm7 = vcmp.lt.s32.totalorder %v12041_v41, 97 }
 0x51c   :  { %v8430_v30 = vmul.f32 %v8414_v42, %v18088_v28  ;;  %v8378_v3 = vpop.permute.xlu1 %8377  ;;  %9208 = vrot.lane.b32.xlu0 %v14536_v40, %s11550_s23  ;;  %10486 = vmatmul.mubr.msk.f32.vlgmr.msra.gmra.mrb[0].mxu1 %vm3110_vm13, %v10478_v60 }
 0x51d   :  { %v8417_v32 = vsel %vm18089_vm8, %v8378_v3, %v8386_v57  ;;  %8259 = vmatprep.mubr.f32.mxu0 %v11552_v11  ;;  %8342 = vmatprep.mubr.f32.mxu1 %v11552_v11  ;;  %vm18108_vm8 = vmmov %vm18107_vm7 }
 0x51e   :  { %9230 = vrot.lane.b32.xlu1 %v14542_v4, %s11550_s23  ;;  %v8380_v58 = vpop.permute.xlu0 %8379  ;;  %v10892_v13 = vpack.c.bf16 %v8430_v30, %v8426_v35  ;;  %v8425_v63 = vmul.f32 %v8417_v32, %v18091_v17 }
 0x51f   :  { %v8418_v61 = vsel %vm18090_vm9, %v8380_v58, %v8388_v47  ;;  %10484 = vmatmul.mubr.msk.f32.gmra.mrb[4].mxu0 %vm3110_vm13, %v10480_v26  ;;  %vm18109_vm9 = vmmov %vm18107_vm7 }
 0x520   :  { %v8429_v34 = vmul.f32 %v8418_v61, %v18091_v17  ;;  %v8402_v7 = vpop.permute.xlu1 %8401  ;;  %9232 = vrot.lane.b32.xlu0 %v14560_v37, %s11550_s23  ;;  %10893 = vmatprep.subr.bf16.mxu0 %v10892_v13 }
 0x521   :  { %v8409_v23 = vsel %vm18092_vm10, %v8394_v31, %v8402_v7  ;;  %v8421_v52 = vsel %vm18093_vm11, %v8402_v7, %v8378_v3  ;;  %10487 = vmatmul.mubr.msk.f32.gmra.mrb[2].mxu1 %vm3110_vm13, %v10479_v53  ;;  %8265 = vmatprep.mubr.f32.mxu0 %v11552_v11  ;;  %vm18110_vm10 = vmmov %vm18107_vm7 }
 0x522   :  { %v10894_v29 = vpack.c.bf16 %v8429_v34, %v8425_v63  ;;  %9485 = vrot.lane.b32.xlu1 %v14478_v45, %s18094_s29  ;;  %v8404_v59 = vpop.permute.xlu0 %8403  ;;  %8348 = vmatprep.mubr.f32.mxu1 %v11552_v11  ;;  %v8427_v19 = vmul.f32 %v8409_v23, %v18095_v14  ;;  %v8428_v55 = vmul.f32 %v8421_v52, %v18098_v10  ;;  %vm18111_vm11 = vmmov %vm18107_vm7 }
 0x523   :  { %v8410_v51 = vsel %vm18096_vm12, %v8396_v21, %v8404_v59  ;;  %v8422_v46 = vsel %vm18097_vm15, %v8404_v59, %v8380_v58  ;;  %10485 = vmatmul.mubr.msk.f32.gmra.mrb[6].mxu0 %vm3110_vm13, %v10481_v56  ;;  %vm18112_vm12 = vmmov %vm18107_vm7 }
 0x524   :  { %v8431_v50 = vmul.f32 %v8410_v51, %v18095_v14  ;;  %v8432_v57 = vmul.f32 %v8422_v46, %v18098_v10  ;;  %v8390_v45 = vpop.permute.xlu1 %8389  ;;  %9487 = vrot.lane.b32.xlu0 %v14500_v12, %s18094_s29  ;;  %10895 = vmatpush1.bf16.msra.mxu0 %v10894_v29  ;;  %vm18113_vm15 = vmmov %vm18107_vm7 }
 0x525   :  { %10488 = vmatmul.mubr.msk.f32.gmra.mrb[4].mxu1 %vm3110_vm13, %v10480_v26  ;;  %8522 = vmatprep.mubr.f32.mxu0 %v11552_v11 }
 0x526   :  { %v10902_v60 = vpack.c.bf16 %v8431_v50, %v8427_v19  ;;  %9493 = vrot.lane.b32.xlu1 %v14506_v18, %s18094_s29  ;;  %v8392_v24 = vpop.permute.xlu0 %8391  ;;  %v10900_v47 = vpack.c.bf16 %v8432_v57, %v8428_v55  ;;  %8354 = vmatprep.mubr.f32.mxu1 %v11552_v11  ;;  %v9752_v55 = vld [vmem:[%s17317_s5] sm:$0xff] }
 0x528   :  { %v8398_v20 = vpop.permute.xlu1 %8397  ;;  %9495 = vrot.lane.b32.xlu0 %v14524_v62, %s18094_s29  ;;  %10901 = vmatprep.subr.bf16.mxu1 %v10900_v47  ;;  %v9753_v47 = vld [vmem:[%s17317_s5 + $0x8] sm:$0xff] }
 0x529   :  { %v8415_v12 = vsel %vm18099_vm14, %v8390_v45, %v8398_v20  ;;  %10903 = vmatpush1.bf16.msra.mxu1 %v10902_v60  ;;  %vm18114_vm14 = vmmov %vm18107_vm7 }
 0x52a   :  { %9477 = vrot.lane.b32.xlu1 %v14466_v54, %s18094_s29  ;;  %v8400_v31 = vpop.permute.xlu0 %8399  ;;  %10489 = vmatmul.mubr.msk.f32.gmra.mrb[6].mxu1 %vm3110_vm13, %v10481_v56  ;;  %v8434_v53 = vmul.f32 %v8415_v12, %v18088_v28 }
 0x52b   :  { %v8416_v18 = vsel %vm18100_vm0, %v8392_v24, %v8400_v31  ;;  %8611 = vmatprep.mubr.f32.mxu1 %v11552_v11  ;;  %vm18116_vm0 = vmmov %vm18107_vm7 }
 0x52c   :  { %v8438_v62 = vmul.f32 %v8416_v18, %v18088_v28  ;;  %v8382_v38 = vpop.permute.xlu1 %8381  ;;  %9479 = vrot.lane.b32.xlu0 %v14487_v25, %s18094_s29 }
 0x52d   :  { %v8419_v21 = vsel %vm18101_vm1, %v8382_v38, %v8390_v45  ;;  %vm18117_vm1 = vmmov %vm18116_vm0 }
 0x52e   :  { %9501 = vrot.lane.b32.xlu1 %v14493_v27, %s18094_s29  ;;  %v8384_v54 = vpop.permute.xlu0 %8383  ;;  %v10896_v42 = vpack.c.bf16 %v8438_v62, %v8434_v53  ;;  %v8433_v30 = vmul.f32 %v8419_v21, %v18091_v17  ;;  %v9754_v53 = vld [vmem:[%s17317_s5 + $0x10] sm:$0xff]  ;;  %v18115_v62 = vld [vmem:[#allocation98_spill] sm:$0xff] }
 0x52f   :  { %v8420_v35 = vsel %vm18102_vm2, %v8384_v54, %v8392_v24  ;;  %vm18118_vm2 = vmmov %vm18116_vm0 }
 0x530   :  { %v8437_v3 = vmul.f32 %v8420_v35, %v18091_v17  ;;  %v8406_v28 = vpop.permute.xlu1 %8405  ;;  %9503 = vrot.lane.b32.xlu0 %v14512_v2, %s18094_s29  ;;  %10897 = vmatprep.subr.bf16.mxu0 %v10896_v42  ;;  %v9755_v35 = vld [vmem:[%s17317_s5 + $0x18] sm:$0xff] }
 0x531   :  { %v8411_v25 = vsel %vm18103_vm3, %v8398_v20, %v8406_v28  ;;  %v8423_v27 = vsel %vm18104_vm4, %v8406_v28, %v8382_v38  ;;  %vm18119_vm3 = vmmov %vm18116_vm0 }
 0x532   :  { %v10898_v26 = vpack.c.bf16 %v8437_v3, %v8433_v30  ;;  %9489 = vrot.lane.b32.xlu1 %v14530_v44, %s18094_s29  ;;  %v8408_v32 = vpop.permute.xlu0 %8407  ;;  %v8435_v58 = vmul.f32 %v8411_v25, %v18095_v14  ;;  %v8436_v61 = vmul.f32 %v8423_v27, %v18098_v10  ;;  %v10490_v44 = vld [vmem:[%s17316_s4 + $0x280] sm:$0xff]  ;;  %vm18120_vm4 = vmmov %vm18116_vm0 }
 0x533   :  { %v8412_v13 = vsel %vm18105_vm5, %v8400_v31, %v8408_v32  ;;  %v8424_v2 = vsel %vm18106_vm6, %v8408_v32, %v8384_v54  ;;  %v9889_v25 = vld [vmem:[%s17319_s7] sm:$0x7]  ;;  %vm18121_vm5 = vmmov %vm18116_vm0 }
 0x534   :  { %v8439_v17 = vmul.f32 %v8412_v13, %v18095_v14  ;;  %v8440_v63 = vmul.f32 %v8424_v2, %v18098_v10  ;;  %v8661_v34 = vpop.permute.xlu1 %8660  ;;  %9491 = vrot.lane.b32.xlu0 %v14548_v48, %s18094_s29  ;;  %10899 = vmatpush1.bf16.msra.mxu0 %v10898_v26  ;;  %v10491_v48 = vld [vmem:[%s17316_s4 + $0x288] sm:$0xff]  ;;  %vm18122_vm6 = vmmov %vm18116_vm0 }
 0x536   :  { %v10906_v7 = vpack.c.bf16 %v8439_v17, %v8435_v58  ;;  %9497 = vrot.lane.b32.xlu1 %v14554_v8, %s18094_s29  ;;  %v8663_v56 = vpop.permute.xlu0 %8662  ;;  %v10904_v23 = vpack.c.bf16 %v8440_v63, %v8436_v61 }
 0x537   :  { %10494 = vmatmul.mubr.msk.f32.vlgmr.msra.gmra.mrb[0].mxu0 %vm3110_vm13, %v10490_v44 }
 0x538   :  { %v8669_v52 = vpop.permute.xlu1 %8668  ;;  %9499 = vrot.lane.b32.xlu0 %v14568_v36, %s18094_s29  ;;  %10905 = vmatprep.subr.bf16.mxu1 %v10904_v23 }
 0x539   :  { %v8688_v29 = vsel %vm18107_vm7, %v8661_v34, %v8669_v52  ;;  %10907 = vmatpush1.bf16.msra.mxu1 %v10906_v7  ;;  %8528 = vmatprep.mubr.f32.mxu0 %v11552_v11  ;;  %vm18123_vm7 = vmmov %vm18116_vm0 }
 0x53a   :  { %9481 = vrot.lane.b32.xlu1 %v14518_v49, %s18094_s29  ;;  %v8671_v8 = vpop.permute.xlu0 %8670  ;;  %v8701_v36 = vmul.f32 %v8688_v29, %v17896_v15  ;;  %v10492_v49 = vld [vmem:[%s17316_s4 + $0x290] sm:$0xff] }
 0x53b   :  { %v8689_v59 = vsel %vm18108_vm8, %v8663_v56, %v8671_v8  ;;  %10495 = vmatmul.mubr.msk.f32.gmra.mrb[2].mxu0 %vm3110_vm13, %v10491_v48  ;;  %vm18124_vm8 = vcmp.lt.s32.totalorder %v12041_v41, 96 }
 0x53c   :  { %v8705_v14 = vmul.f32 %v8689_v59, %v17896_v15  ;;  %v8653_v19 = vpop.permute.xlu1 %8652  ;;  %9483 = vrot.lane.b32.xlu0 %v14536_v40, %s18094_s29  ;;  %10498 = vmatmul.mubr.msk.f32.vlgmr.msra.gmra.mrb[0].mxu1 %vm3110_vm13, %v10490_v44 }
 0x53d   :  { %v8692_v51 = vsel %vm18109_vm9, %v8653_v19, %v8661_v34  ;;  %8534 = vmatprep.mubr.f32.mxu0 %v11552_v11  ;;  %8617 = vmatprep.mubr.f32.mxu1 %v11552_v11  ;;  %vm18125_vm9 = vmmov %vm18124_vm8 }
 0x53e   :  { %9505 = vrot.lane.b32.xlu1 %v14542_v4, %s18094_s29  ;;  %v8655_v46 = vpop.permute.xlu0 %8654  ;;  %v10908_v10 = vpack.c.bf16 %v8705_v14, %v8701_v36  ;;  %v8700_v50 = vmul.f32 %v8692_v51, %v17895_v22  ;;  %v10493_v4 = vld [vmem:[%s17316_s4 + $0x298] sm:$0xff]  ;;  %v10502_v51 = vld [vmem:[%s17316_s4 + $0x2a0] sm:$0xff] }
 0x53f   :  { %v8693_v40 = vsel %vm18110_vm10, %v8655_v46, %v8663_v56  ;;  %10496 = vmatmul.mubr.msk.f32.gmra.mrb[4].mxu0 %vm3110_vm13, %v10492_v49  ;;  %vm18126_vm10 = vmmov %vm18124_vm8 }
 0x540   :  { %v8704_v57 = vmul.f32 %v8693_v40, %v17895_v22  ;;  %v8677_v45 = vpop.permute.xlu1 %8676  ;;  %9507 = vrot.lane.b32.xlu0 %v14560_v37, %s18094_s29  ;;  %10909 = vmatprep.subr.bf16.mxu0 %v10908_v10 }
 0x541   :  { %v8684_v60 = vsel %vm18111_vm11, %v8669_v52, %v8677_v45  ;;  %v8696_v24 = vsel %vm18112_vm12, %v8677_v45, %v8653_v19  ;;  %10499 = vmatmul.mubr.msk.f32.gmra.mrb[2].mxu1 %vm3110_vm13, %v10491_v48  ;;  %8540 = vmatprep.mubr.f32.mxu0 %v11552_v11  ;;  %vm18127_vm11 = vmmov %vm18124_vm8 }
 0x542   :  { %v10910_v37 = vpack.c.bf16 %v8704_v57, %v8700_v50  ;;  %9758 = vperm.xlu1 %11402, %v9752_v55   ;;  %v8679_v20 = vpop.permute.xlu0 %8678  ;;  %8623 = vmatprep.mubr.f32.mxu1 %v11552_v11  ;;  %v8702_v12 = vmul.f32 %v8684_v60, %v17897_v16  ;;  %v8703_v38 = vmul.f32 %v8696_v24, %v18115_v62  ;;  %vm18128_vm12 = vmmov %vm18124_vm8 }
 0x543   :  { %v8685_v31 = vsel %vm18113_vm15, %v8671_v8, %v8679_v20  ;;  %v8697_v18 = vsel %vm18114_vm14, %v8679_v20, %v8655_v46  ;;  %10497 = vmatmul.mubr.msk.f32.gmra.mrb[6].mxu0 %vm3110_vm13, %v10493_v4  ;;  %vm18129_vm15 = vmmov %vm18124_vm8 }
 0x544   :  { %v8706_v21 = vmul.f32 %v8685_v31, %v17897_v16  ;;  %v8707_v54 = vmul.f32 %v8697_v18, %v18115_v62  ;;  %v8665_v42 = vpop.permute.xlu1 %8664  ;;  %9763 = vperm.xlu0 %11401, %v9753_v47   ;;  %10911 = vmatpush1.bf16.msra.mxu0 %v10910_v37  ;;  %v10504_v47 = vld [vmem:[%s17316_s4 + $0x2b0] sm:$0xff]  ;;  %vm18130_vm14 = vmmov %vm18124_vm8 }
 0x545   :  { %10500 = vmatmul.mubr.msk.f32.gmra.mrb[4].mxu1 %vm3110_vm13, %v10492_v49  ;;  %8797 = vmatprep.mubr.f32.mxu0 %v11552_v11 }
 0x546   :  { %v10918_v30 = vpack.c.bf16 %v8706_v21, %v8702_v12  ;;  %9768 = vperm.xlu1 %11402, %v9754_v53   ;;  %v8667_v3 = vpop.permute.xlu0 %8666  ;;  %v10916_v28 = vpack.c.bf16 %v8707_v54, %v8703_v38  ;;  %8629 = vmatprep.mubr.f32.mxu1 %v11552_v11  ;;  %v10505_v38 = vld [vmem:[%s17316_s4 + $0x2b8] sm:$0xff] }
 0x548   :  { %v8673_v27 = vpop.permute.xlu1 %8672  ;;  %9773 = vperm.xlu0 %11401, %v9755_v35   ;;  %10917 = vmatprep.subr.bf16.mxu1 %v10916_v28 }
 0x549   :  { %v8690_v26 = vsel %vm18116_vm0, %v8665_v42, %v8673_v27  ;;  %10919 = vmatpush1.bf16.msra.mxu1 %v10918_v30  ;;  %vm18131_vm0 = vmmov %vm18124_vm8 }
 0x54a   :  { %9892 = vperm.xlu1 %11402, %v9889_v25   ;;  %v8675_v32 = vpop.permute.xlu0 %8674  ;;  %10501 = vmatmul.mubr.msk.f32.gmra.mrb[6].mxu1 %vm3110_vm13, %v10493_v4  ;;  %v8709_v13 = vmul.f32 %v8690_v26, %v17896_v15 }
 0x54b   :  { %v8691_v58 = vsel %vm18117_vm1, %v8667_v3, %v8675_v32  ;;  %8886 = vmatprep.mubr.f32.mxu1 %v11552_v11  ;;  %vm18132_vm1 = vmmov %vm18131_vm0 }
 0x54c   :  { %v8713_v2 = vmul.f32 %v8691_v58, %v17896_v15  ;;  %v8657_v61 = vpop.permute.xlu1 %8656 }
 0x54d   :  { %v8694_v17 = vsel %vm18118_vm2, %v8657_v61, %v8665_v42  ;;  %vm18133_vm2 = vmmov %vm18131_vm0 }
 0x54e   :  { %v8659_v63 = vpop.permute.xlu0 %8658  ;;  %v10912_v34 = vpack.c.bf16 %v8713_v2, %v8709_v13  ;;  %v8708_v7 = vmul.f32 %v8694_v17, %v17895_v22 }
 0x54f   :  { %v8695_v44 = vsel %vm18119_vm3, %v8659_v63, %v8667_v3  ;;  %vm18134_vm3 = vmmov %vm18131_vm0 }
 0x550   :  { %v8712_v56 = vmul.f32 %v8695_v44, %v17895_v22  ;;  %v8681_v23 = vpop.permute.xlu1 %8680  ;;  %10913 = vmatprep.subr.bf16.mxu0 %v10912_v34 }
 0x551   :  { %v8686_v52 = vsel %vm18120_vm4, %v8673_v27, %v8681_v23  ;;  %v8698_v15 = vsel %vm18121_vm5, %v8681_v23, %v8657_v61  ;;  %vm18135_vm4 = vmmov %vm18131_vm0 }
 0x552   :  { %v10914_v48 = vpack.c.bf16 %v8712_v56, %v8708_v7  ;;  %v8683_v29 = vpop.permute.xlu0 %8682  ;;  %v8710_v36 = vmul.f32 %v8686_v52, %v17897_v16  ;;  %v8711_v22 = vmul.f32 %v8698_v15, %v18115_v62  ;;  %vm18136_vm5 = vmmov %vm18131_vm0 }
 0x553   :  { %v8687_v8 = vsel %vm18122_vm6, %v8675_v32, %v8683_v29  ;;  %v8699_v59 = vsel %vm18123_vm7, %v8683_v29, %v8659_v63  ;;  %vm18137_vm6 = vmmov %vm18131_vm0 }
 0x554   :  { %v8714_v14 = vmul.f32 %v8687_v8, %v17897_v16  ;;  %v8715_v19 = vmul.f32 %v8699_v59, %v18115_v62  ;;  %v8936_v49 = vpop.permute.xlu1 %8935  ;;  %10915 = vmatpush1.bf16.msra.mxu0 %v10914_v48  ;;  %v10503_v16 = vld [vmem:[%s17316_s4 + $0x2a8] sm:$0xff]  ;;  %vm18138_vm7 = vmmov %vm18131_vm0 }
 0x556   :  { %v10922_v46 = vpack.c.bf16 %v8714_v14, %v8710_v36  ;;  %v8938_v10 = vpop.permute.xlu0 %8937  ;;  %v10920_v40 = vpack.c.bf16 %v8715_v19, %v8711_v22 }
 0x557   :  { %10506 = vmatmul.mubr.msk.f32.vlgmr.msra.gmra.mrb[0].mxu0 %vm3110_vm13, %v10502_v51 }
 0x558   :  { %v8944_v55 = vpop.permute.xlu1 %8943  ;;  %10921 = vmatprep.subr.bf16.mxu1 %v10920_v40  ;;  %8803 = vmatprep.mubr.f32.mxu0 %v11552_v11 }
 0x559   :  { %v8963_v50 = vsel %vm18124_vm8, %v8936_v49, %v8944_v55  ;;  %10923 = vmatpush1.bf16.msra.mxu1 %v10922_v46  ;;  %vm18139_vm8 = vmmov %vm18131_vm0 }
 0x55a   :  { %v8946_v57 = vpop.permute.xlu0 %8945  ;;  %v8976_v4 = vmul.f32 %v8963_v50, %v17902_v0 }
 0x55b   :  { %v8964_v45 = vsel %vm18125_vm9, %v8938_v10, %v8946_v57  ;;  %10507 = vmatmul.mubr.msk.f32.gmra.mrb[2].mxu0 %vm3110_vm13, %v10503_v16  ;;  %vm18140_vm9 = vcmp.lt.s32.totalorder %v12041_v41, 95 }
 0x55c   :  { %v8980_v60 = vmul.f32 %v8964_v45, %v17902_v0  ;;  %v8928_v24 = vpop.permute.xlu1 %8927  ;;  %10510 = vmatmul.mubr.msk.f32.vlgmr.msra.gmra.mrb[0].mxu1 %vm3110_vm13, %v10502_v51  ;;  %8809 = vmatprep.mubr.f32.mxu0 %v11552_v11 }
 0x55d   :  { %v8967_v37 = vsel %vm18126_vm10, %v8928_v24, %v8936_v49  ;;  %8892 = vmatprep.mubr.f32.mxu1 %v11552_v11  ;;  %vm18141_vm10 = vmmov %vm18140_vm9 }
 0x55e   :  { %v8930_v20 = vpop.permute.xlu0 %8929  ;;  %v10924_v12 = vpack.c.bf16 %v8980_v60, %v8976_v4  ;;  %v8975_v18 = vmul.f32 %v8967_v37, %v17901_v6 }
 0x55f   :  { %v8968_v31 = vsel %vm18127_vm11, %v8930_v20, %v8938_v10  ;;  %10508 = vmatmul.mubr.msk.f32.gmra.mrb[4].mxu0 %vm3110_vm13, %v10504_v47  ;;  %vm18142_vm11 = vmmov %vm18140_vm9 }
 0x560   :  { %v8979_v53 = vmul.f32 %v8968_v31, %v17901_v6  ;;  %v8952_v62 = vpop.permute.xlu1 %8951  ;;  %10925 = vmatprep.subr.bf16.mxu0 %v10924_v12  ;;  %10511 = vmatmul.mubr.msk.f32.gmra.mrb[2].mxu1 %vm3110_vm13, %v10503_v16 }
 0x561   :  { %v8959_v21 = vsel %vm18128_vm12, %v8944_v55, %v8952_v62  ;;  %v8971_v54 = vsel %vm18129_vm15, %v8952_v62, %v8928_v24  ;;  %8815 = vmatprep.mubr.f32.mxu0 %v11552_v11  ;;  %8898 = vmatprep.mubr.f32.mxu1 %v11552_v11  ;;  %v10514_v55 = vld [vmem:[%s17316_s4 + $0x2c0] sm:$0xff]  ;;  %vm18143_vm12 = vmmov %vm18140_vm9 }
 0x562   :  { %v10926_v42 = vpack.c.bf16 %v8979_v53, %v8975_v18  ;;  %v8954_v35 = vpop.permute.xlu0 %8953  ;;  %v8977_v30 = vmul.f32 %v8959_v21, %v17903_v33  ;;  %v8978_v25 = vmul.f32 %v8971_v54, %v17904_v1  ;;  %v10517_v54 = vld [vmem:[%s17316_s4 + $0x2d8] sm:$0xff]  ;;  %vm18144_vm15 = vmmov %vm18140_vm9 }
 0x563   :  { %v8960_v3 = vsel %vm18130_vm14, %v8946_v57, %v8954_v35  ;;  %v8972_v28 = vsel %vm18131_vm0, %v8954_v35, %v8930_v20  ;;  %10509 = vmatmul.mubr.msk.f32.gmra.mrb[6].mxu0 %vm3110_vm13, %v10505_v38  ;;  %v10516_v20 = vld [vmem:[%s17316_s4 + $0x2d0] sm:$0xff]  ;;  %vm18145_vm14 = vmmov %vm18140_vm9 }
 0x564   :  { %v8981_v27 = vmul.f32 %v8960_v3, %v17903_v33  ;;  %v8982_v26 = vmul.f32 %v8972_v28, %v17904_v1  ;;  %v8940_v32 = vpop.permute.xlu1 %8939  ;;  %10927 = vmatpush1.bf16.msra.mxu0 %v10926_v42  ;;  %10512 = vmatmul.mubr.msk.f32.gmra.mrb[4].mxu1 %vm3110_vm13, %v10504_v47  ;;  %vm18146_vm0 = vmmov %vm18140_vm9 }
 0x565   :  { %9072 = vmatprep.mubr.f32.mxu0 %v11552_v11  ;;  %8904 = vmatprep.mubr.f32.mxu1 %v11552_v11 }
 0x566   :  { %v10934_v58 = vpack.c.bf16 %v8981_v27, %v8977_v30  ;;  %v8942_v13 = vpop.permute.xlu0 %8941  ;;  %v10932_v2 = vpack.c.bf16 %v8982_v26, %v8978_v25 }
 0x568   :  { %v8948_v61 = vpop.permute.xlu1 %8947  ;;  %10933 = vmatprep.subr.bf16.mxu1 %v10932_v2  ;;  %10513 = vmatmul.mubr.msk.f32.gmra.mrb[6].mxu1 %vm3110_vm13, %v10505_v38 }
 0x569   :  { %v8965_v17 = vsel %vm18132_vm1, %v8940_v32, %v8948_v61  ;;  %10935 = vmatpush1.bf16.msra.mxu1 %v10934_v58  ;;  %9161 = vmatprep.mubr.f32.mxu1 %v11552_v11  ;;  %vm18147_vm1 = vmmov %vm18146_vm0 }
 0x56a   :  { %v8950_v63 = vpop.permute.xlu0 %8949  ;;  %v8984_v44 = vmul.f32 %v8965_v17, %v17902_v0 }
 0x56b   :  { %v8966_v34 = vsel %vm18133_vm2, %v8942_v13, %v8950_v63  ;;  %vm18148_vm2 = vmmov %vm18146_vm0 }
 0x56c   :  { %v8988_v7 = vmul.f32 %v8966_v34, %v17902_v0  ;;  %v8932_v56 = vpop.permute.xlu1 %8931 }
 0x56d   :  { %v8969_v23 = vsel %vm18134_vm3, %v8932_v56, %v8940_v32  ;;  %vm18149_vm3 = vmmov %vm18146_vm0 }
 0x56e   :  { %v8934_v52 = vpop.permute.xlu0 %8933  ;;  %v10928_v15 = vpack.c.bf16 %v8988_v7, %v8984_v44  ;;  %v8983_v29 = vmul.f32 %v8969_v23, %v17901_v6 }
 0x56f   :  { %v8970_v48 = vsel %vm18135_vm4, %v8934_v52, %v8942_v13  ;;  %vm18150_vm4 = vmmov %vm18146_vm0 }
 0x570   :  { %v8987_v8 = vmul.f32 %v8970_v48, %v17901_v6  ;;  %v8956_v59 = vpop.permute.xlu1 %8955  ;;  %10929 = vmatprep.subr.bf16.mxu0 %v10928_v15 }
 0x571   :  { %v8961_v36 = vsel %vm18136_vm5, %v8948_v61, %v8956_v59  ;;  %v8973_v0 = vsel %vm18137_vm6, %v8956_v59, %v8932_v56  ;;  %vm18151_vm5 = vmmov %vm18146_vm0 }
 0x572   :  { %v10930_v22 = vpack.c.bf16 %v8987_v8, %v8983_v29  ;;  %v8958_v14 = vpop.permute.xlu0 %8957  ;;  %v8985_v51 = vmul.f32 %v8961_v36, %v17903_v33  ;;  %v8986_v6 = vmul.f32 %v8973_v0, %v17904_v1  ;;  %vm18152_vm6 = vmmov %vm18146_vm0 }
 0x573   :  { %v8962_v19 = vsel %vm18138_vm7, %v8950_v63, %v8958_v14  ;;  %v8974_v49 = vsel %vm18139_vm8, %v8958_v14, %v8934_v52  ;;  %vm18153_vm7 = vmmov %vm18146_vm0 }
 0x574   :  { %v8989_v46 = vmul.f32 %v8962_v19, %v17903_v33  ;;  %v8990_v10 = vmul.f32 %v8974_v49, %v17904_v1  ;;  %v9211_v40 = vpop.permute.xlu1 %9210  ;;  %10931 = vmatpush1.bf16.msra.mxu0 %v10930_v22  ;;  %v10515_v33 = vld [vmem:[%s17316_s4 + $0x2c8] sm:$0xff]  ;;  %vm18154_vm8 = vmmov %vm18146_vm0 }
 0x576   :  { %v10938_v16 = vpack.c.bf16 %v8989_v46, %v8985_v51  ;;  %v9213_v50 = vpop.permute.xlu0 %9212  ;;  %v10936_v57 = vpack.c.bf16 %v8990_v10, %v8986_v6 }
 0x577   :  { %10518 = vmatmul.mubr.msk.f32.vlgmr.msra.gmra.mrb[0].mxu0 %vm3110_vm13, %v10514_v55 }
 0x578   :  { %v9219_v45 = vpop.permute.xlu1 %9218  ;;  %10937 = vmatprep.subr.bf16.mxu1 %v10936_v57  ;;  %9078 = vmatprep.mubr.f32.mxu0 %v11552_v11 }
 0x579   :  { %v9238_v1 = vsel %vm18140_vm9, %v9211_v40, %v9219_v45  ;;  %10939 = vmatpush1.bf16.msra.mxu1 %v10938_v16  ;;  %vm18155_vm9 = vmmov %vm18146_vm0 }
 0x57a   :  { %v9221_v4 = vpop.permute.xlu0 %9220  ;;  %v9251_v24 = vmul.f32 %v9238_v1, %v17906_v39 }
 0x57b   :  { %v9239_v60 = vsel %vm18141_vm10, %v9213_v50, %v9221_v4  ;;  %10519 = vmatmul.mubr.msk.f32.gmra.mrb[2].mxu0 %vm3110_vm13, %v10515_v33  ;;  %vm18156_vm10 = vcmp.lt.s32.totalorder %v12041_v41, 94  ;;  %v10539_v41 = vld [vmem:[%s17316_s4 + $0x308] sm:$0xff] }
 0x57c   :  { %v9255_v47 = vmul.f32 %v9239_v60, %v17906_v39  ;;  %v9203_v37 = vpop.permute.xlu1 %9202  ;;  %10522 = vmatmul.mubr.msk.f32.vlgmr.msra.gmra.mrb[0].mxu1 %vm3110_vm13, %v10514_v55  ;;  %9084 = vmatprep.mubr.f32.mxu0 %v11552_v11  ;;  %v10526_v55 = vld [vmem:[%s17316_s4 + $0x2e0] sm:$0xff] }
 0x57d   :  { %v9242_v12 = vsel %vm18142_vm11, %v9203_v37, %v9211_v40  ;;  %9167 = vmatprep.mubr.f32.mxu1 %v11552_v11  ;;  %vm18157_vm11 = vmmov %vm18156_vm10 }
 0x57e   :  { %v9205_v31 = vpop.permute.xlu0 %9204  ;;  %v10940_v18 = vpack.c.bf16 %v9255_v47, %v9251_v24  ;;  %v9250_v62 = vmul.f32 %v9242_v12, %v17905_v9 }
 0x57f   :  { %v9243_v53 = vsel %vm18143_vm12, %v9205_v31, %v9213_v50  ;;  %10520 = vmatmul.mubr.msk.f32.gmra.mrb[4].mxu0 %vm3110_vm13, %v10516_v20  ;;  %vm18159_vm12 = vmmov %vm18156_vm10 }
 0x580   :  { %v9254_v38 = vmul.f32 %v9243_v53, %v17905_v9  ;;  %v9227_v21 = vpop.permute.xlu1 %9226  ;;  %10941 = vmatprep.subr.bf16.mxu0 %v10940_v18  ;;  %10523 = vmatmul.mubr.msk.f32.gmra.mrb[2].mxu1 %vm3110_vm13, %v10515_v33  ;;  %v18161_v53 = vld [vmem:[#allocation16_spill] sm:$0xff] }
 0x581   :  { %v9234_v42 = vsel %vm18144_vm15, %v9219_v45, %v9227_v21  ;;  %v9246_v35 = vsel %vm18145_vm14, %v9227_v21, %v9203_v37  ;;  %9090 = vmatprep.mubr.f32.mxu0 %v11552_v11  ;;  %9173 = vmatprep.mubr.f32.mxu1 %v11552_v11  ;;  %v10528_v37 = vld [vmem:[%s17316_s4 + $0x2f0] sm:$0xff]  ;;  %vm18160_vm15 = vmmov %vm18156_vm10 }
 0x582   :  { %v10942_v30 = vpack.c.bf16 %v9254_v38, %v9250_v62  ;;  %v9229_v3 = vpop.permute.xlu0 %9228  ;;  %v9252_v28 = vmul.f32 %v9234_v42, %v17907_v43  ;;  %v9253_v26 = vmul.f32 %v9246_v35, %v17908_v5  ;;  %vm18162_vm14 = vmmov %vm18156_vm10 }
 0x583   :  { %v9235_v25 = vsel %vm18146_vm0, %v9221_v4, %v9229_v3  ;;  %v9247_v27 = vsel %vm18147_vm1, %v9229_v3, %v9205_v31  ;;  %10521 = vmatmul.mubr.msk.f32.gmra.mrb[6].mxu0 %vm3110_vm13, %v10517_v54  ;;  %v18158_v4 = vld [vmem:[#allocation104_spill] sm:$0xff]  ;;  %vm18163_vm0 = vmmov %vm18156_vm10 }
 0x584   :  { %v9256_v32 = vmul.f32 %v9235_v25, %v17907_v43  ;;  %v9257_v58 = vmul.f32 %v9247_v27, %v17908_v5  ;;  %v9215_v13 = vpop.permute.xlu1 %9214  ;;  %10943 = vmatpush1.bf16.msra.mxu0 %v10942_v30  ;;  %10524 = vmatmul.mubr.msk.f32.gmra.mrb[4].mxu1 %vm3110_vm13, %v10516_v20  ;;  %vm18165_vm1 = vmmov %vm18163_vm0 }
 0x585   :  { %9347 = vmatprep.mubr.f32.mxu0 %v11552_v11  ;;  %9179 = vmatprep.mubr.f32.mxu1 %v11552_v11 }
 0x586   :  { %v10950_v2 = vpack.c.bf16 %v9256_v32, %v9252_v28  ;;  %v9217_v61 = vpop.permute.xlu0 %9216  ;;  %v10948_v17 = vpack.c.bf16 %v9257_v58, %v9253_v26  ;;  %v18164_v28 = vld [vmem:[#allocation113_spill] sm:$0xff]  ;;  %v18167_v32 = vld [vmem:[#allocation114_spill] sm:$0xff] }
 0x588   :  { %v9223_v63 = vpop.permute.xlu1 %9222  ;;  %10949 = vmatprep.subr.bf16.mxu1 %v10948_v17  ;;  %10525 = vmatmul.mubr.msk.f32.gmra.mrb[6].mxu1 %vm3110_vm13, %v10517_v54  ;;  %v10529_v54 = vld [vmem:[%s17316_s4 + $0x2f8] sm:$0xff] }
 0x589   :  { %v9240_v34 = vsel %vm18148_vm2, %v9215_v13, %v9223_v63  ;;  %10951 = vmatpush1.bf16.msra.mxu1 %v10950_v2  ;;  %9436 = vmatprep.mubr.f32.mxu1 %v11552_v11  ;;  %vm18166_vm2 = vmmov %vm18163_vm0 }
 0x58a   :  { %v9225_v44 = vpop.permute.xlu0 %9224  ;;  %v9259_v56 = vmul.f32 %v9240_v34, %v17906_v39 }
 0x58b   :  { %v9241_v7 = vsel %vm18149_vm3, %v9217_v61, %v9225_v44  ;;  %vm18168_vm3 = vmmov %vm18163_vm0 }
 0x58c   :  { %v9263_v23 = vmul.f32 %v9241_v7, %v17906_v39  ;;  %v9207_v52 = vpop.permute.xlu1 %9206 }
 0x58d   :  { %v9244_v15 = vsel %vm18150_vm4, %v9207_v52, %v9215_v13  ;;  %vm18169_vm4 = vmmov %vm18163_vm0 }
 0x58e   :  { %v9209_v48 = vpop.permute.xlu0 %9208  ;;  %v10944_v29 = vpack.c.bf16 %v9263_v23, %v9259_v56  ;;  %v9258_v59 = vmul.f32 %v9244_v15, %v17905_v9 }
 0x58f   :  { %v9245_v8 = vsel %vm18151_vm5, %v9209_v48, %v9217_v61  ;;  %vm18170_vm5 = vmmov %vm18163_vm0 }
 0x590   :  { %v9262_v36 = vmul.f32 %v9245_v8, %v17905_v9  ;;  %v9231_v0 = vpop.permute.xlu1 %9230  ;;  %10945 = vmatprep.subr.bf16.mxu0 %v10944_v29 }
 0x591   :  { %v9236_v22 = vsel %vm18152_vm6, %v9223_v63, %v9231_v0  ;;  %v9248_v39 = vsel %vm18153_vm7, %v9231_v0, %v9207_v52  ;;  %vm18171_vm6 = vmmov %vm18163_vm0 }
 0x592   :  { %v10946_v14 = vpack.c.bf16 %v9262_v36, %v9258_v59  ;;  %v9233_v19 = vpop.permute.xlu0 %9232  ;;  %v9260_v6 = vmul.f32 %v9236_v22, %v17907_v43  ;;  %v9261_v9 = vmul.f32 %v9248_v39, %v17908_v5  ;;  %vm18172_vm7 = vmmov %vm18163_vm0 }
 0x593   :  { %v9237_v49 = vsel %vm18154_vm8, %v9225_v44, %v9233_v19  ;;  %v9249_v51 = vsel %vm18155_vm9, %v9233_v19, %v9209_v48  ;;  %vm18173_vm8 = vmmov %vm18163_vm0 }
 0x594   :  { %v9264_v46 = vmul.f32 %v9237_v49, %v17907_v43  ;;  %v9265_v10 = vmul.f32 %v9249_v51, %v17908_v5  ;;  %v9486_v40 = vpop.permute.xlu1 %9485  ;;  %10947 = vmatpush1.bf16.msra.mxu0 %v10946_v14  ;;  %v10527_v43 = vld [vmem:[%s17316_s4 + $0x2e8] sm:$0xff]  ;;  %vm18174_vm9 = vmmov %vm18163_vm0 }
 0x596   :  { %v10954_v16 = vpack.c.bf16 %v9264_v46, %v9260_v6  ;;  %v9488_v50 = vpop.permute.xlu0 %9487  ;;  %v10952_v57 = vpack.c.bf16 %v9265_v10, %v9261_v9 }
 0x597   :  { %10530 = vmatmul.mubr.msk.f32.vlgmr.msra.gmra.mrb[0].mxu0 %vm3110_vm13, %v10526_v55 }
 0x598   :  { %v9494_v45 = vpop.permute.xlu1 %9493  ;;  %10953 = vmatprep.subr.bf16.mxu1 %v10952_v57  ;;  %9353 = vmatprep.mubr.f32.mxu0 %v11552_v11 }
 0x599   :  { %v9513_v5 = vsel %vm18156_vm10, %v9486_v40, %v9494_v45  ;;  %10955 = vmatpush1.bf16.msra.mxu1 %v10954_v16  ;;  %vm18175_vm10 = vmmov %vm18163_vm0  ;;  %v10538_v16 = vld [vmem:[%s17316_s4 + $0x300] sm:$0xff] }
 0x59a   :  { %v9496_v33 = vpop.permute.xlu0 %9495  ;;  %v9526_v60 = vmul.f32 %v9513_v5, %v18158_v4 }
 0x59b   :  { %v9514_v1 = vsel %vm18157_vm11, %v9488_v50, %v9496_v33  ;;  %10531 = vmatmul.mubr.msk.f32.gmra.mrb[2].mxu0 %vm3110_vm13, %v10527_v43 }
 0x59c   :  { %v9530_v24 = vmul.f32 %v9514_v1, %v18158_v4  ;;  %v9478_v47 = vpop.permute.xlu1 %9477  ;;  %10534 = vmatmul.mubr.msk.f32.vlgmr.msra.gmra.mrb[0].mxu1 %vm3110_vm13, %v10526_v55  ;;  %9359 = vmatprep.mubr.f32.mxu0 %v11552_v11 }
 0x59d   :  { %v9517_v20 = vsel %vm18159_vm12, %v9478_v47, %v9486_v40  ;;  %9442 = vmatprep.mubr.f32.mxu1 %v11552_v11 }
 0x59e   :  { %v9480_v12 = vpop.permute.xlu0 %9479  ;;  %v10956_v31 = vpack.c.bf16 %v9530_v24, %v9526_v60  ;;  %v9525_v62 = vmul.f32 %v9517_v20, %v18161_v53 }
 0x59f   :  { %v9518_v18 = vsel %vm18160_vm15, %v9480_v12, %v9488_v50  ;;  %10532 = vmatmul.mubr.msk.f32.gmra.mrb[4].mxu0 %vm3110_vm13, %v10528_v37 }
 0x5a0   :  { %v9529_v38 = vmul.f32 %v9518_v18, %v18161_v53  ;;  %v9502_v21 = vpop.permute.xlu1 %9501  ;;  %10957 = vmatprep.subr.bf16.mxu0 %v10956_v31  ;;  %10535 = vmatmul.mubr.msk.f32.gmra.mrb[2].mxu1 %vm3110_vm13, %v10527_v43  ;;  %v10541_v43 = vld [vmem:[%s17316_s4 + $0x318] sm:$0xff] }
 0x5a1   :  { %v9509_v42 = vsel %vm18162_vm14, %v9494_v45, %v9502_v21  ;;  %v9521_v35 = vsel %vm18163_vm0, %v9502_v21, %v9478_v47  ;;  %9365 = vmatprep.mubr.f32.mxu0 %v11552_v11  ;;  %9448 = vmatprep.mubr.f32.mxu1 %v11552_v11  ;;  %v10540_v45 = vld [vmem:[%s17316_s4 + $0x310] sm:$0xff] }
 0x5a2   :  { %v10958_v30 = vpack.c.bf16 %v9529_v38, %v9525_v62  ;;  %v9504_v3 = vpop.permute.xlu0 %9503  ;;  %v9527_v25 = vmul.f32 %v9509_v42, %v18164_v28  ;;  %v9528_v58 = vmul.f32 %v9521_v35, %v18167_v32 }
 0x5a3   :  { %v9510_v27 = vsel %vm18165_vm1, %v9496_v33, %v9504_v3  ;;  %v9522_v26 = vsel %vm18166_vm2, %v9504_v3, %v9480_v12  ;;  %10533 = vmatmul.mubr.msk.f32.gmra.mrb[6].mxu0 %vm3110_vm13, %v10529_v54 }
 0x5a4   :  { %v9531_v13 = vmul.f32 %v9510_v27, %v18164_v28  ;;  %v9532_v2 = vmul.f32 %v9522_v26, %v18167_v32  ;;  %v9490_v61 = vpop.permute.xlu1 %9489  ;;  %10959 = vmatpush1.bf16.msra.mxu0 %v10958_v30  ;;  %10536 = vmatmul.mubr.msk.f32.gmra.mrb[4].mxu1 %vm3110_vm13, %v10528_v37 }
 0x5a5   :  { %9622 = vmatprep.mubr.f32.mxu0 %v11552_v11  ;;  %9454 = vmatprep.mubr.f32.mxu1 %v11552_v11 }
 0x5a6   :  { %v10966_v17 = vpack.c.bf16 %v9531_v13, %v9527_v25  ;;  %v9492_v63 = vpop.permute.xlu0 %9491  ;;  %v10964_v34 = vpack.c.bf16 %v9532_v2, %v9528_v58 }
 0x5a8   :  { %v9498_v44 = vpop.permute.xlu1 %9497  ;;  %10965 = vmatprep.subr.bf16.mxu1 %v10964_v34  ;;  %10537 = vmatmul.mubr.msk.f32.gmra.mrb[6].mxu1 %vm3110_vm13, %v10529_v54 }
 0x5a9   :  { %v9515_v7 = vsel %vm18168_vm3, %v9490_v61, %v9498_v44  ;;  %10967 = vmatpush1.bf16.msra.mxu1 %v10966_v17  ;;  %9711 = vmatprep.mubr.f32.mxu1 %v11552_v11 }
 0x5aa   :  { %v9500_v56 = vpop.permute.xlu0 %9499  ;;  %v9534_v52 = vmul.f32 %v9515_v7, %v18158_v4 }
 0x5ab   :  { %v9516_v23 = vsel %vm18169_vm4, %v9492_v63, %v9500_v56 }
 0x5ac   :  { %v9538_v15 = vmul.f32 %v9516_v23, %v18158_v4  ;;  %v9482_v48 = vpop.permute.xlu1 %9481 }
 0x5ad   :  { %v9519_v29 = vsel %vm18170_vm5, %v9482_v48, %v9490_v61 }
 0x5ae   :  { %v9484_v8 = vpop.permute.xlu0 %9483  ;;  %v10960_v59 = vpack.c.bf16 %v9538_v15, %v9534_v52  ;;  %v9533_v0 = vmul.f32 %v9519_v29, %v18161_v53 }
 0x5af   :  { %v9520_v36 = vsel %vm18171_vm6, %v9484_v8, %v9492_v63 }
 0x5b0   :  { %v9537_v22 = vmul.f32 %v9520_v36, %v18161_v53  ;;  %v9506_v39 = vpop.permute.xlu1 %9505  ;;  %10961 = vmatprep.subr.bf16.mxu0 %v10960_v59 }
 0x5b1   :  { %v9511_v14 = vsel %vm18172_vm7, %v9498_v44, %v9506_v39  ;;  %v9523_v19 = vsel %vm18173_vm8, %v9506_v39, %v9482_v48 }
 0x5b2   :  { %v10962_v49 = vpack.c.bf16 %v9537_v22, %v9533_v0  ;;  %v9508_v51 = vpop.permute.xlu0 %9507  ;;  %v9535_v46 = vmul.f32 %v9511_v14, %v18164_v28  ;;  %v9536_v10 = vmul.f32 %v9523_v19, %v18167_v32 }
 0x5b3   :  { %v9512_v6 = vsel %vm18174_vm9, %v9500_v56, %v9508_v51  ;;  %v9524_v9 = vsel %vm18175_vm10, %v9508_v51, %v9484_v8 }
 0x5b4   :  { %v9539_v40 = vmul.f32 %v9512_v6, %v18164_v28  ;;  %v9540_v55 = vmul.f32 %v9524_v9, %v18167_v32  ;;  %10963 = vmatpush1.bf16.msra.mxu0 %v10962_v49 }
 0x5b6   :  { %v10970_v50 = vpack.c.bf16 %v9539_v40, %v9535_v46  ;;  %v10968_v57 = vpack.c.bf16 %v9540_v55, %v9536_v10 }
 0x5b7   :  { %10542 = vmatmul.mubr.msk.f32.vlgmr.msra.gmra.mrb[0].mxu0 %vm3110_vm13, %v10538_v16 }
 0x5b8   :  { %10969 = vmatprep.subr.bf16.mxu1 %v10968_v57  ;;  %9628 = vmatprep.mubr.f32.mxu0 %v11552_v11 }
 0x5b9   :  { %10971 = vmatpush1.bf16.msra.mxu1 %v10970_v50 }
 0x5bb   :  { %10543 = vmatmul.mubr.msk.f32.gmra.mrb[2].mxu0 %vm3110_vm13, %v10539_v41 }
 0x5bc   :  { %10546 = vmatmul.mubr.msk.f32.vlgmr.msra.gmra.mrb[0].mxu1 %vm3110_vm13, %v10538_v16  ;;  %9634 = vmatprep.mubr.f32.mxu0 %v11552_v11 }
 0x5bd   :  { %9717 = vmatprep.mubr.f32.mxu1 %v11552_v11 }
 0x5bf   :  { %10544 = vmatmul.mubr.msk.f32.gmra.mrb[4].mxu0 %vm3110_vm13, %v10540_v45 }
 0x5c0   :  { %10547 = vmatmul.mubr.msk.f32.gmra.mrb[2].mxu1 %vm3110_vm13, %v10539_v41  ;;  %9640 = vmatprep.mubr.f32.mxu0 %v11552_v11 }
 0x5c1   :  { %9723 = vmatprep.mubr.f32.mxu1 %v11552_v11  ;;  %v9759_v5 = vpop.permute.xlu1 %9758 }
 0x5c3   :  { %10545 = vmatmul.mubr.msk.f32.gmra.mrb[6].mxu0 %vm3110_vm13, %v10541_v43  ;;  %v9764_v47 = vpop.permute.xlu0 %9763 }
 0x5c4   :  { %10548 = vmatmul.mubr.msk.f32.gmra.mrb[4].mxu1 %vm3110_vm13, %v10540_v45  ;;  %9962 = vmatprep.mubr.f32.mxu0 %v11552_v11 }
 0x5c5   :  { %9729 = vmatprep.mubr.f32.mxu1 %v11552_v11  ;;  %v9769_v28 = vpop.permute.xlu1 %9768 }
 0x5c7   :  { %v9774_v7 = vpop.permute.xlu0 %9773 }
 0x5c8   :  { %10549 = vmatmul.mubr.msk.f32.gmra.mrb[6].mxu1 %vm3110_vm13, %v10541_v43 }
 0x5c9   :  { %10033 = vmatprep.mubr.f32.mxu1 %v11552_v11 }
 0x68a   :  { %v9624_v33 = vpop.f32.mrb[0].mxu0 }
 0x68b   :  { %v17199_v1 = vadd.f32 %v9759_v5, %v9624_v33  ;;  %v9626_v4 = vpop.f32.mrb[1].mxu0 }
 0x68c   :  { %v17201_v60 = vadd.f32 %v9759_v5, %v9626_v4 }
 0x68d   :  { %v9808_v24 = vmin.f32 %v17199_v1, 0.0  ;;  %vm9792_vm11 = vcmp.gt.f32.partialorder %v17199_v1, 0.0 }
 0x68e   :  { %v9809_v37 = vmin.f32 %v17201_v60, 0.0  ;;  %v9630_v20 = vpop.f32.mrb[2].mxu0  ;;  %vm9793_vm15 = vcmp.gt.f32.partialorder %v17201_v60, 0.0 }
 0x68f   :  { %v9824_v12 = vmul.f32 1.442695, %v9808_v24  ;;  %v17205_v31 = vadd.f32 %v9764_v47, %v9630_v20  ;;  %v9632_v18 = vpop.f32.mrb[3].mxu0  ;;  %v9713_v53 = vpop.f32.mrb[0].mxu1 }
 0x690   :  { %v9826_v62 = vmul.f32 1.442695, %v9809_v37  ;;  %v17207_v38 = vadd.f32 %v9764_v47, %v9632_v18  ;;  %v17209_v21 = vadd.f32 %v9759_v5, %v9713_v53  ;;  %v9715_v54 = vpop.f32.mrb[1].mxu1 }
 0x691   :  { %11435 = vpow2.f32 %v9824_v12  ;;  %v9812_v42 = vmin.f32 %v17205_v31, 0.0  ;;  %v17212_v35 = vadd.f32 %v9759_v5, %v9715_v54  ;;  %vm9796_vm12 = vcmp.gt.f32.partialorder %v17205_v31, 0.0 }
 0x692   :  { %v9813_v30 = vmin.f32 %v17207_v38, 0.0  ;;  %v9636_v3 = vpop.f32.mrb[4].mxu0  ;;  %11437 = vpow2.f32 %v9826_v62  ;;  %v9810_v27 = vmin.f32 %v17209_v21, 0.0  ;;  %vm9797_vm14 = vcmp.gt.f32.partialorder %v17207_v38, 0.0 }
 0x693   :  { %v9832_v25 = vmul.f32 1.442695, %v9812_v42  ;;  %v9811_v26 = vmin.f32 %v17212_v35, 0.0  ;;  %v9638_v32 = vpop.f32.mrb[5].mxu0  ;;  %v17217_v13 = vadd.f32 %v9769_v28, %v9636_v3  ;;  %v9719_v61 = vpop.f32.mrb[2].mxu1  ;;  %vm9794_vm0 = vcmp.gt.f32.partialorder %v17209_v21, 0.0 }
 0x694   :  { %v9834_v58 = vmul.f32 1.442695, %v9813_v30  ;;  %v17219_v2 = vadd.f32 %v9769_v28, %v9638_v32  ;;  %v9828_v17 = vmul.f32 1.442695, %v9810_v27  ;;  %v17221_v34 = vadd.f32 %v9764_v47, %v9719_v61  ;;  %v9721_v44 = vpop.f32.mrb[3].mxu1 }
 0x695   :  { %11439 = vpow2.f32 %v9832_v25  ;;  %v9830_v63 = vmul.f32 1.442695, %v9811_v26  ;;  %v9816_v56 = vmin.f32 %v17217_v13, 0.0  ;;  %v17226_v59 = vadd.f32 %v9764_v47, %v9721_v44 }
 0x696   :  { %11441 = vpow2.f32 %v9834_v58  ;;  %v9642_v23 = vpop.f32.mrb[6].mxu0  ;;  %v9817_v52 = vmin.f32 %v17219_v2, 0.0  ;;  %v9814_v15 = vmin.f32 %v17221_v34, 0.0  ;;  %vm9795_vm1 = vcmp.gt.f32.partialorder %v17212_v35, 0.0 }
 0x697   :  { %11443 = vpow2.f32 %v9828_v17  ;;  %v9644_v48 = vpop.f32.mrb[7].mxu0  ;;  %v9725_v29 = vpop.f32.mrb[4].mxu1  ;;  %v9840_v8 = vmul.f32 1.442695, %v9816_v56  ;;  %v17228_v36 = vadd.f32 %v9774_v7, %v9642_v23  ;;  %v9815_v49 = vmin.f32 %v17226_v59, 0.0 }
 0x698   :  { %11445 = vpow2.f32 %v9830_v63  ;;  %v9727_v0 = vpop.f32.mrb[5].mxu1  ;;  %v9842_v22 = vmul.f32 1.442695, %v9817_v52  ;;  %v9836_v39 = vmul.f32 1.442695, %v9814_v15  ;;  %v17230_v14 = vadd.f32 %v9774_v7, %v9644_v48 }
 0x699   :  { %v17232_v19 = vadd.f32 %v9769_v28, %v9725_v29  ;;  %11447 = vpow2.f32 %v9840_v8  ;;  %v9820_v6 = vmin.f32 %v17228_v36, 0.0  ;;  %v9838_v10 = vmul.f32 1.442695, %v9815_v49 }
 0x69a   :  { %11449 = vpow2.f32 %v9842_v22  ;;  %v9821_v9 = vmin.f32 %v17230_v14, 0.0  ;;  %v17238_v45 = vadd.f32 %v9769_v28, %v9727_v0  ;;  %vm9800_vm2 = vcmp.gt.f32.partialorder %v17217_v13, 0.0 }
 0x69b   :  { %v11436_v51 = vpop.eup %11435  ;;  %v9731_v46 = vpop.f32.mrb[6].mxu1  ;;  %11451 = vpow2.f32 %v9836_v39  ;;  %v9848_v16 = vmul.f32 1.442695, %v9820_v6  ;;  %v9818_v57 = vmin.f32 %v17232_v19, 0.0  ;;  %vm9798_vm3 = vcmp.gt.f32.partialorder %v17221_v34, 0.0 }
 0x69c   :  { %v9733_v40 = vpop.f32.mrb[7].mxu1  ;;  %v11438_v55 = vpop.eup %11437  ;;  %v9850_v50 = vmul.f32 1.442695, %v9821_v9  ;;  %v10550_v41 = vadd.f32 -1.0, %v11436_v51  ;;  %11453 = vpow2.f32 %v9838_v10  ;;  %v17240_v43 = vadd.f32 %v9774_v7, %v9731_v46 }
 0x69d   :  { %11455 = vpow2.f32 %v9848_v16  ;;  %v9844_v33 = vmul.f32 1.442695, %v9818_v57  ;;  %v17243_v4 = vadd.f32 %v9774_v7, %v9733_v40  ;;  %v10551_v47 = vadd.f32 -1.0, %v11438_v55 }
 0x69e   :  { %11457 = vpow2.f32 %v9850_v50  ;;  %v9819_v20 = vmin.f32 %v17238_v45, 0.0  ;;  %v9822_v53 = vmin.f32 %v17240_v43, 0.0  ;;  %v9872_v54 = vsel %vm9792_vm11, %v17199_v1, %v10550_v41 }
 0x69f   :  { %v11440_v5 = vpop.eup %11439  ;;  %11459 = vpow2.f32 %v9844_v33  ;;  %v9823_v25 = vmin.f32 %v17243_v4, 0.0  ;;  %v9873_v26 = vsel %vm9793_vm15, %v17201_v60, %v10551_v47  ;;  %vm9801_vm4 = vcmp.gt.f32.partialorder %v17219_v2, 0.0 }
 0x6a0   :  { %v11442_v24 = vpop.eup %11441  ;;  %v10554_v37 = vadd.f32 -1.0, %v11440_v5  ;;  %v9846_v30 = vmul.f32 1.442695, %v9819_v20  ;;  %v9852_v28 = vmul.f32 1.442695, %v9822_v53  ;;  %vm9799_vm5 = vcmp.gt.f32.partialorder %v17226_v59, 0.0 }
 0x6a1   :  { %v11444_v12 = vpop.eup %11443  ;;  %v10555_v18 = vadd.f32 -1.0, %v11442_v24  ;;  %v9854_v1 = vmul.f32 1.442695, %v9823_v25  ;;  %vm9804_vm6 = vcmp.gt.f32.partialorder %v17228_v36, 0.0  ;;  %vm9805_vm7 = vcmp.gt.f32.partialorder %v17230_v14, 0.0 }
 0x6a2   :  { %v11446_v62 = vpop.eup %11445  ;;  %v9876_v42 = vsel %vm9796_vm12, %v17205_v31, %v10554_v37  ;;  %11461 = vpow2.f32 %v9846_v30  ;;  %v10552_v61 = vadd.f32 -1.0, %v11444_v12  ;;  %vm9802_vm8 = vcmp.gt.f32.partialorder %v17232_v19, 0.0 }
 0x6a3   :  { %v10974_v3 = vpack.c.bf16 %v9876_v42, %v9872_v54  ;;  %v11448_v27 = vpop.eup %11447  ;;  %v9877_v32 = vsel %vm9797_vm14, %v17207_v38, %v10555_v18  ;;  %11463 = vpow2.f32 %v9852_v28  ;;  %v10553_v31 = vadd.f32 -1.0, %v11446_v62 }
 0x6a4   :  { %v11450_v58 = vpop.eup %11449  ;;  %v10972_v17 = vpack.c.bf16 %v9877_v32, %v9873_v26  ;;  %11465 = vpow2.f32 %v9854_v1  ;;  %v10558_v60 = vadd.f32 -1.0, %v11448_v27  ;;  %v9874_v56 = vsel %vm9794_vm0, %v17209_v21, %v10552_v61 }
 0x6a5   :  { %v11452_v63 = vpop.eup %11451  ;;  %v10559_v23 = vadd.f32 -1.0, %v11450_v58  ;;  %v9875_v39 = vsel %vm9795_vm1, %v17212_v35, %v10553_v31  ;;  %vm9806_vm9 = vcmp.gt.f32.partialorder %v17240_v43, 0.0  ;;  %vm9803_vm10 = vcmp.gt.f32.partialorder %v17238_v45, 0.0 }
 0x6a6   :  { %v10556_v44 = vadd.f32 -1.0, %v11452_v63  ;;  %10973 = vmatprep.subr.bf16.mxu0 %v10972_v17  ;;  %v11454_v7 = vpop.eup %11453  ;;  %vm9807_vm11 = vcmp.gt.f32.partialorder %v17243_v4, 0.0  ;;  %vm10064_vm15 = vcmask 1042432  }
 0x6a7   :  { %10975 = vmatpush1.bf16.msra.mxu0 %v10974_v3  ;;  %v11456_v38 = vpop.eup %11455  ;;  %v10557_v15 = vadd.f32 -1.0, %v11454_v7  ;;  %v9881_v9 = vsel %vm9801_vm4, %v17219_v2, %v10559_v23  ;;  %v9888_v2 = vld [vmem:[%s17318_s6] sm:$0x7]  ;;  %s11553_s6 = smov [#allocation5]  }
 0x6a8   :  { %v9878_v52 = vsel %vm9798_vm3, %v17221_v34, %v10556_v44  ;;  %v11458_v48 = vpop.eup %11457  ;;  %v10562_v8 = vadd.f32 -1.0, %v11456_v38  ;;  %v9880_v34 = vsel %vm9800_vm2, %v17217_v13, %v10558_v60  ;;  %s10132_s26 = sshll.u32 %s11553_s6, 4  ;;  %s10133_s26 = int_to_ptr.vmem [resolvable:$true] %s10132_s26 }
 0x6a9   :  { %v10982_v29 = vpack.c.bf16 %v9878_v52, %v9874_v56  ;;  %v11460_v0 = vpop.eup %11459  ;;  %v10563_v22 = vadd.f32 -1.0, %v11458_v48  ;;  %v9879_v21 = vsel %vm9799_vm5, %v17226_v59, %v10557_v15  ;;  %s11499_s10 = scalar_lea.vmem %s10133_s26, 256  ;;  %p11504_p9 = scmp.lt.s32.totalorder %s10133_s26, %s10133_s26 }
 0x6aa   :  { %v9884_v49 = vsel %vm9804_vm6, %v17228_v36, %v10562_v8  ;;  %v10980_v51 = vpack.c.bf16 %v9879_v21, %v9875_v39  ;;  %v10560_v40 = vadd.f32 -1.0, %v11460_v0  ;;  %p11500_p8 = scmp.ne.s32.totalorder %s10133_s26, %s11499_s10  ;;  %p11505_p10 = scmp.lt.s32.totalorder %s11499_s10, %s11499_s10 }
 0x6ab   :  { %v10978_v6 = vpack.c.bf16 %v9884_v49, %v9880_v34  ;;  %v9885_v46 = vsel %vm9805_vm7, %v17230_v14, %v10563_v22 }
 0x6ac   :  { %v11462_v10 = vpop.eup %11461  ;;  %10981 = vmatprep.subr.bf16.mxu1 %v10980_v51  ;;  %v10976_v35 = vpack.c.bf16 %v9885_v46, %v9881_v9  ;;  %v9882_v36 = vsel %vm9802_vm8, %v17232_v19, %v10560_v40  ;;  %v9893_v19 = vpop.permute.xlu1 %9892  ;;  %p11506_p11 = por %p11505_p10, %p11504_p9 }
 0x6ad   :  { %v11464_v55 = vpop.eup %11463  ;;  %10983 = vmatpush1.bf16.msra.mxu1 %v10982_v29  ;;  %v10561_v59 = vadd.f32 -1.0, %v11462_v10 }
 0x6ae   :  { %v10564_v16 = vadd.f32 -1.0, %v11464_v55  ;;  %10977 = vmatprep.subr.bf16.mxu0 %v10976_v35  ;;  %v11466_v13 = vpop.eup %11465  ;;  %p11507_p12 = pnand %p11506_p11, %p11500_p8 }
 0x6af   :  { %10979 = vmatpush1.bf16.msra.mxu0 %v10978_v6  ;;  %v10565_v50 = vadd.f32 -1.0, %v11466_v13  ;;  %v9883_v41 = vsel %vm9803_vm10, %v17238_v45, %v10561_v59 }
 0x6b0   :  { %v9886_v14 = vsel %vm9806_vm9, %v17240_v43, %v10564_v16 }
 0x6b1   :  { %v10986_v57 = vpack.c.bf16 %v9886_v14, %v9882_v36  ;;  %v9887_v5 = vsel %vm9807_vm11, %v17243_v4, %v10565_v50 }
 0x6b2   :  { %10566 = vmatmul.mubr.msk.f32.vlgmr.msra.gmra.mrb[8].mxu0 %vm3110_vm13, %v9888_v2  ;;  %v10984_v33 = vpack.c.bf16 %v9887_v5, %v9883_v41 }
 0x6b4   :  { %10985 = vmatprep.subr.bf16.mxu1 %v10984_v33 }
 0x6b5   :  { %10987 = vmatpush1.bf16.msra.mxu1 %v10986_v57 }
 0x6b8   :  { %10567 = vmatmul.mubr.msk.f32.vlgmr.msra.gmra.mrb[8].mxu1 %vm3110_vm13, %v9888_v2 }
 0x785   :  { %v9964_v24 = vpop.f32.mrb[8].mxu0 }
 0x786   :  { %v9965_v43 = vadd.f32 %v9964_v24, %v9893_v19  ;;  %v9966_v47 = vpop.f32.mrb[9].mxu0 }
 0x787   :  { %v9967_v37 = vadd.f32 %v9966_v47, %v9893_v19 }
 0x788   :  { %v10044_v20 = vmin.f32 %v9965_v43, 0.0  ;;  %vm10040_vm13 = vcmp.gt.f32.partialorder %v9965_v43, 0.0 }
 0x789   :  { %v10045_v12 = vmin.f32 %v9967_v37, 0.0  ;;  %vm10041_vm12 = vcmp.gt.f32.partialorder %v9967_v37, 0.0 }
 0x78a   :  { %v10048_v18 = vmul.f32 1.442695, %v10044_v20 }
 0x78b   :  { %v10050_v53 = vmul.f32 1.442695, %v10045_v12  ;;  %v10035_v62 = vpop.f32.mrb[8].mxu1 }
 0x78c   :  { %11467 = vpow2.f32 %v10048_v18  ;;  %v10036_v45 = vadd.f32 %v10035_v62, %v9893_v19  ;;  %v10037_v54 = vpop.f32.mrb[9].mxu1 }
 0x78d   :  { %11469 = vpow2.f32 %v10050_v53  ;;  %v10038_v4 = vadd.f32 %v10037_v54, %v9893_v19 }
 0x78e   :  { %v10046_v42 = vmin.f32 %v10036_v45, 0.0  ;;  %vm10042_vm14 = vcmp.gt.f32.partialorder %v10036_v45, 0.0 }
 0x78f   :  { %v10047_v30 = vmin.f32 %v10038_v4, 0.0  ;;  %vm10043_vm0 = vcmp.gt.f32.partialorder %v10038_v4, 0.0 }
 0x790   :  { %v10052_v3 = vmul.f32 1.442695, %v10046_v42 }
 0x791   :  { %v10054_v28 = vmul.f32 1.442695, %v10047_v30 }
 0x792   :  { %11471 = vpow2.f32 %v10052_v3 }
 0x793   :  { %11473 = vpow2.f32 %v10054_v28 }
 0x796   :  { %v11468_v25 = vpop.eup %11467 }
 0x797   :  { %v11470_v27 = vpop.eup %11469  ;;  %v10568_v26 = vadd.f32 -1.0, %v11468_v25 }
 0x798   :  { %v10569_v32 = vadd.f32 -1.0, %v11470_v27 }
 0x799   :  { %v10060_v58 = vsel %vm10040_vm13, %v9965_v43, %v10568_v26 }
 0x79a   :  { %v10061_v61 = vsel %vm10041_vm12, %v9967_v37, %v10569_v32  ;;  %v10065_v17 = vsel %vm10064_vm15, %v10060_v58, 0.0 }
 0x79b   :  { %v10066_v63 = vsel %vm10064_vm15, %v10061_v61, 0.0 }
 0x79c   :  { %v11472_v1 = vpop.eup %11471  ;;  %v10067_v60 = vadd.f32 %v10066_v63, %v10065_v17 }
 0x79d   :  { %v11474_v31 = vpop.eup %11473  ;;  %v10570_v44 = vadd.f32 -1.0, %v11472_v1 }
 0x79e   :  { %v10571_v7 = vadd.f32 -1.0, %v11474_v31 }
 0x79f   :  { %v10062_v38 = vsel %vm10042_vm14, %v10036_v45, %v10570_v44 }
 0x7a0   :  { %v10068_v56 = vsel %vm10064_vm15, %v10062_v38, 0.0  ;;  %v10063_v23 = vsel %vm10043_vm0, %v10038_v4, %v10571_v7 }
 0x7a1   :  { %v10069_v52 = vadd.f32 %v10068_v56, %v10067_v60  ;;  %v10070_v15 = vsel %vm10064_vm15, %v10063_v23, 0.0 }
 0x7a3   :  { %v10071_v48 = vadd.f32 %v10070_v15, %v10069_v52 }
 0x7a5   :  { %10072 = vadd.xlane.f32.xlu0 %v10071_v48 }
 0x832   :  { %v10073_v29 = vpop.xlane.xlu0 %10072 }
 0x833   :  { %v10075_v8 = vmul.f32 0.001953125, %v10073_v29 }
 0x835   :  { %v10076_v0 = vsub.f32 %v10060_v58, %v10075_v8  ;;  %v10077_v22 = vsub.f32 %v10061_v61, %v10075_v8  ;;  %v10078_v39 = vsub.f32 %v10062_v38, %v10075_v8  ;;  %v10079_v21 = vsub.f32 %v10063_v23, %v10075_v8 }
 0x837   :  { %v10080_v34 = vmul.f32 %v10076_v0, %v10076_v0  ;;  %v10081_v49 = vmul.f32 %v10077_v22, %v10077_v22  ;;  %v10082_v51 = vmul.f32 %v10078_v39, %v10078_v39  ;;  %v10083_v6 = vmul.f32 %v10079_v21, %v10079_v21 }
 0x839   :  { %v10084_v9 = vsel %vm10064_vm15, %v10080_v34, 0.0  ;;  %v10085_v46 = vsel %vm10064_vm15, %v10081_v49, 0.0  ;;  %v10087_v40 = vsel %vm10064_vm15, %v10082_v51, 0.0  ;;  %v10089_v55 = vsel %vm10064_vm15, %v10083_v6, 0.0 }
 0x83a   :  { %v10086_v10 = vadd.f32 %v10085_v46, %v10084_v9 }
 0x83c   :  { %v10088_v35 = vadd.f32 %v10087_v40, %v10086_v10 }
 0x83e   :  { %v10090_v59 = vadd.f32 %v10089_v55, %v10088_v35 }
 0x840   :  { %10091 = vadd.xlane.f32.xlu1 %v10090_v59 }
 0x8cd   :  { %v10092_v16 = vpop.xlane.xlu1 %10091 }
 0x8ce   :  { %v10093_v13 = vmul.f32 0.001953125, %v10092_v16 }
 0x8d0   :  { %v10094_v2 = vadd.f32 1e-05, %v10093_v13 }
 0x8d2   :  { %11475 = vrsqrt.f32 %v10094_v2 }
 0x8dc   :  { %v11476_v36 = vpop.eup %11475 }
 0x8dd   :  { %v10096_v14 = vmul.f32 %v11476_v36, %v10076_v0  ;;  %v10097_v50 = vmul.f32 %v11476_v36, %v10077_v22  ;;  %v10098_v57 = vmul.f32 %v11476_v36, %v10078_v39  ;;  %v10099_v41 = vmul.f32 %v11476_v36, %v10079_v21 }
 0x8df   :  { %vm10100_vm1 = vcmp.gt.f32.partialorder %v10096_v14, 0.0  ;;  %vm10101_vm2 = vcmp.gt.f32.partialorder %v10097_v50, 0.0  ;;  %vm10102_vm3 = vcmp.gt.f32.partialorder %v10098_v57, 0.0  ;;  %vm10103_vm4 = vcmp.gt.f32.partialorder %v10099_v41, 0.0 }
 0x8e0   :  { %vm10104_vm5 = vcmp.lt.f32.partialorder %v10096_v14, 0.0  ;;  %vm10105_vm6 = vcmp.lt.f32.partialorder %v10097_v50, 0.0  ;;  %vm10106_vm7 = vcmp.lt.f32.partialorder %v10098_v57, 0.0  ;;  %vm10107_vm8 = vcmp.lt.f32.partialorder %v10099_v41, 0.0 }
 0x8e1   :  { %v10108_v5 = vsel %vm10104_vm5, -1.0, %v11552_v11  ;;  %v10109_v33 = vsel %vm10105_vm6, -1.0, %v11552_v11  ;;  %v10110_v19 = vsel %vm10106_vm7, -1.0, %v11552_v11  ;;  %v10111_v24 = vsel %vm10107_vm8, -1.0, %v11552_v11 }
 0x8e2   :  { %v10112_v43 = vsel %vm10100_vm1, 1.0, %v10108_v5  ;;  %v10113_v47 = vsel %vm10101_vm2, 1.0, %v10109_v33  ;;  %v10114_v37 = vsel %vm10102_vm3, 1.0, %v10110_v19  ;;  %v10115_v20 = vsel %vm10103_vm4, 1.0, %v10111_v24 }
 0x8e3   :  { %v10120_v12 = vcombine.low %v10112_v43, %v10113_v47  ;;  %v10121_v18 = vcombine.low %v10114_v37, %v10115_v20 }
 0x8e5   :  { %10124 = vst [vmem:[#allocation5] sm:$0x77] %v10120_v12  ;;  %10125 = vst [vmem:[#allocation5 + $0x8] sm:$0x77] %v10121_v18 }
 0x8e6   :  { %11510 = shalt.err (!%p11507_p12)
}
 0x8e7   :  { %s11511_s29 = scalar_lea.hbm %s17320_s8, 256 }
 0x8e8   :  { %p11512_p13 = scmp.ne.s32.totalorder %s17320_s8, %s11511_s29  ;;  %p11515_p0 = scmp.lt.u32.totalorder %s11511_s29, %s17320_s8 }
 0x8ea   :  { %p11517_p1 = pnand %p11515_p0, %p11512_p13 }
 0x8ec   :  { %11520 = shalt.err (!%p11517_p1)
}
 0x8ed   :  { %10135 = dma.vmem_to_hbm [thread:$0]  %s10133_s26, 256, %s17320_s8, [#allocation4]  }
 0x8ee   :  { %11523 = dma.done.wait [#allocation4], 256  }
 0x8ef   :  { %11524 = vsyncadd [#allocation4], 4294967040 }
 0x8f0   :  { %10139 = vsyncpa [#allocation3], 1 }
 0x8f1   :  { %10140 = vsyncpa [#allocation4], 1 }

</bundles_post_ra>
